<compile_context>
chip_gen: v7x
topology: tpu7x:2x2x1
jax: 0.10.0
libtpu: 0.0.40
codegen_flags: <defaults>
</compile_context>

<pallas_src>
import jax
import jax.numpy as jnp
from jax import lax
from jax.experimental import pallas as pl
from jax.experimental.pallas import tpu as pltpu


# ----------------------------------------------------------------------------
# Glue (plain JAX): im2col and weight reshaping.  Patch ordering is
# (kh, kw, cin) along K, matching the weight matrix built by `_w_mat`.
# ----------------------------------------------------------------------------
def _im2col(x_nhwc, *, pad, ksize=4, stride=2):
    """(N,H,W,C) -> ((N*Ho*Wo, ksize*ksize*C), Ho, Wo)."""
    N, H, W, C = x_nhwc.shape
    Ho = (H + 2 * pad - ksize) // stride + 1
    Wo = (W + 2 * pad - ksize) // stride + 1
    xp = jnp.pad(x_nhwc, ((0, 0), (pad, pad), (pad, pad), (0, 0)))
    cols = []
    for i in range(ksize):
        for j in range(ksize):
            cols.append(lax.slice(
                xp,
                (0, i, j, 0),
                (N, i + stride * (Ho - 1) + 1, j + stride * (Wo - 1) + 1, C),
                (1, stride, stride, 1)))                     # (N, Ho, Wo, C)
    patches = jnp.stack(cols, axis=3).reshape(N * Ho * Wo, ksize * ksize * C)
    return patches, Ho, Wo


def _w_mat(w_pt):
    """PyTorch (Cout,Cin,KH,KW) -> (KH*KW*Cin, Cout), matching _im2col order."""
    Cout, Cin, KH, KW = w_pt.shape
    return jnp.transpose(w_pt, (2, 3, 1, 0)).reshape(KH * KW * Cin, Cout)


# ----------------------------------------------------------------------------
# Layer 1: conv + bias + LeakyReLU.  M-tiled, parallel grid, bf16 MXU operands.
# ----------------------------------------------------------------------------
def _l1_kernel(p_ref, w_ref, b_ref, o_ref):
    y = jnp.dot(p_ref[...], w_ref[...], preferred_element_type=jnp.float32)
    y = y + b_ref[...]                       # (1, Cout) broadcast, f32
    y = jnp.where(y > 0, y, 0.2 * y)         # LeakyReLU(0.2) in f32
    o_ref[...] = y.astype(o_ref.dtype)


def conv1(x_nhwc, w_pt, bias):
    N = x_nhwc.shape[0]
    Cout = int(w_pt.shape[0])
    patches, Ho, Wo = _im2col(x_nhwc, pad=1)
    M, K = patches.shape                     # K = 4*4*3 = 48
    K_PAD = 128                              # lane-dense contraction dim
    patches = jnp.pad(patches, ((0, 0), (0, K_PAD - K))).astype(jnp.bfloat16)
    w = jnp.pad(_w_mat(w_pt), ((0, K_PAD - K), (0, 0))).astype(jnp.bfloat16)
    b = bias.reshape(1, Cout).astype(jnp.float32)

    tile_m = next(t for t in (512, 256, 128, 64, 32, 16, 8, M) if M % t == 0)
    out = pl.pallas_call(
        _l1_kernel,
        out_shape=jax.ShapeDtypeStruct((M, Cout), jnp.bfloat16),
        grid=(M // tile_m,),
        in_specs=[
            pl.BlockSpec((tile_m, K_PAD), lambda i: (i, 0)),
            pl.BlockSpec((K_PAD, Cout), lambda i: (0, 0)),
            pl.BlockSpec((1, Cout), lambda i: (0, 0)),
        ],
        out_specs=pl.BlockSpec((tile_m, Cout), lambda i: (i, 0)),
        compiler_params=pltpu.CompilerParams(
            dimension_semantics=("parallel",)),
    )(patches, w, b)
    return out.reshape(N, Ho, Wo, Cout)


# ----------------------------------------------------------------------------
# Layers 2 & 3: conv (no bias) + BatchNorm (batch stats) + LeakyReLU.
# Whole layer fits in VMEM -> single-block call; BN needs full-M stats anyway.
# ----------------------------------------------------------------------------
def _make_bn_conv_kernel(m_rows):
    inv_m = 1.0 / m_rows

    def kernel(p_ref, w_ref, g_ref, be_ref, o_ref):
        y = jnp.dot(p_ref[...], w_ref[...], preferred_element_type=jnp.float32)
        mean = jnp.sum(y, axis=0, keepdims=True) * inv_m
        cent = y - mean
        var = jnp.sum(cent * cent, axis=0, keepdims=True) * inv_m
        y = cent * lax.rsqrt(var + 1e-5) * g_ref[...] + be_ref[...]
        y = jnp.where(y > 0, y, 0.2 * y)
        o_ref[...] = y.astype(o_ref.dtype)

    return kernel


def conv_bn_lrelu(x_nhwc, w_pt, gamma, beta):
    N = x_nhwc.shape[0]
    Cout = int(w_pt.shape[0])
    patches, Ho, Wo = _im2col(x_nhwc, pad=1)
    M = patches.shape[0]

    vmem = pl.BlockSpec(memory_space=pltpu.MemorySpace.VMEM)
    out = pl.pallas_call(
        _make_bn_conv_kernel(float(M)),
        out_shape=jax.ShapeDtypeStruct((M, Cout), jnp.bfloat16),
        in_specs=[vmem] * 4,
        out_specs=vmem,
    )(patches.astype(jnp.bfloat16),
      _w_mat(w_pt).astype(jnp.bfloat16),
      gamma.reshape(1, Cout).astype(jnp.float32),
      beta.reshape(1, Cout).astype(jnp.float32))
    return out.reshape(N, Ho, Wo, Cout)


# ----------------------------------------------------------------------------
# Fused layers 4 + 5: conv4 + BN + LeakyReLU, then the 4x4/s2/p0 Cout=1 conv
# (which on a 4x4 map is just a full dot product per image) + bias + sigmoid.
# Layer-4 activation (32, 512) never leaves VMEM; layer 5 runs on the VPU as
# elementwise multiply + reduction (no 1-lane matmul output / masked stores).
# ----------------------------------------------------------------------------
def _make_tail_kernel(m_rows):
    inv_m = 1.0 / m_rows

    def kernel(p_ref, w4_ref, g_ref, be_ref, w5_ref, sel_ref, b5_ref, o_ref):
        # ---- layer 4: conv + BatchNorm(batch stats) + LeakyReLU, f32 accum
        y = jnp.dot(p_ref[...], w4_ref[...], preferred_element_type=jnp.float32)
        mean = jnp.sum(y, axis=0, keepdims=True) * inv_m
        cent = y - mean
        var = jnp.sum(cent * cent, axis=0, keepdims=True) * inv_m
        y = cent * lax.rsqrt(var + 1e-5) * g_ref[...] + be_ref[...]
        y = jnp.where(y > 0, y, 0.2 * y)                 # (M4, 512), stays in VMEM

        # ---- layer 5: out[n] = sum_{tap,c} y[n*16+tap, c] * w5[tap, c] + b5
        prod = y * w5_ref[...]                           # (M4, 512) VPU
        per_img = jnp.dot(sel_ref[...], prod,            # (N, 512) group-sum rows
                          preferred_element_type=jnp.float32)
        logit = jnp.sum(per_img, axis=1, keepdims=True) + b5_ref[...]   # (N, 1)
        o_ref[...] = jax.nn.sigmoid(logit).astype(o_ref.dtype)

    return kernel


def conv4_and_5(x_nhwc, w4_pt, gamma4, beta4, w5_pt, b5):
    N = x_nhwc.shape[0]
    C4 = int(w4_pt.shape[0])                              # 512
    patches, Ho, Wo = _im2col(x_nhwc, pad=1)              # layer-4 im2col
    assert Ho == 4 and Wo == 4, "fused tail assumes image_size=64"
    M4 = patches.shape[0]                                 # N * 16
    hw = Ho * Wo                                          # 16 == layer-5 taps

    # Layer-5 weight as a (taps, C4) matrix (tap = kh*4+kw), replicated per image
    # so rows line up with the layer-4 output rows (n, ho, wo).
    w5_taps = jnp.transpose(w5_pt[0], (1, 2, 0)).reshape(hw, C4)
    w5_rep = jnp.tile(w5_taps, (N, 1)).astype(jnp.float32)           # (M4, C4)
    sel = (jnp.arange(M4)[None, :] // hw ==
           jnp.arange(N)[:, None]).astype(jnp.float32)               # (N, M4)
    b5v = b5.reshape(1, 1).astype(jnp.float32)

    vmem = pl.BlockSpec(memory_space=pltpu.MemorySpace.VMEM)
    out = pl.pallas_call(
        _make_tail_kernel(float(M4)),
        out_shape=jax.ShapeDtypeStruct((N, 1), jnp.float32),
        in_specs=[vmem] * 7,
        out_specs=vmem,
    )(patches.astype(jnp.bfloat16),
      _w_mat(w4_pt).astype(jnp.bfloat16),
      gamma4.reshape(1, C4).astype(jnp.float32),
      beta4.reshape(1, C4).astype(jnp.float32),
      w5_rep, sel, b5v)
    return out                                            # (N, 1)


# ----------------------------------------------------------------------------
# Parameters and forward pass
# ----------------------------------------------------------------------------
def init_discriminator_params(key, image_size=64):
    """Synthetic init matching the module: conv W ~ N(0,0.02), BN gamma ~ N(1,0.02)."""
    hidden = 64 // (image_size // 64)
    chans = [3, hidden, hidden * 2, hidden * 4, hidden * 8, 1]
    params = []
    for li in range(5):
        cin, cout = chans[li], chans[li + 1]
        key, kw, kg = jax.random.split(key, 3)
        w = 0.02 * jax.random.normal(kw, (cout, cin, 4, 4), jnp.float32)
        gamma = 1.0 + 0.02 * jax.random.normal(kg, (cout,), jnp.float32)
        params.append(dict(
            w=w,
            b=jnp.zeros((cout,), jnp.float32),
            gamma=gamma,
            beta=jnp.zeros((cout,), jnp.float32),
        ))
    return params


def discriminator_forward(x_nchw, params):
    """Forward pass (as_critic=False). Input NCHW, output NCHW (N, 1, 1, 1)."""
    x = jnp.transpose(x_nchw, (0, 2, 3, 1))               # NCHW -> NHWC
    p1, p2, p3, p4, p5 = params
    x = conv1(x, p1["w"], p1["b"])                        # (N, 32, 32, 64)  bf16
    x = conv_bn_lrelu(x, p2["w"], p2["gamma"], p2["beta"])  # (N, 16, 16, 128)
    x = conv_bn_lrelu(x, p3["w"], p3["gamma"], p3["beta"])  # (N, 8, 8, 256)
    out = conv4_and_5(x, p4["w"], p4["gamma"], p4["beta"],
                      p5["w"], p5["b"])                   # (N, 1)
    return out.reshape(-1, 1, 1, 1)                       # NCHW (N, 1, 1, 1)


if __name__ == "__main__":
    key = jax.random.PRNGKey(0)
    key_x, key_p = jax.random.split(key)

    image_size = 64                    # smallest size consistent with the module
    batch = 2
    x = jax.random.normal(key_x, (batch, 3, image_size, image_size), jnp.float32)
    params = init_discriminator_params(key_p, image_size=image_size)

    fwd = jax.jit(discriminator_forward)
    out = jax.block_until_ready(fwd(x, params))

    assert out.shape == (batch, 1, 1, 1), out.shape
    assert bool(jnp.all(jnp.isfinite(out)))
    assert bool(jnp.all((out >= 0.0) & (out <= 1.0)))     # sigmoid output range
    print("KERNEL_OK")
</pallas_src>

<mosaic_0001>
module attributes {stable_mosaic.version = 11 : i64} {
  func.func @_l1_kernel(%arg0: i32, %arg1: memref<512x128xbf16, #tpu.memory_space<vmem>>, %arg2: memref<128x64xbf16, #tpu.memory_space<vmem>>, %arg3: memref<1x64xf32, #tpu.memory_space<vmem>>, %arg4: memref<512x64xbf16, #tpu.memory_space<vmem>>) attributes {dimension_semantics = [#tpu.dimension_semantics<parallel>], iteration_bounds = array<i64: 4>, scalar_prefetch = 0 : i64, scratch_operands = 0 : i64, tpu.core_type = #tpu.core_type<tc>, window_params = [{transform_indices = @transform_0, window_bounds = array<i64: 512, 128>}, {pipeline_mode = #tpu.pipeline_mode<synchronous>, transform_indices = @transform_1, window_bounds = array<i64: 128, 64>}, {pipeline_mode = #tpu.pipeline_mode<synchronous>, transform_indices = @transform_2, window_bounds = array<i64: 1, 64>}, {transform_indices = @transform_3, window_bounds = array<i64: 512, 64>}]} {
    %c0 = arith.constant 0 : index
    %c0_0 = arith.constant 0 : index
    %0 = vector.load %arg1[%c0, %c0_0] : memref<512x128xbf16, #tpu.memory_space<vmem>>, vector<512x128xbf16>
    %c0_1 = arith.constant 0 : index
    %c0_2 = arith.constant 0 : index
    %1 = vector.load %arg2[%c0_1, %c0_2] : memref<128x64xbf16, #tpu.memory_space<vmem>>, vector<128x64xbf16>
    %cst = arith.constant dense<0.000000e+00> : vector<512x64xf32>
    %2 = tpu.matmul %0, %1, %cst {dimension_numbers = #tpu.dot_dimension_numbers<[1], [0], [0], [1], [0, 0, 1, 1], [], []>} : vector<512x128xbf16>, vector<128x64xbf16>, vector<512x64xf32> -> vector<512x64xf32>
    %c0_3 = arith.constant 0 : index
    %c0_4 = arith.constant 0 : index
    %3 = vector.load %arg3[%c0_3, %c0_4] : memref<1x64xf32, #tpu.memory_space<vmem>>, vector<1x64xf32>
    %4 = vector.broadcast %3 : vector<1x64xf32> to vector<512x64xf32>
    %5 = arith.addf %2, %4 : vector<512x64xf32>
    %cst_5 = arith.constant 0.000000e+00 : f32
    %6 = vector.broadcast %cst_5 : f32 to vector<512x64xf32>
    %7 = arith.cmpf ogt, %5, %6 : vector<512x64xf32>
    %cst_6 = arith.constant 2.000000e-01 : f32
    %8 = vector.broadcast %cst_6 : f32 to vector<512x64xf32>
    %9 = arith.mulf %8, %5 : vector<512x64xf32>
    %10 = arith.select %7, %5, %9 : vector<512x64xi1>, vector<512x64xf32>
    %11 = arith.truncf %10 : vector<512x64xf32> to vector<512x64xbf16>
    %c0_7 = arith.constant 0 : index
    %c0_8 = arith.constant 0 : index
    %12 = vector.load %arg4[%c0_7, %c0_8] : memref<512x64xbf16, #tpu.memory_space<vmem>>, vector<512x64xbf16>
    tpu.vector_store %arg4[%c0_7, %c0_8], %11 {strides = array<i32>} : memref<512x64xbf16, #tpu.memory_space<vmem>>, vector<512x64xbf16>,
    return
  }
  func.func @transform_0(%arg0: i32) -> (i32, i32) {
    %c0_i32 = arith.constant 0 : i32
    %c0_i32_0 = arith.constant 0 : i32
    return %arg0, %c0_i32 : i32, i32
  }
  func.func @transform_1(%arg0: i32) -> (i32, i32) {
    %c0_i32 = arith.constant 0 : i32
    %c0_i32_0 = arith.constant 0 : i32
    %c0_i32_1 = arith.constant 0 : i32
    return %c0_i32, %c0_i32_0 : i32, i32
  }
  func.func @transform_2(%arg0: i32) -> (i32, i32) {
    %c0_i32 = arith.constant 0 : i32
    %c0_i32_0 = arith.constant 0 : i32
    %c0_i32_1 = arith.constant 0 : i32
    return %c0_i32, %c0_i32_0 : i32, i32
  }
  func.func @transform_3(%arg0: i32) -> (i32, i32) {
    %c0_i32 = arith.constant 0 : i32
    %c0_i32_0 = arith.constant 0 : i32
    return %arg0, %c0_i32 : i32, i32
  }
}

module attributes {stable_mosaic.version = 11 : i64} {
  func.func @kernel(%arg0: memref<512x1024xbf16, #tpu.memory_space<vmem>>, %arg1: memref<1024x128xbf16, #tpu.memory_space<vmem>>, %arg2: memref<1x128xf32, #tpu.memory_space<vmem>>, %arg3: memref<1x128xf32, #tpu.memory_space<vmem>>, %arg4: memref<512x128xbf16, #tpu.memory_space<vmem>>) attributes {dimension_semantics = [], scalar_prefetch = 0 : i64, scratch_operands = 0 : i64, tpu.core_type = #tpu.core_type<tc>} {
    %c0 = arith.constant 0 : index
    %c0_0 = arith.constant 0 : index
    %0 = vector.load %arg0[%c0, %c0_0] : memref<512x1024xbf16, #tpu.memory_space<vmem>>, vector<512x1024xbf16>
    %c0_1 = arith.constant 0 : index
    %c0_2 = arith.constant 0 : index
    %1 = vector.load %arg1[%c0_1, %c0_2] : memref<1024x128xbf16, #tpu.memory_space<vmem>>, vector<1024x128xbf16>
    %cst = arith.constant dense<0.000000e+00> : vector<512x128xf32>
    %2 = tpu.matmul %0, %1, %cst {dimension_numbers = #tpu.dot_dimension_numbers<[1], [0], [0], [1], [0, 0, 1, 1], [], []>} : vector<512x1024xbf16>, vector<1024x128xbf16>, vector<512x128xf32> -> vector<512x128xf32>
    %cst_3 = arith.constant dense<0.000000e+00> : vector<128xf32>
    %3 = vector.multi_reduction <add>, %2, %cst_3 [0] : vector<512x128xf32> to vector<128xf32>
    %4 = vector.shape_cast %3 : vector<128xf32> to vector<1x128xf32>
    %cst_4 = arith.constant 0.001953125 : f32
    %5 = vector.broadcast %cst_4 : f32 to vector<1x128xf32>
    %6 = arith.mulf %4, %5 : vector<1x128xf32>
    %7 = vector.broadcast %6 : vector<1x128xf32> to vector<512x128xf32>
    %8 = arith.subf %2, %7 : vector<512x128xf32>
    %9 = arith.mulf %8, %8 : vector<512x128xf32>
    %cst_5 = arith.constant dense<0.000000e+00> : vector<128xf32>
    %10 = vector.multi_reduction <add>, %9, %cst_5 [0] : vector<512x128xf32> to vector<128xf32>
    %11 = vector.shape_cast %10 : vector<128xf32> to vector<1x128xf32>
    %cst_6 = arith.constant 0.001953125 : f32
    %12 = vector.broadcast %cst_6 : f32 to vector<1x128xf32>
    %13 = arith.mulf %11, %12 : vector<1x128xf32>
    %cst_7 = arith.constant 9.99999974E-6 : f32
    %14 = vector.broadcast %cst_7 : f32 to vector<1x128xf32>
    %15 = arith.addf %13, %14 : vector<1x128xf32>
    %16 = math.rsqrt %15 : vector<1x128xf32>
    %17 = vector.broadcast %16 : vector<1x128xf32> to vector<512x128xf32>
    %18 = arith.mulf %8, %17 : vector<512x128xf32>
    %c0_8 = arith.constant 0 : index
    %c0_9 = arith.constant 0 : index
    %19 = vector.load %arg2[%c0_8, %c0_9] : memref<1x128xf32, #tpu.memory_space<vmem>>, vector<1x128xf32>
    %20 = vector.broadcast %19 : vector<1x128xf32> to vector<512x128xf32>
    %21 = arith.mulf %18, %20 : vector<512x128xf32>
    %c0_10 = arith.constant 0 : index
    %c0_11 = arith.constant 0 : index
    %22 = vector.load %arg3[%c0_10, %c0_11] : memref<1x128xf32, #tpu.memory_space<vmem>>, vector<1x128xf32>
    %23 = vector.broadcast %22 : vector<1x128xf32> to vector<512x128xf32>
    %24 = arith.addf %21, %23 : vector<512x128xf32>
    %cst_12 = arith.constant 0.000000e+00 : f32
    %25 = vector.broadcast %cst_12 : f32 to vector<512x128xf32>
    %26 = arith.cmpf ogt, %24, %25 : vector<512x128xf32>
    %cst_13 = arith.constant 2.000000e-01 : f32
    %27 = vector.broadcast %cst_13 : f32 to vector<512x128xf32>
    %28 = arith.mulf %27, %24 : vector<512x128xf32>
    %29 = arith.select %26, %24, %28 : vector<512x128xi1>, vector<512x128xf32>
    %30 = arith.truncf %29 : vector<512x128xf32> to vector<512x128xbf16>
    %c0_14 = arith.constant 0 : index
    %c0_15 = arith.constant 0 : index
    %31 = vector.load %arg4[%c0_14, %c0_15] : memref<512x128xbf16, #tpu.memory_space<vmem>>, vector<512x128xbf16>
    tpu.vector_store %arg4[%c0_14, %c0_15], %30 {strides = array<i32>} : memref<512x128xbf16, #tpu.memory_space<vmem>>, vector<512x128xbf16>,
    return
  }
}

module attributes {stable_mosaic.version = 11 : i64} {
  func.func @kernel(%arg0: memref<128x2048xbf16, #tpu.memory_space<vmem>>, %arg1: memref<2048x256xbf16, #tpu.memory_space<vmem>>, %arg2: memref<1x256xf32, #tpu.memory_space<vmem>>, %arg3: memref<1x256xf32, #tpu.memory_space<vmem>>, %arg4: memref<128x256xbf16, #tpu.memory_space<vmem>>) attributes {dimension_semantics = [], scalar_prefetch = 0 : i64, scratch_operands = 0 : i64, tpu.core_type = #tpu.core_type<tc>} {
    %c0 = arith.constant 0 : index
    %c0_0 = arith.constant 0 : index
    %0 = vector.load %arg0[%c0, %c0_0] : memref<128x2048xbf16, #tpu.memory_space<vmem>>, vector<128x2048xbf16>
    %c0_1 = arith.constant 0 : index
    %c0_2 = arith.constant 0 : index
    %1 = vector.load %arg1[%c0_1, %c0_2] : memref<2048x256xbf16, #tpu.memory_space<vmem>>, vector<2048x256xbf16>
    %cst = arith.constant dense<0.000000e+00> : vector<128x256xf32>
    %2 = tpu.matmul %0, %1, %cst {dimension_numbers = #tpu.dot_dimension_numbers<[1], [0], [0], [1], [0, 0, 1, 1], [], []>} : vector<128x2048xbf16>, vector<2048x256xbf16>, vector<128x256xf32> -> vector<128x256xf32>
    %cst_3 = arith.constant dense<0.000000e+00> : vector<256xf32>
    %3 = vector.multi_reduction <add>, %2, %cst_3 [0] : vector<128x256xf32> to vector<256xf32>
    %4 = vector.shape_cast %3 : vector<256xf32> to vector<1x256xf32>
    %cst_4 = arith.constant 7.812500e-03 : f32
    %5 = vector.broadcast %cst_4 : f32 to vector<1x256xf32>
    %6 = arith.mulf %4, %5 : vector<1x256xf32>
    %7 = vector.broadcast %6 : vector<1x256xf32> to vector<128x256xf32>
    %8 = arith.subf %2, %7 : vector<128x256xf32>
    %9 = arith.mulf %8, %8 : vector<128x256xf32>
    %cst_5 = arith.constant dense<0.000000e+00> : vector<256xf32>
    %10 = vector.multi_reduction <add>, %9, %cst_5 [0] : vector<128x256xf32> to vector<256xf32>
    %11 = vector.shape_cast %10 : vector<256xf32> to vector<1x256xf32>
    %cst_6 = arith.constant 7.812500e-03 : f32
    %12 = vector.broadcast %cst_6 : f32 to vector<1x256xf32>
    %13 = arith.mulf %11, %12 : vector<1x256xf32>
    %cst_7 = arith.constant 9.99999974E-6 : f32
    %14 = vector.broadcast %cst_7 : f32 to vector<1x256xf32>
    %15 = arith.addf %13, %14 : vector<1x256xf32>
    %16 = math.rsqrt %15 : vector<1x256xf32>
    %17 = vector.broadcast %16 : vector<1x256xf32> to vector<128x256xf32>
    %18 = arith.mulf %8, %17 : vector<128x256xf32>
    %c0_8 = arith.constant 0 : index
    %c0_9 = arith.constant 0 : index
    %19 = vector.load %arg2[%c0_8, %c0_9] : memref<1x256xf32, #tpu.memory_space<vmem>>, vector<1x256xf32>
    %20 = vector.broadcast %19 : vector<1x256xf32> to vector<128x256xf32>
    %21 = arith.mulf %18, %20 : vector<128x256xf32>
    %c0_10 = arith.constant 0 : index
    %c0_11 = arith.constant 0 : index
    %22 = vector.load %arg3[%c0_10, %c0_11] : memref<1x256xf32, #tpu.memory_space<vmem>>, vector<1x256xf32>
    %23 = vector.broadcast %22 : vector<1x256xf32> to vector<128x256xf32>
    %24 = arith.addf %21, %23 : vector<128x256xf32>
    %cst_12 = arith.constant 0.000000e+00 : f32
    %25 = vector.broadcast %cst_12 : f32 to vector<128x256xf32>
    %26 = arith.cmpf ogt, %24, %25 : vector<128x256xf32>
    %cst_13 = arith.constant 2.000000e-01 : f32
    %27 = vector.broadcast %cst_13 : f32 to vector<128x256xf32>
    %28 = arith.mulf %27, %24 : vector<128x256xf32>
    %29 = arith.select %26, %24, %28 : vector<128x256xi1>, vector<128x256xf32>
    %30 = arith.truncf %29 : vector<128x256xf32> to vector<128x256xbf16>
    %c0_14 = arith.constant 0 : index
    %c0_15 = arith.constant 0 : index
    %31 = vector.load %arg4[%c0_14, %c0_15] : memref<128x256xbf16, #tpu.memory_space<vmem>>, vector<128x256xbf16>
    tpu.vector_store %arg4[%c0_14, %c0_15], %30 {strides = array<i32>} : memref<128x256xbf16, #tpu.memory_space<vmem>>, vector<128x256xbf16>,
    return
  }
}

module attributes {stable_mosaic.version = 11 : i64} {
  func.func @kernel(%arg0: memref<32x4096xbf16, #tpu.memory_space<vmem>>, %arg1: memref<4096x512xbf16, #tpu.memory_space<vmem>>, %arg2: memref<1x512xf32, #tpu.memory_space<vmem>>, %arg3: memref<1x512xf32, #tpu.memory_space<vmem>>, %arg4: memref<32x512xf32, #tpu.memory_space<vmem>>, %arg5: memref<2x32xf32, #tpu.memory_space<vmem>>, %arg6: memref<1x1xf32, #tpu.memory_space<vmem>>, %arg7: memref<2x1xf32, #tpu.memory_space<vmem>>) attributes {dimension_semantics = [], scalar_prefetch = 0 : i64, scratch_operands = 0 : i64, tpu.core_type = #tpu.core_type<tc>} {
    %c0 = arith.constant 0 : index
    %c0_0 = arith.constant 0 : index
    %0 = vector.load %arg0[%c0, %c0_0] : memref<32x4096xbf16, #tpu.memory_space<vmem>>, vector<32x4096xbf16>
    %c0_1 = arith.constant 0 : index
    %c0_2 = arith.constant 0 : index
    %1 = vector.load %arg1[%c0_1, %c0_2] : memref<4096x512xbf16, #tpu.memory_space<vmem>>, vector<4096x512xbf16>
    %cst = arith.constant dense<0.000000e+00> : vector<32x512xf32>
    %2 = tpu.matmul %0, %1, %cst {dimension_numbers = #tpu.dot_dimension_numbers<[1], [0], [0], [1], [0, 0, 1, 1], [], []>} : vector<32x4096xbf16>, vector<4096x512xbf16>, vector<32x512xf32> -> vector<32x512xf32>
    %cst_3 = arith.constant dense<0.000000e+00> : vector<512xf32>
    %3 = vector.multi_reduction <add>, %2, %cst_3 [0] : vector<32x512xf32> to vector<512xf32>
    %4 = vector.shape_cast %3 : vector<512xf32> to vector<1x512xf32>
    %cst_4 = arith.constant 3.125000e-02 : f32
    %5 = vector.broadcast %cst_4 : f32 to vector<1x512xf32>
    %6 = arith.mulf %4, %5 : vector<1x512xf32>
    %7 = vector.broadcast %6 : vector<1x512xf32> to vector<32x512xf32>
    %8 = arith.subf %2, %7 : vector<32x512xf32>
    %9 = arith.mulf %8, %8 : vector<32x512xf32>
    %cst_5 = arith.constant dense<0.000000e+00> : vector<512xf32>
    %10 = vector.multi_reduction <add>, %9, %cst_5 [0] : vector<32x512xf32> to vector<512xf32>
    %11 = vector.shape_cast %10 : vector<512xf32> to vector<1x512xf32>
    %cst_6 = arith.constant 3.125000e-02 : f32
    %12 = vector.broadcast %cst_6 : f32 to vector<1x512xf32>
    %13 = arith.mulf %11, %12 : vector<1x512xf32>
    %cst_7 = arith.constant 9.99999974E-6 : f32
    %14 = vector.broadcast %cst_7 : f32 to vector<1x512xf32>
    %15 = arith.addf %13, %14 : vector<1x512xf32>
    %16 = math.rsqrt %15 : vector<1x512xf32>
    %17 = vector.broadcast %16 : vector<1x512xf32> to vector<32x512xf32>
    %18 = arith.mulf %8, %17 : vector<32x512xf32>
    %c0_8 = arith.constant 0 : index
    %c0_9 = arith.constant 0 : index
    %19 = vector.load %arg2[%c0_8, %c0_9] : memref<1x512xf32, #tpu.memory_space<vmem>>, vector<1x512xf32>
    %20 = vector.broadcast %19 : vector<1x512xf32> to vector<32x512xf32>
    %21 = arith.mulf %18, %20 : vector<32x512xf32>
    %c0_10 = arith.constant 0 : index
    %c0_11 = arith.constant 0 : index
    %22 = vector.load %arg3[%c0_10, %c0_11] : memref<1x512xf32, #tpu.memory_space<vmem>>, vector<1x512xf32>
    %23 = vector.broadcast %22 : vector<1x512xf32> to vector<32x512xf32>
    %24 = arith.addf %21, %23 : vector<32x512xf32>
    %cst_12 = arith.constant 0.000000e+00 : f32
    %25 = vector.broadcast %cst_12 : f32 to vector<32x512xf32>
    %26 = arith.cmpf ogt, %24, %25 : vector<32x512xf32>
    %cst_13 = arith.constant 2.000000e-01 : f32
    %27 = vector.broadcast %cst_13 : f32 to vector<32x512xf32>
    %28 = arith.mulf %27, %24 : vector<32x512xf32>
    %29 = arith.select %26, %24, %28 : vector<32x512xi1>, vector<32x512xf32>
    %c0_14 = arith.constant 0 : index
    %c0_15 = arith.constant 0 : index
    %30 = vector.load %arg4[%c0_14, %c0_15] : memref<32x512xf32, #tpu.memory_space<vmem>>, vector<32x512xf32>
    %31 = arith.mulf %29, %30 : vector<32x512xf32>
    %c0_16 = arith.constant 0 : index
    %c0_17 = arith.constant 0 : index
    %32 = vector.load %arg5[%c0_16, %c0_17] : memref<2x32xf32, #tpu.memory_space<vmem>>, vector<2x32xf32>
    %cst_18 = arith.constant dense<0.000000e+00> : vector<2x512xf32>
    %33 = tpu.matmul %32, %31, %cst_18 {dimension_numbers = #tpu.dot_dimension_numbers<[1], [0], [0], [1], [0, 0, 1, 1], [], []>} : vector<2x32xf32>, vector<32x512xf32>, vector<2x512xf32> -> vector<2x512xf32>
    %cst_19 = arith.constant dense<0.000000e+00> : vector<2xf32>
    %34 = vector.multi_reduction <add>, %33, %cst_19 [1] : vector<2x512xf32> to vector<2xf32>
    %35 = vector.shape_cast %34 : vector<2xf32> to vector<2x1xf32>
    %c0_20 = arith.constant 0 : index
    %c0_21 = arith.constant 0 : index
    %36 = vector.load %arg6[%c0_20, %c0_21] : memref<1x1xf32, #tpu.memory_space<vmem>>, vector<1x1xf32>
    %37 = vector.broadcast %36 : vector<1x1xf32> to vector<2x1xf32>
    %38 = arith.addf %35, %37 : vector<2x1xf32>
    %39 = arith.negf %38 : vector<2x1xf32>
    %40 = math.exp %39 : vector<2x1xf32>
    %cst_22 = arith.constant 1.000000e+00 : f32
    %41 = vector.broadcast %cst_22 : f32 to vector<2x1xf32>
    %42 = arith.addf %41, %40 : vector<2x1xf32>
    %43 = arith.divf %41, %42 : vector<2x1xf32>
    %c0_23 = arith.constant 0 : index
    %c0_24 = arith.constant 0 : index
    %44 = vector.load %arg7[%c0_23, %c0_24] : memref<2x1xf32, #tpu.memory_space<vmem>>, vector<2x1xf32>
    tpu.vector_store %arg7[%c0_23, %c0_24], %43 {strides = array<i32>} : memref<2x1xf32, #tpu.memory_space<vmem>>, vector<2x1xf32>,
    return
  }
}

</mosaic_0001>

<bundles_post_ra>
// kernel: discriminator_forward.4
= control target key start
LH: loop header
LB: loop body
LE: loop exit
PB: predicated region body
PF: predicated region fallthrough
CT: control target
= control target key end

     0   :  { %s1752_s12 = smov 0   ;;  %s2112_s0 = inlined_call_operand.vmem [shape: bf16[2048,128], index: 0, kind: input, shape index: {}]   ;;  %s2113_s1 = inlined_call_operand.vmem [shape: bf16[128,64], index: 1, kind: input, shape index: {}]   ;;  %s2114_s2 = inlined_call_operand.vmem [shape: f32[1,64], index: 2, kind: input, shape index: {}]   ;;  %s2115_s3 = inlined_call_operand.vmem [shape: bf16[2048,64], index: 3, kind: output, shape index: {}]  }
   0x1 LB: > { %s1360_s13 = sadd.s32 4294967295, %s1730_s12   ;;  %p1364_p0 = scmp.ge.s32.totalorder %s1730_s12, 1  ;;  %s1730_s12 = sphi %s1752_s12, %s13_s12  }
   0x2   : > { %p138_p1 = scmp.lt.s32.totalorder %s1730_s12, 5 }
   0x4   : > { %p139_p2 = pnand %p1364_p0, %p138_p1 }
   0x5   : > { %v1684_v0 = vld [vmem:[%s2113_s1] sm:$0xff] (!%p139_p2)   ;;  %s1365_s16 = sshll.u32 (!%p139_p2), %s1360_s13, 6  ;;  %v1685_v1 = vld [vmem:[%s2113_s1 + $0x8] sm:$0xff] (!%p139_p2)   ;;  %v1686_v2 = vld [vmem:[%s2113_s1 + $0x10] sm:$0xff] (!%p139_p2)   ;;  %vm1239_vm0 = vcmask (!%p139_p2), 519168  }
   0x6   : > { %142 = sbr.rel (%p139_p2) target bundleno = 335 (0x14f), region = 32  ;;  %p163_p3 = scmp.lt.s32.totalorder (!%p139_p2), %s1365_s16, 255  ;;  %1580 = vmatprep.subr.bf16.mxu0 (!%p139_p2), %v1684_v0  ;;  %1660 = vmatprep.subr.bf16.mxu1 (!%p139_p2), %v1684_v0  ;;  %v1687_v3 = vld [vmem:[%s2113_s1 + $0x18] sm:$0xff] (!%p139_p2)   ;;  %v1688_v6 = vld [vmem:[%s2113_s1 + $0x20] sm:$0xff] (!%p139_p2)   ;;  %v1689_v7 = vld [vmem:[%s2113_s1 + $0x28] sm:$0xff] (!%p139_p2)  }
   0x7   : > { %1581 = vmatpush3.bf16.msra.mxu0 (!%p139_p2), %v1684_v0  ;;  %1668 = vmatpush3.bf16.msra.mxu1 (!%p139_p2), %v1684_v0  ;;  %v1690_v8 = vld [vmem:[%s2113_s1 + $0x30] sm:$0xff] (!%p139_p2)   ;;  %v1691_v9 = vld [vmem:[%s2113_s1 + $0x38] sm:$0xff] (!%p139_p2)   ;;  %v1829_v40 = vld [vmem:[%s2114_s2] ss:$0 sm:$0xff] (!%p139_p2) }
   0x8   : > { %1582 = vmatprep.subr.bf16.mxu0 (!%p139_p2), %v1685_v1  ;;  %1661 = vmatprep.subr.bf16.mxu1 (!%p139_p2), %v1685_v1 }
   0xb   : > { %1583 = vmatpush3.bf16.msra.mxu0 (!%p139_p2), %v1685_v1  ;;  %1669 = vmatpush3.bf16.msra.mxu1 (!%p139_p2), %v1685_v1 }
   0xc   : > { %1584 = vmatprep.subr.bf16.mxu0 (!%p139_p2), %v1686_v2  ;;  %1662 = vmatprep.subr.bf16.mxu1 (!%p139_p2), %v1686_v2 }
   0xd   : > { %s2117_s16 = smov (!%p163_p3, %s1365_s16), 255 }
   0xe   : > { %s1366_s21 = sshll.u32 %s2117_s16, 2 }
   0xf   : > { %s1777_s24 = scalar_lea.vmem %s2112_s0, %s1366_s21  ;;  %1585 = vmatpush3.bf16.msra.mxu0 %v1686_v2  ;;  %1670 = vmatpush3.bf16.msra.mxu1 %v1686_v2  ;;  %s1840_s13 = scalar_lea.vmem %s2115_s3, %s1366_s21 }
  0x10   : > { %v1692_v4 = vld [vmem:[%s1777_s24] sm:$0xff]   ;;  %1586 = vmatprep.subr.bf16.mxu0 %v1687_v3  ;;  %1663 = vmatprep.subr.bf16.mxu1 %v1687_v3  ;;  %v1694_v10 = vld [vmem:[%s1777_s24 + $0x8] sm:$0xff]   ;;  %v1696_v12 = vld [vmem:[%s1777_s24 + $0x10] sm:$0xff]  }
  0x11   : > { %v1693_v5 = vld [vmem:[%s1777_s24 + $0x80] sm:$0xff]   ;;  %1596 = vmatprep.mubr.bf16.mxu0 %v1692_v4  ;;  %v1695_v11 = vld [vmem:[%s1777_s24 + $0x88] sm:$0xff]   ;;  %v1697_v13 = vld [vmem:[%s1777_s24 + $0x90] sm:$0xff]  }
  0x12   : > { %1628 = vmatprep.mubr.bf16.mxu1 %v1693_v5  ;;  %v1698_v14 = vld [vmem:[%s1777_s24 + $0x18] sm:$0xff]   ;;  %v1700_v16 = vld [vmem:[%s1777_s24 + $0x20] sm:$0xff]   ;;  %v1702_v18 = vld [vmem:[%s1777_s24 + $0x28] sm:$0xff]  }
  0x13   : > { %1587 = vmatpush3.bf16.msra.mxu0 %v1687_v3  ;;  %1671 = vmatpush3.bf16.msra.mxu1 %v1687_v3  ;;  %v1699_v15 = vld [vmem:[%s1777_s24 + $0x98] sm:$0xff]   ;;  %v1701_v17 = vld [vmem:[%s1777_s24 + $0xa0] sm:$0xff]   ;;  %v1703_v19 = vld [vmem:[%s1777_s24 + $0xa8] sm:$0xff]  }
  0x14   : > { %1588 = vmatprep.subr.bf16.mxu0 %v1688_v6  ;;  %1664 = vmatprep.subr.bf16.mxu1 %v1688_v6  ;;  %v1704_v20 = vld [vmem:[%s1777_s24 + $0x30] sm:$0xff]   ;;  %v1706_v22 = vld [vmem:[%s1777_s24 + $0x38] sm:$0xff]   ;;  %v1708_v24 = vld [vmem:[%s1777_s24 + $0x40] sm:$0xff]  }
  0x15   : > { %v1705_v21 = vld [vmem:[%s1777_s24 + $0xb0] sm:$0xff]   ;;  %v1707_v23 = vld [vmem:[%s1777_s24 + $0xb8] sm:$0xff]   ;;  %v1709_v25 = vld [vmem:[%s1777_s24 + $0xc0] sm:$0xff]  }
  0x16   : > { %v1710_v26 = vld [vmem:[%s1777_s24 + $0x48] sm:$0xff]   ;;  %v1712_v28 = vld [vmem:[%s1777_s24 + $0x50] sm:$0xff]   ;;  %v1714_v30 = vld [vmem:[%s1777_s24 + $0x58] sm:$0xff]  }
  0x17   : > { %1589 = vmatpush3.bf16.msra.mxu0 %v1688_v6  ;;  %1672 = vmatpush3.bf16.msra.mxu1 %v1688_v6  ;;  %v1711_v27 = vld [vmem:[%s1777_s24 + $0xc8] sm:$0xff]   ;;  %v1713_v29 = vld [vmem:[%s1777_s24 + $0xd0] sm:$0xff]   ;;  %v1715_v31 = vld [vmem:[%s1777_s24 + $0xd8] sm:$0xff]  }
  0x18   : > { %1590 = vmatprep.subr.bf16.mxu0 %v1689_v7  ;;  %1665 = vmatprep.subr.bf16.mxu1 %v1689_v7  ;;  %v1716_v32 = vld [vmem:[%s1777_s24 + $0x60] sm:$0xff]   ;;  %v1718_v34 = vld [vmem:[%s1777_s24 + $0x68] sm:$0xff]   ;;  %v1720_v36 = vld [vmem:[%s1777_s24 + $0x70] sm:$0xff]  }
  0x19   : > { %v1717_v33 = vld [vmem:[%s1777_s24 + $0xe0] sm:$0xff]   ;;  %v1719_v35 = vld [vmem:[%s1777_s24 + $0xe8] sm:$0xff]   ;;  %v1721_v37 = vld [vmem:[%s1777_s24 + $0xf0] sm:$0xff]  }
  0x1a   : > { %v1722_v38 = vld [vmem:[%s1777_s24 + $0x78] sm:$0xff]  }
  0x1b   : > { %1591 = vmatpush3.bf16.msra.mxu0 %v1689_v7  ;;  %1673 = vmatpush3.bf16.msra.mxu1 %v1689_v7  ;;  %v1723_v39 = vld [vmem:[%s1777_s24 + $0xf8] sm:$0xff]  }
  0x1c   : > { %1592 = vmatprep.subr.bf16.mxu0 %v1690_v8  ;;  %1666 = vmatprep.subr.bf16.mxu1 %v1690_v8 }
  0x1f   : > { %1593 = vmatpush3.bf16.msra.mxu0 %v1690_v8  ;;  %1674 = vmatpush3.bf16.msra.mxu1 %v1690_v8 }
  0x20   : > { %1594 = vmatprep.subr.bf16.mxu0 %v1691_v9  ;;  %1667 = vmatprep.subr.bf16.mxu1 %v1691_v9 }
  0x23   : > { %1595 = vmatpush3.bf16.msra.mxu0 %v1691_v9  ;;  %1675 = vmatpush3.bf16.msra.mxu1 %v1691_v9 }
  0x26   : > { %1597 = vmatmul.mubr.bf16.vlgmr.msra.gmra.mrb[0].mxu0 %v1694_v10  ;;  %1629 = vmatmul.mubr.bf16.vlgmr.msra.gmra.mrb[0].mxu1 %v1695_v11 }
  0x27   : > { %1600 = vmatprep.mubr.bf16.mxu0 %v1696_v12  ;;  %1632 = vmatprep.mubr.bf16.mxu1 %v1697_v13 }
  0x2e   : > { %1601 = vmatmul.mubr.bf16.gmra.mrb[4].mxu0 %v1698_v14  ;;  %1633 = vmatmul.mubr.bf16.gmra.mrb[4].mxu1 %v1699_v15 }
  0x2f   : > { %1604 = vmatprep.mubr.bf16.mxu0 %v1700_v16  ;;  %1636 = vmatprep.mubr.bf16.mxu1 %v1701_v17 }
  0x36   : > { %1605 = vmatmul.mubr.bf16.gmra.mrb[8].mxu0 %v1702_v18  ;;  %1637 = vmatmul.mubr.bf16.gmra.mrb[8].mxu1 %v1703_v19 }
  0x37   : > { %1608 = vmatprep.mubr.bf16.mxu0 %v1704_v20  ;;  %1640 = vmatprep.mubr.bf16.mxu1 %v1705_v21 }
  0x3e   : > { %1609 = vmatmul.mubr.bf16.gmra.mrb[12].mxu0 %v1706_v22  ;;  %1641 = vmatmul.mubr.bf16.gmra.mrb[12].mxu1 %v1707_v23 }
  0x3f   : > { %1612 = vmatprep.mubr.bf16.mxu0 %v1708_v24  ;;  %1644 = vmatprep.mubr.bf16.mxu1 %v1709_v25 }
  0x46   : > { %1613 = vmatmul.mubr.bf16.gmra.mrb[16].mxu0 %v1710_v26  ;;  %1645 = vmatmul.mubr.bf16.gmra.mrb[16].mxu1 %v1711_v27 }
  0x47   : > { %1616 = vmatprep.mubr.bf16.mxu0 %v1712_v28  ;;  %1648 = vmatprep.mubr.bf16.mxu1 %v1713_v29 }
  0x4e   : > { %1617 = vmatmul.mubr.bf16.gmra.mrb[20].mxu0 %v1714_v30  ;;  %1649 = vmatmul.mubr.bf16.gmra.mrb[20].mxu1 %v1715_v31 }
  0x4f   : > { %1620 = vmatprep.mubr.bf16.mxu0 %v1716_v32  ;;  %1652 = vmatprep.mubr.bf16.mxu1 %v1717_v33 }
  0x56   : > { %1621 = vmatmul.mubr.bf16.gmra.mrb[24].mxu0 %v1718_v34  ;;  %1653 = vmatmul.mubr.bf16.gmra.mrb[24].mxu1 %v1719_v35 }
  0x57   : > { %1624 = vmatprep.mubr.bf16.mxu0 %v1720_v36  ;;  %1656 = vmatprep.mubr.bf16.mxu1 %v1721_v37 }
  0x5e   : > { %1625 = vmatmul.mubr.bf16.gmra.mrb[28].mxu0 %v1722_v38  ;;  %1657 = vmatmul.mubr.bf16.gmra.mrb[28].mxu1 %v1723_v39 }
  0xf9   : > { %v1598_v41 = vpop.f32.mrb[0].mxu0  ;;  %v1630_v42 = vpop.f32.mrb[0].mxu1 }
  0xfa   : > { %v545_v43 = vadd.f32 %v1598_v41, %v1829_v40  ;;  %v673_v44 = vadd.f32 %v1630_v42, %v1829_v40  ;;  %v536_v45 = vpop.f32.mrb[1].mxu0  ;;  %v664_v46 = vpop.f32.mrb[1].mxu1 }
  0xfb   : > { %v537_v47 = vadd.f32 %v1829_v40, %v536_v45  ;;  %v665_v48 = vadd.f32 %v1829_v40, %v664_v46  ;;  %v1599_v49 = vpop.f32.mrb[2].mxu0  ;;  %v1631_v50 = vpop.f32.mrb[2].mxu1 }
  0xfc   : > { %vm793_vm1 = vcmp.gt.f32.partialorder %v545_v43, 0.0  ;;  %v857_v51 = vmul.f32 0.2, %v545_v43  ;;  %vm825_vm2 = vcmp.gt.f32.partialorder %v673_v44, 0.0  ;;  %v889_v52 = vmul.f32 0.2, %v673_v44 }
  0xfd   : > { %vm791_vm3 = vcmp.gt.f32.partialorder %v537_v47, 0.0  ;;  %v855_v53 = vmul.f32 0.2, %v537_v47  ;;  %vm823_vm4 = vcmp.gt.f32.partialorder %v665_v48, 0.0  ;;  %v887_v54 = vmul.f32 0.2, %v665_v48 }
  0xfe   : > { %v921_v55 = vsel %vm793_vm1, %v545_v43, %v857_v51  ;;  %v953_v56 = vsel %vm825_vm2, %v673_v44, %v889_v52  ;;  %v548_v57 = vadd.f32 %v1599_v49, %v1829_v40  ;;  %v676_v58 = vadd.f32 %v1631_v50, %v1829_v40  ;;  %v539_v59 = vpop.f32.mrb[3].mxu0  ;;  %v667_v60 = vpop.f32.mrb[3].mxu1 }
  0xff   : > { %v1478_v61 = vpack.c.bf16 %v921_v55, %v921_v55  ;;  %v1510_v62 = vpack.c.bf16 %v953_v56, %v953_v56  ;;  %v919_v63 = vsel %vm791_vm3, %v537_v47, %v855_v53  ;;  %v951_v0 = vsel %vm823_vm4, %v665_v48, %v887_v54 }
 0x100   : > { %v1476_v1 = vpack.c.bf16 %v919_v63, %v919_v63  ;;  %v1508_v2 = vpack.c.bf16 %v951_v0, %v951_v0  ;;  %vm794_vm5 = vcmp.gt.f32.partialorder %v548_v57, 0.0  ;;  %v858_v3 = vmul.f32 0.2, %v548_v57 }
 0x101   : > { %1242 = vst.msk [vmem:[%s1840_s13 + $0x8] sm:$0xf] %vm1239_vm0, %v1478_v61  ;;  %1274 = vst.msk [vmem:[%s1840_s13 + $0x88] sm:$0xf] %vm1239_vm0, %v1510_v62  ;;  %vm826_vm6 = vcmp.gt.f32.partialorder %v676_v58, 0.0  ;;  %v540_v5 = vadd.f32 %v1829_v40, %v539_v59  ;;  %v668_v6 = vadd.f32 %v1829_v40, %v667_v60  ;;  %v1602_v7 = vpop.f32.mrb[4].mxu0 }
 0x102   : > { %v890_v4 = vmul.f32 0.2, %v676_v58  ;;  %v1634_v8 = vpop.f32.mrb[4].mxu1  ;;  %1240 = vst.msk [vmem:[%s1840_s13] sm:$0xf] %vm1239_vm0, %v1476_v1  ;;  %v922_v9 = vsel %vm794_vm5, %v548_v57, %v858_v3  ;;  %v561_v10 = vadd.f32 %v1602_v7, %v1829_v40  ;;  %v552_v12 = vpop.f32.mrb[5].mxu0 }
 0x103   : > { %1272 = vst.msk [vmem:[%s1840_s13 + $0x80] sm:$0xf] %vm1239_vm0, %v1508_v2  ;;  %v689_v11 = vadd.f32 %v1634_v8, %v1829_v40  ;;  %v680_v13 = vpop.f32.mrb[5].mxu1  ;;  %v1479_v14 = vpack.c.bf16 %v922_v9, %v922_v9  ;;  %vm792_vm7 = vcmp.gt.f32.partialorder %v540_v5, 0.0  ;;  %v856_v16 = vmul.f32 0.2, %v540_v5 }
 0x104   : > { %v954_v15 = vsel %vm826_vm6, %v676_v58, %v890_v4  ;;  %v1603_v17 = vpop.f32.mrb[6].mxu0  ;;  %v1635_v18 = vpop.f32.mrb[6].mxu1  ;;  %vm824_vm8 = vcmp.gt.f32.partialorder %v668_v6, 0.0  ;;  %v888_v20 = vmul.f32 0.2, %v668_v6  ;;  %vm797_vm9 = vcmp.gt.f32.partialorder %v561_v10, 0.0 }
 0x105   : > { %v1511_v19 = vpack.c.bf16 %v954_v15, %v954_v15  ;;  %v555_v21 = vpop.f32.mrb[7].mxu0  ;;  %v683_v22 = vpop.f32.mrb[7].mxu1  ;;  %1243 = vst.msk [vmem:[%s1840_s13 + $0xc] sm:$0xf] %vm1239_vm0, %v1479_v14  ;;  %v920_v23 = vsel %vm792_vm7, %v540_v5, %v856_v16  ;;  %v861_v24 = vmul.f32 0.2, %v561_v10  ;;  %v553_v28 = vadd.f32 %v1829_v40, %v552_v12 }
 0x106   : > { %vm829_vm10 = vcmp.gt.f32.partialorder %v689_v11, 0.0  ;;  %v893_v25 = vmul.f32 0.2, %v689_v11  ;;  %v1477_v26 = vpack.c.bf16 %v920_v23, %v920_v23  ;;  %v952_v27 = vsel %vm824_vm8, %v668_v6, %v888_v20 }
 0x107   : > { %1275 = vst.msk [vmem:[%s1840_s13 + $0x8c] sm:$0xf] %vm1239_vm0, %v1511_v19  ;;  %v681_v29 = vadd.f32 %v1829_v40, %v680_v13  ;;  %v1509_v30 = vpack.c.bf16 %v952_v27, %v952_v27  ;;  %v925_v31 = vsel %vm797_vm9, %v561_v10, %v861_v24  ;;  %v564_v33 = vadd.f32 %v1603_v17, %v1829_v40 }
 0x108   : > { %v957_v32 = vsel %vm829_vm10, %v689_v11, %v893_v25  ;;  %1241 = vst.msk [vmem:[%s1840_s13 + $0x4] sm:$0xf] %vm1239_vm0, %v1477_v26  ;;  %v1482_v34 = vpack.c.bf16 %v925_v31, %v925_v31  ;;  %vm795_vm11 = vcmp.gt.f32.partialorder %v553_v28, 0.0  ;;  %v859_v36 = vmul.f32 0.2, %v553_v28 }
 0x109   : > { %v1514_v35 = vpack.c.bf16 %v957_v32, %v957_v32  ;;  %1273 = vst.msk [vmem:[%s1840_s13 + $0x84] sm:$0xf] %vm1239_vm0, %v1509_v30  ;;  %vm827_vm12 = vcmp.gt.f32.partialorder %v681_v29, 0.0  ;;  %v891_v37 = vmul.f32 0.2, %v681_v29  ;;  %vm798_vm13 = vcmp.gt.f32.partialorder %v564_v33, 0.0 }
 0x10a   : > { %v862_v38 = vmul.f32 0.2, %v564_v33  ;;  %1246 = vst.msk [vmem:[%s1840_s13 + $0x18] sm:$0xf] %vm1239_vm0, %v1482_v34  ;;  %v923_v39 = vsel %vm795_vm11, %v553_v28, %v859_v36  ;;  %v692_v41 = vadd.f32 %v1635_v18, %v1829_v40  ;;  %v556_v42 = vadd.f32 %v1829_v40, %v555_v21  ;;  %v1606_v44 = vpop.f32.mrb[8].mxu0  ;;  %v1638_v45 = vpop.f32.mrb[8].mxu1 }
 0x10b   : > { %1278 = vst.msk [vmem:[%s1840_s13 + $0x98] sm:$0xf] %vm1239_vm0, %v1514_v35  ;;  %v684_v43 = vadd.f32 %v1829_v40, %v683_v22  ;;  %v1480_v46 = vpack.c.bf16 %v923_v39, %v923_v39  ;;  %v955_v47 = vsel %vm827_vm12, %v681_v29, %v891_v37  ;;  %v577_v49 = vadd.f32 %v1606_v44, %v1829_v40  ;;  %v568_v50 = vpop.f32.mrb[9].mxu0  ;;  %v696_v51 = vpop.f32.mrb[9].mxu1 }
 0x10c   : > { %v926_v48 = vsel %vm798_vm13, %v564_v33, %v862_v38  ;;  %v1512_v52 = vpack.c.bf16 %v955_v47, %v955_v47  ;;  %vm830_vm14 = vcmp.gt.f32.partialorder %v692_v41, 0.0  ;;  %v894_v54 = vmul.f32 0.2, %v692_v41  ;;  %v1607_v55 = vpop.f32.mrb[10].mxu0  ;;  %v1639_v56 = vpop.f32.mrb[10].mxu1 }
 0x10d   : > { %v1483_v53 = vpack.c.bf16 %v926_v48, %v926_v48  ;;  %1244 = vst.msk [vmem:[%s1840_s13 + $0x10] sm:$0xf] %vm1239_vm0, %v1480_v46  ;;  %vm796_vm15 = vcmp.gt.f32.partialorder %v556_v42, 0.0  ;;  %v860_v57 = vmul.f32 0.2, %v556_v42  ;;  %vm828_vm1 = vcmp.gt.f32.partialorder %v684_v43, 0.0 }
 0x10e   : > { %v892_v58 = vmul.f32 0.2, %v684_v43  ;;  %1276 = vst.msk [vmem:[%s1840_s13 + $0x90] sm:$0xf] %vm1239_vm0, %v1512_v52  ;;  %v958_v59 = vsel %vm830_vm14, %v692_v41, %v894_v54  ;;  %vm801_vm2 = vcmp.gt.f32.partialorder %v577_v49, 0.0  ;;  %v705_v61 = vadd.f32 %v1638_v45, %v1829_v40  ;;  %v571_v62 = vpop.f32.mrb[11].mxu0 }
 0x10f   : > { %1247 = vst.msk [vmem:[%s1840_s13 + $0x1c] sm:$0xf] %vm1239_vm0, %v1483_v53  ;;  %v865_v60 = vmul.f32 0.2, %v577_v49  ;;  %v699_v63 = vpop.f32.mrb[11].mxu1  ;;  %v1515_v0 = vpack.c.bf16 %v958_v59, %v958_v59  ;;  %v924_v1 = vsel %vm796_vm15, %v556_v42, %v860_v57  ;;  %v569_v3 = vadd.f32 %v1829_v40, %v568_v50 }
 0x110   : > { %v956_v2 = vsel %vm828_vm1, %v684_v43, %v892_v58  ;;  %v1481_v4 = vpack.c.bf16 %v924_v1, %v924_v1  ;;  %vm833_vm3 = vcmp.gt.f32.partialorder %v705_v61, 0.0  ;;  %v897_v8 = vmul.f32 0.2, %v705_v61 }
 0x111   : > { %v1513_v5 = vpack.c.bf16 %v956_v2, %v956_v2  ;;  %v929_v6 = vsel %vm801_vm2, %v577_v49, %v865_v60  ;;  %1279 = vst.msk [vmem:[%s1840_s13 + $0x9c] sm:$0xf] %vm1239_vm0, %v1515_v0  ;;  %vm799_vm4 = vcmp.gt.f32.partialorder %v569_v3, 0.0  ;;  %v863_v9 = vmul.f32 0.2, %v569_v3  ;;  %v1610_v10 = vpop.f32.mrb[12].mxu0 }
 0x112   : > { %v1486_v7 = vpack.c.bf16 %v929_v6, %v929_v6  ;;  %1245 = vst.msk [vmem:[%s1840_s13 + $0x14] sm:$0xf] %vm1239_vm0, %v1481_v4  ;;  %v697_v11 = vadd.f32 %v1829_v40, %v696_v51  ;;  %v580_v12 = vadd.f32 %v1607_v55, %v1829_v40  ;;  %v708_v13 = vadd.f32 %v1639_v56, %v1829_v40  ;;  %v1642_v15 = vpop.f32.mrb[12].mxu1  ;;  %v584_v16 = vpop.f32.mrb[13].mxu0 }
 0x113   : > { %1277 = vst.msk [vmem:[%s1840_s13 + $0x94] sm:$0xf] %vm1239_vm0, %v1513_v5  ;;  %v572_v14 = vadd.f32 %v1829_v40, %v571_v62  ;;  %v961_v17 = vsel %vm833_vm3, %v705_v61, %v897_v8  ;;  %v927_v18 = vsel %vm799_vm4, %v569_v3, %v863_v9  ;;  %v700_v19 = vadd.f32 %v1829_v40, %v699_v63  ;;  %v712_v21 = vpop.f32.mrb[13].mxu1  ;;  %v1611_v22 = vpop.f32.mrb[14].mxu0 }
 0x114   : > { %1250 = vst.msk [vmem:[%s1840_s13 + $0x28] sm:$0xf] %vm1239_vm0, %v1486_v7  ;;  %v593_v20 = vadd.f32 %v1610_v10, %v1829_v40  ;;  %v1518_v23 = vpack.c.bf16 %v961_v17, %v961_v17  ;;  %v1484_v24 = vpack.c.bf16 %v927_v18, %v927_v18  ;;  %vm831_vm5 = vcmp.gt.f32.partialorder %v697_v11, 0.0  ;;  %v1643_v26 = vpop.f32.mrb[14].mxu1  ;;  %v587_v27 = vpop.f32.mrb[15].mxu0 }
 0x115   : > { %v895_v25 = vmul.f32 0.2, %v697_v11  ;;  %vm802_vm6 = vcmp.gt.f32.partialorder %v580_v12, 0.0  ;;  %v866_v28 = vmul.f32 0.2, %v580_v12  ;;  %vm834_vm7 = vcmp.gt.f32.partialorder %v708_v13, 0.0 }
 0x116   : > { %v898_v29 = vmul.f32 0.2, %v708_v13  ;;  %1282 = vst.msk [vmem:[%s1840_s13 + $0xa8] sm:$0xf] %vm1239_vm0, %v1518_v23  ;;  %1248 = vst.msk [vmem:[%s1840_s13 + $0x20] sm:$0xf] %vm1239_vm0, %v1484_v24  ;;  %v721_v44 = vadd.f32 %v1642_v15, %v1829_v40  ;;  %v585_v48 = vadd.f32 %v1829_v40, %v584_v16  ;;  %v713_v49 = vadd.f32 %v1829_v40, %v712_v21 }
 0x117   : > { %v959_v30 = vsel %vm831_vm5, %v697_v11, %v895_v25  ;;  %vm800_vm8 = vcmp.gt.f32.partialorder %v572_v14, 0.0  ;;  %v864_v31 = vmul.f32 0.2, %v572_v14  ;;  %vm832_vm9 = vcmp.gt.f32.partialorder %v700_v19, 0.0  ;;  %v715_v32 = vpop.f32.mrb[15].mxu1 }
 0x118   : > { %v1516_v33 = vpack.c.bf16 %v959_v30, %v959_v30  ;;  %v930_v34 = vsel %vm802_vm6, %v580_v12, %v866_v28  ;;  %v962_v35 = vsel %vm834_vm7, %v708_v13, %v898_v29  ;;  %v896_v36 = vmul.f32 0.2, %v700_v19 }
 0x119   : > { %v1487_v37 = vpack.c.bf16 %v930_v34, %v930_v34  ;;  %v1519_v38 = vpack.c.bf16 %v962_v35, %v962_v35  ;;  %v928_v39 = vsel %vm800_vm8, %v572_v14, %v864_v31  ;;  %vm805_vm10 = vcmp.gt.f32.partialorder %v593_v20, 0.0  ;;  %v1614_v45 = vpop.f32.mrb[16].mxu0  ;;  %v1646_v46 = vpop.f32.mrb[16].mxu1 }
 0x11a   : > { %1280 = vst.msk [vmem:[%s1840_s13 + $0xa0] sm:$0xf] %vm1239_vm0, %v1516_v33  ;;  %v1485_v41 = vpack.c.bf16 %v928_v39, %v928_v39  ;;  %v960_v42 = vsel %vm832_vm9, %v700_v19, %v896_v36  ;;  %v869_v43 = vmul.f32 0.2, %v593_v20  ;;  %v596_v50 = vadd.f32 %v1611_v22, %v1829_v40  ;;  %v600_v51 = vpop.f32.mrb[17].mxu0  ;;  %v728_v52 = vpop.f32.mrb[17].mxu1 }
 0x11b   : > { %1251 = vst.msk [vmem:[%s1840_s13 + $0x2c] sm:$0xf] %vm1239_vm0, %v1487_v37  ;;  %1283 = vst.msk [vmem:[%s1840_s13 + $0xac] sm:$0xf] %vm1239_vm0, %v1519_v38  ;;  %v1517_v47 = vpack.c.bf16 %v960_v42, %v960_v42  ;;  %vm837_vm11 = vcmp.gt.f32.partialorder %v721_v44, 0.0  ;;  %v724_v55 = vadd.f32 %v1643_v26, %v1829_v40  ;;  %v1916_v56 = vpop.f32.mrb[18].mxu0  ;;  %v588_v7 = vadd.f32 %v1829_v40, %v587_v27 }
 0x11c   : > { %1249 = vst.msk [vmem:[%s1840_s13 + $0x24] sm:$0xf] %vm1239_vm0, %v1485_v41  ;;  %v933_v53 = vsel %vm805_vm10, %v593_v20, %v869_v43  ;;  %v901_v54 = vmul.f32 0.2, %v721_v44  ;;  %v1918_v57 = vpop.f32.mrb[18].mxu1  ;;  %vm803_vm12 = vcmp.gt.f32.partialorder %v585_v48, 0.0  ;;  %v716_v11 = vadd.f32 %v1829_v40, %v715_v32 }
 0x11d   : > { %1281 = vst.msk [vmem:[%s1840_s13 + $0xa4] sm:$0xf] %vm1239_vm0, %v1517_v47  ;;  %v1490_v58 = vpack.c.bf16 %v933_v53, %v933_v53  ;;  %v867_v59 = vmul.f32 0.2, %v585_v48  ;;  %vm835_vm13 = vcmp.gt.f32.partialorder %v713_v49, 0.0  ;;  %v1922_v60 = vpop.f32.mrb[19].mxu0  ;;  %v609_v14 = vadd.f32 %v1614_v45, %v1829_v40 }
 0x11e   : > { %v1924_v61 = vpop.f32.mrb[19].mxu1  ;;  %v965_v62 = vsel %vm837_vm11, %v721_v44, %v901_v54  ;;  %v899_v63 = vmul.f32 0.2, %v713_v49  ;;  %vm806_vm14 = vcmp.gt.f32.partialorder %v596_v50, 0.0  ;;  %v870_v0 = vmul.f32 0.2, %v596_v50 }
 0x11f   : > { %1254 = vst.msk [vmem:[%s1840_s13 + $0x38] sm:$0xf] %vm1239_vm0, %v1490_v58  ;;  %v1522_v1 = vpack.c.bf16 %v965_v62, %v965_v62  ;;  %v931_v2 = vsel %vm803_vm12, %v585_v48, %v867_v59  ;;  %vm838_vm15 = vcmp.gt.f32.partialorder %v724_v55, 0.0  ;;  %v902_v3 = vmul.f32 0.2, %v724_v55 }
 0x120   : > { %v1488_v4 = vpack.c.bf16 %v931_v2, %v931_v2  ;;  %v963_v5 = vsel %vm835_vm13, %v713_v49, %v899_v63  ;;  %v934_v6 = vsel %vm806_vm14, %v596_v50, %v870_v0  ;;  %vm804_vm1 = vcmp.gt.f32.partialorder %v588_v7, 0.0 }
 0x121   : > { %1286 = vst.msk [vmem:[%s1840_s13 + $0xb8] sm:$0xf] %vm1239_vm0, %v1522_v1  ;;  %v1520_v8 = vpack.c.bf16 %v963_v5, %v963_v5  ;;  %v1491_v9 = vpack.c.bf16 %v934_v6, %v934_v6  ;;  %v966_v10 = vsel %vm838_vm15, %v724_v55, %v902_v3  ;;  %v868_v13 = vmul.f32 0.2, %v588_v7  ;;  %v1618_v15 = vpop.f32.mrb[20].mxu0  ;;  %v1650_v16 = vpop.f32.mrb[20].mxu1 }
 0x122   : > { %1252 = vst.msk [vmem:[%s1840_s13 + $0x30] sm:$0xf] %vm1239_vm0, %v1488_v4  ;;  %v1523_v12 = vpack.c.bf16 %v966_v10, %v966_v10  ;;  %vm836_vm2 = vcmp.gt.f32.partialorder %v716_v11, 0.0  ;;  %v900_v17 = vmul.f32 0.2, %v716_v11  ;;  %v737_v18 = vadd.f32 %v1646_v46, %v1829_v40  ;;  %v616_v20 = vpop.f32.mrb[21].mxu0 }
 0x123   : > { %1284 = vst.msk [vmem:[%s1840_s13 + $0xb0] sm:$0xf] %vm1239_vm0, %v1520_v8  ;;  %1255 = vst.msk [vmem:[%s1840_s13 + $0x3c] sm:$0xf] %vm1239_vm0, %v1491_v9  ;;  %v601_v19 = vadd.f32 %v1829_v40, %v600_v51  ;;  %v1941_v21 = vpop.f32.mrb[21].mxu1  ;;  %v932_v22 = vsel %vm804_vm1, %v588_v7, %v868_v13  ;;  %vm809_vm3 = vcmp.gt.f32.partialorder %v609_v14, 0.0  ;;  %v729_v24 = vadd.f32 %v1829_v40, %v728_v52 }
 0x124   : > { %1287 = vst.msk [vmem:[%s1840_s13 + $0xbc] sm:$0xf] %vm1239_vm0, %v1523_v12  ;;  %v873_v23 = vmul.f32 0.2, %v609_v14  ;;  %v1946_v25 = vpop.f32.mrb[22].mxu0  ;;  %v1948_v26 = vpop.f32.mrb[22].mxu1  ;;  %v1489_v27 = vpack.c.bf16 %v932_v22, %v932_v22  ;;  %v964_v28 = vsel %vm836_vm2, %v716_v11, %v900_v17  ;;  %v612_v41 = vadd.f32 %v1916_v56, %v1829_v40 }
 0x125   : > { %vm841_vm4 = vcmp.gt.f32.partialorder %v737_v18, 0.0  ;;  %v905_v29 = vmul.f32 0.2, %v737_v18  ;;  %v1950_v30 = vpop.f32.mrb[23].mxu0  ;;  %v1952_v31 = vpop.f32.mrb[23].mxu1  ;;  %v1521_v32 = vpack.c.bf16 %v964_v28, %v964_v28  ;;  %vm807_vm5 = vcmp.gt.f32.partialorder %v601_v19, 0.0 }
 0x126   : > { %v937_v33 = vsel %vm809_vm3, %v609_v14, %v873_v23  ;;  %v871_v34 = vmul.f32 0.2, %v601_v19  ;;  %1253 = vst.msk [vmem:[%s1840_s13 + $0x34] sm:$0xf] %vm1239_vm0, %v1489_v27  ;;  %vm839_vm6 = vcmp.gt.f32.partialorder %v729_v24, 0.0  ;;  %v740_v42 = vadd.f32 %v1918_v57, %v1829_v40 }
 0x127   : > { %v1494_v35 = vpack.c.bf16 %v937_v33, %v937_v33  ;;  %v969_v36 = vsel %vm841_vm4, %v737_v18, %v905_v29  ;;  %v903_v37 = vmul.f32 0.2, %v729_v24  ;;  %1285 = vst.msk [vmem:[%s1840_s13 + $0xb4] sm:$0xf] %vm1239_vm0, %v1521_v32  ;;  %v604_v45 = vadd.f32 %v1829_v40, %v1922_v60 }
 0x128   : > { %v1526_v38 = vpack.c.bf16 %v969_v36, %v969_v36  ;;  %v935_v39 = vsel %vm807_vm5, %v601_v19, %v871_v34  ;;  %v732_v46 = vadd.f32 %v1829_v40, %v1924_v61  ;;  %vm810_vm7 = vcmp.gt.f32.partialorder %v612_v41, 0.0 }
 0x129   : > { %1258 = vst.msk [vmem:[%s1840_s13 + $0x48] sm:$0xf] %vm1239_vm0, %v1494_v35  ;;  %v1492_v43 = vpack.c.bf16 %v935_v39, %v935_v39  ;;  %v967_v44 = vsel %vm839_vm6, %v729_v24, %v903_v37  ;;  %v874_v48 = vmul.f32 0.2, %v612_v41  ;;  %vm842_vm8 = vcmp.gt.f32.partialorder %v740_v42, 0.0  ;;  %v1970_v49 = vpop.f32.mrb[24].mxu0 }
 0x12a   : > { %1290 = vst.msk [vmem:[%s1840_s13 + $0xc8] sm:$0xf] %vm1239_vm0, %v1526_v38  ;;  %v1524_v47 = vpack.c.bf16 %v967_v44, %v967_v44  ;;  %v1972_v50 = vpop.f32.mrb[24].mxu1  ;;  %v906_v51 = vmul.f32 0.2, %v740_v42  ;;  %vm808_vm9 = vcmp.gt.f32.partialorder %v604_v45, 0.0  ;;  %v625_v55 = vadd.f32 %v1618_v15, %v1829_v40 }
 0x12b   : > { %1256 = vst.msk [vmem:[%s1840_s13 + $0x40] sm:$0xf] %vm1239_vm0, %v1492_v43  ;;  %v872_v52 = vmul.f32 0.2, %v604_v45  ;;  %vm840_vm10 = vcmp.gt.f32.partialorder %v732_v46, 0.0  ;;  %v938_v53 = vsel %vm810_vm7, %v612_v41, %v874_v48  ;;  %v753_v56 = vadd.f32 %v1650_v16, %v1829_v40  ;;  %v1980_v57 = vpop.f32.mrb[25].mxu0 }
 0x12c   : > { %1288 = vst.msk [vmem:[%s1840_s13 + $0xc0] sm:$0xf] %vm1239_vm0, %v1524_v47  ;;  %v904_v54 = vmul.f32 0.2, %v732_v46  ;;  %v1982_v58 = vpop.f32.mrb[25].mxu1  ;;  %v1495_v59 = vpack.c.bf16 %v938_v53, %v938_v53  ;;  %v970_v60 = vsel %vm842_vm8, %v740_v42, %v906_v51  ;;  %v617_v62 = vadd.f32 %v1829_v40, %v616_v20  ;;  %v1986_v63 = vpop.f32.mrb[26].mxu0 }
 0x12d   : > { %v936_v61 = vsel %vm808_vm9, %v604_v45, %v872_v52  ;;  %v1988_v0 = vpop.f32.mrb[26].mxu1  ;;  %v1527_v1 = vpack.c.bf16 %v970_v60, %v970_v60  ;;  %vm813_vm11 = vcmp.gt.f32.partialorder %v625_v55, 0.0  ;;  %v1991_v4 = vpop.f32.mrb[27].mxu0  ;;  %v877_v7 = vmul.f32 0.2, %v625_v55 }
 0x12e   : > { %v1493_v2 = vpack.c.bf16 %v936_v61, %v936_v61  ;;  %v968_v3 = vsel %vm840_vm10, %v732_v46, %v904_v54  ;;  %v1993_v5 = vpop.f32.mrb[27].mxu1  ;;  %1259 = vst.msk [vmem:[%s1840_s13 + $0x4c] sm:$0xf] %vm1239_vm0, %v1495_v59  ;;  %vm845_vm12 = vcmp.gt.f32.partialorder %v753_v56, 0.0  ;;  %v909_v8 = vmul.f32 0.2, %v753_v56 }
 0x12f   : > { %v1525_v6 = vpack.c.bf16 %v968_v3, %v968_v3  ;;  %1291 = vst.msk [vmem:[%s1840_s13 + $0xcc] sm:$0xf] %vm1239_vm0, %v1527_v1  ;;  %vm811_vm13 = vcmp.gt.f32.partialorder %v617_v62, 0.0  ;;  %v875_v9 = vmul.f32 0.2, %v617_v62  ;;  %v745_v10 = vadd.f32 %v1829_v40, %v1941_v21 }
 0x130   : > { %1257 = vst.msk [vmem:[%s1840_s13 + $0x44] sm:$0xf] %vm1239_vm0, %v1493_v2  ;;  %v628_v11 = vadd.f32 %v1946_v25, %v1829_v40  ;;  %v941_v12 = vsel %vm813_vm11, %v625_v55, %v877_v7  ;;  %v973_v13 = vsel %vm845_vm12, %v753_v56, %v909_v8  ;;  %v756_v14 = vadd.f32 %v1948_v26, %v1829_v40 }
 0x131   : > { %1289 = vst.msk [vmem:[%s1840_s13 + $0xc4] sm:$0xf] %vm1239_vm0, %v1525_v6  ;;  %v620_v15 = vadd.f32 %v1829_v40, %v1950_v30  ;;  %v1498_v16 = vpack.c.bf16 %v941_v12, %v941_v12  ;;  %v1530_v17 = vpack.c.bf16 %v973_v13, %v973_v13  ;;  %v939_v18 = vsel %vm811_vm13, %v617_v62, %v875_v9  ;;  %v2011_v19 = vpop.f32.mrb[28].mxu0  ;;  %v2013_v20 = vpop.f32.mrb[28].mxu1 }
 0x132   : > { %vm843_vm14 = vcmp.gt.f32.partialorder %v745_v10, 0.0  ;;  %v1496_v21 = vpack.c.bf16 %v939_v18, %v939_v18  ;;  %v907_v22 = vmul.f32 0.2, %v745_v10  ;;  %vm814_vm15 = vcmp.gt.f32.partialorder %v628_v11, 0.0  ;;  %v2015_v24 = vpop.f32.mrb[29].mxu0  ;;  %v2027_v32 = vpop.f32.mrb[29].mxu1 }
 0x133   : > { %v878_v23 = vmul.f32 0.2, %v628_v11  ;;  %1262 = vst.msk [vmem:[%s1840_s13 + $0x58] sm:$0xf] %vm1239_vm0, %v1498_v16  ;;  %1294 = vst.msk [vmem:[%s1840_s13 + $0xd8] sm:$0xf] %vm1239_vm0, %v1530_v17  ;;  %v748_v29 = vadd.f32 %v1829_v40, %v1952_v31  ;;  %v641_v30 = vadd.f32 %v1970_v49, %v1829_v40  ;;  %v769_v45 = vadd.f32 %v1972_v50, %v1829_v40 }
 0x134   : > { %vm846_vm1 = vcmp.gt.f32.partialorder %v756_v14, 0.0  ;;  %v910_v25 = vmul.f32 0.2, %v756_v14  ;;  %vm812_vm2 = vcmp.gt.f32.partialorder %v620_v15, 0.0  ;;  %v876_v26 = vmul.f32 0.2, %v620_v15 }
 0x135   : > { %1260 = vst.msk [vmem:[%s1840_s13 + $0x50] sm:$0xf] %vm1239_vm0, %v1496_v21  ;;  %v971_v27 = vsel %vm843_vm14, %v745_v10, %v907_v22  ;;  %v942_v28 = vsel %vm814_vm15, %v628_v11, %v878_v23  ;;  %v2029_v33 = vpop.f32.mrb[30].mxu0  ;;  %v2031_v38 = vpop.f32.mrb[30].mxu1  ;;  %vm844_vm3 = vcmp.gt.f32.partialorder %v748_v29, 0.0  ;;  %vm817_vm4 = vcmp.gt.f32.partialorder %v641_v30, 0.0 }
 0x136   : > { %v1528_v34 = vpack.c.bf16 %v971_v27, %v971_v27  ;;  %v1499_v35 = vpack.c.bf16 %v942_v28, %v942_v28  ;;  %v974_v36 = vsel %vm846_vm1, %v756_v14, %v910_v25  ;;  %v940_v37 = vsel %vm812_vm2, %v620_v15, %v876_v26  ;;  %v2033_v39 = vpop.f32.mrb[31].mxu0  ;;  %v2035_v43 = vpop.f32.mrb[31].mxu1 }
 0x137   : > { %v1531_v41 = vpack.c.bf16 %v974_v36, %v974_v36  ;;  %v1497_v31 = vpack.c.bf16 %v940_v37, %v940_v37  ;;  %v908_v42 = vmul.f32 0.2, %v748_v29  ;;  %v881_v44 = vmul.f32 0.2, %v641_v30 }
 0x138   : > { %1292 = vst.msk [vmem:[%s1840_s13 + $0xd0] sm:$0xf] %vm1239_vm0, %v1528_v34  ;;  %1263 = vst.msk [vmem:[%s1840_s13 + $0x5c] sm:$0xf] %vm1239_vm0, %v1499_v35  ;;  %v633_v46 = vadd.f32 %v1829_v40, %v1980_v57  ;;  %v761_v48 = vadd.f32 %v1829_v40, %v1982_v58  ;;  %v644_v49 = vadd.f32 %v1986_v63, %v1829_v40  ;;  %vm849_vm5 = vcmp.gt.f32.partialorder %v769_v45, 0.0 }
 0x139   : > { %1295 = vst.msk [vmem:[%s1840_s13 + $0xdc] sm:$0xf] %vm1239_vm0, %v1531_v41  ;;  %1261 = vst.msk [vmem:[%s1840_s13 + $0x54] sm:$0xf] %vm1239_vm0, %v1497_v31  ;;  %v972_v47 = vsel %vm844_vm3, %v748_v29, %v908_v42  ;;  %v772_v51 = vadd.f32 %v1988_v0, %v1829_v40  ;;  %v945_v52 = vsel %vm817_vm4, %v641_v30, %v881_v44  ;;  %v913_v53 = vmul.f32 0.2, %v769_v45 }
 0x13a   : > { %v1529_v50 = vpack.c.bf16 %v972_v47, %v972_v47  ;;  %v1502_v54 = vpack.c.bf16 %v945_v52, %v945_v52  ;;  %vm815_vm6 = vcmp.gt.f32.partialorder %v633_v46, 0.0  ;;  %v879_v55 = vmul.f32 0.2, %v633_v46 }
 0x13b   : > { %vm847_vm7 = vcmp.gt.f32.partialorder %v761_v48, 0.0  ;;  %v977_v56 = vsel %vm849_vm5, %v769_v45, %v913_v53  ;;  %v911_v57 = vmul.f32 0.2, %v761_v48  ;;  %vm818_vm8 = vcmp.gt.f32.partialorder %v644_v49, 0.0 }
 0x13c   : > { %1293 = vst.msk [vmem:[%s1840_s13 + $0xd4] sm:$0xf] %vm1239_vm0, %v1529_v50  ;;  %v882_v58 = vmul.f32 0.2, %v644_v49  ;;  %1266 = vst.msk [vmem:[%s1840_s13 + $0x68] sm:$0xf] %vm1239_vm0, %v1502_v54  ;;  %v1534_v59 = vpack.c.bf16 %v977_v56, %v977_v56  ;;  %v943_v60 = vsel %vm815_vm6, %v633_v46, %v879_v55  ;;  %v636_v1 = vadd.f32 %v1829_v40, %v1991_v4 }
 0x13d   : > { %vm850_vm9 = vcmp.gt.f32.partialorder %v772_v51, 0.0  ;;  %v914_v61 = vmul.f32 0.2, %v772_v51  ;;  %v1500_v62 = vpack.c.bf16 %v943_v60, %v943_v60  ;;  %v975_v63 = vsel %vm847_vm7, %v761_v48, %v911_v57 }
 0x13e   : > { %v946_v0 = vsel %vm818_vm8, %v644_v49, %v882_v58  ;;  %1298 = vst.msk [vmem:[%s1840_s13 + $0xe8] sm:$0xf] %vm1239_vm0, %v1534_v59  ;;  %v1532_v2 = vpack.c.bf16 %v975_v63, %v975_v63  ;;  %v764_v7 = vadd.f32 %v1829_v40, %v1993_v5  ;;  %vm816_vm10 = vcmp.gt.f32.partialorder %v636_v1, 0.0 }
 0x13f   : > { %v1503_v3 = vpack.c.bf16 %v946_v0, %v946_v0  ;;  %v978_v6 = vsel %vm850_vm9, %v772_v51, %v914_v61  ;;  %1264 = vst.msk [vmem:[%s1840_s13 + $0x60] sm:$0xf] %vm1239_vm0, %v1500_v62  ;;  %v880_v9 = vmul.f32 0.2, %v636_v1  ;;  %v657_v10 = vadd.f32 %v2011_v19, %v1829_v40 }
 0x140   : > { %v1535_v8 = vpack.c.bf16 %v978_v6, %v978_v6  ;;  %1296 = vst.msk [vmem:[%s1840_s13 + $0xe0] sm:$0xf] %vm1239_vm0, %v1532_v2  ;;  %vm848_vm11 = vcmp.gt.f32.partialorder %v764_v7, 0.0  ;;  %v912_v4 = vmul.f32 0.2, %v764_v7  ;;  %v785_v11 = vadd.f32 %v2013_v20, %v1829_v40 }
 0x141   : > { %1267 = vst.msk [vmem:[%s1840_s13 + $0x6c] sm:$0xf] %vm1239_vm0, %v1503_v3  ;;  %v649_v5 = vadd.f32 %v1829_v40, %v2015_v24  ;;  %v944_v12 = vsel %vm816_vm10, %v636_v1, %v880_v9  ;;  %vm821_vm12 = vcmp.gt.f32.partialorder %v657_v10, 0.0  ;;  %v885_v13 = vmul.f32 0.2, %v657_v10 }
 0x142   : > { %1299 = vst.msk [vmem:[%s1840_s13 + $0xec] sm:$0xf] %vm1239_vm0, %v1535_v8  ;;  %v777_v14 = vadd.f32 %v1829_v40, %v2027_v32  ;;  %v1501_v15 = vpack.c.bf16 %v944_v12, %v944_v12  ;;  %v976_v16 = vsel %vm848_vm11, %v764_v7, %v912_v4  ;;  %vm853_vm13 = vcmp.gt.f32.partialorder %v785_v11, 0.0 }
 0x143   : > { %v917_v17 = vmul.f32 0.2, %v785_v11  ;;  %v1533_v18 = vpack.c.bf16 %v976_v16, %v976_v16  ;;  %v949_v19 = vsel %vm821_vm12, %v657_v10, %v885_v13  ;;  %vm819_vm14 = vcmp.gt.f32.partialorder %v649_v5, 0.0 }
 0x144   : > { %v883_v20 = vmul.f32 0.2, %v649_v5  ;;  %1265 = vst.msk [vmem:[%s1840_s13 + $0x64] sm:$0xf] %vm1239_vm0, %v1501_v15  ;;  %v1506_v21 = vpack.c.bf16 %v949_v19, %v949_v19  ;;  %vm851_vm15 = vcmp.gt.f32.partialorder %v777_v14, 0.0  ;;  %v660_v26 = vadd.f32 %v2029_v33, %v1829_v40 }
 0x145   : > { %v981_v22 = vsel %vm853_vm13, %v785_v11, %v917_v17  ;;  %v915_v23 = vmul.f32 0.2, %v777_v14  ;;  %1297 = vst.msk [vmem:[%s1840_s13 + $0xe4] sm:$0xf] %vm1239_vm0, %v1533_v18  ;;  %v788_v27 = vadd.f32 %v2031_v38, %v1829_v40  ;;  %v652_v30 = vadd.f32 %v1829_v40, %v2033_v39 }
 0x146   : > { %v1538_v24 = vpack.c.bf16 %v981_v22, %v981_v22  ;;  %v947_v25 = vsel %vm819_vm14, %v649_v5, %v883_v20  ;;  %1270 = vst.msk [vmem:[%s1840_s13 + $0x78] sm:$0xf] %vm1239_vm0, %v1506_v21  ;;  %v780_v32 = vadd.f32 %v1829_v40, %v2035_v43  ;;  %vm822_vm1 = vcmp.gt.f32.partialorder %v660_v26, 0.0 }
 0x147   : > { %v1504_v28 = vpack.c.bf16 %v947_v25, %v947_v25  ;;  %v979_v29 = vsel %vm851_vm15, %v777_v14, %v915_v23  ;;  %v886_v35 = vmul.f32 0.2, %v660_v26  ;;  %vm854_vm2 = vcmp.gt.f32.partialorder %v788_v27, 0.0 }
 0x148   : > { %1302 = vst.msk [vmem:[%s1840_s13 + $0xf8] sm:$0xf] %vm1239_vm0, %v1538_v24  ;;  %v1536_v34 = vpack.c.bf16 %v979_v29, %v979_v29  ;;  %v918_v33 = vmul.f32 0.2, %v788_v27  ;;  %vm820_vm3 = vcmp.gt.f32.partialorder %v652_v30, 0.0  ;;  %vm852_vm4 = vcmp.gt.f32.partialorder %v780_v32, 0.0 }
 0x149   : > { %1268 = vst.msk [vmem:[%s1840_s13 + $0x70] sm:$0xf] %vm1239_vm0, %v1504_v28  ;;  %v884_v36 = vmul.f32 0.2, %v652_v30  ;;  %v950_v37 = vsel %vm822_vm1, %v660_v26, %v886_v35  ;;  %v916_v40 = vmul.f32 0.2, %v780_v32 }
 0x14a   : > { %1300 = vst.msk [vmem:[%s1840_s13 + $0xf0] sm:$0xf] %vm1239_vm0, %v1536_v34  ;;  %v1507_v38 = vpack.c.bf16 %v950_v37, %v950_v37  ;;  %v982_v39 = vsel %vm854_vm2, %v788_v27, %v918_v33 }
 0x14b   : > { %v948_v41 = vsel %vm820_vm3, %v652_v30, %v884_v36  ;;  %v1539_v31 = vpack.c.bf16 %v982_v39, %v982_v39  ;;  %v980_v43 = vsel %vm852_vm4, %v780_v32, %v916_v40 }
 0x14c   : > { %v1505_v42 = vpack.c.bf16 %v948_v41, %v948_v41  ;;  %1271 = vst.msk [vmem:[%s1840_s13 + $0x7c] sm:$0xf] %vm1239_vm0, %v1507_v38  ;;  %v1537_v44 = vpack.c.bf16 %v980_v43, %v980_v43 }
 0x14d   : > { %1303 = vst.msk [vmem:[%s1840_s13 + $0xfc] sm:$0xf] %vm1239_vm0, %v1539_v31 }
 0x14e   : > { %1269 = vst.msk [vmem:[%s1840_s13 + $0x74] sm:$0xf] %vm1239_vm0, %v1505_v42  ;;  %1301 = vst.msk [vmem:[%s1840_s13 + $0xf4] sm:$0xf] %vm1239_vm0, %v1537_v44 }
 0x14f PF: > { %s13_s12 = sadd.s32 1, %s1730_s12  }
 0x150   : > { %p10_p4 = scmp.ge.s32.totalorder %s13_s12, 6  }
 0x152   :  { %12 = sbr.rel (!%p10_p4) target bundleno = 1 (0x1), region = 62 }

// kernel: discriminator_forward.5
= control target key start
LH: loop header
LB: loop body
LE: loop exit
PB: predicated region body
PF: predicated region fallthrough
CT: control target
= control target key end

     0   :  { %v5242_v0 = vmov 0   ;;  %s8197_s1 = inlined_call_operand.vmem [shape: bf16[1024,128], index: 1, kind: input, shape index: {}]   ;;  %s8198_s0 = inlined_call_operand.vmem [shape: bf16[512,1024], index: 0, kind: input, shape index: {}]   ;;  %s8199_s2 = inlined_call_operand.vmem [shape: f32[1,128], index: 2, kind: input, shape index: {}]   ;;  %s8200_s3 = inlined_call_operand.vmem [shape: f32[1,128], index: 3, kind: input, shape index: {}]   ;;  %s8201_s4 = inlined_call_operand.vmem [shape: bf16[512,128], index: 4, kind: output, shape index: {}]  }
   0x1   :  { %2066 = vmatprep.subr.bf16.mxu1 %v5242_v0  ;;  %2644 = vmatprep.subr.bf16.mxu0 %v5242_v0  ;;  %v5176_v1 = vld [vmem:[%s8197_s1] sm:$0xff]   ;;  %v5178_v3 = vld [vmem:[%s8197_s1 + $0x8] sm:$0xff]   ;;  %v5180_v5 = vld [vmem:[%s8197_s1 + $0x10] sm:$0xff]  }
   0x2   :  { %v5177_v2 = vld [vmem:[%s8197_s1 + $0x100] sm:$0xff]   ;;  %2067 = vmatpush1.bf16.msra.mxu1 %v5176_v1  ;;  %v5179_v4 = vld [vmem:[%s8197_s1 + $0x108] sm:$0xff]   ;;  %v5181_v6 = vld [vmem:[%s8197_s1 + $0x110] sm:$0xff]  }
   0x3   :  { %2645 = vmatpush1.bf16.msra.mxu0 %v5177_v2  ;;  %2068 = vmatprep.subr.bf16.mxu1 %v5242_v0  ;;  %v5182_v7 = vld [vmem:[%s8197_s1 + $0x18] sm:$0xff]   ;;  %v5184_v9 = vld [vmem:[%s8197_s1 + $0x20] sm:$0xff]   ;;  %v5186_v11 = vld [vmem:[%s8197_s1 + $0x28] sm:$0xff]  }
   0x4   :  { %2646 = vmatprep.subr.bf16.mxu0 %v5242_v0  ;;  %v5183_v8 = vld [vmem:[%s8197_s1 + $0x118] sm:$0xff]   ;;  %v5185_v10 = vld [vmem:[%s8197_s1 + $0x120] sm:$0xff]   ;;  %v5187_v12 = vld [vmem:[%s8197_s1 + $0x128] sm:$0xff]  }
   0x5   :  { %v5188_v13 = vld [vmem:[%s8197_s1 + $0x30] sm:$0xff]   ;;  %v5190_v15 = vld [vmem:[%s8197_s1 + $0x38] sm:$0xff]   ;;  %v5192_v17 = vld [vmem:[%s8197_s1 + $0x40] sm:$0xff]  }
   0x6   :  { %2069 = vmatpush1.bf16.msra.mxu1 %v5178_v3  ;;  %v5189_v14 = vld [vmem:[%s8197_s1 + $0x130] sm:$0xff]   ;;  %v5191_v16 = vld [vmem:[%s8197_s1 + $0x138] sm:$0xff]   ;;  %v5193_v18 = vld [vmem:[%s8197_s1 + $0x140] sm:$0xff]  }
   0x7   :  { %2647 = vmatpush1.bf16.msra.mxu0 %v5179_v4  ;;  %2070 = vmatprep.subr.bf16.mxu1 %v5242_v0  ;;  %v5343_v19 = vld [vmem:[%s8198_s0] sm:$0xff]  ;;  %v5353_v21 = vld [vmem:[%s8198_s0 + $0x10] sm:$0xff]  ;;  %v5194_v24 = vld [vmem:[%s8197_s1 + $0x48] sm:$0xff]  }
   0x8   :  { %2648 = vmatprep.subr.bf16.mxu0 %v5242_v0  ;;  %v5348_v20 = vld [vmem:[%s8198_s0 + $0x20] sm:$0xff]  ;;  %v5360_v23 = vld [vmem:[%s8198_s0 + $0x30] sm:$0xff]  ;;  %v5195_v26 = vld [vmem:[%s8197_s1 + $0x148] sm:$0xff]  }
   0x9   :  { %v4215_v22 = vcombine.high %v5343_v19, %v5348_v20  ;;  %v4219_v25 = vcombine.high %v5353_v21, %v5360_v23  ;;  %v5196_v27 = vld [vmem:[%s8197_s1 + $0x50] sm:$0xff]   ;;  %v5198_v29 = vld [vmem:[%s8197_s1 + $0x58] sm:$0xff]   ;;  %v5200_v31 = vld [vmem:[%s8197_s1 + $0x60] sm:$0xff]   ;;  %v4214_v42 = vcombine.low %v5343_v19, %v5348_v20  ;;  %v4218_v44 = vcombine.low %v5353_v21, %v5360_v23 }
   0xa   :  { %2071 = vmatpush1.bf16.msra.mxu1 %v5180_v5  ;;  %v5197_v28 = vld [vmem:[%s8197_s1 + $0x150] sm:$0xff]   ;;  %v5199_v30 = vld [vmem:[%s8197_s1 + $0x158] sm:$0xff]   ;;  %v5201_v32 = vld [vmem:[%s8197_s1 + $0x160] sm:$0xff]  }
   0xb   :  { %2649 = vmatpush1.bf16.msra.mxu0 %v5181_v6  ;;  %2072 = vmatprep.subr.bf16.mxu1 %v5242_v0  ;;  %v5202_v33 = vld [vmem:[%s8197_s1 + $0x68] sm:$0xff]   ;;  %v5204_v35 = vld [vmem:[%s8197_s1 + $0x70] sm:$0xff]   ;;  %v5206_v37 = vld [vmem:[%s8197_s1 + $0x78] sm:$0xff]  }
   0xc   :  { %2650 = vmatprep.subr.bf16.mxu0 %v5242_v0  ;;  %2098 = vmatprep.mubr.bf16.mxu1 %v4215_v22  ;;  %v5203_v34 = vld [vmem:[%s8197_s1 + $0x168] sm:$0xff]   ;;  %v5205_v36 = vld [vmem:[%s8197_s1 + $0x170] sm:$0xff]   ;;  %v5207_v38 = vld [vmem:[%s8197_s1 + $0x178] sm:$0xff]  }
   0xd   :  { %2676 = vmatprep.mubr.bf16.mxu0 %v4219_v25  ;;  %v26_v39 = vld [vmem:[%s8198_s0 + $0x40] sm:$0xff]  ;;  %v28_v41 = vld [vmem:[%s8198_s0 + $0x50] sm:$0xff]  ;;  %v5210_v51 = vld [vmem:[%s8197_s1 + $0x88] sm:$0xff]  }
   0xe   :  { %2073 = vmatpush1.bf16.msra.mxu1 %v5182_v7  ;;  %v30_v40 = vld [vmem:[%s8198_s0 + $0x60] sm:$0xff]  ;;  %v32_v43 = vld [vmem:[%s8198_s0 + $0x70] sm:$0xff]  ;;  %v5211_v52 = vld [vmem:[%s8197_s1 + $0x188] sm:$0xff]  }
   0xf   :  { %2651 = vmatpush1.bf16.msra.mxu0 %v5183_v8  ;;  %2074 = vmatprep.subr.bf16.mxu1 %v5242_v0  ;;  %v5208_v45 = vld [vmem:[%s8197_s1 + $0x80] sm:$0xff]   ;;  %v4223_v47 = vcombine.high %v26_v39, %v30_v40  ;;  %v4227_v48 = vcombine.high %v28_v41, %v32_v43  ;;  %v36_v53 = vld [vmem:[%s8198_s0 + $0x90] sm:$0xff]  ;;  %v4222_v55 = vcombine.low %v26_v39, %v30_v40  ;;  %v5214_v2 = vld [vmem:[%s8197_s1 + $0x98] sm:$0xff]  }
  0x10   :  { %2652 = vmatprep.subr.bf16.mxu0 %v5242_v0  ;;  %v5209_v46 = vld [vmem:[%s8197_s1 + $0x180] sm:$0xff]   ;;  %v40_v54 = vld [vmem:[%s8198_s0 + $0xb0] sm:$0xff]  ;;  %v4226_v56 = vcombine.low %v28_v41, %v32_v43  ;;  %v5215_v3 = vld [vmem:[%s8197_s1 + $0x198] sm:$0xff]  }
  0x11   :  { %v34_v49 = vld [vmem:[%s8198_s0 + $0x80] sm:$0xff]  ;;  %v4235_v58 = vcombine.high %v36_v53, %v40_v54  ;;  %v5212_v59 = vld [vmem:[%s8197_s1 + $0x90] sm:$0xff]   ;;  %v4234_v6 = vcombine.low %v36_v53, %v40_v54  ;;  %v5227_v39 = vld [vmem:[%s8197_s1 + $0x1c8] sm:$0xff]  }
  0x12   :  { %2075 = vmatpush1.bf16.msra.mxu1 %v5184_v9  ;;  %v38_v50 = vld [vmem:[%s8198_s0 + $0xa0] sm:$0xff]  ;;  %v5213_v60 = vld [vmem:[%s8197_s1 + $0x190] sm:$0xff]   ;;  %v5230_v54 = vld [vmem:[%s8197_s1 + $0xd8] sm:$0xff]  }
  0x13   :  { %2653 = vmatpush1.bf16.msra.mxu0 %v5185_v10  ;;  %2076 = vmatprep.subr.bf16.mxu1 %v5242_v0  ;;  %v4231_v57 = vcombine.high %v34_v49, %v38_v50  ;;  %v42_v61 = vld [vmem:[%s8198_s0 + $0xc0] sm:$0xff]  ;;  %v44_v63 = vld [vmem:[%s8198_s0 + $0xd0] sm:$0xff]  ;;  %v4230_v4 = vcombine.low %v34_v49, %v38_v50 }
  0x14   :  { %2654 = vmatprep.subr.bf16.mxu0 %v5242_v0  ;;  %v46_v62 = vld [vmem:[%s8198_s0 + $0xe0] sm:$0xff]  ;;  %v48_v1 = vld [vmem:[%s8198_s0 + $0xf0] sm:$0xff] }
  0x15   :  { %v5216_v5 = vld [vmem:[%s8197_s1 + $0xa0] sm:$0xff]   ;;  %v4239_v7 = vcombine.high %v42_v61, %v46_v62  ;;  %v4243_v9 = vcombine.high %v44_v63, %v48_v1  ;;  %v5220_v20 = vld [vmem:[%s8197_s1 + $0xb0] sm:$0xff]  }
  0x16   :  { %2077 = vmatpush1.bf16.msra.mxu1 %v5186_v11  ;;  %v5217_v8 = vld [vmem:[%s8197_s1 + $0x1a0] sm:$0xff]   ;;  %v5221_v21 = vld [vmem:[%s8197_s1 + $0x1b0] sm:$0xff]  }
  0x17   :  { %2655 = vmatpush1.bf16.msra.mxu0 %v5187_v12  ;;  %2078 = vmatprep.subr.bf16.mxu1 %v5242_v0  ;;  %v50_v10 = vld [vmem:[%s8198_s0 + $0x100] sm:$0xff]  ;;  %v52_v12 = vld [vmem:[%s8198_s0 + $0x110] sm:$0xff] }
  0x18   :  { %2656 = vmatprep.subr.bf16.mxu0 %v5242_v0  ;;  %v54_v11 = vld [vmem:[%s8198_s0 + $0x120] sm:$0xff]  ;;  %v60_v25 = vld [vmem:[%s8198_s0 + $0x150] sm:$0xff] }
  0x19   :  { %v58_v22 = vld [vmem:[%s8198_s0 + $0x140] sm:$0xff]  ;;  %v80_v49 = vld [vmem:[%s8198_s0 + $0x1f0] sm:$0xff] }
  0x1a   :  { %2079 = vmatpush1.bf16.msra.mxu1 %v5188_v13  ;;  %v56_v13 = vld [vmem:[%s8198_s0 + $0x130] sm:$0xff]  ;;  %v62_v23 = vld [vmem:[%s8198_s0 + $0x160] sm:$0xff] }
  0x1b   :  { %2657 = vmatpush1.bf16.msra.mxu0 %v5189_v14  ;;  %2080 = vmatprep.subr.bf16.mxu1 %v5242_v0  ;;  %v5218_v14 = vld [vmem:[%s8197_s1 + $0xa8] sm:$0xff]   ;;  %v4251_v19 = vcombine.high %v52_v12, %v56_v13  ;;  %v4254_v40 = vcombine.low %v58_v22, %v62_v23 }
  0x1c   :  { %2658 = vmatprep.subr.bf16.mxu0 %v5242_v0 }
  0x1e   :  { %2081 = vmatpush1.bf16.msra.mxu1 %v5190_v15  ;;  %v5219_v15 = vld [vmem:[%s8197_s1 + $0x1a8] sm:$0xff]  }
  0x1f   :  { %2659 = vmatpush1.bf16.msra.mxu0 %v5191_v16  ;;  %2082 = vmatprep.subr.bf16.mxu1 %v5242_v0  ;;  %v4238_v16 = vcombine.low %v42_v61, %v46_v62 }
  0x20   :  { %2660 = vmatprep.subr.bf16.mxu0 %v5242_v0 }
  0x22   :  { %2083 = vmatpush1.bf16.msra.mxu1 %v5192_v17  ;;  %v4242_v17 = vcombine.low %v44_v63, %v48_v1  ;;  %v90_v1 = vld [vmem:[%s8198_s0 + $0x240] sm:$0xff] }
  0x23   :  { %2661 = vmatpush1.bf16.msra.mxu0 %v5193_v18  ;;  %2084 = vmatprep.subr.bf16.mxu1 %v5242_v0  ;;  %v4247_v18 = vcombine.high %v50_v10, %v54_v11 }
  0x24   :  { %2662 = vmatprep.subr.bf16.mxu0 %v5242_v0 }
  0x26   :  { %2085 = vmatpush1.bf16.msra.mxu1 %v5194_v24  ;;  %v5222_v24 = vld [vmem:[%s8197_s1 + $0xb8] sm:$0xff]  }
  0x27   :  { %2663 = vmatpush1.bf16.msra.mxu0 %v5195_v26  ;;  %2086 = vmatprep.subr.bf16.mxu1 %v5242_v0  ;;  %v64_v26 = vld [vmem:[%s8198_s0 + $0x170] sm:$0xff] }
  0x28   :  { %2664 = vmatprep.subr.bf16.mxu0 %v5242_v0  ;;  %v4258_v41 = vcombine.low %v60_v25, %v64_v26 }
  0x2a   :  { %2087 = vmatpush1.bf16.msra.mxu1 %v5196_v27  ;;  %v5223_v27 = vld [vmem:[%s8197_s1 + $0x1b8] sm:$0xff]  }
  0x2b   :  { %2665 = vmatpush1.bf16.msra.mxu0 %v5197_v28  ;;  %2088 = vmatprep.subr.bf16.mxu1 %v5242_v0  ;;  %v4246_v28 = vcombine.low %v50_v10, %v54_v11  ;;  %v5233_v10 = vld [vmem:[%s8197_s1 + $0x1e0] sm:$0xff]  }
  0x2c   :  { %2666 = vmatprep.subr.bf16.mxu0 %v5242_v0  ;;  %v98_v11 = vld [vmem:[%s8198_s0 + $0x280] sm:$0xff] }
  0x2e   :  { %2089 = vmatpush1.bf16.msra.mxu1 %v5198_v29  ;;  %v4250_v29 = vcombine.low %v52_v12, %v56_v13  ;;  %v102_v12 = vld [vmem:[%s8198_s0 + $0x2a0] sm:$0xff]  ;;  %v100_v13 = vld [vmem:[%s8198_s0 + $0x290] sm:$0xff] }
  0x2f   :  { %2667 = vmatpush1.bf16.msra.mxu0 %v5199_v30  ;;  %2090 = vmatprep.subr.bf16.mxu1 %v5242_v0  ;;  %v4255_v30 = vcombine.high %v58_v22, %v62_v23  ;;  %v112_v22 = vld [vmem:[%s8198_s0 + $0x2f0] sm:$0xff]  ;;  %v4294_v23 = vcombine.low %v98_v11, %v102_v12 }
  0x30   :  { %2668 = vmatprep.subr.bf16.mxu0 %v5242_v0 }
  0x32   :  { %2091 = vmatpush1.bf16.msra.mxu1 %v5200_v31  ;;  %v4259_v31 = vcombine.high %v60_v25, %v64_v26 }
  0x33   :  { %2669 = vmatpush1.bf16.msra.mxu0 %v5201_v32  ;;  %2092 = vmatprep.subr.bf16.mxu1 %v5242_v0  ;;  %v5224_v32 = vld [vmem:[%s8197_s1 + $0xc0] sm:$0xff]  }
  0x34   :  { %2670 = vmatprep.subr.bf16.mxu0 %v5242_v0 }
  0x36   :  { %2093 = vmatpush1.bf16.msra.mxu1 %v5202_v33  ;;  %v5225_v33 = vld [vmem:[%s8197_s1 + $0x1c0] sm:$0xff]  }
  0x37   :  { %2671 = vmatpush1.bf16.msra.mxu0 %v5203_v34  ;;  %2094 = vmatprep.subr.bf16.mxu1 %v5242_v0  ;;  %v66_v34 = vld [vmem:[%s8198_s0 + $0x180] sm:$0xff] }
  0x38   :  { %2672 = vmatprep.subr.bf16.mxu0 %v5242_v0 }
  0x3a   :  { %2095 = vmatpush1.bf16.msra.mxu1 %v5204_v35  ;;  %v70_v35 = vld [vmem:[%s8198_s0 + $0x1a0] sm:$0xff] }
  0x3b   :  { %2673 = vmatpush1.bf16.msra.mxu0 %v5205_v36  ;;  %2096 = vmatprep.subr.bf16.mxu1 %v5242_v0  ;;  %v5226_v36 = vld [vmem:[%s8197_s1 + $0xc8] sm:$0xff]   ;;  %v4262_v50 = vcombine.low %v66_v34, %v70_v35 }
  0x3c   :  { %2674 = vmatprep.subr.bf16.mxu0 %v5242_v0 }
  0x3e   :  { %2097 = vmatpush1.bf16.msra.mxu1 %v5206_v37  ;;  %v68_v37 = vld [vmem:[%s8198_s0 + $0x190] sm:$0xff] }
  0x3f   :  { %2675 = vmatpush1.bf16.msra.mxu0 %v5207_v38  ;;  %2355 = vmatprep.subr.bf16.mxu1 %v5242_v0  ;;  %v72_v38 = vld [vmem:[%s8198_s0 + $0x1b0] sm:$0xff] }
  0x40   :  { %2933 = vmatprep.subr.bf16.mxu0 %v5242_v0  ;;  %v4267_v43 = vcombine.high %v68_v37, %v72_v38 }
  0x41   :  { %2099 = vmatmul.mubr.bf16.vlgmr.msra.gmra.mrb[0].mxu1 %v4214_v42  ;;  %v4263_v42 = vcombine.high %v66_v34, %v70_v35 }
  0x42   :  { %2677 = vmatmul.mubr.bf16.vlgmr.msra.gmra.mrb[0].mxu0 %v4218_v44  ;;  %2356 = vmatpush1.bf16.msra.mxu1 %v5208_v45  ;;  %v5228_v44 = vld [vmem:[%s8197_s1 + $0xd0] sm:$0xff]  }
  0x43   :  { %2934 = vmatpush1.bf16.msra.mxu0 %v5209_v46  ;;  %2106 = vmatprep.mubr.bf16.mxu1 %v4223_v47  ;;  %v5229_v45 = vld [vmem:[%s8197_s1 + $0x1d0] sm:$0xff]   ;;  %v74_v46 = vld [vmem:[%s8198_s0 + $0x1c0] sm:$0xff] }
  0x44   :  { %2684 = vmatprep.mubr.bf16.mxu0 %v4227_v48  ;;  %2357 = vmatprep.subr.bf16.mxu1 %v5242_v0  ;;  %v78_v47 = vld [vmem:[%s8198_s0 + $0x1e0] sm:$0xff]  ;;  %v76_v48 = vld [vmem:[%s8198_s0 + $0x1d0] sm:$0xff] }
  0x45   :  { %2935 = vmatprep.subr.bf16.mxu0 %v5242_v0  ;;  %v4275_v53 = vcombine.high %v76_v48, %v80_v49  ;;  %v4274_v61 = vcombine.low %v76_v48, %v80_v49  ;;  %v134_v48 = vld [vmem:[%s8198_s0 + $0x3a0] sm:$0xff]  ;;  %v132_v49 = vld [vmem:[%s8198_s0 + $0x390] sm:$0xff] }
  0x46   :  { %2358 = vmatpush1.bf16.msra.mxu1 %v5210_v51  ;;  %v4266_v51 = vcombine.low %v68_v37, %v72_v38  ;;  %v122_v37 = vld [vmem:[%s8198_s0 + $0x340] sm:$0xff] }
  0x47   :  { %2936 = vmatpush1.bf16.msra.mxu0 %v5211_v52  ;;  %2359 = vmatprep.subr.bf16.mxu1 %v5242_v0  ;;  %v4271_v52 = vcombine.high %v74_v46, %v78_v47  ;;  %v126_v38 = vld [vmem:[%s8198_s0 + $0x360] sm:$0xff] }
  0x48   :  { %2937 = vmatprep.subr.bf16.mxu0 %v5242_v0 }
  0x49   :  { %2107 = vmatmul.mubr.bf16.gmra.mrb[4].mxu1 %v4222_v55  ;;  %v5231_v55 = vld [vmem:[%s8197_s1 + $0x1d8] sm:$0xff]  }
  0x4a   :  { %2685 = vmatmul.mubr.bf16.gmra.mrb[4].mxu0 %v4226_v56  ;;  %2114 = vmatprep.mubr.bf16.mxu1 %v4231_v57  ;;  %v82_v56 = vld [vmem:[%s8198_s0 + $0x200] sm:$0xff] }
  0x4b   :  { %2692 = vmatprep.mubr.bf16.mxu0 %v4235_v58  ;;  %2360 = vmatpush1.bf16.msra.mxu1 %v5212_v59  ;;  %v86_v57 = vld [vmem:[%s8198_s0 + $0x220] sm:$0xff]  ;;  %v84_v58 = vld [vmem:[%s8198_s0 + $0x210] sm:$0xff] }
  0x4c   :  { %2938 = vmatpush1.bf16.msra.mxu0 %v5213_v60  ;;  %2361 = vmatprep.subr.bf16.mxu1 %v5242_v0  ;;  %v88_v59 = vld [vmem:[%s8198_s0 + $0x230] sm:$0xff]  ;;  %v4270_v60 = vcombine.low %v74_v46, %v78_v47  ;;  %v4279_v62 = vcombine.high %v82_v56, %v86_v57  ;;  %v130_v47 = vld [vmem:[%s8198_s0 + $0x380] sm:$0xff] }
  0x4d   :  { %2939 = vmatprep.subr.bf16.mxu0 %v5242_v0  ;;  %v4283_v63 = vcombine.high %v84_v58, %v88_v59  ;;  %v5237_v46 = vld [vmem:[%s8197_s1 + $0x1f0] sm:$0xff]  }
  0x4f   :  { %2362 = vmatpush1.bf16.msra.mxu1 %v5214_v2  ;;  %v94_v2 = vld [vmem:[%s8198_s0 + $0x260] sm:$0xff] }
  0x50   :  { %2940 = vmatpush1.bf16.msra.mxu0 %v5215_v3  ;;  %2363 = vmatprep.subr.bf16.mxu1 %v5242_v0  ;;  %v92_v3 = vld [vmem:[%s8198_s0 + $0x250] sm:$0xff] }
  0x51   :  { %2115 = vmatmul.mubr.bf16.gmra.mrb[8].mxu1 %v4230_v4  ;;  %2941 = vmatprep.subr.bf16.mxu0 %v5242_v0  ;;  %v96_v4 = vld [vmem:[%s8198_s0 + $0x270] sm:$0xff] }
  0x52   :  { %2693 = vmatmul.mubr.bf16.gmra.mrb[8].mxu0 %v4234_v6  ;;  %2122 = vmatprep.mubr.bf16.mxu1 %v4239_v7  ;;  %v4282_v6 = vcombine.low %v84_v58, %v88_v59  ;;  %v4287_v7 = vcombine.high %v90_v1, %v94_v2  ;;  %v4326_v58 = vcombine.low %v130_v47, %v134_v48 }
  0x53   :  { %2700 = vmatprep.mubr.bf16.mxu0 %v4243_v9  ;;  %2364 = vmatpush1.bf16.msra.mxu1 %v5216_v5  ;;  %v4278_v5 = vcombine.low %v82_v56, %v86_v57  ;;  %v5232_v9 = vld [vmem:[%s8197_s1 + $0xe0] sm:$0xff]   ;;  %v140_v57 = vld [vmem:[%s8198_s0 + $0x3d0] sm:$0xff] }
  0x54   :  { %2942 = vmatpush1.bf16.msra.mxu0 %v5217_v8  ;;  %2365 = vmatprep.subr.bf16.mxu1 %v5242_v0  ;;  %v4291_v8 = vcombine.high %v92_v3, %v96_v4  ;;  %v142_v56 = vld [vmem:[%s8198_s0 + $0x3e0] sm:$0xff] }
  0x55   :  { %2943 = vmatprep.subr.bf16.mxu0 %v5242_v0 }
  0x57   :  { %2366 = vmatpush1.bf16.msra.mxu1 %v5218_v14  ;;  %v104_v14 = vld [vmem:[%s8198_s0 + $0x2b0] sm:$0xff] }
  0x58   :  { %2944 = vmatpush1.bf16.msra.mxu0 %v5219_v15  ;;  %2367 = vmatprep.subr.bf16.mxu1 %v5242_v0  ;;  %v4286_v15 = vcombine.low %v90_v1, %v94_v2  ;;  %v146_v1 = vld [vmem:[%s8198_s0 + $0x400] sm:$0xff] }
  0x59   :  { %2123 = vmatmul.mubr.bf16.gmra.mrb[12].mxu1 %v4238_v16  ;;  %2945 = vmatprep.subr.bf16.mxu0 %v5242_v0  ;;  %v4290_v16 = vcombine.low %v92_v3, %v96_v4  ;;  %v150_v2 = vld [vmem:[%s8198_s0 + $0x420] sm:$0xff]  ;;  %v148_v3 = vld [vmem:[%s8198_s0 + $0x410] sm:$0xff] }
  0x5a   :  { %2701 = vmatmul.mubr.bf16.gmra.mrb[12].mxu0 %v4242_v17  ;;  %2130 = vmatprep.mubr.bf16.mxu1 %v4247_v18  ;;  %v4295_v17 = vcombine.high %v98_v11, %v102_v12  ;;  %v4299_v18 = vcombine.high %v100_v13, %v104_v14  ;;  %v152_v4 = vld [vmem:[%s8198_s0 + $0x430] sm:$0xff] }
  0x5b   :  { %2708 = vmatprep.mubr.bf16.mxu0 %v4251_v19  ;;  %2368 = vmatpush1.bf16.msra.mxu1 %v5220_v20  ;;  %v106_v19 = vld [vmem:[%s8198_s0 + $0x2c0] sm:$0xff]  ;;  %v156_v11 = vld [vmem:[%s8198_s0 + $0x450] sm:$0xff] }
  0x5c   :  { %2946 = vmatpush1.bf16.msra.mxu0 %v5221_v21  ;;  %2369 = vmatprep.subr.bf16.mxu1 %v5242_v0  ;;  %v110_v20 = vld [vmem:[%s8198_s0 + $0x2e0] sm:$0xff]  ;;  %v108_v21 = vld [vmem:[%s8198_s0 + $0x2d0] sm:$0xff] }
  0x5d   :  { %2947 = vmatprep.subr.bf16.mxu0 %v5242_v0  ;;  %v4303_v25 = vcombine.high %v106_v19, %v110_v20  ;;  %v4307_v26 = vcombine.high %v108_v21, %v112_v22  ;;  %v4306_v34 = vcombine.low %v108_v21, %v112_v22  ;;  %v160_v12 = vld [vmem:[%s8198_s0 + $0x470] sm:$0xff] }
  0x5e   :  { %v4354_v22 = vcombine.low %v156_v11, %v160_v12 }
  0x5f   :  { %2370 = vmatpush1.bf16.msra.mxu1 %v5222_v24  ;;  %v4298_v24 = vcombine.low %v100_v13, %v104_v14  ;;  %v4342_v13 = vcombine.low %v146_v1, %v150_v2  ;;  %v4346_v14 = vcombine.low %v148_v3, %v152_v4 }
  0x60   :  { %2948 = vmatpush1.bf16.msra.mxu0 %v5223_v27  ;;  %2371 = vmatprep.subr.bf16.mxu1 %v5242_v0  ;;  %v5234_v27 = vld [vmem:[%s8197_s1 + $0xe8] sm:$0xff]  }
  0x61   :  { %2131 = vmatmul.mubr.bf16.gmra.mrb[16].mxu1 %v4246_v28  ;;  %2949 = vmatprep.subr.bf16.mxu0 %v5242_v0  ;;  %v5235_v28 = vld [vmem:[%s8197_s1 + $0x1e8] sm:$0xff]  }
  0x62   :  { %2709 = vmatmul.mubr.bf16.gmra.mrb[16].mxu0 %v4250_v29  ;;  %2138 = vmatprep.mubr.bf16.mxu1 %v4255_v30  ;;  %v114_v29 = vld [vmem:[%s8198_s0 + $0x300] sm:$0xff] }
  0x63   :  { %2716 = vmatprep.mubr.bf16.mxu0 %v4259_v31  ;;  %2372 = vmatpush1.bf16.msra.mxu1 %v5224_v32  ;;  %v118_v30 = vld [vmem:[%s8198_s0 + $0x320] sm:$0xff]  ;;  %v116_v31 = vld [vmem:[%s8198_s0 + $0x310] sm:$0xff] }
  0x64   :  { %2950 = vmatpush1.bf16.msra.mxu0 %v5225_v33  ;;  %2373 = vmatprep.subr.bf16.mxu1 %v5242_v0  ;;  %v120_v32 = vld [vmem:[%s8198_s0 + $0x330] sm:$0xff]  ;;  %v4302_v33 = vcombine.low %v106_v19, %v110_v20  ;;  %v4311_v35 = vcombine.high %v114_v29, %v118_v30 }
  0x65   :  { %2951 = vmatprep.subr.bf16.mxu0 %v5242_v0  ;;  %v164_v19 = vld [vmem:[%s8198_s0 + $0x490] sm:$0xff] }
  0x66   :  { %v168_v20 = vld [vmem:[%s8198_s0 + $0x4b0] sm:$0xff] }
  0x67   :  { %2374 = vmatpush1.bf16.msra.mxu1 %v5226_v36  ;;  %v4315_v36 = vcombine.high %v116_v31, %v120_v32 }
  0x68   :  { %2952 = vmatpush1.bf16.msra.mxu0 %v5227_v39  ;;  %2375 = vmatprep.subr.bf16.mxu1 %v5242_v0  ;;  %v124_v39 = vld [vmem:[%s8198_s0 + $0x350] sm:$0xff] }
  0x69   :  { %2139 = vmatmul.mubr.bf16.gmra.mrb[20].mxu1 %v4254_v40  ;;  %2953 = vmatprep.subr.bf16.mxu0 %v5242_v0  ;;  %v128_v40 = vld [vmem:[%s8198_s0 + $0x370] sm:$0xff] }
  0x6a   :  { %2717 = vmatmul.mubr.bf16.gmra.mrb[20].mxu0 %v4258_v41  ;;  %2146 = vmatprep.mubr.bf16.mxu1 %v4263_v42  ;;  %v4310_v41 = vcombine.low %v114_v29, %v118_v30  ;;  %v4314_v42 = vcombine.low %v116_v31, %v120_v32  ;;  %v4362_v30 = vcombine.low %v164_v19, %v168_v20 }
  0x6b   :  { %2724 = vmatprep.mubr.bf16.mxu0 %v4267_v43  ;;  %2376 = vmatpush1.bf16.msra.mxu1 %v5228_v44  ;;  %v4319_v43 = vcombine.high %v122_v37, %v126_v38  ;;  %v4323_v44 = vcombine.high %v124_v39, %v128_v40 }
  0x6c   :  { %2954 = vmatpush1.bf16.msra.mxu0 %v5229_v45  ;;  %2377 = vmatprep.subr.bf16.mxu1 %v5242_v0  ;;  %v5236_v45 = vld [vmem:[%s8197_s1 + $0xf0] sm:$0xff]  }
  0x6d   :  { %2955 = vmatprep.subr.bf16.mxu0 %v5242_v0 }
  0x6f   :  { %2378 = vmatpush1.bf16.msra.mxu1 %v5230_v54 }
  0x70   :  { %2956 = vmatpush1.bf16.msra.mxu0 %v5231_v55  ;;  %2379 = vmatprep.subr.bf16.mxu1 %v5242_v0  ;;  %v138_v55 = vld [vmem:[%s8198_s0 + $0x3c0] sm:$0xff] }
  0x71   :  { %2147 = vmatmul.mubr.bf16.gmra.mrb[24].mxu1 %v4262_v50  ;;  %2957 = vmatprep.subr.bf16.mxu0 %v5242_v0  ;;  %v136_v50 = vld [vmem:[%s8198_s0 + $0x3b0] sm:$0xff] }
  0x72   :  { %2725 = vmatmul.mubr.bf16.gmra.mrb[24].mxu0 %v4266_v51  ;;  %2154 = vmatprep.mubr.bf16.mxu1 %v4271_v52  ;;  %v4318_v51 = vcombine.low %v122_v37, %v126_v38  ;;  %v4322_v52 = vcombine.low %v124_v39, %v128_v40  ;;  %v4331_v54 = vcombine.high %v132_v49, %v136_v50 }
  0x73   :  { %2732 = vmatprep.mubr.bf16.mxu0 %v4275_v53  ;;  %2380 = vmatpush1.bf16.msra.mxu1 %v5232_v9  ;;  %v4327_v53 = vcombine.high %v130_v47, %v134_v48  ;;  %v4330_v59 = vcombine.low %v132_v49, %v136_v50  ;;  %v154_v9 = vld [vmem:[%s8198_s0 + $0x440] sm:$0xff] }
  0x74   :  { %2958 = vmatpush1.bf16.msra.mxu0 %v5233_v10  ;;  %2381 = vmatprep.subr.bf16.mxu1 %v5242_v0  ;;  %v158_v10 = vld [vmem:[%s8198_s0 + $0x460] sm:$0xff] }
  0x75   :  { %2959 = vmatprep.subr.bf16.mxu0 %v5242_v0  ;;  %v4350_v21 = vcombine.low %v154_v9, %v158_v10  ;;  %v194_v49 = vld [vmem:[%s8198_s0 + $0x580] sm:$0xff] }
  0x76   :  { %v198_v50 = vld [vmem:[%s8198_s0 + $0x5a0] sm:$0xff] }
  0x77   :  { %2382 = vmatpush1.bf16.msra.mxu1 %v5234_v27  ;;  %v172_v27 = vld [vmem:[%s8198_s0 + $0x4d0] sm:$0xff] }
  0x78   :  { %2960 = vmatpush1.bf16.msra.mxu0 %v5235_v28  ;;  %2383 = vmatprep.subr.bf16.mxu1 %v5242_v0  ;;  %v176_v28 = vld [vmem:[%s8198_s0 + $0x4f0] sm:$0xff] }
  0x79   :  { %2155 = vmatmul.mubr.bf16.gmra.mrb[28].mxu1 %v4270_v60  ;;  %2961 = vmatprep.subr.bf16.mxu0 %v5242_v0  ;;  %v4335_v60 = vcombine.high %v138_v55, %v142_v56  ;;  %v4371_v32 = vcombine.high %v172_v27, %v176_v28  ;;  %v4370_v38 = vcombine.low %v172_v27, %v176_v28  ;;  %v236_v27 = vld [vmem:[%s8198_s0 + $0x6d0] sm:$0xff] }
  0x7a   :  { %2733 = vmatmul.mubr.bf16.gmra.mrb[28].mxu0 %v4274_v61  ;;  %2162 = vmatprep.mubr.bf16.mxu1 %v4279_v62  ;;  %v5238_v62 = vld [vmem:[%s8197_s1 + $0xf8] sm:$0xff]   ;;  %v240_v28 = vld [vmem:[%s8198_s0 + $0x6f0] sm:$0xff] }
  0x7b   :  { %2740 = vmatprep.mubr.bf16.mxu0 %v4283_v63  ;;  %2384 = vmatpush1.bf16.msra.mxu1 %v5236_v45  ;;  %v5239_v63 = vld [vmem:[%s8197_s1 + $0x1f8] sm:$0xff]  }
  0x7c   :  { %2962 = vmatpush1.bf16.msra.mxu0 %v5237_v46  ;;  %2385 = vmatprep.subr.bf16.mxu1 %v5242_v0 }
  0x7d   :  { %2963 = vmatprep.subr.bf16.mxu0 %v5242_v0  ;;  %v144_v0 = vld [vmem:[%s8198_s0 + $0x3f0] sm:$0xff] }
  0x7e   :  { %v4339_v61 = vcombine.high %v140_v57, %v144_v0 }
  0x7f   :  { %2386 = vmatpush1.bf16.msra.mxu1 %v5238_v62 }
  0x80   :  { %2964 = vmatpush1.bf16.msra.mxu0 %v5239_v63 }
  0x81   :  { %2163 = vmatmul.mubr.bf16.gmra.mrb[32].mxu1 %v4278_v5  ;;  %v4334_v5 = vcombine.low %v138_v55, %v142_v56  ;;  %v4391_v55 = vcombine.high %v194_v49, %v198_v50 }
  0x82   :  { %2741 = vmatmul.mubr.bf16.gmra.mrb[32].mxu0 %v4282_v6  ;;  %2170 = vmatprep.mubr.bf16.mxu1 %v4287_v7  ;;  %v4338_v6 = vcombine.low %v140_v57, %v144_v0  ;;  %v4343_v7 = vcombine.high %v146_v1, %v150_v2  ;;  %v202_v57 = vld [vmem:[%s8198_s0 + $0x5c0] sm:$0xff] }
  0x83   :  { %2748 = vmatprep.mubr.bf16.mxu0 %v4291_v8  ;;  %v4347_v8 = vcombine.high %v148_v3, %v152_v4  ;;  %v206_v0 = vld [vmem:[%s8198_s0 + $0x5e0] sm:$0xff]  ;;  %v212_v3 = vld [vmem:[%s8198_s0 + $0x610] sm:$0xff] }
  0x84   :  { %v4399_v62 = vcombine.high %v202_v57, %v206_v0  ;;  %v210_v1 = vld [vmem:[%s8198_s0 + $0x600] sm:$0xff]  ;;  %v216_v4 = vld [vmem:[%s8198_s0 + $0x630] sm:$0xff] }
  0x85   :  { %v214_v2 = vld [vmem:[%s8198_s0 + $0x620] sm:$0xff] }
  0x89   :  { %2171 = vmatmul.mubr.bf16.gmra.mrb[36].mxu1 %v4286_v15  ;;  %v4351_v15 = vcombine.high %v154_v9, %v158_v10  ;;  %v218_v9 = vld [vmem:[%s8198_s0 + $0x640] sm:$0xff] }
  0x8a   :  { %2749 = vmatmul.mubr.bf16.gmra.mrb[36].mxu0 %v4290_v16  ;;  %2178 = vmatprep.mubr.bf16.mxu1 %v4295_v17  ;;  %v4355_v16 = vcombine.high %v156_v11, %v160_v12  ;;  %v162_v17 = vld [vmem:[%s8198_s0 + $0x480] sm:$0xff]  ;;  %v220_v11 = vld [vmem:[%s8198_s0 + $0x650] sm:$0xff] }
  0x8b   :  { %2756 = vmatprep.mubr.bf16.mxu0 %v4299_v18  ;;  %v166_v18 = vld [vmem:[%s8198_s0 + $0x4a0] sm:$0xff]  ;;  %v224_v12 = vld [vmem:[%s8198_s0 + $0x670] sm:$0xff] }
  0x8c   :  { %v4358_v29 = vcombine.low %v162_v17, %v166_v18  ;;  %v222_v10 = vld [vmem:[%s8198_s0 + $0x660] sm:$0xff] }
  0x91   :  { %2179 = vmatmul.mubr.bf16.gmra.mrb[40].mxu1 %v4294_v23  ;;  %v4359_v23 = vcombine.high %v162_v17, %v166_v18  ;;  %v226_v17 = vld [vmem:[%s8198_s0 + $0x680] sm:$0xff] }
  0x92   :  { %2757 = vmatmul.mubr.bf16.gmra.mrb[40].mxu0 %v4298_v24  ;;  %2186 = vmatprep.mubr.bf16.mxu1 %v4303_v25  ;;  %v4363_v24 = vcombine.high %v164_v19, %v168_v20  ;;  %v170_v25 = vld [vmem:[%s8198_s0 + $0x4c0] sm:$0xff]  ;;  %v228_v19 = vld [vmem:[%s8198_s0 + $0x690] sm:$0xff] }
  0x93   :  { %2764 = vmatprep.mubr.bf16.mxu0 %v4307_v26  ;;  %v174_v26 = vld [vmem:[%s8198_s0 + $0x4e0] sm:$0xff]  ;;  %v232_v20 = vld [vmem:[%s8198_s0 + $0x6b0] sm:$0xff] }
  0x94   :  { %v4367_v31 = vcombine.high %v170_v25, %v174_v26  ;;  %v4366_v37 = vcombine.low %v170_v25, %v174_v26  ;;  %v230_v18 = vld [vmem:[%s8198_s0 + $0x6a0] sm:$0xff] }
  0x95   :  { %v234_v25 = vld [vmem:[%s8198_s0 + $0x6c0] sm:$0xff] }
  0x96   :  { %v238_v26 = vld [vmem:[%s8198_s0 + $0x6e0] sm:$0xff] }
  0x99   :  { %2187 = vmatmul.mubr.bf16.gmra.mrb[44].mxu1 %v4302_v33  ;;  %v178_v33 = vld [vmem:[%s8198_s0 + $0x500] sm:$0xff] }
  0x9a   :  { %2765 = vmatmul.mubr.bf16.gmra.mrb[44].mxu0 %v4306_v34  ;;  %2194 = vmatprep.mubr.bf16.mxu1 %v4311_v35  ;;  %v182_v34 = vld [vmem:[%s8198_s0 + $0x520] sm:$0xff]  ;;  %v180_v35 = vld [vmem:[%s8198_s0 + $0x510] sm:$0xff] }
  0x9b   :  { %2772 = vmatprep.mubr.bf16.mxu0 %v4315_v36  ;;  %v184_v36 = vld [vmem:[%s8198_s0 + $0x530] sm:$0xff]  ;;  %v4375_v39 = vcombine.high %v178_v33, %v182_v34  ;;  %v4374_v45 = vcombine.low %v178_v33, %v182_v34  ;;  %v242_v33 = vld [vmem:[%s8198_s0 + $0x700] sm:$0xff] }
  0x9c   :  { %v4379_v40 = vcombine.high %v180_v35, %v184_v36  ;;  %v4378_v46 = vcombine.low %v180_v35, %v184_v36  ;;  %v246_v34 = vld [vmem:[%s8198_s0 + $0x720] sm:$0xff]  ;;  %v244_v35 = vld [vmem:[%s8198_s0 + $0x710] sm:$0xff] }
  0x9d   :  { %v248_v36 = vld [vmem:[%s8198_s0 + $0x730] sm:$0xff] }
  0xa1   :  { %2195 = vmatmul.mubr.bf16.gmra.mrb[48].mxu1 %v4310_v41  ;;  %v186_v41 = vld [vmem:[%s8198_s0 + $0x540] sm:$0xff] }
  0xa2   :  { %2773 = vmatmul.mubr.bf16.gmra.mrb[48].mxu0 %v4314_v42  ;;  %2202 = vmatprep.mubr.bf16.mxu1 %v4319_v43  ;;  %v190_v42 = vld [vmem:[%s8198_s0 + $0x560] sm:$0xff]  ;;  %v188_v43 = vld [vmem:[%s8198_s0 + $0x550] sm:$0xff] }
  0xa3   :  { %2780 = vmatprep.mubr.bf16.mxu0 %v4323_v44  ;;  %v192_v44 = vld [vmem:[%s8198_s0 + $0x570] sm:$0xff]  ;;  %v4383_v47 = vcombine.high %v186_v41, %v190_v42 }
  0xa4   :  { %v4387_v48 = vcombine.high %v188_v43, %v192_v44 }
  0xa9   :  { %2203 = vmatmul.mubr.bf16.gmra.mrb[52].mxu1 %v4318_v51  ;;  %v196_v51 = vld [vmem:[%s8198_s0 + $0x590] sm:$0xff] }
  0xaa   :  { %2781 = vmatmul.mubr.bf16.gmra.mrb[52].mxu0 %v4322_v52  ;;  %2210 = vmatprep.mubr.bf16.mxu1 %v4327_v53  ;;  %v200_v52 = vld [vmem:[%s8198_s0 + $0x5b0] sm:$0xff]  ;;  %v4382_v53 = vcombine.low %v186_v41, %v190_v42  ;;  %v250_v41 = vld [vmem:[%s8198_s0 + $0x740] sm:$0xff] }
  0xab   :  { %2788 = vmatprep.mubr.bf16.mxu0 %v4331_v54  ;;  %v4386_v54 = vcombine.low %v188_v43, %v192_v44  ;;  %v4395_v56 = vcombine.high %v196_v51, %v200_v52  ;;  %v254_v42 = vld [vmem:[%s8198_s0 + $0x760] sm:$0xff]  ;;  %v252_v43 = vld [vmem:[%s8198_s0 + $0x750] sm:$0xff] }
  0xac   :  { %v256_v44 = vld [vmem:[%s8198_s0 + $0x770] sm:$0xff] }
  0xb1   :  { %2211 = vmatmul.mubr.bf16.gmra.mrb[56].mxu1 %v4326_v58  ;;  %v204_v58 = vld [vmem:[%s8198_s0 + $0x5d0] sm:$0xff] }
  0xb2   :  { %2789 = vmatmul.mubr.bf16.gmra.mrb[56].mxu0 %v4330_v59  ;;  %2218 = vmatprep.mubr.bf16.mxu1 %v4335_v60  ;;  %v208_v59 = vld [vmem:[%s8198_s0 + $0x5f0] sm:$0xff]  ;;  %v4390_v60 = vcombine.low %v194_v49, %v198_v50  ;;  %v258_v49 = vld [vmem:[%s8198_s0 + $0x780] sm:$0xff] }
  0xb3   :  { %2796 = vmatprep.mubr.bf16.mxu0 %v4339_v61  ;;  %v4394_v61 = vcombine.low %v196_v51, %v200_v52  ;;  %v4403_v63 = vcombine.high %v204_v58, %v208_v59  ;;  %v262_v50 = vld [vmem:[%s8198_s0 + $0x7a0] sm:$0xff]  ;;  %v260_v51 = vld [vmem:[%s8198_s0 + $0x790] sm:$0xff] }
  0xb4   :  { %v264_v52 = vld [vmem:[%s8198_s0 + $0x7b0] sm:$0xff] }
  0xb9   :  { %2219 = vmatmul.mubr.bf16.gmra.mrb[60].mxu1 %v4334_v5  ;;  %v4398_v5 = vcombine.low %v202_v57, %v206_v0  ;;  %v266_v57 = vld [vmem:[%s8198_s0 + $0x7c0] sm:$0xff] }
  0xba   :  { %2797 = vmatmul.mubr.bf16.gmra.mrb[60].mxu0 %v4338_v6  ;;  %2226 = vmatprep.mubr.bf16.mxu1 %v4343_v7  ;;  %v4402_v6 = vcombine.low %v204_v58, %v208_v59  ;;  %v4407_v7 = vcombine.high %v210_v1, %v214_v2  ;;  %v270_v0 = vld [vmem:[%s8198_s0 + $0x7e0] sm:$0xff]  ;;  %v268_v58 = vld [vmem:[%s8198_s0 + $0x7d0] sm:$0xff] }
  0xbb   :  { %2804 = vmatprep.mubr.bf16.mxu0 %v4347_v8  ;;  %v4411_v8 = vcombine.high %v212_v3, %v216_v4  ;;  %v272_v59 = vld [vmem:[%s8198_s0 + $0x7f0] sm:$0xff] }
  0xc1   :  { %2227 = vmatmul.mubr.bf16.gmra.mrb[64].mxu1 %v4342_v13  ;;  %v4406_v13 = vcombine.low %v210_v1, %v214_v2  ;;  %v19_v1 = vld [vmem:[%s8198_s0 + $0x8] sm:$0xff] }
  0xc2   :  { %2805 = vmatmul.mubr.bf16.gmra.mrb[64].mxu0 %v4346_v14  ;;  %2234 = vmatprep.mubr.bf16.mxu1 %v4351_v15  ;;  %v4410_v14 = vcombine.low %v212_v3, %v216_v4  ;;  %v4415_v15 = vcombine.high %v218_v9, %v222_v10  ;;  %v23_v2 = vld [vmem:[%s8198_s0 + $0x28] sm:$0xff]  ;;  %v21_v3 = vld [vmem:[%s8198_s0 + $0x18] sm:$0xff] }
  0xc3   :  { %2812 = vmatprep.mubr.bf16.mxu0 %v4355_v16  ;;  %v4419_v16 = vcombine.high %v220_v11, %v224_v12  ;;  %v25_v4 = vld [vmem:[%s8198_s0 + $0x38] sm:$0xff] }
  0xc9   :  { %2235 = vmatmul.mubr.bf16.gmra.mrb[68].mxu1 %v4350_v21  ;;  %v4414_v21 = vcombine.low %v218_v9, %v222_v10  ;;  %v27_v9 = vld [vmem:[%s8198_s0 + $0x48] sm:$0xff] }
  0xca   :  { %2813 = vmatmul.mubr.bf16.gmra.mrb[68].mxu0 %v4354_v22  ;;  %2242 = vmatprep.mubr.bf16.mxu1 %v4359_v23  ;;  %v4418_v22 = vcombine.low %v220_v11, %v224_v12  ;;  %v4423_v23 = vcombine.high %v226_v17, %v230_v18  ;;  %v31_v10 = vld [vmem:[%s8198_s0 + $0x68] sm:$0xff]  ;;  %v29_v11 = vld [vmem:[%s8198_s0 + $0x58] sm:$0xff] }
  0xcb   :  { %2820 = vmatprep.mubr.bf16.mxu0 %v4363_v24  ;;  %v4427_v24 = vcombine.high %v228_v19, %v232_v20  ;;  %v33_v12 = vld [vmem:[%s8198_s0 + $0x78] sm:$0xff] }
  0xd1   :  { %2243 = vmatmul.mubr.bf16.gmra.mrb[72].mxu1 %v4358_v29  ;;  %v4422_v29 = vcombine.low %v226_v17, %v230_v18  ;;  %v35_v17 = vld [vmem:[%s8198_s0 + $0x88] sm:$0xff] }
  0xd2   :  { %2821 = vmatmul.mubr.bf16.gmra.mrb[72].mxu0 %v4362_v30  ;;  %2250 = vmatprep.mubr.bf16.mxu1 %v4367_v31  ;;  %v4426_v30 = vcombine.low %v228_v19, %v232_v20  ;;  %v4431_v31 = vcombine.high %v234_v25, %v238_v26  ;;  %v39_v18 = vld [vmem:[%s8198_s0 + $0xa8] sm:$0xff]  ;;  %v37_v19 = vld [vmem:[%s8198_s0 + $0x98] sm:$0xff] }
  0xd3   :  { %2828 = vmatprep.mubr.bf16.mxu0 %v4371_v32  ;;  %v4435_v32 = vcombine.high %v236_v27, %v240_v28  ;;  %v41_v20 = vld [vmem:[%s8198_s0 + $0xb8] sm:$0xff] }
  0xd9   :  { %2251 = vmatmul.mubr.bf16.gmra.mrb[76].mxu1 %v4366_v37  ;;  %v4430_v37 = vcombine.low %v234_v25, %v238_v26  ;;  %v43_v25 = vld [vmem:[%s8198_s0 + $0xc8] sm:$0xff] }
  0xda   :  { %2829 = vmatmul.mubr.bf16.gmra.mrb[76].mxu0 %v4370_v38  ;;  %2258 = vmatprep.mubr.bf16.mxu1 %v4375_v39  ;;  %v4434_v38 = vcombine.low %v236_v27, %v240_v28  ;;  %v4439_v39 = vcombine.high %v242_v33, %v246_v34  ;;  %v47_v26 = vld [vmem:[%s8198_s0 + $0xe8] sm:$0xff]  ;;  %v45_v27 = vld [vmem:[%s8198_s0 + $0xd8] sm:$0xff] }
  0xdb   :  { %2836 = vmatprep.mubr.bf16.mxu0 %v4379_v40  ;;  %v4443_v40 = vcombine.high %v244_v35, %v248_v36  ;;  %v49_v28 = vld [vmem:[%s8198_s0 + $0xf8] sm:$0xff] }
  0xe1   :  { %2259 = vmatmul.mubr.bf16.gmra.mrb[80].mxu1 %v4374_v45  ;;  %v4438_v45 = vcombine.low %v242_v33, %v246_v34  ;;  %v51_v33 = vld [vmem:[%s8198_s0 + $0x108] sm:$0xff] }
  0xe2   :  { %2837 = vmatmul.mubr.bf16.gmra.mrb[80].mxu0 %v4378_v46  ;;  %2266 = vmatprep.mubr.bf16.mxu1 %v4383_v47  ;;  %v4442_v46 = vcombine.low %v244_v35, %v248_v36  ;;  %v4447_v47 = vcombine.high %v250_v41, %v254_v42  ;;  %v55_v34 = vld [vmem:[%s8198_s0 + $0x128] sm:$0xff]  ;;  %v53_v35 = vld [vmem:[%s8198_s0 + $0x118] sm:$0xff] }
  0xe3   :  { %2844 = vmatprep.mubr.bf16.mxu0 %v4387_v48  ;;  %v4451_v48 = vcombine.high %v252_v43, %v256_v44  ;;  %v57_v36 = vld [vmem:[%s8198_s0 + $0x138] sm:$0xff] }
  0xe9   :  { %2267 = vmatmul.mubr.bf16.gmra.mrb[84].mxu1 %v4382_v53  ;;  %v4446_v53 = vcombine.low %v250_v41, %v254_v42  ;;  %v59_v41 = vld [vmem:[%s8198_s0 + $0x148] sm:$0xff] }
  0xea   :  { %2845 = vmatmul.mubr.bf16.gmra.mrb[84].mxu0 %v4386_v54  ;;  %2274 = vmatprep.mubr.bf16.mxu1 %v4391_v55  ;;  %v4450_v54 = vcombine.low %v252_v43, %v256_v44  ;;  %v4455_v55 = vcombine.high %v258_v49, %v262_v50  ;;  %v63_v42 = vld [vmem:[%s8198_s0 + $0x168] sm:$0xff]  ;;  %v61_v43 = vld [vmem:[%s8198_s0 + $0x158] sm:$0xff] }
  0xeb   :  { %2852 = vmatprep.mubr.bf16.mxu0 %v4395_v56  ;;  %v4459_v56 = vcombine.high %v260_v51, %v264_v52  ;;  %v65_v44 = vld [vmem:[%s8198_s0 + $0x178] sm:$0xff] }
  0xf1   :  { %2275 = vmatmul.mubr.bf16.gmra.mrb[88].mxu1 %v4390_v60  ;;  %v4454_v60 = vcombine.low %v258_v49, %v262_v50  ;;  %v67_v49 = vld [vmem:[%s8198_s0 + $0x188] sm:$0xff] }
  0xf2   :  { %2853 = vmatmul.mubr.bf16.gmra.mrb[88].mxu0 %v4394_v61  ;;  %2282 = vmatprep.mubr.bf16.mxu1 %v4399_v62  ;;  %v4458_v61 = vcombine.low %v260_v51, %v264_v52  ;;  %v4463_v62 = vcombine.high %v266_v57, %v270_v0  ;;  %v71_v50 = vld [vmem:[%s8198_s0 + $0x1a8] sm:$0xff]  ;;  %v69_v51 = vld [vmem:[%s8198_s0 + $0x198] sm:$0xff] }
  0xf3   :  { %2860 = vmatprep.mubr.bf16.mxu0 %v4403_v63  ;;  %v4467_v63 = vcombine.high %v268_v58, %v272_v59  ;;  %v73_v52 = vld [vmem:[%s8198_s0 + $0x1b8] sm:$0xff] }
  0xf9   :  { %2283 = vmatmul.mubr.bf16.gmra.mrb[92].mxu1 %v4398_v5  ;;  %v4462_v5 = vcombine.low %v266_v57, %v270_v0  ;;  %v75_v57 = vld [vmem:[%s8198_s0 + $0x1c8] sm:$0xff] }
  0xfa   :  { %2861 = vmatmul.mubr.bf16.gmra.mrb[92].mxu0 %v4402_v6  ;;  %2290 = vmatprep.mubr.bf16.mxu1 %v4407_v7  ;;  %v4466_v6 = vcombine.low %v268_v58, %v272_v59  ;;  %v4217_v7 = vcombine.high %v19_v1, %v23_v2  ;;  %v79_v0 = vld [vmem:[%s8198_s0 + $0x1e8] sm:$0xff]  ;;  %v77_v58 = vld [vmem:[%s8198_s0 + $0x1d8] sm:$0xff] }
  0xfb   :  { %2868 = vmatprep.mubr.bf16.mxu0 %v4411_v8  ;;  %v4221_v8 = vcombine.high %v21_v3, %v25_v4  ;;  %v81_v59 = vld [vmem:[%s8198_s0 + $0x1f8] sm:$0xff] }
 0x101   :  { %2291 = vmatmul.mubr.bf16.gmra.mrb[96].mxu1 %v4406_v13  ;;  %v4216_v13 = vcombine.low %v19_v1, %v23_v2  ;;  %v83_v1 = vld [vmem:[%s8198_s0 + $0x208] sm:$0xff] }
 0x102   :  { %2869 = vmatmul.mubr.bf16.gmra.mrb[96].mxu0 %v4410_v14  ;;  %2298 = vmatprep.mubr.bf16.mxu1 %v4415_v15  ;;  %v4220_v14 = vcombine.low %v21_v3, %v25_v4  ;;  %v4225_v15 = vcombine.high %v27_v9, %v31_v10  ;;  %v87_v2 = vld [vmem:[%s8198_s0 + $0x228] sm:$0xff]  ;;  %v85_v3 = vld [vmem:[%s8198_s0 + $0x218] sm:$0xff] }
 0x103   :  { %2876 = vmatprep.mubr.bf16.mxu0 %v4419_v16  ;;  %v4229_v16 = vcombine.high %v29_v11, %v33_v12  ;;  %v89_v4 = vld [vmem:[%s8198_s0 + $0x238] sm:$0xff] }
 0x109   :  { %2299 = vmatmul.mubr.bf16.gmra.mrb[100].mxu1 %v4414_v21  ;;  %v4224_v21 = vcombine.low %v27_v9, %v31_v10  ;;  %v91_v9 = vld [vmem:[%s8198_s0 + $0x248] sm:$0xff] }
 0x10a   :  { %2877 = vmatmul.mubr.bf16.gmra.mrb[100].mxu0 %v4418_v22  ;;  %2306 = vmatprep.mubr.bf16.mxu1 %v4423_v23  ;;  %v4228_v22 = vcombine.low %v29_v11, %v33_v12  ;;  %v4233_v23 = vcombine.high %v35_v17, %v39_v18  ;;  %v95_v10 = vld [vmem:[%s8198_s0 + $0x268] sm:$0xff]  ;;  %v93_v11 = vld [vmem:[%s8198_s0 + $0x258] sm:$0xff] }
 0x10b   :  { %2884 = vmatprep.mubr.bf16.mxu0 %v4427_v24  ;;  %v4237_v24 = vcombine.high %v37_v19, %v41_v20  ;;  %v97_v12 = vld [vmem:[%s8198_s0 + $0x278] sm:$0xff] }
 0x111   :  { %2307 = vmatmul.mubr.bf16.gmra.mrb[104].mxu1 %v4422_v29  ;;  %v4232_v29 = vcombine.low %v35_v17, %v39_v18  ;;  %v99_v17 = vld [vmem:[%s8198_s0 + $0x288] sm:$0xff] }
 0x112   :  { %2885 = vmatmul.mubr.bf16.gmra.mrb[104].mxu0 %v4426_v30  ;;  %2314 = vmatprep.mubr.bf16.mxu1 %v4431_v31  ;;  %v4236_v30 = vcombine.low %v37_v19, %v41_v20  ;;  %v4241_v31 = vcombine.high %v43_v25, %v47_v26  ;;  %v103_v18 = vld [vmem:[%s8198_s0 + $0x2a8] sm:$0xff]  ;;  %v101_v19 = vld [vmem:[%s8198_s0 + $0x298] sm:$0xff] }
 0x113   :  { %2892 = vmatprep.mubr.bf16.mxu0 %v4435_v32  ;;  %v4245_v32 = vcombine.high %v45_v27, %v49_v28  ;;  %v105_v20 = vld [vmem:[%s8198_s0 + $0x2b8] sm:$0xff] }
 0x119   :  { %2315 = vmatmul.mubr.bf16.gmra.mrb[108].mxu1 %v4430_v37  ;;  %v4240_v37 = vcombine.low %v43_v25, %v47_v26  ;;  %v107_v25 = vld [vmem:[%s8198_s0 + $0x2c8] sm:$0xff] }
 0x11a   :  { %2893 = vmatmul.mubr.bf16.gmra.mrb[108].mxu0 %v4434_v38  ;;  %2322 = vmatprep.mubr.bf16.mxu1 %v4439_v39  ;;  %v4244_v38 = vcombine.low %v45_v27, %v49_v28  ;;  %v4249_v39 = vcombine.high %v51_v33, %v55_v34  ;;  %v111_v26 = vld [vmem:[%s8198_s0 + $0x2e8] sm:$0xff]  ;;  %v109_v27 = vld [vmem:[%s8198_s0 + $0x2d8] sm:$0xff] }
 0x11b   :  { %2900 = vmatprep.mubr.bf16.mxu0 %v4443_v40  ;;  %v4253_v40 = vcombine.high %v53_v35, %v57_v36  ;;  %v113_v28 = vld [vmem:[%s8198_s0 + $0x2f8] sm:$0xff] }
 0x121   :  { %2323 = vmatmul.mubr.bf16.gmra.mrb[112].mxu1 %v4438_v45  ;;  %v4248_v45 = vcombine.low %v51_v33, %v55_v34  ;;  %v115_v33 = vld [vmem:[%s8198_s0 + $0x308] sm:$0xff] }
 0x122   :  { %2901 = vmatmul.mubr.bf16.gmra.mrb[112].mxu0 %v4442_v46  ;;  %2330 = vmatprep.mubr.bf16.mxu1 %v4447_v47  ;;  %v4252_v46 = vcombine.low %v53_v35, %v57_v36  ;;  %v4257_v47 = vcombine.high %v59_v41, %v63_v42  ;;  %v119_v34 = vld [vmem:[%s8198_s0 + $0x328] sm:$0xff]  ;;  %v117_v35 = vld [vmem:[%s8198_s0 + $0x318] sm:$0xff] }
 0x123   :  { %2908 = vmatprep.mubr.bf16.mxu0 %v4451_v48  ;;  %v4261_v48 = vcombine.high %v61_v43, %v65_v44  ;;  %v121_v36 = vld [vmem:[%s8198_s0 + $0x338] sm:$0xff] }
 0x129   :  { %2331 = vmatmul.mubr.bf16.gmra.mrb[116].mxu1 %v4446_v53  ;;  %v4256_v53 = vcombine.low %v59_v41, %v63_v42  ;;  %v123_v41 = vld [vmem:[%s8198_s0 + $0x348] sm:$0xff] }
 0x12a   :  { %2909 = vmatmul.mubr.bf16.gmra.mrb[116].mxu0 %v4450_v54  ;;  %2338 = vmatprep.mubr.bf16.mxu1 %v4455_v55  ;;  %v4260_v54 = vcombine.low %v61_v43, %v65_v44  ;;  %v4265_v55 = vcombine.high %v67_v49, %v71_v50  ;;  %v127_v42 = vld [vmem:[%s8198_s0 + $0x368] sm:$0xff]  ;;  %v125_v43 = vld [vmem:[%s8198_s0 + $0x358] sm:$0xff] }
 0x12b   :  { %2916 = vmatprep.mubr.bf16.mxu0 %v4459_v56  ;;  %v4269_v56 = vcombine.high %v69_v51, %v73_v52  ;;  %v129_v44 = vld [vmem:[%s8198_s0 + $0x378] sm:$0xff] }
 0x131   :  { %2339 = vmatmul.mubr.bf16.gmra.mrb[120].mxu1 %v4454_v60  ;;  %v4264_v60 = vcombine.low %v67_v49, %v71_v50  ;;  %v131_v49 = vld [vmem:[%s8198_s0 + $0x388] sm:$0xff] }
 0x132   :  { %2917 = vmatmul.mubr.bf16.gmra.mrb[120].mxu0 %v4458_v61  ;;  %2346 = vmatprep.mubr.bf16.mxu1 %v4463_v62  ;;  %v4268_v61 = vcombine.low %v69_v51, %v73_v52  ;;  %v4273_v62 = vcombine.high %v75_v57, %v79_v0  ;;  %v135_v50 = vld [vmem:[%s8198_s0 + $0x3a8] sm:$0xff]  ;;  %v133_v51 = vld [vmem:[%s8198_s0 + $0x398] sm:$0xff] }
 0x133   :  { %2924 = vmatprep.mubr.bf16.mxu0 %v4467_v63  ;;  %v4277_v63 = vcombine.high %v77_v58, %v81_v59  ;;  %v137_v52 = vld [vmem:[%s8198_s0 + $0x3b8] sm:$0xff] }
 0x139   :  { %2347 = vmatmul.mubr.bf16.gmra.mrb[124].mxu1 %v4462_v5  ;;  %v4272_v5 = vcombine.low %v75_v57, %v79_v0  ;;  %v139_v57 = vld [vmem:[%s8198_s0 + $0x3c8] sm:$0xff] }
 0x13a   :  { %2925 = vmatmul.mubr.bf16.gmra.mrb[124].mxu0 %v4466_v6  ;;  %2387 = vmatprep.mubr.bf16.mxu1 %v4217_v7  ;;  %v4276_v6 = vcombine.low %v77_v58, %v81_v59  ;;  %v4281_v7 = vcombine.high %v83_v1, %v87_v2  ;;  %v143_v0 = vld [vmem:[%s8198_s0 + $0x3e8] sm:$0xff]  ;;  %v141_v58 = vld [vmem:[%s8198_s0 + $0x3d8] sm:$0xff] }
 0x13b   :  { %2965 = vmatprep.mubr.bf16.mxu0 %v4221_v8  ;;  %v4285_v8 = vcombine.high %v85_v3, %v89_v4  ;;  %v145_v59 = vld [vmem:[%s8198_s0 + $0x3f8] sm:$0xff] }
 0x141   :  { %2388 = vmatmul.mubr.bf16.vlgmr.msra.gmra.mrb[0].mxu1 %v4216_v13  ;;  %v4280_v13 = vcombine.low %v83_v1, %v87_v2  ;;  %v147_v1 = vld [vmem:[%s8198_s0 + $0x408] sm:$0xff] }
 0x142   :  { %2966 = vmatmul.mubr.bf16.vlgmr.msra.gmra.mrb[0].mxu0 %v4220_v14  ;;  %2395 = vmatprep.mubr.bf16.mxu1 %v4225_v15  ;;  %v4284_v14 = vcombine.low %v85_v3, %v89_v4  ;;  %v4289_v15 = vcombine.high %v91_v9, %v95_v10  ;;  %v151_v2 = vld [vmem:[%s8198_s0 + $0x428] sm:$0xff]  ;;  %v149_v3 = vld [vmem:[%s8198_s0 + $0x418] sm:$0xff] }
 0x143   :  { %2973 = vmatprep.mubr.bf16.mxu0 %v4229_v16  ;;  %v4293_v16 = vcombine.high %v93_v11, %v97_v12  ;;  %v153_v4 = vld [vmem:[%s8198_s0 + $0x438] sm:$0xff] }
 0x149   :  { %2396 = vmatmul.mubr.bf16.gmra.mrb[4].mxu1 %v4224_v21  ;;  %v4288_v21 = vcombine.low %v91_v9, %v95_v10  ;;  %v155_v9 = vld [vmem:[%s8198_s0 + $0x448] sm:$0xff] }
 0x14a   :  { %2974 = vmatmul.mubr.bf16.gmra.mrb[4].mxu0 %v4228_v22  ;;  %2403 = vmatprep.mubr.bf16.mxu1 %v4233_v23  ;;  %v4292_v22 = vcombine.low %v93_v11, %v97_v12  ;;  %v4297_v23 = vcombine.high %v99_v17, %v103_v18  ;;  %v159_v10 = vld [vmem:[%s8198_s0 + $0x468] sm:$0xff]  ;;  %v157_v11 = vld [vmem:[%s8198_s0 + $0x458] sm:$0xff] }
 0x14b   :  { %2981 = vmatprep.mubr.bf16.mxu0 %v4237_v24  ;;  %v4301_v24 = vcombine.high %v101_v19, %v105_v20  ;;  %v161_v12 = vld [vmem:[%s8198_s0 + $0x478] sm:$0xff] }
 0x151   :  { %2404 = vmatmul.mubr.bf16.gmra.mrb[8].mxu1 %v4232_v29  ;;  %v4296_v29 = vcombine.low %v99_v17, %v103_v18  ;;  %v163_v17 = vld [vmem:[%s8198_s0 + $0x488] sm:$0xff] }
 0x152   :  { %2982 = vmatmul.mubr.bf16.gmra.mrb[8].mxu0 %v4236_v30  ;;  %2411 = vmatprep.mubr.bf16.mxu1 %v4241_v31  ;;  %v4300_v30 = vcombine.low %v101_v19, %v105_v20  ;;  %v4305_v31 = vcombine.high %v107_v25, %v111_v26  ;;  %v167_v18 = vld [vmem:[%s8198_s0 + $0x4a8] sm:$0xff]  ;;  %v165_v19 = vld [vmem:[%s8198_s0 + $0x498] sm:$0xff] }
 0x153   :  { %2989 = vmatprep.mubr.bf16.mxu0 %v4245_v32  ;;  %v4309_v32 = vcombine.high %v109_v27, %v113_v28  ;;  %v169_v20 = vld [vmem:[%s8198_s0 + $0x4b8] sm:$0xff] }
 0x159   :  { %2412 = vmatmul.mubr.bf16.gmra.mrb[12].mxu1 %v4240_v37  ;;  %v4304_v37 = vcombine.low %v107_v25, %v111_v26  ;;  %v171_v25 = vld [vmem:[%s8198_s0 + $0x4c8] sm:$0xff] }
 0x15a   :  { %2990 = vmatmul.mubr.bf16.gmra.mrb[12].mxu0 %v4244_v38  ;;  %2419 = vmatprep.mubr.bf16.mxu1 %v4249_v39  ;;  %v4308_v38 = vcombine.low %v109_v27, %v113_v28  ;;  %v4313_v39 = vcombine.high %v115_v33, %v119_v34  ;;  %v175_v26 = vld [vmem:[%s8198_s0 + $0x4e8] sm:$0xff]  ;;  %v173_v27 = vld [vmem:[%s8198_s0 + $0x4d8] sm:$0xff] }
 0x15b   :  { %2997 = vmatprep.mubr.bf16.mxu0 %v4253_v40  ;;  %v4317_v40 = vcombine.high %v117_v35, %v121_v36  ;;  %v177_v28 = vld [vmem:[%s8198_s0 + $0x4f8] sm:$0xff] }
 0x161   :  { %2420 = vmatmul.mubr.bf16.gmra.mrb[16].mxu1 %v4248_v45  ;;  %v4312_v45 = vcombine.low %v115_v33, %v119_v34  ;;  %v179_v33 = vld [vmem:[%s8198_s0 + $0x508] sm:$0xff] }
 0x162   :  { %2998 = vmatmul.mubr.bf16.gmra.mrb[16].mxu0 %v4252_v46  ;;  %2427 = vmatprep.mubr.bf16.mxu1 %v4257_v47  ;;  %v4316_v46 = vcombine.low %v117_v35, %v121_v36  ;;  %v4321_v47 = vcombine.high %v123_v41, %v127_v42  ;;  %v183_v34 = vld [vmem:[%s8198_s0 + $0x528] sm:$0xff]  ;;  %v181_v35 = vld [vmem:[%s8198_s0 + $0x518] sm:$0xff] }
 0x163   :  { %3005 = vmatprep.mubr.bf16.mxu0 %v4261_v48  ;;  %v4325_v48 = vcombine.high %v125_v43, %v129_v44  ;;  %v185_v36 = vld [vmem:[%s8198_s0 + $0x538] sm:$0xff] }
 0x169   :  { %2428 = vmatmul.mubr.bf16.gmra.mrb[20].mxu1 %v4256_v53  ;;  %v4320_v53 = vcombine.low %v123_v41, %v127_v42  ;;  %v187_v41 = vld [vmem:[%s8198_s0 + $0x548] sm:$0xff] }
 0x16a   :  { %3006 = vmatmul.mubr.bf16.gmra.mrb[20].mxu0 %v4260_v54  ;;  %2435 = vmatprep.mubr.bf16.mxu1 %v4265_v55  ;;  %v4324_v54 = vcombine.low %v125_v43, %v129_v44  ;;  %v4329_v55 = vcombine.high %v131_v49, %v135_v50  ;;  %v191_v42 = vld [vmem:[%s8198_s0 + $0x568] sm:$0xff]  ;;  %v189_v43 = vld [vmem:[%s8198_s0 + $0x558] sm:$0xff] }
 0x16b   :  { %3013 = vmatprep.mubr.bf16.mxu0 %v4269_v56  ;;  %v4333_v56 = vcombine.high %v133_v51, %v137_v52  ;;  %v193_v44 = vld [vmem:[%s8198_s0 + $0x578] sm:$0xff] }
 0x171   :  { %2436 = vmatmul.mubr.bf16.gmra.mrb[24].mxu1 %v4264_v60  ;;  %v4328_v60 = vcombine.low %v131_v49, %v135_v50  ;;  %v195_v49 = vld [vmem:[%s8198_s0 + $0x588] sm:$0xff] }
 0x172   :  { %3014 = vmatmul.mubr.bf16.gmra.mrb[24].mxu0 %v4268_v61  ;;  %2443 = vmatprep.mubr.bf16.mxu1 %v4273_v62  ;;  %v4332_v61 = vcombine.low %v133_v51, %v137_v52  ;;  %v4337_v62 = vcombine.high %v139_v57, %v143_v0  ;;  %v199_v50 = vld [vmem:[%s8198_s0 + $0x5a8] sm:$0xff]  ;;  %v197_v51 = vld [vmem:[%s8198_s0 + $0x598] sm:$0xff] }
 0x173   :  { %3021 = vmatprep.mubr.bf16.mxu0 %v4277_v63  ;;  %v4341_v63 = vcombine.high %v141_v58, %v145_v59  ;;  %v201_v52 = vld [vmem:[%s8198_s0 + $0x5b8] sm:$0xff] }
 0x179   :  { %2444 = vmatmul.mubr.bf16.gmra.mrb[28].mxu1 %v4272_v5  ;;  %v4336_v5 = vcombine.low %v139_v57, %v143_v0  ;;  %v203_v57 = vld [vmem:[%s8198_s0 + $0x5c8] sm:$0xff] }
 0x17a   :  { %3022 = vmatmul.mubr.bf16.gmra.mrb[28].mxu0 %v4276_v6  ;;  %2451 = vmatprep.mubr.bf16.mxu1 %v4281_v7  ;;  %v4340_v6 = vcombine.low %v141_v58, %v145_v59  ;;  %v4345_v7 = vcombine.high %v147_v1, %v151_v2  ;;  %v207_v0 = vld [vmem:[%s8198_s0 + $0x5e8] sm:$0xff]  ;;  %v205_v58 = vld [vmem:[%s8198_s0 + $0x5d8] sm:$0xff] }
 0x17b   :  { %3029 = vmatprep.mubr.bf16.mxu0 %v4285_v8  ;;  %v4349_v8 = vcombine.high %v149_v3, %v153_v4  ;;  %v209_v59 = vld [vmem:[%s8198_s0 + $0x5f8] sm:$0xff] }
 0x181   :  { %2452 = vmatmul.mubr.bf16.gmra.mrb[32].mxu1 %v4280_v13  ;;  %v4344_v13 = vcombine.low %v147_v1, %v151_v2  ;;  %v211_v1 = vld [vmem:[%s8198_s0 + $0x608] sm:$0xff] }
 0x182   :  { %3030 = vmatmul.mubr.bf16.gmra.mrb[32].mxu0 %v4284_v14  ;;  %2459 = vmatprep.mubr.bf16.mxu1 %v4289_v15  ;;  %v4348_v14 = vcombine.low %v149_v3, %v153_v4  ;;  %v4353_v15 = vcombine.high %v155_v9, %v159_v10  ;;  %v215_v2 = vld [vmem:[%s8198_s0 + $0x628] sm:$0xff]  ;;  %v213_v3 = vld [vmem:[%s8198_s0 + $0x618] sm:$0xff] }
 0x183   :  { %3037 = vmatprep.mubr.bf16.mxu0 %v4293_v16  ;;  %v4357_v16 = vcombine.high %v157_v11, %v161_v12  ;;  %v217_v4 = vld [vmem:[%s8198_s0 + $0x638] sm:$0xff] }
 0x189   :  { %2460 = vmatmul.mubr.bf16.gmra.mrb[36].mxu1 %v4288_v21  ;;  %v4352_v21 = vcombine.low %v155_v9, %v159_v10  ;;  %v219_v9 = vld [vmem:[%s8198_s0 + $0x648] sm:$0xff] }
 0x18a   :  { %3038 = vmatmul.mubr.bf16.gmra.mrb[36].mxu0 %v4292_v22  ;;  %2467 = vmatprep.mubr.bf16.mxu1 %v4297_v23  ;;  %v4356_v22 = vcombine.low %v157_v11, %v161_v12  ;;  %v4361_v23 = vcombine.high %v163_v17, %v167_v18  ;;  %v223_v10 = vld [vmem:[%s8198_s0 + $0x668] sm:$0xff]  ;;  %v221_v11 = vld [vmem:[%s8198_s0 + $0x658] sm:$0xff] }
 0x18b   :  { %3045 = vmatprep.mubr.bf16.mxu0 %v4301_v24  ;;  %v4365_v24 = vcombine.high %v165_v19, %v169_v20  ;;  %v225_v12 = vld [vmem:[%s8198_s0 + $0x678] sm:$0xff] }
 0x191   :  { %2468 = vmatmul.mubr.bf16.gmra.mrb[40].mxu1 %v4296_v29  ;;  %v4360_v29 = vcombine.low %v163_v17, %v167_v18  ;;  %v227_v17 = vld [vmem:[%s8198_s0 + $0x688] sm:$0xff] }
 0x192   :  { %3046 = vmatmul.mubr.bf16.gmra.mrb[40].mxu0 %v4300_v30  ;;  %2475 = vmatprep.mubr.bf16.mxu1 %v4305_v31  ;;  %v4364_v30 = vcombine.low %v165_v19, %v169_v20  ;;  %v4369_v31 = vcombine.high %v171_v25, %v175_v26  ;;  %v231_v18 = vld [vmem:[%s8198_s0 + $0x6a8] sm:$0xff]  ;;  %v229_v19 = vld [vmem:[%s8198_s0 + $0x698] sm:$0xff] }
 0x193   :  { %3053 = vmatprep.mubr.bf16.mxu0 %v4309_v32  ;;  %v4373_v32 = vcombine.high %v173_v27, %v177_v28  ;;  %v233_v20 = vld [vmem:[%s8198_s0 + $0x6b8] sm:$0xff] }
 0x199   :  { %2476 = vmatmul.mubr.bf16.gmra.mrb[44].mxu1 %v4304_v37  ;;  %v4368_v37 = vcombine.low %v171_v25, %v175_v26  ;;  %v235_v25 = vld [vmem:[%s8198_s0 + $0x6c8] sm:$0xff] }
 0x19a   :  { %3054 = vmatmul.mubr.bf16.gmra.mrb[44].mxu0 %v4308_v38  ;;  %2483 = vmatprep.mubr.bf16.mxu1 %v4313_v39  ;;  %v4372_v38 = vcombine.low %v173_v27, %v177_v28  ;;  %v4377_v39 = vcombine.high %v179_v33, %v183_v34  ;;  %v239_v26 = vld [vmem:[%s8198_s0 + $0x6e8] sm:$0xff]  ;;  %v237_v27 = vld [vmem:[%s8198_s0 + $0x6d8] sm:$0xff] }
 0x19b   :  { %3061 = vmatprep.mubr.bf16.mxu0 %v4317_v40  ;;  %v4381_v40 = vcombine.high %v181_v35, %v185_v36  ;;  %v241_v28 = vld [vmem:[%s8198_s0 + $0x6f8] sm:$0xff] }
 0x1a1   :  { %2484 = vmatmul.mubr.bf16.gmra.mrb[48].mxu1 %v4312_v45  ;;  %v4376_v45 = vcombine.low %v179_v33, %v183_v34  ;;  %v243_v33 = vld [vmem:[%s8198_s0 + $0x708] sm:$0xff] }
 0x1a2   :  { %3062 = vmatmul.mubr.bf16.gmra.mrb[48].mxu0 %v4316_v46  ;;  %2491 = vmatprep.mubr.bf16.mxu1 %v4321_v47  ;;  %v4380_v46 = vcombine.low %v181_v35, %v185_v36  ;;  %v4385_v47 = vcombine.high %v187_v41, %v191_v42  ;;  %v247_v34 = vld [vmem:[%s8198_s0 + $0x728] sm:$0xff]  ;;  %v245_v36 = vld [vmem:[%s8198_s0 + $0x718] sm:$0xff] }
 0x1a3   :  { %3069 = vmatprep.mubr.bf16.mxu0 %v4325_v48  ;;  %v4389_v48 = vcombine.high %v189_v43, %v193_v44 }
 0x1a9   :  { %2492 = vmatmul.mubr.bf16.gmra.mrb[52].mxu1 %v4320_v53  ;;  %v4384_v53 = vcombine.low %v187_v41, %v191_v42 }
 0x1aa   :  { %3070 = vmatmul.mubr.bf16.gmra.mrb[52].mxu0 %v4324_v54  ;;  %2499 = vmatprep.mubr.bf16.mxu1 %v4329_v55  ;;  %v4388_v54 = vcombine.low %v189_v43, %v193_v44  ;;  %v4393_v55 = vcombine.high %v195_v49, %v199_v50  ;;  %v4436_v44 = vcombine.low %v237_v27, %v241_v28 }
 0x1ab   :  { %3077 = vmatprep.mubr.bf16.mxu0 %v4333_v56  ;;  %v4397_v56 = vcombine.high %v197_v51, %v201_v52 }
 0x1b1   :  { %2500 = vmatmul.mubr.bf16.gmra.mrb[56].mxu1 %v4328_v60  ;;  %v4392_v60 = vcombine.low %v195_v49, %v199_v50 }
 0x1b2   :  { %3078 = vmatmul.mubr.bf16.gmra.mrb[56].mxu0 %v4332_v61  ;;  %2507 = vmatprep.mubr.bf16.mxu1 %v4337_v62  ;;  %v4396_v61 = vcombine.low %v197_v51, %v201_v52  ;;  %v4401_v62 = vcombine.high %v203_v57, %v207_v0  ;;  %v251_v51 = vld [vmem:[%s8198_s0 + $0x748] sm:$0xff] }
 0x1b3   :  { %3085 = vmatprep.mubr.bf16.mxu0 %v4341_v63  ;;  %v4405_v63 = vcombine.high %v205_v58, %v209_v59  ;;  %v255_v52 = vld [vmem:[%s8198_s0 + $0x768] sm:$0xff] }
 0x1b9   :  { %2508 = vmatmul.mubr.bf16.gmra.mrb[60].mxu1 %v4336_v5  ;;  %v4400_v5 = vcombine.low %v203_v57, %v207_v0  ;;  %v4440_v0 = vcombine.low %v243_v33, %v247_v34 }
 0x1ba   :  { %3086 = vmatmul.mubr.bf16.gmra.mrb[60].mxu0 %v4340_v6  ;;  %2515 = vmatprep.mubr.bf16.mxu1 %v4345_v7  ;;  %v4404_v6 = vcombine.low %v205_v58, %v209_v59  ;;  %v4409_v7 = vcombine.high %v211_v1, %v215_v2 }
 0x1bb   :  { %3093 = vmatprep.mubr.bf16.mxu0 %v4349_v8  ;;  %v4413_v8 = vcombine.high %v213_v3, %v217_v4 }
 0x1c1   :  { %2516 = vmatmul.mubr.bf16.gmra.mrb[64].mxu1 %v4344_v13  ;;  %v4408_v13 = vcombine.low %v211_v1, %v215_v2 }
 0x1c2   :  { %3094 = vmatmul.mubr.bf16.gmra.mrb[64].mxu0 %v4348_v14  ;;  %2523 = vmatprep.mubr.bf16.mxu1 %v4353_v15  ;;  %v4412_v14 = vcombine.low %v213_v3, %v217_v4  ;;  %v4417_v15 = vcombine.high %v219_v9, %v223_v10 }
 0x1c3   :  { %3101 = vmatprep.mubr.bf16.mxu0 %v4357_v16  ;;  %v4421_v16 = vcombine.high %v221_v11, %v225_v12 }
 0x1c9   :  { %2524 = vmatmul.mubr.bf16.gmra.mrb[68].mxu1 %v4352_v21  ;;  %v4416_v21 = vcombine.low %v219_v9, %v223_v10  ;;  %v265_v9 = vld [vmem:[%s8198_s0 + $0x7b8] sm:$0xff] }
 0x1ca   :  { %3102 = vmatmul.mubr.bf16.gmra.mrb[68].mxu0 %v4356_v22  ;;  %2531 = vmatprep.mubr.bf16.mxu1 %v4361_v23  ;;  %v4420_v22 = vcombine.low %v221_v11, %v225_v12  ;;  %v4425_v23 = vcombine.high %v227_v17, %v231_v18  ;;  %v4448_v12 = vcombine.low %v251_v51, %v255_v52 }
 0x1cb   :  { %3109 = vmatprep.mubr.bf16.mxu0 %v4365_v24  ;;  %v4429_v24 = vcombine.high %v229_v19, %v233_v20 }
 0x1d1   :  { %2532 = vmatmul.mubr.bf16.gmra.mrb[72].mxu1 %v4360_v29  ;;  %v4424_v29 = vcombine.low %v227_v17, %v231_v18 }
 0x1d2   :  { %3110 = vmatmul.mubr.bf16.gmra.mrb[72].mxu0 %v4364_v30  ;;  %2539 = vmatprep.mubr.bf16.mxu1 %v4369_v31  ;;  %v4428_v30 = vcombine.low %v229_v19, %v233_v20  ;;  %v4433_v31 = vcombine.high %v235_v25, %v239_v26 }
 0x1d3   :  { %3117 = vmatprep.mubr.bf16.mxu0 %v4373_v32  ;;  %v4437_v32 = vcombine.high %v237_v27, %v241_v28  ;;  %v273_v27 = vld [vmem:[%s8198_s0 + $0x7f8] sm:$0xff] }
 0x1d9   :  { %2540 = vmatmul.mubr.bf16.gmra.mrb[76].mxu1 %v4368_v37  ;;  %v249_v37 = vld [vmem:[%s8198_s0 + $0x738] sm:$0xff] }
 0x1da   :  { %3118 = vmatmul.mubr.bf16.gmra.mrb[76].mxu0 %v4372_v38  ;;  %2547 = vmatprep.mubr.bf16.mxu1 %v4377_v39 }
 0x1db   :  { %3125 = vmatprep.mubr.bf16.mxu0 %v4381_v40  ;;  %v4432_v40 = vcombine.low %v235_v25, %v239_v26  ;;  %v269_v26 = vld [vmem:[%s8198_s0 + $0x7d8] sm:$0xff] }
 0x1e1   :  { %2548 = vmatmul.mubr.bf16.gmra.mrb[80].mxu1 %v4376_v45  ;;  %v4441_v45 = vcombine.high %v243_v33, %v247_v34 }
 0x1e2   :  { %3126 = vmatmul.mubr.bf16.gmra.mrb[80].mxu0 %v4380_v46  ;;  %2555 = vmatprep.mubr.bf16.mxu1 %v4385_v47 }
 0x1e3   :  { %3133 = vmatprep.mubr.bf16.mxu0 %v4389_v48  ;;  %v4445_v48 = vcombine.high %v245_v36, %v249_v37 }
 0x1e9   :  { %2556 = vmatmul.mubr.bf16.gmra.mrb[84].mxu1 %v4384_v53 }
 0x1ea   :  { %3134 = vmatmul.mubr.bf16.gmra.mrb[84].mxu0 %v4388_v54  ;;  %2563 = vmatprep.mubr.bf16.mxu1 %v4393_v55  ;;  %v253_v54 = vld [vmem:[%s8198_s0 + $0x758] sm:$0xff] }
 0x1eb   :  { %3141 = vmatprep.mubr.bf16.mxu0 %v4397_v56  ;;  %v257_v55 = vld [vmem:[%s8198_s0 + $0x778] sm:$0xff] }
 0x1ec   :  { %v4453_v2 = vcombine.high %v253_v54, %v257_v55 }
 0x1f1   :  { %2564 = vmatmul.mubr.bf16.gmra.mrb[88].mxu1 %v4392_v60 }
 0x1f2   :  { %3142 = vmatmul.mubr.bf16.gmra.mrb[88].mxu0 %v4396_v61  ;;  %2571 = vmatprep.mubr.bf16.mxu1 %v4401_v62  ;;  %v4444_v61 = vcombine.low %v245_v36, %v249_v37  ;;  %v4449_v62 = vcombine.high %v251_v51, %v255_v52 }
 0x1f3   :  { %3149 = vmatprep.mubr.bf16.mxu0 %v4405_v63 }
 0x1f9   :  { %2572 = vmatmul.mubr.bf16.gmra.mrb[92].mxu1 %v4400_v5  ;;  %v259_v5 = vld [vmem:[%s8198_s0 + $0x788] sm:$0xff] }
 0x1fa   :  { %3150 = vmatmul.mubr.bf16.gmra.mrb[92].mxu0 %v4404_v6  ;;  %2579 = vmatprep.mubr.bf16.mxu1 %v4409_v7  ;;  %v263_v6 = vld [vmem:[%s8198_s0 + $0x7a8] sm:$0xff] }
 0x1fb   :  { %3157 = vmatprep.mubr.bf16.mxu0 %v4413_v8  ;;  %v261_v8 = vld [vmem:[%s8198_s0 + $0x798] sm:$0xff]  ;;  %v4457_v17 = vcombine.high %v259_v5, %v263_v6 }
 0x1fc   :  { %v4461_v20 = vcombine.high %v261_v8, %v265_v9  ;;  %v4460_v34 = vcombine.low %v261_v8, %v265_v9 }
 0x201   :  { %2580 = vmatmul.mubr.bf16.gmra.mrb[96].mxu1 %v4408_v13 }
 0x202   :  { %3158 = vmatmul.mubr.bf16.gmra.mrb[96].mxu0 %v4412_v14  ;;  %2587 = vmatprep.mubr.bf16.mxu1 %v4417_v15 }
 0x203   :  { %3165 = vmatprep.mubr.bf16.mxu0 %v4421_v16  ;;  %v4452_v16 = vcombine.low %v253_v54, %v257_v55 }
 0x209   :  { %2588 = vmatmul.mubr.bf16.gmra.mrb[100].mxu1 %v4416_v21 }
 0x20a   :  { %3166 = vmatmul.mubr.bf16.gmra.mrb[100].mxu0 %v4420_v22  ;;  %2595 = vmatprep.mubr.bf16.mxu1 %v4425_v23  ;;  %v267_v23 = vld [vmem:[%s8198_s0 + $0x7c8] sm:$0xff] }
 0x20b   :  { %3173 = vmatprep.mubr.bf16.mxu0 %v4429_v24  ;;  %v271_v24 = vld [vmem:[%s8198_s0 + $0x7e8] sm:$0xff] }
 0x211   :  { %2596 = vmatmul.mubr.bf16.gmra.mrb[104].mxu1 %v4424_v29 }
 0x212   :  { %3174 = vmatmul.mubr.bf16.gmra.mrb[104].mxu0 %v4428_v30  ;;  %2603 = vmatprep.mubr.bf16.mxu1 %v4433_v31  ;;  %v4456_v30 = vcombine.low %v259_v5, %v263_v6 }
 0x213   :  { %3181 = vmatprep.mubr.bf16.mxu0 %v4437_v32 }
 0x214   :  { %v2389_v35 = vpop.f32.mrb[0].mxu1 }
 0x215   :  { %v2967_v38 = vpop.f32.mrb[0].mxu0  ;;  %v2391_v39 = vpop.f32.mrb[1].mxu1 }
 0x216   :  { %v6272_v41 = vadd.f32 %v2967_v38, %v2389_v35  ;;  %v2969_v42 = vpop.f32.mrb[1].mxu0  ;;  %v2392_v43 = vpop.f32.mrb[2].mxu1  ;;  %v4465_v35 = vcombine.high %v267_v23, %v271_v24  ;;  %v4469_v38 = vcombine.high %v269_v26, %v273_v27 }
 0x217   :  { %v2970_v46 = vpop.f32.mrb[2].mxu0  ;;  %v2394_v47 = vpop.f32.mrb[3].mxu1 }
 0x218   :  { %v6274_v49 = vadd.f32 %v2970_v46, %v2392_v43  ;;  %v2972_v50 = vpop.f32.mrb[3].mxu0 }
 0x219   :  { %2604 = vmatmul.mubr.bf16.gmra.mrb[108].mxu1 %v4432_v40  ;;  %v4468_v50 = vcombine.low %v269_v26, %v273_v27 }
 0x21a   :  { %3182 = vmatmul.mubr.bf16.gmra.mrb[108].mxu0 %v4436_v44  ;;  %2611 = vmatprep.mubr.bf16.mxu1 %v4441_v45  ;;  %v4464_v45 = vcombine.low %v267_v23, %v271_v24 }
 0x21b   :  { %3189 = vmatprep.mubr.bf16.mxu0 %v4445_v48 }
 0x21c   :  { %v2397_v53 = vpop.f32.mrb[4].mxu1 }
 0x21d   :  { %v2975_v56 = vpop.f32.mrb[4].mxu0  ;;  %v2399_v57 = vpop.f32.mrb[5].mxu1 }
 0x21e   :  { %v6288_v58 = vadd.f32 %v2975_v56, %v2397_v53  ;;  %v2977_v59 = vpop.f32.mrb[5].mxu0  ;;  %v2400_v60 = vpop.f32.mrb[6].mxu1 }
 0x21f   :  { %v2978_v63 = vpop.f32.mrb[6].mxu0  ;;  %v2402_v1 = vpop.f32.mrb[7].mxu1 }
 0x220   :  { %v6290_v3 = vadd.f32 %v2978_v63, %v2400_v60  ;;  %v2980_v4 = vpop.f32.mrb[7].mxu0 }
 0x221   :  { %2612 = vmatmul.mubr.bf16.gmra.mrb[112].mxu1 %v4440_v0 }
 0x222   :  { %3190 = vmatmul.mubr.bf16.gmra.mrb[112].mxu0 %v4444_v61  ;;  %2619 = vmatprep.mubr.bf16.mxu1 %v4449_v62 }
 0x223   :  { %3197 = vmatprep.mubr.bf16.mxu0 %v4453_v2 }
 0x224   :  { %v2405_v7 = vpop.f32.mrb[8].mxu1 }
 0x225   :  { %v2983_v10 = vpop.f32.mrb[8].mxu0  ;;  %v2407_v11 = vpop.f32.mrb[9].mxu1 }
 0x226   :  { %v6304_v13 = vadd.f32 %v2983_v10, %v2405_v7  ;;  %v2985_v14 = vpop.f32.mrb[9].mxu0  ;;  %v2408_v15 = vpop.f32.mrb[10].mxu1 }
 0x227   :  { %v2986_v18 = vpop.f32.mrb[10].mxu0  ;;  %v2410_v19 = vpop.f32.mrb[11].mxu1 }
 0x228   :  { %v6306_v21 = vadd.f32 %v2986_v18, %v2408_v15  ;;  %v2988_v22 = vpop.f32.mrb[11].mxu0 }
 0x229   :  { %2620 = vmatmul.mubr.bf16.gmra.mrb[116].mxu1 %v4448_v12 }
 0x22a   :  { %3198 = vmatmul.mubr.bf16.gmra.mrb[116].mxu0 %v4452_v16  ;;  %2627 = vmatprep.mubr.bf16.mxu1 %v4457_v17 }
 0x22b   :  { %3205 = vmatprep.mubr.bf16.mxu0 %v4461_v20 }
 0x22c   :  { %v2413_v25 = vpop.f32.mrb[12].mxu1 }
 0x22d   :  { %v2991_v28 = vpop.f32.mrb[12].mxu0  ;;  %v2415_v29 = vpop.f32.mrb[13].mxu1 }
 0x22e   :  { %v6320_v31 = vadd.f32 %v2991_v28, %v2413_v25  ;;  %v2993_v32 = vpop.f32.mrb[13].mxu0  ;;  %v2416_v33 = vpop.f32.mrb[14].mxu1  ;;  %v3222_v25 = vadd.f32 %v6274_v49, %v6272_v41 }
 0x22f   :  { %v2994_v36 = vpop.f32.mrb[14].mxu0  ;;  %v2418_v37 = vpop.f32.mrb[15].mxu1 }
 0x230   :  { %v6322_v39 = vadd.f32 %v2994_v36, %v2416_v33  ;;  %v2996_v40 = vpop.f32.mrb[15].mxu0  ;;  %v3223_v26 = vadd.f32 %v6288_v58, %v3222_v25 }
 0x231   :  { %2628 = vmatmul.mubr.bf16.gmra.mrb[120].mxu1 %v4456_v30 }
 0x232   :  { %3206 = vmatmul.mubr.bf16.gmra.mrb[120].mxu0 %v4460_v34  ;;  %2635 = vmatprep.mubr.bf16.mxu1 %v4465_v35  ;;  %v3224_v36 = vadd.f32 %v6290_v3, %v3223_v26 }
 0x233   :  { %3213 = vmatprep.mubr.bf16.mxu0 %v4469_v38 }
 0x234   :  { %v2421_v42 = vpop.f32.mrb[16].mxu1  ;;  %v3225_v40 = vadd.f32 %v6304_v13, %v3224_v36 }
 0x235   :  { %v2999_v43 = vpop.f32.mrb[16].mxu0  ;;  %v2423_v44 = vpop.f32.mrb[17].mxu1 }
 0x236   :  { %v6324_v46 = vadd.f32 %v2999_v43, %v2421_v42  ;;  %v3001_v47 = vpop.f32.mrb[17].mxu0  ;;  %v2424_v48 = vpop.f32.mrb[18].mxu1 }
 0x237   :  { %v3002_v51 = vpop.f32.mrb[18].mxu0  ;;  %v2426_v52 = vpop.f32.mrb[19].mxu1 }
 0x238   :  { %v6326_v53 = vadd.f32 %v3002_v51, %v2424_v48  ;;  %v3004_v54 = vpop.f32.mrb[19].mxu0 }
 0x239   :  { %2636 = vmatmul.mubr.bf16.gmra.mrb[124].mxu1 %v4464_v45  ;;  %v3226_v45 = vadd.f32 %v6306_v21, %v3225_v40 }
 0x23a   :  { %3214 = vmatmul.mubr.bf16.gmra.mrb[124].mxu0 %v4468_v50 }
 0x23b   :  { %v3227_v54 = vadd.f32 %v6320_v31, %v3226_v45 }
 0x23c   :  { %v2429_v55 = vpop.f32.mrb[20].mxu1 }
 0x23d   :  { %v3007_v56 = vpop.f32.mrb[20].mxu0  ;;  %v2431_v57 = vpop.f32.mrb[21].mxu1 }
 0x23e   :  { %v6328_v0 = vadd.f32 %v3007_v56, %v2429_v55  ;;  %v3009_v59 = vpop.f32.mrb[21].mxu0  ;;  %v2432_v60 = vpop.f32.mrb[22].mxu1  ;;  %v3228_v57 = vadd.f32 %v6322_v39, %v3227_v54 }
 0x23f   :  { %v3010_v61 = vpop.f32.mrb[22].mxu0  ;;  %v2434_v62 = vpop.f32.mrb[23].mxu1 }
 0x240   :  { %v6330_v63 = vadd.f32 %v3010_v61, %v2432_v60  ;;  %v3012_v1 = vpop.f32.mrb[23].mxu0  ;;  %v3229_v62 = vadd.f32 %v6324_v46, %v3228_v57 }
 0x244   :  { %v2437_v2 = vpop.f32.mrb[24].mxu1 }
 0x245   :  { %v3015_v4 = vpop.f32.mrb[24].mxu0  ;;  %v2439_v5 = vpop.f32.mrb[25].mxu1 }
 0x246   :  { %v6332_v6 = vadd.f32 %v3015_v4, %v2437_v2  ;;  %v3017_v7 = vpop.f32.mrb[25].mxu0  ;;  %v2440_v8 = vpop.f32.mrb[26].mxu1 }
 0x247   :  { %v3018_v9 = vpop.f32.mrb[26].mxu0  ;;  %v2442_v10 = vpop.f32.mrb[27].mxu1 }
 0x248   :  { %v6334_v11 = vadd.f32 %v3018_v9, %v2440_v8  ;;  %v3020_v12 = vpop.f32.mrb[27].mxu0  ;;  %v3230_v10 = vadd.f32 %v6326_v53, %v3229_v62 }
 0x24a   :  { %v3231_v12 = vadd.f32 %v6328_v0, %v3230_v10 }
 0x24c   :  { %v2445_v14 = vpop.f32.mrb[28].mxu1  ;;  %v3232_v25 = vadd.f32 %v6330_v63, %v3231_v12 }
 0x24d   :  { %v3023_v15 = vpop.f32.mrb[28].mxu0  ;;  %v2447_v16 = vpop.f32.mrb[29].mxu1 }
 0x24e   :  { %v6336_v17 = vadd.f32 %v3023_v15, %v2445_v14  ;;  %v3025_v18 = vpop.f32.mrb[29].mxu0  ;;  %v2448_v19 = vpop.f32.mrb[30].mxu1 }
 0x24f   :  { %v3026_v20 = vpop.f32.mrb[30].mxu0  ;;  %v2450_v22 = vpop.f32.mrb[31].mxu1 }
 0x250   :  { %v6338_v23 = vadd.f32 %v3026_v20, %v2448_v19  ;;  %v3028_v24 = vpop.f32.mrb[31].mxu0 }
 0x254   :  { %v2453_v27 = vpop.f32.mrb[32].mxu1 }
 0x255   :  { %v3031_v28 = vpop.f32.mrb[32].mxu0  ;;  %v2455_v29 = vpop.f32.mrb[33].mxu1 }
 0x256   :  { %v6343_v30 = vadd.f32 %v3031_v28, %v2453_v27  ;;  %v3033_v32 = vpop.f32.mrb[33].mxu0  ;;  %v2456_v33 = vpop.f32.mrb[34].mxu1  ;;  %v3233_v28 = vadd.f32 %v6332_v6, %v3232_v25 }
 0x257   :  { %v3034_v34 = vpop.f32.mrb[34].mxu0  ;;  %v2458_v35 = vpop.f32.mrb[35].mxu1 }
 0x258   :  { %v6346_v37 = vadd.f32 %v3034_v34, %v2456_v33  ;;  %v3036_v38 = vpop.f32.mrb[35].mxu0  ;;  %v3234_v34 = vadd.f32 %v6334_v11, %v3233_v28 }
 0x25c   :  { %v2461_v42 = vpop.f32.mrb[36].mxu1 }
 0x25d   :  { %v3039_v43 = vpop.f32.mrb[36].mxu0  ;;  %v2463_v44 = vpop.f32.mrb[37].mxu1 }
 0x25e   :  { %v6350_v47 = vadd.f32 %v3039_v43, %v2461_v42  ;;  %v3041_v48 = vpop.f32.mrb[37].mxu0  ;;  %v2464_v50 = vpop.f32.mrb[38].mxu1  ;;  %v3235_v43 = vadd.f32 %v6336_v17, %v3234_v34 }
 0x25f   :  { %v3042_v51 = vpop.f32.mrb[38].mxu0  ;;  %v2466_v52 = vpop.f32.mrb[39].mxu1 }
 0x260   :  { %v6353_v55 = vadd.f32 %v3042_v51, %v2464_v50  ;;  %v3044_v56 = vpop.f32.mrb[39].mxu0  ;;  %v3236_v48 = vadd.f32 %v6338_v23, %v3235_v43 }
 0x262   :  { %v3237_v54 = vadd.f32 %v6343_v30, %v3236_v48 }
 0x264   :  { %v2469_v59 = vpop.f32.mrb[40].mxu1 }
 0x265   :  { %v3047_v60 = vpop.f32.mrb[40].mxu0  ;;  %v2471_v61 = vpop.f32.mrb[41].mxu1 }
 0x266   :  { %v6357_v1 = vadd.f32 %v3047_v60, %v2469_v59  ;;  %v3049_v2 = vpop.f32.mrb[41].mxu0  ;;  %v2472_v4 = vpop.f32.mrb[42].mxu1 }
 0x267   :  { %v3050_v5 = vpop.f32.mrb[42].mxu0  ;;  %v2474_v7 = vpop.f32.mrb[43].mxu1 }
 0x268   :  { %v6359_v8 = vadd.f32 %v3050_v5, %v2472_v4  ;;  %v3052_v9 = vpop.f32.mrb[43].mxu0  ;;  %v3238_v4 = vadd.f32 %v6346_v37, %v3237_v54 }
 0x26a   :  { %v3239_v5 = vadd.f32 %v6350_v47, %v3238_v4 }
 0x26c   :  { %v2477_v14 = vpop.f32.mrb[44].mxu1 }
 0x26d   :  { %v3055_v15 = vpop.f32.mrb[44].mxu0  ;;  %v2479_v16 = vpop.f32.mrb[45].mxu1 }
 0x26e   :  { %v6363_v18 = vadd.f32 %v3055_v15, %v2477_v14  ;;  %v3057_v19 = vpop.f32.mrb[45].mxu0  ;;  %v2480_v20 = vpop.f32.mrb[46].mxu1 }
 0x26f   :  { %v3058_v22 = vpop.f32.mrb[46].mxu0  ;;  %v2482_v24 = vpop.f32.mrb[47].mxu1 }
 0x270   :  { %v6366_v26 = vadd.f32 %v3058_v22, %v2480_v20  ;;  %v3060_v27 = vpop.f32.mrb[47].mxu0  ;;  %v3240_v20 = vadd.f32 %v6353_v55, %v3239_v5 }
 0x272   :  { %v3241_v25 = vadd.f32 %v6357_v1, %v3240_v20 }
 0x274   :  { %v2485_v29 = vpop.f32.mrb[48].mxu1 }
 0x275   :  { %v3063_v32 = vpop.f32.mrb[48].mxu0  ;;  %v2487_v33 = vpop.f32.mrb[49].mxu1 }
 0x276   :  { %v6370_v35 = vadd.f32 %v3063_v32, %v2485_v29  ;;  %v3065_v36 = vpop.f32.mrb[49].mxu0  ;;  %v2488_v38 = vpop.f32.mrb[50].mxu1  ;;  %v3242_v32 = vadd.f32 %v6359_v8, %v3241_v25 }
 0x277   :  { %v3066_v40 = vpop.f32.mrb[50].mxu0  ;;  %v2490_v42 = vpop.f32.mrb[51].mxu1 }
 0x278   :  { %v6373_v44 = vadd.f32 %v3066_v40, %v2488_v38  ;;  %v3068_v45 = vpop.f32.mrb[51].mxu0  ;;  %v3243_v42 = vadd.f32 %v6363_v18, %v3242_v32 }
 0x27a   :  { %v3244_v48 = vadd.f32 %v6366_v26, %v3243_v42 }
 0x27c   :  { %v2493_v50 = vpop.f32.mrb[52].mxu1  ;;  %v3245_v54 = vadd.f32 %v6370_v35, %v3244_v48 }
 0x27d   :  { %v3071_v51 = vpop.f32.mrb[52].mxu0  ;;  %v2495_v52 = vpop.f32.mrb[53].mxu1 }
 0x27e   :  { %v6377_v56 = vadd.f32 %v3071_v51, %v2493_v50  ;;  %v3073_v57 = vpop.f32.mrb[53].mxu0  ;;  %v2496_v59 = vpop.f32.mrb[54].mxu1 }
 0x27f   :  { %v3074_v60 = vpop.f32.mrb[54].mxu0  ;;  %v2498_v61 = vpop.f32.mrb[55].mxu1 }
 0x280   :  { %v6379_v62 = vadd.f32 %v3074_v60, %v2496_v59  ;;  %v3076_v2 = vpop.f32.mrb[55].mxu0 }
 0x284   :  { %v2501_v7 = vpop.f32.mrb[56].mxu1 }
 0x285   :  { %v3079_v9 = vpop.f32.mrb[56].mxu0  ;;  %v2503_v10 = vpop.f32.mrb[57].mxu1 }
 0x286   :  { %v6383_v12 = vadd.f32 %v3079_v9, %v2501_v7  ;;  %v3081_v14 = vpop.f32.mrb[57].mxu0  ;;  %v2504_v15 = vpop.f32.mrb[58].mxu1  ;;  %v3246_v7 = vadd.f32 %v6373_v44, %v3245_v54 }
 0x287   :  { %v3082_v16 = vpop.f32.mrb[58].mxu0  ;;  %v2506_v19 = vpop.f32.mrb[59].mxu1 }
 0x288   :  { %v6386_v22 = vadd.f32 %v3082_v16, %v2504_v15  ;;  %v3084_v24 = vpop.f32.mrb[59].mxu0  ;;  %v3247_v9 = vadd.f32 %v6377_v56, %v3246_v7 }
 0x28c   :  { %v2509_v27 = vpop.f32.mrb[60].mxu1 }
 0x28d   :  { %v3087_v28 = vpop.f32.mrb[60].mxu0  ;;  %v2511_v29 = vpop.f32.mrb[61].mxu1 }
 0x28e   :  { %v6390_v33 = vadd.f32 %v3087_v28, %v2509_v27  ;;  %v3089_v34 = vpop.f32.mrb[61].mxu0  ;;  %v2512_v36 = vpop.f32.mrb[62].mxu1  ;;  %v3248_v27 = vadd.f32 %v6379_v62, %v3247_v9 }
 0x28f   :  { %v3090_v38 = vpop.f32.mrb[62].mxu0  ;;  %v2514_v40 = vpop.f32.mrb[63].mxu1 }
 0x290   :  { %v6393_v43 = vadd.f32 %v3090_v38, %v2512_v36  ;;  %v3092_v45 = vpop.f32.mrb[63].mxu0  ;;  %v3249_v32 = vadd.f32 %v6383_v12, %v3248_v27 }
 0x292   :  { %v3250_v40 = vadd.f32 %v6386_v22, %v3249_v32 }
 0x294   :  { %v2517_v50 = vpop.f32.mrb[64].mxu1 }
 0x295   :  { %v3095_v51 = vpop.f32.mrb[64].mxu0  ;;  %v2519_v52 = vpop.f32.mrb[65].mxu1 }
 0x296   :  { %v6397_v57 = vadd.f32 %v3095_v51, %v2517_v50  ;;  %v3097_v59 = vpop.f32.mrb[65].mxu0  ;;  %v2520_v60 = vpop.f32.mrb[66].mxu1  ;;  %v3251_v52 = vadd.f32 %v6390_v33, %v3250_v40 }
 0x297   :  { %v3098_v61 = vpop.f32.mrb[66].mxu0  ;;  %v2522_v2 = vpop.f32.mrb[67].mxu1 }
 0x298   :  { %v6399_v4 = vadd.f32 %v3098_v61, %v2520_v60  ;;  %v3100_v5 = vpop.f32.mrb[67].mxu0  ;;  %v3252_v60 = vadd.f32 %v6393_v43, %v3251_v52 }
 0x29a   :  { %v3253_v7 = vadd.f32 %v6397_v57, %v3252_v60 }
 0x29c   :  { %v2525_v10 = vpop.f32.mrb[68].mxu1 }
 0x29d   :  { %v3103_v14 = vpop.f32.mrb[68].mxu0  ;;  %v2527_v15 = vpop.f32.mrb[69].mxu1 }
 0x29e   :  { %v6403_v16 = vadd.f32 %v3103_v14, %v2525_v10  ;;  %v3105_v19 = vpop.f32.mrb[69].mxu0  ;;  %v2528_v20 = vpop.f32.mrb[70].mxu1 }
 0x29f   :  { %v3106_v24 = vpop.f32.mrb[70].mxu0  ;;  %v2530_v25 = vpop.f32.mrb[71].mxu1 }
 0x2a0   :  { %8273 = vst [vmem:[#allocation2_spill] sm:$0xff] %v6403_v16  ;;  %v6406_v28 = vadd.f32 %v3106_v24, %v2528_v20  ;;  %v3108_v29 = vpop.f32.mrb[71].mxu0  ;;  %v3254_v25 = vadd.f32 %v6399_v4, %v3253_v7 }
 0x2a2   :  { %8274 = vst [vmem:[#allocation3_spill] sm:$0xff] %v6406_v28  ;;  %v3255_v27 = vadd.f32 %v6403_v16, %v3254_v25 }
 0x2a4   :  { %v2533_v34 = vpop.f32.mrb[72].mxu1 }
 0x2a5   :  { %v3111_v36 = vpop.f32.mrb[72].mxu0  ;;  %v2535_v38 = vpop.f32.mrb[73].mxu1 }
 0x2a6   :  { %v6410_v42 = vadd.f32 %v3111_v36, %v2533_v34  ;;  %v3113_v45 = vpop.f32.mrb[73].mxu0  ;;  %v2536_v48 = vpop.f32.mrb[74].mxu1 }
 0x2a7   :  { %v3114_v50 = vpop.f32.mrb[74].mxu0  ;;  %v2538_v51 = vpop.f32.mrb[75].mxu1 }
 0x2a8   :  { %8275 = vst [vmem:[#allocation4_spill] sm:$0xff] %v6410_v42  ;;  %v6413_v54 = vadd.f32 %v3114_v50, %v2536_v48  ;;  %v3116_v59 = vpop.f32.mrb[75].mxu0  ;;  %v3256_v50 = vadd.f32 %v6406_v28, %v3255_v27 }
 0x2aa   :  { %8276 = vst [vmem:[#allocation5_spill] sm:$0xff] %v6413_v54  ;;  %v3257_v59 = vadd.f32 %v6410_v42, %v3256_v50 }
 0x2ac   :  { %v2541_v61 = vpop.f32.mrb[76].mxu1 }
 0x2ad   :  { %v3119_v2 = vpop.f32.mrb[76].mxu0  ;;  %v2543_v5 = vpop.f32.mrb[77].mxu1 }
 0x2ae   :  { %v6417_v9 = vadd.f32 %v3119_v2, %v2541_v61  ;;  %v3121_v10 = vpop.f32.mrb[77].mxu0  ;;  %v2544_v14 = vpop.f32.mrb[78].mxu1  ;;  %v3258_v5 = vadd.f32 %v6413_v54, %v3257_v59 }
 0x2af   :  { %v3122_v15 = vpop.f32.mrb[78].mxu0  ;;  %v2546_v19 = vpop.f32.mrb[79].mxu1 }
 0x2b0   :  { %8277 = vst [vmem:[#allocation6_spill] sm:$0xff] %v6417_v9  ;;  %v6419_v20 = vadd.f32 %v3122_v15, %v2544_v14  ;;  %v3124_v24 = vpop.f32.mrb[79].mxu0 }
 0x2b1   :  { %v3259_v24 = vadd.f32 %v6417_v9, %v3258_v5 }
 0x2b2   :  { %8278 = vst [vmem:[#allocation7_spill] sm:$0xff] %v6419_v20 }
 0x2b4   :  { %v2549_v29 = vpop.f32.mrb[80].mxu1 }
 0x2b5   :  { %v3127_v32 = vpop.f32.mrb[80].mxu0  ;;  %v2551_v34 = vpop.f32.mrb[81].mxu1 }
 0x2b6   :  { %v6423_v36 = vadd.f32 %v3127_v32, %v2549_v29  ;;  %v3129_v38 = vpop.f32.mrb[81].mxu0  ;;  %v2552_v40 = vpop.f32.mrb[82].mxu1  ;;  %v3260_v29 = vadd.f32 %v6419_v20, %v3259_v24 }
 0x2b7   :  { %v3130_v45 = vpop.f32.mrb[82].mxu0  ;;  %v2554_v48 = vpop.f32.mrb[83].mxu1 }
 0x2b8   :  { %8279 = vst [vmem:[#allocation8_spill] sm:$0xff] %v6423_v36  ;;  %v6426_v51 = vadd.f32 %v3130_v45, %v2552_v40  ;;  %v3132_v52 = vpop.f32.mrb[83].mxu0  ;;  %v3261_v40 = vadd.f32 %v6423_v36, %v3260_v29 }
 0x2ba   :  { %8280 = vst [vmem:[#allocation9_spill] sm:$0xff] %v6426_v51 }
 0x2bc   :  { %v2557_v60 = vpop.f32.mrb[84].mxu1 }
 0x2bd   :  { %v3135_v61 = vpop.f32.mrb[84].mxu0  ;;  %v2559_v2 = vpop.f32.mrb[85].mxu1 }
 0x2be   :  { %v6430_v7 = vadd.f32 %v3135_v61, %v2557_v60  ;;  %v3137_v10 = vpop.f32.mrb[85].mxu0  ;;  %v2560_v14 = vpop.f32.mrb[86].mxu1  ;;  %v3262_v2 = vadd.f32 %v6426_v51, %v3261_v40 }
 0x2bf   :  { %v3138_v15 = vpop.f32.mrb[86].mxu0  ;;  %v2562_v19 = vpop.f32.mrb[87].mxu1 }
 0x2c0   :  { %8281 = vst [vmem:[#allocation10_spill] sm:$0xff] %v6430_v7  ;;  %v6433_v25 = vadd.f32 %v3138_v15, %v2560_v14  ;;  %v3140_v27 = vpop.f32.mrb[87].mxu0  ;;  %v3263_v5 = vadd.f32 %v6430_v7, %v3262_v2 }
 0x2c2   :  { %8282 = vst [vmem:[#allocation11_spill] sm:$0xff] %v6433_v25 }
 0x2c4   :  { %v2565_v32 = vpop.f32.mrb[88].mxu1 }
 0x2c5   :  { %v3143_v34 = vpop.f32.mrb[88].mxu0  ;;  %v2567_v38 = vpop.f32.mrb[89].mxu1 }
 0x2c6   :  { %v6437_v45 = vadd.f32 %v3143_v34, %v2565_v32  ;;  %v3145_v48 = vpop.f32.mrb[89].mxu0  ;;  %v2568_v50 = vpop.f32.mrb[90].mxu1  ;;  %v3264_v34 = vadd.f32 %v6433_v25, %v3263_v5 }
 0x2c7   :  { %v3146_v52 = vpop.f32.mrb[90].mxu0  ;;  %v2570_v59 = vpop.f32.mrb[91].mxu1 }
 0x2c8   :  { %8283 = vst [vmem:[#allocation12_spill] sm:$0xff] %v6437_v45  ;;  %v6439_v60 = vadd.f32 %v3146_v52, %v2568_v50  ;;  %v3148_v61 = vpop.f32.mrb[91].mxu0  ;;  %v3265_v50 = vadd.f32 %v6437_v45, %v3264_v34 }
 0x2ca   :  { %8284 = vst [vmem:[#allocation13_spill] sm:$0xff] %v6439_v60  ;;  %v3266_v61 = vadd.f32 %v6439_v60, %v3265_v50 }
 0x2cc   :  { %v2573_v10 = vpop.f32.mrb[92].mxu1 }
 0x2cd   :  { %v3151_v14 = vpop.f32.mrb[92].mxu0  ;;  %v2575_v15 = vpop.f32.mrb[93].mxu1 }
 0x2ce   :  { %v6443_v19 = vadd.f32 %v3151_v14, %v2573_v10  ;;  %v3153_v24 = vpop.f32.mrb[93].mxu0  ;;  %v2576_v27 = vpop.f32.mrb[94].mxu1 }
 0x2cf   :  { %v3154_v29 = vpop.f32.mrb[94].mxu0  ;;  %v2578_v32 = vpop.f32.mrb[95].mxu1 }
 0x2d0   :  { %8285 = vst [vmem:[#allocation14_spill] sm:$0xff] %v6443_v19  ;;  %v6446_v38 = vadd.f32 %v3154_v29, %v2576_v27  ;;  %v3156_v48 = vpop.f32.mrb[95].mxu0  ;;  %v3267_v32 = vadd.f32 %v6443_v19, %v3266_v61 }
 0x2d2   :  { %8286 = vst [vmem:[#allocation15_spill] sm:$0xff] %v6446_v38  ;;  %v3268_v27 = vadd.f32 %v6446_v38, %v3267_v32 }
 0x2d4   :  { %v2581_v52 = vpop.f32.mrb[96].mxu1 }
 0x2d5   :  { %v3159_v40 = vpop.f32.mrb[96].mxu0  ;;  %v2583_v59 = vpop.f32.mrb[97].mxu1 }
 0x2d6   :  { %v6450_v2 = vadd.f32 %v3159_v40, %v2581_v52  ;;  %v3161_v10 = vpop.f32.mrb[97].mxu0  ;;  %v2584_v14 = vpop.f32.mrb[98].mxu1 }
 0x2d7   :  { %v3162_v15 = vpop.f32.mrb[98].mxu0  ;;  %v2586_v24 = vpop.f32.mrb[99].mxu1 }
 0x2d8   :  { %8287 = vst [vmem:[#allocation16_spill] sm:$0xff] %v6450_v2  ;;  %v6453_v7 = vadd.f32 %v3162_v15, %v2584_v14  ;;  %v3164_v5 = vpop.f32.mrb[99].mxu0  ;;  %v3269_v59 = vadd.f32 %v6450_v2, %v3268_v27 }
 0x2da   :  { %8288 = vst [vmem:[#allocation17_spill] sm:$0xff] %v6453_v7  ;;  %v3270_v61 = vadd.f32 %v6453_v7, %v3269_v59 }
 0x2dc   :  { %v2589_v29 = vpop.f32.mrb[100].mxu1 }
 0x2dd   :  { %v3167_v34 = vpop.f32.mrb[100].mxu0  ;;  %v2591_v48 = vpop.f32.mrb[101].mxu1 }
 0x2de   :  { %v6457_v45 = vadd.f32 %v3167_v34, %v2589_v29  ;;  %v3169_v50 = vpop.f32.mrb[101].mxu0  ;;  %v2592_v52 = vpop.f32.mrb[102].mxu1 }
 0x2df   :  { %v3170_v40 = vpop.f32.mrb[102].mxu0  ;;  %v2594_v10 = vpop.f32.mrb[103].mxu1 }
 0x2e0   :  { %8289 = vst [vmem:[#allocation18_spill] sm:$0xff] %v6457_v45  ;;  %v6459_v60 = vadd.f32 %v3170_v40, %v2592_v52  ;;  %v3172_v24 = vpop.f32.mrb[103].mxu0  ;;  %v3271_v14 = vadd.f32 %v6457_v45, %v3270_v61 }
 0x2e2   :  { %8290 = vst [vmem:[#allocation19_spill] sm:$0xff] %v6459_v60  ;;  %v3272_v50 = vadd.f32 %v6459_v60, %v3271_v14 }
 0x2e4   :  { %v2597_v15 = vpop.f32.mrb[104].mxu1 }
 0x2e5   :  { %v3175_v32 = vpop.f32.mrb[104].mxu0  ;;  %v2599_v5 = vpop.f32.mrb[105].mxu1 }
 0x2e6   :  { %v6463_v38 = vadd.f32 %v3175_v32, %v2597_v15  ;;  %v3177_v48 = vpop.f32.mrb[105].mxu0  ;;  %v2600_v27 = vpop.f32.mrb[106].mxu1 }
 0x2e7   :  { %v3178_v29 = vpop.f32.mrb[106].mxu0  ;;  %v2602_v34 = vpop.f32.mrb[107].mxu1 }
 0x2e8   :  { %8291 = vst [vmem:[#allocation20_spill] sm:$0xff] %v6463_v38  ;;  %v6466_v2 = vadd.f32 %v3178_v29, %v2600_v27  ;;  %v3180_v52 = vpop.f32.mrb[107].mxu0  ;;  %v3273_v40 = vadd.f32 %v6463_v38, %v3272_v50 }
 0x2ea   :  { %8292 = vst [vmem:[#allocation21_spill] sm:$0xff] %v6466_v2  ;;  %v3274_v61 = vadd.f32 %v6466_v2, %v3273_v40 }
 0x2ec   :  { %v2605_v10 = vpop.f32.mrb[108].mxu1 }
 0x2ed   :  { %v3183_v59 = vpop.f32.mrb[108].mxu0  ;;  %v2607_v24 = vpop.f32.mrb[109].mxu1 }
 0x2ee   :  { %v6470_v45 = vadd.f32 %v3183_v59, %v2605_v10  ;;  %v3185_v15 = vpop.f32.mrb[109].mxu0  ;;  %v2608_v32 = vpop.f32.mrb[110].mxu1 }
 0x2ef   :  { %v3186_v5 = vpop.f32.mrb[110].mxu0  ;;  %v2610_v48 = vpop.f32.mrb[111].mxu1 }
 0x2f0   :  { %v3275_v34 = vadd.f32 %v6470_v45, %v3274_v61  ;;  %v4910_v7 = vadd.f32 %v3186_v5, %v2608_v32  ;;  %v3188_v14 = vpop.f32.mrb[111].mxu0 }
 0x2f2   :  { %v3276_v27 = vadd.f32 %v4910_v7, %v3275_v34 }
 0x2f4   :  { %v2613_v29 = vpop.f32.mrb[112].mxu1 }
 0x2f5   :  { %v3191_v52 = vpop.f32.mrb[112].mxu0  ;;  %v2615_v60 = vpop.f32.mrb[113].mxu1 }
 0x2f6   :  { %v4911_v50 = vadd.f32 %v3191_v52, %v2613_v29  ;;  %v3193_v38 = vpop.f32.mrb[113].mxu0  ;;  %v2616_v19 = vpop.f32.mrb[114].mxu1 }
 0x2f7   :  { %v3194_v24 = vpop.f32.mrb[114].mxu0  ;;  %v2618_v25 = vpop.f32.mrb[115].mxu1 }
 0x2f8   :  { %v3277_v40 = vadd.f32 %v4911_v50, %v3276_v27  ;;  %v4912_v10 = vadd.f32 %v3194_v24, %v2616_v19  ;;  %v3196_v59 = vpop.f32.mrb[115].mxu0 }
 0x2fa   :  { %v3278_v15 = vadd.f32 %v4912_v10, %v3277_v40 }
 0x2fc   :  { %v2621_v2 = vpop.f32.mrb[116].mxu1 }
 0x2fd   :  { %v3199_v51 = vpop.f32.mrb[116].mxu0  ;;  %v2623_v48 = vpop.f32.mrb[117].mxu1 }
 0x2fe   :  { %v4913_v36 = vadd.f32 %v3199_v51, %v2621_v2  ;;  %v3201_v61 = vpop.f32.mrb[117].mxu0  ;;  %v2624_v32 = vpop.f32.mrb[118].mxu1 }
 0x2ff   :  { %v3202_v5 = vpop.f32.mrb[118].mxu0  ;;  %v2626_v34 = vpop.f32.mrb[119].mxu1 }
 0x300   :  { %v3279_v14 = vadd.f32 %v4913_v36, %v3278_v15  ;;  %v4914_v20 = vadd.f32 %v3202_v5, %v2624_v32  ;;  %v3204_v60 = vpop.f32.mrb[119].mxu0 }
 0x302   :  { %v3280_v29 = vadd.f32 %v4914_v20, %v3279_v14 }
 0x304   :  { %v2629_v38 = vpop.f32.mrb[120].mxu1 }
 0x305   :  { %v3207_v52 = vpop.f32.mrb[120].mxu0  ;;  %v2631_v9 = vpop.f32.mrb[121].mxu1 }
 0x306   :  { %v4915_v25 = vadd.f32 %v3207_v52, %v2629_v38  ;;  %v3209_v27 = vpop.f32.mrb[121].mxu0  ;;  %v2632_v19 = vpop.f32.mrb[122].mxu1 }
 0x307   :  { %v3210_v24 = vpop.f32.mrb[122].mxu0  ;;  %v2634_v40 = vpop.f32.mrb[123].mxu1 }
 0x308   :  { %v3281_v59 = vadd.f32 %v4915_v25, %v3280_v29  ;;  %v4916_v54 = vadd.f32 %v3210_v24, %v2632_v19  ;;  %v3212_v48 = vpop.f32.mrb[123].mxu0 }
 0x30a   :  { %v3282_v51 = vadd.f32 %v4916_v54, %v3281_v59 }
 0x30c   :  { %v2637_v2 = vpop.f32.mrb[124].mxu1 }
 0x30d   :  { %v3215_v61 = vpop.f32.mrb[124].mxu0  ;;  %v2639_v42 = vpop.f32.mrb[125].mxu1 }
 0x30e   :  { %v4917_v34 = vadd.f32 %v3215_v61, %v2637_v2  ;;  %v3217_v15 = vpop.f32.mrb[125].mxu0  ;;  %v2640_v32 = vpop.f32.mrb[126].mxu1 }
 0x30f   :  { %v3218_v5 = vpop.f32.mrb[126].mxu0  ;;  %v2642_v14 = vpop.f32.mrb[127].mxu1 }
 0x310   :  { %v3283_v60 = vadd.f32 %v4917_v34, %v3282_v51  ;;  %v4918_v28 = vadd.f32 %v3218_v5, %v2640_v32  ;;  %v3220_v9 = vpop.f32.mrb[127].mxu0 }
 0x312   :  { %v3284_v38 = vadd.f32 %v4918_v28, %v3283_v60 }
 0x314   :  { %v3285_v52 = vrot.slane %v3284_v38, 4 }
 0x316   :  { %v3286_v27 = vadd.f32 %v3285_v52, %v3284_v38 }
 0x318   :  { %v3287_v16 = vrot.slane %v3286_v27, 2 }
 0x31a   :  { %v3288_v40 = vadd.f32 %v3287_v16, %v3286_v27 }
 0x31c   :  { %v3289_v29 = vrot.slane %v3288_v40, 1 }
 0x31e   :  { %v3290_v19 = vadd.f32 %v3289_v29, %v3288_v40 }
 0x320   :  { %v6473_v24 = vmul.f32 0.001953125, %v3290_v19 }
 0x322   :  { %v6477_v42 = vsub.f32 %v6470_v45, %v6473_v24  ;;  %v6480_v59 = vsub.f32 %v4910_v7, %v6473_v24  ;;  %v6483_v48 = vsub.f32 %v4911_v50, %v6473_v24  ;;  %v6486_v51 = vsub.f32 %v4912_v10, %v6473_v24 }
 0x323   :  { %v6489_v2 = vsub.f32 %v4913_v36, %v6473_v24  ;;  %v6492_v16 = vsub.f32 %v4914_v20, %v6473_v24  ;;  %v6495_v61 = vsub.f32 %v4915_v25, %v6473_v24  ;;  %v6498_v45 = vsub.f32 %v4916_v54, %v6473_v24 }
 0x324   :  { %v6501_v7 = vsub.f32 %v4917_v34, %v6473_v24  ;;  %v6504_v50 = vsub.f32 %v4918_v28, %v6473_v24  ;;  %v6508_v10 = vsub.f32 %v6272_v41, %v6473_v24  ;;  %v6512_v20 = vsub.f32 %v6274_v49, %v6473_v24 }
 0x325   :  { %v6516_v36 = vsub.f32 %v6288_v58, %v6473_v24  ;;  %v6524_v28 = vsub.f32 %v6290_v3, %v6473_v24  ;;  %v6528_v41 = vsub.f32 %v6304_v13, %v6473_v24  ;;  %v6534_v58 = vsub.f32 %v6306_v21, %v6473_v24 }
 0x326   :  { %v3356_v54 = vmul.f32 %v6508_v10, %v6508_v10  ;;  %v3357_v25 = vmul.f32 %v6512_v20, %v6512_v20  ;;  %v6540_v3 = vsub.f32 %v6320_v31, %v6473_v24  ;;  %v6546_v14 = vsub.f32 %v6322_v39, %v6473_v24 }
 0x327   :  { %v3358_v49 = vmul.f32 %v6516_v36, %v6516_v36  ;;  %v3359_v15 = vmul.f32 %v6524_v28, %v6524_v28  ;;  %v3360_v13 = vmul.f32 %v6528_v41, %v6528_v41  ;;  %v3361_v21 = vmul.f32 %v6534_v58, %v6534_v58 }
 0x328   :  { %v3420_v34 = vadd.f32 %v3357_v25, %v3356_v54  ;;  %v6552_v9 = vsub.f32 %v6324_v46, %v6473_v24  ;;  %v3362_v31 = vmul.f32 %v6540_v3, %v6540_v3  ;;  %v6558_v52 = vsub.f32 %v6326_v53, %v6473_v24 }
 0x329   :  { %v3363_v39 = vmul.f32 %v6546_v14, %v6546_v14  ;;  %v6564_v40 = vsub.f32 %v6328_v0, %v6473_v24  ;;  %v6570_v19 = vsub.f32 %v6330_v63, %v6473_v24  ;;  %v6576_v25 = vsub.f32 %v6332_v6, %v6473_v24 }
 0x32a   :  { %v3421_v32 = vadd.f32 %v3420_v34, %v3358_v49  ;;  %v3364_v46 = vmul.f32 %v6552_v9, %v6552_v9  ;;  %v3365_v53 = vmul.f32 %v6558_v52, %v6558_v52  ;;  %v6582_v34 = vsub.f32 %v6334_v11, %v6473_v24 }
 0x32b   :  { %v3366_v0 = vmul.f32 %v6564_v40, %v6564_v40  ;;  %v3367_v63 = vmul.f32 %v6570_v19, %v6570_v19  ;;  %v3368_v6 = vmul.f32 %v6576_v25, %v6576_v25 }
 0x32c   :  { %v3422_v5 = vadd.f32 %v3421_v32, %v3359_v15  ;;  %v6588_v32 = vsub.f32 %v6336_v17, %v6473_v24  ;;  %v3369_v11 = vmul.f32 %v6582_v34, %v6582_v34 }
 0x32e   :  { %v3423_v60 = vadd.f32 %v3422_v5, %v3360_v13  ;;  %v6594_v5 = vsub.f32 %v6338_v23, %v6473_v24  ;;  %v3370_v17 = vmul.f32 %v6588_v32, %v6588_v32 }
 0x330   :  { %v3424_v38 = vadd.f32 %v3423_v60, %v3361_v21  ;;  %v6600_v60 = vsub.f32 %v6343_v30, %v6473_v24  ;;  %v3371_v23 = vmul.f32 %v6594_v5, %v6594_v5 }
 0x332   :  { %v3425_v27 = vadd.f32 %v3424_v38, %v3362_v31  ;;  %v6606_v38 = vsub.f32 %v6346_v37, %v6473_v24  ;;  %v3372_v30 = vmul.f32 %v6600_v60, %v6600_v60 }
 0x334   :  { %v3426_v29 = vadd.f32 %v3425_v27, %v3363_v39  ;;  %v6612_v27 = vsub.f32 %v6350_v47, %v6473_v24  ;;  %v3373_v37 = vmul.f32 %v6606_v38, %v6606_v38 }
 0x336   :  { %v3427_v54 = vadd.f32 %v3426_v29, %v3364_v46  ;;  %v6618_v29 = vsub.f32 %v6353_v55, %v6473_v24  ;;  %v3374_v47 = vmul.f32 %v6612_v27, %v6612_v27 }
 0x338   :  { %v3428_v49 = vadd.f32 %v3427_v54, %v3365_v53  ;;  %v6624_v54 = vsub.f32 %v6357_v1, %v6473_v24  ;;  %v3375_v55 = vmul.f32 %v6618_v29, %v6618_v29 }
 0x33a   :  { %v3429_v15 = vadd.f32 %v3428_v49, %v3366_v0  ;;  %v6630_v49 = vsub.f32 %v6359_v8, %v6473_v24  ;;  %v3376_v1 = vmul.f32 %v6624_v54, %v6624_v54 }
 0x33c   :  { %v3430_v13 = vadd.f32 %v3429_v15, %v3367_v63  ;;  %v6636_v15 = vsub.f32 %v6363_v18, %v6473_v24  ;;  %v3377_v8 = vmul.f32 %v6630_v49, %v6630_v49 }
 0x33e   :  { %v3431_v21 = vadd.f32 %v3430_v13, %v3368_v6  ;;  %v6642_v13 = vsub.f32 %v6366_v26, %v6473_v24  ;;  %v3378_v18 = vmul.f32 %v6636_v15, %v6636_v15 }
 0x340   :  { %v3432_v31 = vadd.f32 %v3431_v21, %v3369_v11  ;;  %v6648_v21 = vsub.f32 %v6370_v35, %v6473_v24  ;;  %v3379_v26 = vmul.f32 %v6642_v13, %v6642_v13 }
 0x342   :  { %v3433_v39 = vadd.f32 %v3432_v31, %v3370_v17  ;;  %v6654_v31 = vsub.f32 %v6373_v44, %v6473_v24  ;;  %v3380_v35 = vmul.f32 %v6648_v21, %v6648_v21 }
 0x344   :  { %v3434_v46 = vadd.f32 %v3433_v39, %v3371_v23  ;;  %v6660_v39 = vsub.f32 %v6377_v56, %v6473_v24  ;;  %v3381_v44 = vmul.f32 %v6654_v31, %v6654_v31 }
 0x346   :  { %v3435_v53 = vadd.f32 %v3434_v46, %v3372_v30  ;;  %v6666_v46 = vsub.f32 %v6379_v62, %v6473_v24  ;;  %v3382_v56 = vmul.f32 %v6660_v39, %v6660_v39 }
 0x348   :  { %v3436_v0 = vadd.f32 %v3435_v53, %v3373_v37  ;;  %v6672_v53 = vsub.f32 %v6383_v12, %v6473_v24  ;;  %v3383_v62 = vmul.f32 %v6666_v46, %v6666_v46 }
 0x34a   :  { %v3437_v63 = vadd.f32 %v3436_v0, %v3374_v47  ;;  %v6678_v0 = vsub.f32 %v6386_v22, %v6473_v24  ;;  %v3384_v12 = vmul.f32 %v6672_v53, %v6672_v53 }
 0x34c   :  { %v3438_v6 = vadd.f32 %v3437_v63, %v3375_v55  ;;  %v6684_v63 = vsub.f32 %v6390_v33, %v6473_v24  ;;  %v3385_v22 = vmul.f32 %v6678_v0, %v6678_v0 }
 0x34e   :  { %v3439_v11 = vadd.f32 %v3438_v6, %v3376_v1  ;;  %v6690_v6 = vsub.f32 %v6393_v43, %v6473_v24  ;;  %v3386_v33 = vmul.f32 %v6684_v63, %v6684_v63 }
 0x350   :  { %v3440_v17 = vadd.f32 %v3439_v11, %v3377_v8  ;;  %v6696_v11 = vsub.f32 %v6397_v57, %v6473_v24  ;;  %v3387_v43 = vmul.f32 %v6690_v6, %v6690_v6 }
 0x352   :  { %v3441_v23 = vadd.f32 %v3440_v17, %v3378_v18  ;;  %8293 = vst [vmem:[#allocation22_spill] sm:$0xff] %v6696_v11  ;;  %v6702_v17 = vsub.f32 %v6399_v4, %v6473_v24  ;;  %v3388_v57 = vmul.f32 %v6696_v11, %v6696_v11 }
 0x354   :  { %v3442_v30 = vadd.f32 %v3441_v23, %v3379_v26  ;;  %8294 = vst [vmem:[#allocation23_spill] sm:$0xff] %v6702_v17  ;;  %v8295_v23 = vld [vmem:[#allocation2_spill] sm:$0xff]  ;;  %v3389_v4 = vmul.f32 %v6702_v17, %v6702_v17 }
 0x356   :  { %v3443_v37 = vadd.f32 %v3442_v30, %v3380_v35  ;;  %v6708_v35 = vsub.f32 %v8295_v23, %v6473_v24 }
 0x358   :  { %v3444_v47 = vadd.f32 %v3443_v37, %v3381_v44  ;;  %8296 = vst [vmem:[#allocation2_spill] sm:$0xff] %v6708_v35  ;;  %v8297_v44 = vld [vmem:[#allocation3_spill] sm:$0xff] }
 0x359   :  { %v6714_v37 = vsub.f32 %v8297_v44, %v6473_v24 }
 0x35a   :  { %v3445_v55 = vadd.f32 %v3444_v47, %v3382_v56  ;;  %v8299_v47 = vld [vmem:[#allocation4_spill] sm:$0xff] }
 0x35b   :  { %8298 = vst [vmem:[#allocation3_spill] sm:$0xff] %v6714_v37 }
 0x35c   :  { %v3446_v1 = vadd.f32 %v3445_v55, %v3383_v62  ;;  %v6720_v62 = vsub.f32 %v8299_v47, %v6473_v24  ;;  %v3390_v55 = vmul.f32 %v6708_v35, %v6708_v35 }
 0x35e   :  { %v3447_v8 = vadd.f32 %v3446_v1, %v3384_v12  ;;  %8300 = vst [vmem:[#allocation4_spill] sm:$0xff] %v6720_v62  ;;  %v8301_v1 = vld [vmem:[#allocation5_spill] sm:$0xff] }
 0x360   :  { %v3448_v18 = vadd.f32 %v3447_v8, %v3385_v22  ;;  %v6726_v22 = vsub.f32 %v8301_v1, %v6473_v24  ;;  %v3391_v8 = vmul.f32 %v6714_v37, %v6714_v37  ;;  %v8309_v1 = vld [vmem:[#allocation9_spill] sm:$0xff] }
 0x362   :  { %v3449_v26 = vadd.f32 %v3448_v18, %v3386_v33  ;;  %8302 = vst [vmem:[#allocation5_spill] sm:$0xff] %v6726_v22  ;;  %v8303_v18 = vld [vmem:[#allocation6_spill] sm:$0xff]  ;;  %v3393_v44 = vmul.f32 %v6726_v22, %v6726_v22 }
 0x364   :  { %v3450_v30 = vadd.f32 %v3449_v26, %v3387_v43  ;;  %v6732_v43 = vsub.f32 %v8303_v18, %v6473_v24  ;;  %v3392_v26 = vmul.f32 %v6720_v62, %v6720_v62  ;;  %v6750_v18 = vsub.f32 %v8309_v1, %v6473_v24  ;;  %v8315_v1 = vld [vmem:[#allocation12_spill] sm:$0xff] }
 0x366   :  { %v3451_v56 = vadd.f32 %v3450_v30, %v3388_v57  ;;  %8304 = vst [vmem:[#allocation6_spill] sm:$0xff] %v6732_v43  ;;  %v8305_v57 = vld [vmem:[#allocation7_spill] sm:$0xff]  ;;  %8310 = vst [vmem:[#allocation9_spill] sm:$0xff] %v6750_v18 }
 0x367   :  { %v6738_v30 = vsub.f32 %v8305_v57, %v6473_v24  ;;  %v8311_v57 = vld [vmem:[#allocation10_spill] sm:$0xff] }
 0x368   :  { %v3452_v12 = vadd.f32 %v3451_v56, %v3389_v4  ;;  %v8307_v56 = vld [vmem:[#allocation8_spill] sm:$0xff]  ;;  %v6756_v22 = vsub.f32 %v8311_v57, %v6473_v24  ;;  %v8317_v57 = vld [vmem:[#allocation13_spill] sm:$0xff] }
 0x369   :  { %8306 = vst [vmem:[#allocation7_spill] sm:$0xff] %v6738_v30  ;;  %v6744_v47 = vsub.f32 %v8307_v56, %v6473_v24  ;;  %v8313_v56 = vld [vmem:[#allocation11_spill] sm:$0xff] }
 0x36a   :  { %v3453_v33 = vadd.f32 %v3452_v12, %v3390_v55  ;;  %v3394_v55 = vmul.f32 %v6732_v43, %v6732_v43  ;;  %8312 = vst [vmem:[#allocation10_spill] sm:$0xff] %v6756_v22  ;;  %v6762_v43 = vsub.f32 %v8313_v56, %v6473_v24  ;;  %v8319_v56 = vld [vmem:[#allocation14_spill] sm:$0xff] }
 0x36b   :  { %8308 = vst [vmem:[#allocation8_spill] sm:$0xff] %v6744_v47 }
 0x36c   :  { %v3454_v23 = vadd.f32 %v3453_v33, %v3391_v8  ;;  %v3395_v8 = vmul.f32 %v6738_v30, %v6738_v30  ;;  %8314 = vst [vmem:[#allocation11_spill] sm:$0xff] %v6762_v43  ;;  %v6768_v30 = vsub.f32 %v8315_v1, %v6473_v24  ;;  %v8321_v1 = vld [vmem:[#allocation15_spill] sm:$0xff] }
 0x36e   :  { %v3455_v4 = vadd.f32 %v3454_v23, %v3392_v26  ;;  %v3396_v26 = vmul.f32 %v6744_v47, %v6744_v47  ;;  %8316 = vst [vmem:[#allocation12_spill] sm:$0xff] %v6768_v30  ;;  %v6774_v47 = vsub.f32 %v8317_v57, %v6473_v24  ;;  %v8323_v57 = vld [vmem:[#allocation16_spill] sm:$0xff] }
 0x370   :  { %v3456_v12 = vadd.f32 %v3455_v4, %v3393_v44  ;;  %v3397_v44 = vmul.f32 %v6750_v18, %v6750_v18  ;;  %8318 = vst [vmem:[#allocation13_spill] sm:$0xff] %v6774_v47  ;;  %v6780_v18 = vsub.f32 %v8319_v56, %v6473_v24  ;;  %v8325_v56 = vld [vmem:[#allocation17_spill] sm:$0xff] }
 0x372   :  { %v3457_v33 = vadd.f32 %v3456_v12, %v3394_v55  ;;  %v3398_v55 = vmul.f32 %v6756_v22, %v6756_v22  ;;  %8320 = vst [vmem:[#allocation14_spill] sm:$0xff] %v6780_v18  ;;  %v6786_v22 = vsub.f32 %v8321_v1, %v6473_v24  ;;  %v8327_v1 = vld [vmem:[#allocation18_spill] sm:$0xff] }
 0x374   :  { %v3458_v23 = vadd.f32 %v3457_v33, %v3395_v8  ;;  %v3399_v8 = vmul.f32 %v6762_v43, %v6762_v43  ;;  %8322 = vst [vmem:[#allocation15_spill] sm:$0xff] %v6786_v22  ;;  %v6792_v43 = vsub.f32 %v8323_v57, %v6473_v24  ;;  %v8328_v57 = vld [vmem:[#allocation19_spill] sm:$0xff] }
 0x375   :  { %v3343_v62 = vsub.f32 %v8328_v57, %v6473_v24  ;;  %v3410_v57 = vmul.f32 %v6477_v42, %v6477_v42 }
 0x376   :  { %v3459_v4 = vadd.f32 %v3458_v23, %v3396_v26  ;;  %v3400_v26 = vmul.f32 %v6768_v30, %v6768_v30  ;;  %8324 = vst [vmem:[#allocation16_spill] sm:$0xff] %v6792_v43  ;;  %v6798_v30 = vsub.f32 %v8325_v56, %v6473_v24  ;;  %v8329_v56 = vld [vmem:[#allocation20_spill] sm:$0xff] }
 0x378   :  { %v3460_v12 = vadd.f32 %v3459_v4, %v3397_v44  ;;  %v3401_v44 = vmul.f32 %v6774_v47, %v6774_v47  ;;  %8326 = vst [vmem:[#allocation17_spill] sm:$0xff] %v6798_v30  ;;  %v3342_v47 = vsub.f32 %v8327_v1, %v6473_v24  ;;  %v3407_v1 = vmul.f32 %v3343_v62, %v3343_v62 }
 0x37a   :  { %v3461_v33 = vadd.f32 %v3460_v12, %v3398_v55  ;;  %v3402_v55 = vmul.f32 %v6780_v18, %v6780_v18  ;;  %v3344_v18 = vsub.f32 %v8329_v56, %v6473_v24  ;;  %v3406_v37 = vmul.f32 %v3342_v47, %v3342_v47 }
 0x37b   :  { %v3416_v56 = vmul.f32 %v6495_v61, %v6495_v61 }
 0x37c   :  { %v3462_v23 = vadd.f32 %v3461_v33, %v3399_v8  ;;  %v3403_v8 = vmul.f32 %v6786_v22, %v6786_v22  ;;  %v3408_v17 = vmul.f32 %v3344_v18, %v3344_v18 }
 0x37e   :  { %v3463_v4 = vadd.f32 %v3462_v23, %v3400_v26  ;;  %v3404_v26 = vmul.f32 %v6792_v43, %v6792_v43 }
 0x380   :  { %v3464_v12 = vadd.f32 %v3463_v4, %v3401_v44  ;;  %v3405_v44 = vmul.f32 %v6798_v30, %v6798_v30 }
 0x382   :  { %v3465_v33 = vadd.f32 %v3464_v12, %v3402_v55  ;;  %v8330_v55 = vld [vmem:[#allocation21_spill] sm:$0xff] }
 0x383   :  { %v3345_v12 = vsub.f32 %v8330_v55, %v6473_v24  ;;  %v3413_v24 = vmul.f32 %v6486_v51, %v6486_v51  ;;  %v3417_v55 = vmul.f32 %v6498_v45, %v6498_v45 }
 0x384   :  { %v3466_v23 = vadd.f32 %v3465_v33, %v3403_v8 }
 0x385   :  { %v3409_v8 = vmul.f32 %v3345_v12, %v3345_v12 }
 0x386   :  { %v3467_v4 = vadd.f32 %v3466_v23, %v3404_v26  ;;  %v3411_v26 = vmul.f32 %v6480_v59, %v6480_v59 }
 0x388   :  { %v3468_v22 = vadd.f32 %v3467_v4, %v3405_v44  ;;  %v3412_v44 = vmul.f32 %v6483_v48, %v6483_v48 }
 0x38a   :  { %v3469_v35 = vadd.f32 %v3468_v22, %v3406_v37  ;;  %v3415_v22 = vmul.f32 %v6492_v16, %v6492_v16 }
 0x38c   :  { %v3470_v43 = vadd.f32 %v3469_v35, %v3407_v1  ;;  %v3414_v35 = vmul.f32 %v6489_v2, %v6489_v2 }
 0x38e   :  { %v3471_v33 = vadd.f32 %v3470_v43, %v3408_v17 }
 0x390   :  { %v3472_v11 = vadd.f32 %v3471_v33, %v3409_v8  ;;  %v3418_v8 = vmul.f32 %v6501_v7, %v6501_v7 }
 0x392   :  { %v3473_v23 = vadd.f32 %v3472_v11, %v3410_v57  ;;  %v3419_v57 = vmul.f32 %v6504_v50, %v6504_v50 }
 0x394   :  { %v3474_v4 = vadd.f32 %v3473_v23, %v3411_v26 }
 0x396   :  { %v3475_v37 = vadd.f32 %v3474_v4, %v3412_v44 }
 0x398   :  { %v3476_v17 = vadd.f32 %v3475_v37, %v3413_v24 }
 0x39a   :  { %v3477_v43 = vadd.f32 %v3476_v17, %v3414_v35 }
 0x39c   :  { %v3478_v11 = vadd.f32 %v3477_v43, %v3415_v22 }
 0x39e   :  { %v3479_v1 = vadd.f32 %v3478_v11, %v3416_v56 }
 0x3a0   :  { %v3480_v33 = vadd.f32 %v3479_v1, %v3417_v55 }
 0x3a2   :  { %v3481_v26 = vadd.f32 %v3480_v33, %v3418_v8 }
 0x3a4   :  { %v3482_v23 = vadd.f32 %v3481_v26, %v3419_v57  ;;  %v8340_v26 = vld [vmem:[#allocation22_spill] sm:$0xff] }
 0x3a6   :  { %v3483_v44 = vrot.slane %v3482_v23, 4 }
 0x3a8   :  { %v3484_v4 = vadd.f32 %v3483_v44, %v3482_v23  ;;  %v8341_v23 = vld [vmem:[#allocation23_spill] sm:$0xff]  ;;  %v8342_v44 = vld [vmem:[#allocation2_spill] sm:$0xff] }
 0x3aa   :  { %v3485_v24 = vrot.slane %v3484_v4, 2 }
 0x3ac   :  { %v3486_v37 = vadd.f32 %v3485_v24, %v3484_v4  ;;  %v8343_v4 = vld [vmem:[#allocation3_spill] sm:$0xff]  ;;  %v8344_v24 = vld [vmem:[#allocation4_spill] sm:$0xff] }
 0x3ae   :  { %v3487_v35 = vrot.slane %v3486_v37, 1 }
 0x3b0   :  { %v3488_v17 = vadd.f32 %v3487_v35, %v3486_v37  ;;  %v8345_v37 = vld [vmem:[#allocation5_spill] sm:$0xff]  ;;  %v8346_v35 = vld [vmem:[#allocation6_spill] sm:$0xff] }
 0x3b2   :  { %v3489_v22 = vmul.f32 0.001953125, %v3488_v17  ;;  %v8347_v17 = vld [vmem:[#allocation7_spill] sm:$0xff] }
 0x3b4   :  { %v3490_v43 = vadd.f32 1e-05, %v3489_v22 }
 0x3b6   :  { %5240 = vrsqrt.f32 %v3490_v43  ;;  %v8348_v43 = vld [vmem:[#allocation8_spill] sm:$0xff] }
 0x3c0   :  { %v6834_v30 = vpop.eup %5240 }
 0x3c1   :  { %v6837_v56 = vmul.f32 %v6834_v30, %v3342_v47  ;;  %v6840_v11 = vmul.f32 %v6834_v30, %v3343_v62  ;;  %v6843_v55 = vmul.f32 %v6834_v30, %v3344_v18  ;;  %v6846_v1 = vmul.f32 %v6834_v30, %v3345_v12 }
 0x3c2   :  { %v6850_v8 = vmul.f32 %v6834_v30, %v6477_v42  ;;  %v6854_v33 = vmul.f32 %v6834_v30, %v6480_v59  ;;  %v6858_v47 = vmul.f32 %v6834_v30, %v6483_v48  ;;  %v6862_v62 = vmul.f32 %v6834_v30, %v6486_v51 }
 0x3c3   :  { %v6866_v18 = vmul.f32 %v6834_v30, %v6489_v2  ;;  %v6870_v42 = vmul.f32 %v6834_v30, %v6492_v16  ;;  %v6874_v59 = vmul.f32 %v6834_v30, %v6495_v61  ;;  %v6878_v48 = vmul.f32 %v6834_v30, %v6498_v45 }
 0x3c4   :  { %8331 = vst [vmem:[#allocation18_spill] sm:$0xff] %v6854_v33  ;;  %8332 = vst [vmem:[#allocation19_spill] sm:$0xff] %v6858_v47  ;;  %v6882_v51 = vmul.f32 %v6834_v30, %v6501_v7  ;;  %v6886_v2 = vmul.f32 %v6834_v30, %v6504_v50  ;;  %v3492_v16 = vmul.f32 %v6834_v30, %v6508_v10  ;;  %v8356_v47 = vld [vmem:[#allocation16_spill] sm:$0xff]  ;;  %v8357_v33 = vld [vmem:[#allocation17_spill] sm:$0xff] }
 0x3c5   :  { %8333 = vst [vmem:[#allocation20_spill] sm:$0xff] %v6862_v62  ;;  %8334 = vst [vmem:[#allocation21_spill] sm:$0xff] %v6866_v18  ;;  %v3493_v12 = vmul.f32 %v6834_v30, %v6512_v20  ;;  %v3494_v61 = vmul.f32 %v6834_v30, %v6516_v36  ;;  %v3495_v45 = vmul.f32 %v6834_v30, %v6524_v28  ;;  %v8355_v18 = vld [vmem:[#allocation15_spill] sm:$0xff] }
 0x3c6   :  { %8335 = vst [vmem:[#allocation24_spill] sm:$0xff] %v6870_v42  ;;  %8336 = vst [vmem:[#allocation25_spill] sm:$0xff] %v6874_v59  ;;  %v3496_v7 = vmul.f32 %v6834_v30, %v6528_v41  ;;  %v3497_v57 = vmul.f32 %v6834_v30, %v6534_v58  ;;  %v3498_v50 = vmul.f32 %v6834_v30, %v6540_v3  ;;  %v8354_v59 = vld [vmem:[#allocation14_spill] sm:$0xff] }
 0x3c7   :  { %8337 = vst [vmem:[#allocation26_spill] sm:$0xff] %v6878_v48  ;;  %8338 = vst [vmem:[#allocation27_spill] sm:$0xff] %v6882_v51  ;;  %v3499_v10 = vmul.f32 %v6834_v30, %v6546_v14  ;;  %v3500_v20 = vmul.f32 %v6834_v30, %v6552_v9  ;;  %v3501_v36 = vmul.f32 %v6834_v30, %v6558_v52  ;;  %v8352_v51 = vld [vmem:[#allocation12_spill] sm:$0xff]  ;;  %v8353_v48 = vld [vmem:[#allocation13_spill] sm:$0xff] }
 0x3c8   :  { %8339 = vst [vmem:[#allocation28_spill] sm:$0xff] %v6886_v2  ;;  %v3502_v28 = vmul.f32 %v6834_v30, %v6564_v40  ;;  %v3503_v41 = vmul.f32 %v6834_v30, %v6570_v19  ;;  %v3504_v58 = vmul.f32 %v6834_v30, %v6576_v25  ;;  %v3505_v3 = vmul.f32 %v6834_v30, %v6582_v34  ;;  %v8351_v2 = vld [vmem:[#allocation11_spill] sm:$0xff] }
 0x3c9   :  { %v3506_v14 = vmul.f32 %v6834_v30, %v6588_v32  ;;  %v3507_v9 = vmul.f32 %v6834_v30, %v6594_v5  ;;  %v3508_v52 = vmul.f32 %v6834_v30, %v6600_v60  ;;  %v3509_v40 = vmul.f32 %v6834_v30, %v6606_v38 }
 0x3ca   :  { %v3510_v19 = vmul.f32 %v6834_v30, %v6612_v27  ;;  %v3511_v25 = vmul.f32 %v6834_v30, %v6618_v29  ;;  %v3512_v34 = vmul.f32 %v6834_v30, %v6624_v54  ;;  %v3513_v32 = vmul.f32 %v6834_v30, %v6630_v49 }
 0x3cb   :  { %v3514_v5 = vmul.f32 %v6834_v30, %v6636_v15  ;;  %v3515_v60 = vmul.f32 %v6834_v30, %v6642_v13  ;;  %v3516_v38 = vmul.f32 %v6834_v30, %v6648_v21  ;;  %v3517_v27 = vmul.f32 %v6834_v30, %v6654_v31 }
 0x3cc   :  { %v3518_v29 = vmul.f32 %v6834_v30, %v6660_v39  ;;  %v3519_v54 = vmul.f32 %v6834_v30, %v6666_v46  ;;  %v3520_v49 = vmul.f32 %v6834_v30, %v6672_v53  ;;  %v3521_v15 = vmul.f32 %v6834_v30, %v6678_v0 }
 0x3cd   :  { %v3522_v13 = vmul.f32 %v6834_v30, %v6684_v63  ;;  %v3523_v21 = vmul.f32 %v6834_v30, %v6690_v6  ;;  %v3524_v31 = vmul.f32 %v6834_v30, %v8340_v26  ;;  %v3525_v39 = vmul.f32 %v6834_v30, %v8341_v23  ;;  %v6973_v23 = vld [vmem:[%s8199_s2] ss:$0 sm:$0xff] }
 0x3ce   :  { %v3526_v46 = vmul.f32 %v6834_v30, %v8342_v44  ;;  %v3527_v53 = vmul.f32 %v6834_v30, %v8343_v4  ;;  %v3528_v0 = vmul.f32 %v6834_v30, %v8344_v24  ;;  %v3529_v63 = vmul.f32 %v6834_v30, %v8345_v37  ;;  %v8349_v44 = vld [vmem:[#allocation9_spill] sm:$0xff]  ;;  %v8350_v24 = vld [vmem:[#allocation10_spill] sm:$0xff] }
 0x3cf   :  { %v3530_v6 = vmul.f32 %v6834_v30, %v8346_v35  ;;  %v3531_v22 = vmul.f32 %v6834_v30, %v8347_v17  ;;  %v3532_v26 = vmul.f32 %v6834_v30, %v8348_v43  ;;  %v3533_v4 = vmul.f32 %v6834_v30, %v8349_v44 }
 0x3d0   :  { %v3534_v37 = vmul.f32 %v6834_v30, %v8350_v24  ;;  %v3535_v35 = vmul.f32 %v6834_v30, %v8351_v2  ;;  %v3536_v17 = vmul.f32 %v6834_v30, %v8352_v51  ;;  %v3537_v43 = vmul.f32 %v6834_v30, %v8353_v48 }
 0x3d1   :  { %v3538_v42 = vmul.f32 %v6834_v30, %v8354_v59  ;;  %v3539_v62 = vmul.f32 %v6834_v30, %v8355_v18  ;;  %v3540_v44 = vmul.f32 %v6834_v30, %v8356_v47  ;;  %v3541_v24 = vmul.f32 %v6834_v30, %v8357_v33 }
 0x3d2   :  { %v6994_v2 = vmul.f32 %v6973_v23, %v3492_v16  ;;  %v6997_v51 = vmul.f32 %v6973_v23, %v3493_v12  ;;  %v7000_v48 = vmul.f32 %v6973_v23, %v3494_v61  ;;  %v7003_v59 = vmul.f32 %v6973_v23, %v3495_v45 }
 0x3d3   :  { %v7006_v18 = vmul.f32 %v6973_v23, %v3496_v7  ;;  %v7009_v47 = vmul.f32 %v6973_v23, %v3497_v57  ;;  %v7012_v30 = vmul.f32 %v6973_v23, %v3498_v50  ;;  %v7015_v33 = vmul.f32 %v6973_v23, %v3499_v10 }
 0x3d4   :  { %v7018_v16 = vmul.f32 %v6973_v23, %v3500_v20  ;;  %v7021_v12 = vmul.f32 %v6973_v23, %v3501_v36  ;;  %v7024_v61 = vmul.f32 %v6973_v23, %v3502_v28  ;;  %v7027_v45 = vmul.f32 %v6973_v23, %v3503_v41 }
 0x3d5   :  { %v7030_v7 = vmul.f32 %v6973_v23, %v3504_v58  ;;  %v7033_v57 = vmul.f32 %v6973_v23, %v3505_v3  ;;  %v7036_v50 = vmul.f32 %v6973_v23, %v3506_v14  ;;  %v7039_v10 = vmul.f32 %v6973_v23, %v3507_v9 }
 0x3d6   :  { %v7042_v20 = vmul.f32 %v6973_v23, %v3508_v52  ;;  %v7045_v36 = vmul.f32 %v6973_v23, %v3509_v40  ;;  %v7048_v28 = vmul.f32 %v6973_v23, %v3510_v19  ;;  %v7051_v41 = vmul.f32 %v6973_v23, %v3511_v25 }
 0x3d7   :  { %v7054_v58 = vmul.f32 %v6973_v23, %v3512_v34  ;;  %v7057_v3 = vmul.f32 %v6973_v23, %v3513_v32  ;;  %v7060_v14 = vmul.f32 %v6973_v23, %v3514_v5  ;;  %v7063_v9 = vmul.f32 %v6973_v23, %v3515_v60 }
 0x3d8   :  { %v7066_v52 = vmul.f32 %v6973_v23, %v3516_v38  ;;  %v7069_v40 = vmul.f32 %v6973_v23, %v3517_v27  ;;  %v7072_v19 = vmul.f32 %v6973_v23, %v3518_v29  ;;  %v7075_v25 = vmul.f32 %v6973_v23, %v3519_v54 }
 0x3d9   :  { %v7078_v34 = vmul.f32 %v6973_v23, %v3520_v49  ;;  %v7081_v32 = vmul.f32 %v6973_v23, %v3521_v15  ;;  %v7084_v5 = vmul.f32 %v6973_v23, %v3522_v13  ;;  %v7087_v60 = vmul.f32 %v6973_v23, %v3523_v21 }
 0x3da   :  { %v7090_v38 = vmul.f32 %v6973_v23, %v3524_v31  ;;  %v7093_v27 = vmul.f32 %v6973_v23, %v3525_v39  ;;  %v7096_v29 = vmul.f32 %v6973_v23, %v3526_v46  ;;  %v7099_v54 = vmul.f32 %v6973_v23, %v3527_v53 }
 0x3db   :  { %v7102_v49 = vmul.f32 %v6973_v23, %v3528_v0  ;;  %v7105_v15 = vmul.f32 %v6973_v23, %v3529_v63  ;;  %v7108_v13 = vmul.f32 %v6973_v23, %v3530_v6  ;;  %v7111_v21 = vmul.f32 %v6973_v23, %v3531_v22 }
 0x3dc   :  { %v7114_v31 = vmul.f32 %v6973_v23, %v3532_v26  ;;  %v7117_v39 = vmul.f32 %v6973_v23, %v3533_v4  ;;  %v7120_v46 = vmul.f32 %v6973_v23, %v3534_v37  ;;  %v7123_v53 = vmul.f32 %v6973_v23, %v3535_v35 }
 0x3dd   :  { %v7126_v0 = vmul.f32 %v6973_v23, %v3536_v17  ;;  %v7129_v63 = vmul.f32 %v6973_v23, %v3537_v43  ;;  %v7132_v6 = vmul.f32 %v6973_v23, %v3538_v42  ;;  %v7135_v22 = vmul.f32 %v6973_v23, %v3539_v62  ;;  %v8362_v43 = vld [vmem:[#allocation18_spill] sm:$0xff] }
 0x3de   :  { %v7138_v26 = vmul.f32 %v6973_v23, %v3540_v44  ;;  %v7141_v4 = vmul.f32 %v6973_v23, %v3541_v24  ;;  %v7145_v37 = vmul.f32 %v6973_v23, %v6837_v56  ;;  %v7149_v35 = vmul.f32 %v6973_v23, %v6840_v11  ;;  %v7166_v56 = vld [vmem:[%s8200_s3] ss:$0 sm:$0xff]  ;;  %v8364_v44 = vld [vmem:[#allocation19_spill] sm:$0xff]  ;;  %v8366_v24 = vld [vmem:[#allocation20_spill] sm:$0xff] }
 0x3df   :  { %v7153_v42 = vmul.f32 %v6973_v23, %v6843_v55  ;;  %v7157_v62 = vmul.f32 %v6973_v23, %v6846_v1  ;;  %v7161_v17 = vmul.f32 %v6973_v23, %v6850_v8  ;;  %v7170_v11 = vmul.f32 %v6973_v23, %v8362_v43 }
 0x3e0   :  { %8358 = vst [vmem:[#allocation22_spill] sm:$0xff] %v7149_v35  ;;  %v7174_v55 = vmul.f32 %v6973_v23, %v8364_v44  ;;  %v7178_v1 = vmul.f32 %v6973_v23, %v8366_v24  ;;  %v8370_v35 = vld [vmem:[#allocation25_spill] sm:$0xff] }
 0x3e1   :  { %8359 = vst [vmem:[#allocation23_spill] sm:$0xff] %v7153_v42  ;;  %8360 = vst [vmem:[#allocation2_spill] sm:$0xff] %v7157_v62  ;;  %v8368_v62 = vld [vmem:[#allocation21_spill] sm:$0xff]  ;;  %v7190_v43 = vmul.f32 %v6973_v23, %v8370_v35  ;;  %v7210_v35 = vadd.f32 %v7166_v56, %v6997_v51  ;;  %v7230_v51 = vadd.f32 %v7166_v56, %v7012_v30 }
 0x3e2   :  { %8361 = vst [vmem:[#allocation3_spill] sm:$0xff] %v7161_v17  ;;  %8363 = vst [vmem:[#allocation4_spill] sm:$0xff] %v7170_v11  ;;  %v7182_v8 = vmul.f32 %v6973_v23, %v8368_v62  ;;  %v8369_v17 = vld [vmem:[#allocation24_spill] sm:$0xff]  ;;  %v8371_v11 = vld [vmem:[#allocation26_spill] sm:$0xff]  ;;  %v7250_v30 = vadd.f32 %v7166_v56, %v7027_v45  ;;  %v7270_v45 = vadd.f32 %v7166_v56, %v7042_v20 }
 0x3e3   :  { %8365 = vst [vmem:[#allocation5_spill] sm:$0xff] %v7174_v55  ;;  %8367 = vst [vmem:[#allocation6_spill] sm:$0xff] %v7178_v1  ;;  %v7186_v42 = vmul.f32 %v6973_v23, %v8369_v17  ;;  %v7194_v44 = vmul.f32 %v6973_v23, %v8371_v11  ;;  %v8372_v55 = vld [vmem:[#allocation27_spill] sm:$0xff]  ;;  %v8373_v1 = vld [vmem:[#allocation28_spill] sm:$0xff]  ;;  %v7206_v17 = vadd.f32 %v7166_v56, %v6994_v2  ;;  %vm3699_vm1 = vcmp.gt.f32.partialorder %v7210_v35, 0.0 }
 0x3e4   :  { %v7198_v24 = vmul.f32 %v6973_v23, %v8372_v55  ;;  %v7202_v62 = vmul.f32 %v6973_v23, %v8373_v1  ;;  %v7214_v11 = vadd.f32 %v7166_v56, %v7000_v48  ;;  %v7218_v55 = vadd.f32 %v7166_v56, %v7003_v59 }
 0x3e5   :  { %v7222_v23 = vadd.f32 %v7166_v56, %v7006_v18  ;;  %v7226_v2 = vadd.f32 %v7166_v56, %v7009_v47  ;;  %v7234_v48 = vadd.f32 %v7166_v56, %v7015_v33  ;;  %v7238_v59 = vadd.f32 %v7166_v56, %v7018_v16 }
 0x3e6   :  { %v7242_v18 = vadd.f32 %v7166_v56, %v7021_v12  ;;  %v7246_v47 = vadd.f32 %v7166_v56, %v7024_v61  ;;  %v7254_v33 = vadd.f32 %v7166_v56, %v7030_v7  ;;  %v7258_v16 = vadd.f32 %v7166_v56, %v7033_v57 }
 0x3e7   :  { %v7262_v12 = vadd.f32 %v7166_v56, %v7036_v50  ;;  %v7266_v61 = vadd.f32 %v7166_v56, %v7039_v10  ;;  %v7274_v7 = vadd.f32 %v7166_v56, %v7045_v36  ;;  %v7278_v57 = vadd.f32 %v7166_v56, %v7048_v28  ;;  %v8380_v1 = vld [vmem:[#allocation22_spill] sm:$0xff] }
 0x3e8   :  { %v7282_v50 = vadd.f32 %v7166_v56, %v7051_v41  ;;  %v7286_v10 = vadd.f32 %v7166_v56, %v7054_v58  ;;  %v7290_v20 = vadd.f32 %v7166_v56, %v7057_v3  ;;  %v7294_v36 = vadd.f32 %v7166_v56, %v7060_v14 }
 0x3e9   :  { %v7298_v28 = vadd.f32 %v7166_v56, %v7063_v9  ;;  %v7302_v41 = vadd.f32 %v7166_v56, %v7066_v52  ;;  %v7306_v58 = vadd.f32 %v7166_v56, %v7069_v40  ;;  %v7310_v3 = vadd.f32 %v7166_v56, %v7072_v19 }
 0x3ea   :  { %v7314_v14 = vadd.f32 %v7166_v56, %v7075_v25  ;;  %v7318_v9 = vadd.f32 %v7166_v56, %v7078_v34  ;;  %v7322_v52 = vadd.f32 %v7166_v56, %v7081_v32  ;;  %v7326_v40 = vadd.f32 %v7166_v56, %v7084_v5 }
 0x3eb   :  { %v7330_v19 = vadd.f32 %v7166_v56, %v7087_v60  ;;  %v7334_v25 = vadd.f32 %v7166_v56, %v7090_v38  ;;  %v7338_v34 = vadd.f32 %v7166_v56, %v7093_v27  ;;  %v7342_v32 = vadd.f32 %v7166_v56, %v7096_v29 }
 0x3ec   :  { %v7346_v5 = vadd.f32 %v7166_v56, %v7099_v54  ;;  %v7350_v60 = vadd.f32 %v7166_v56, %v7102_v49  ;;  %v7354_v38 = vadd.f32 %v7166_v56, %v7105_v15  ;;  %v7358_v27 = vadd.f32 %v7166_v56, %v7108_v13 }
 0x3ed   :  { %v7362_v29 = vadd.f32 %v7166_v56, %v7111_v21  ;;  %v7366_v54 = vadd.f32 %v7166_v56, %v7114_v31  ;;  %v7370_v49 = vadd.f32 %v7166_v56, %v7117_v39  ;;  %v7374_v15 = vadd.f32 %v7166_v56, %v7120_v46 }
 0x3ee   :  { %v7378_v13 = vadd.f32 %v7166_v56, %v7123_v53  ;;  %v7382_v21 = vadd.f32 %v7166_v56, %v7126_v0  ;;  %v7386_v31 = vadd.f32 %v7166_v56, %v7129_v63  ;;  %v7390_v39 = vadd.f32 %v7166_v56, %v7132_v6 }
 0x3ef   :  { %8374 = vst [vmem:[#allocation7_spill] sm:$0xff] %v7370_v49  ;;  %v7394_v46 = vadd.f32 %v7166_v56, %v7135_v22  ;;  %v7398_v53 = vadd.f32 %v7166_v56, %v7138_v26  ;;  %v7402_v0 = vadd.f32 %v7166_v56, %v7141_v4  ;;  %v7406_v63 = vadd.f32 %v7166_v56, %v7145_v37 }
 0x3f0   :  { %8375 = vst [vmem:[#allocation8_spill] sm:$0xff] %v7390_v39  ;;  %v7410_v6 = vadd.f32 %v7166_v56, %v8380_v1  ;;  %v8382_v39 = vld [vmem:[#allocation23_spill] sm:$0xff]  ;;  %vm3698_vm0 = vcmp.gt.f32.partialorder %v7206_v17, 0.0  ;;  %vm3700_vm2 = vcmp.gt.f32.partialorder %v7214_v11, 0.0  ;;  %vm3701_vm3 = vcmp.gt.f32.partialorder %v7218_v55, 0.0 }
 0x3f1   :  { %8376 = vst [vmem:[#allocation9_spill] sm:$0xff] %v7394_v46  ;;  %8377 = vst [vmem:[#allocation10_spill] sm:$0xff] %v7398_v53  ;;  %v7414_v22 = vadd.f32 %v7166_v56, %v8382_v39  ;;  %v8384_v46 = vld [vmem:[#allocation2_spill] sm:$0xff]  ;;  %v8386_v53 = vld [vmem:[#allocation3_spill] sm:$0xff]  ;;  %vm3702_vm4 = vcmp.gt.f32.partialorder %v7222_v23, 0.0  ;;  %vm3703_vm5 = vcmp.gt.f32.partialorder %v7226_v2, 0.0 }
 0x3f2   :  { %8378 = vst [vmem:[#allocation11_spill] sm:$0xff] %v7402_v0  ;;  %8379 = vst [vmem:[#allocation12_spill] sm:$0xff] %v7406_v63  ;;  %v7418_v26 = vadd.f32 %v7166_v56, %v8384_v46  ;;  %v7422_v4 = vadd.f32 %v7166_v56, %v8386_v53  ;;  %v8388_v0 = vld [vmem:[#allocation4_spill] sm:$0xff]  ;;  %v8390_v63 = vld [vmem:[#allocation5_spill] sm:$0xff]  ;;  %v7438_v46 = vadd.f32 %v7166_v56, %v7182_v8  ;;  %vm3704_vm6 = vcmp.gt.f32.partialorder %v7230_v51, 0.0 }
 0x3f3   :  { %8381 = vst [vmem:[#allocation13_spill] sm:$0xff] %v7410_v6  ;;  %8383 = vst [vmem:[#allocation14_spill] sm:$0xff] %v7414_v22  ;;  %v7426_v37 = vadd.f32 %v7166_v56, %v8388_v0  ;;  %v7430_v1 = vadd.f32 %v7166_v56, %v8390_v63  ;;  %v8392_v6 = vld [vmem:[#allocation6_spill] sm:$0xff]  ;;  %v7442_v53 = vadd.f32 %v7166_v56, %v7186_v42  ;;  %vm3705_vm7 = vcmp.gt.f32.partialorder %v7234_v48, 0.0 }
 0x3f4   :  { %8385 = vst [vmem:[#allocation15_spill] sm:$0xff] %v7418_v26  ;;  %8387 = vst [vmem:[#allocation16_spill] sm:$0xff] %v7422_v4  ;;  %v7434_v39 = vadd.f32 %v7166_v56, %v8392_v6  ;;  %v7446_v0 = vadd.f32 %v7166_v56, %v7190_v43  ;;  %v7450_v63 = vadd.f32 %v7166_v56, %v7194_v44  ;;  %vm3706_vm8 = vcmp.gt.f32.partialorder %v7238_v59, 0.0 }
 0x3f5   :  { %8389 = vst [vmem:[#allocation17_spill] sm:$0xff] %v7426_v37  ;;  %8391 = vst [vmem:[#allocation18_spill] sm:$0xff] %v7430_v1  ;;  %v7463_v42 = vadd.f32 %v7166_v56, %v7198_v24  ;;  %vm3707_vm9 = vcmp.gt.f32.partialorder %v7242_v18, 0.0  ;;  %v3762_v8 = vmul.f32 0.2, %v7206_v17  ;;  %v7471_v6 = vadd.f32 %v7166_v56, %v7202_v62 }
 0x3f6   :  { %8393 = vst [vmem:[#allocation19_spill] sm:$0xff] %v7434_v39  ;;  %8394 = vst [vmem:[#allocation20_spill] sm:$0xff] %v7438_v46  ;;  %v3763_v43 = vmul.f32 0.2, %v7210_v35  ;;  %v3764_v44 = vmul.f32 0.2, %v7214_v11 }
 0x3f7   :  { %8395 = vst [vmem:[#allocation21_spill] sm:$0xff] %v7442_v53  ;;  %8396 = vst [vmem:[#allocation24_spill] sm:$0xff] %v7446_v0  ;;  %vm3708_vm10 = vcmp.gt.f32.partialorder %v7246_v47, 0.0  ;;  %v3766_v0 = vmul.f32 0.2, %v7222_v23  ;;  %vm3709_vm11 = vcmp.gt.f32.partialorder %v7250_v30, 0.0  ;;  %v7484_v56 = vsel %vm3698_vm0, %v7206_v17, %v3762_v8 }
 0x3f8   :  { %8397 = vst [vmem:[#allocation25_spill] sm:$0xff] %v7450_v63  ;;  %8398 = vst [vmem:[#allocation26_spill] sm:$0xff] %v7463_v42  ;;  %v3765_v63 = vmul.f32 0.2, %v7218_v55  ;;  %v3767_v24 = vmul.f32 0.2, %v7226_v2  ;;  %v7495_v1 = vsel %vm3699_vm1, %v7210_v35, %v3763_v43 }
 0x3f9   :  { %8399 = vst [vmem:[#allocation27_spill] sm:$0xff] %v7471_v6  ;;  %v3768_v42 = vmul.f32 0.2, %v7230_v51  ;;  %v3769_v53 = vmul.f32 0.2, %v7234_v48  ;;  %8400 = vst [vmem:[#allocation28_spill] sm:$0xff] %v7484_v56  ;;  %v7510_v56 = vsel %vm3700_vm2, %v7214_v11, %v3764_v44 }
 0x3fa   :  { %v3770_v46 = vmul.f32 0.2, %v7238_v59  ;;  %vm3710_vm12 = vcmp.gt.f32.partialorder %v7254_v33, 0.0  ;;  %v3771_v62 = vmul.f32 0.2, %v7242_v18  ;;  %8401 = vst [vmem:[#allocation22_spill] sm:$0xff] %v7495_v1  ;;  %v7525_v4 = vsel %vm3701_vm3, %v7218_v55, %v3765_v63 }
 0x3fb   :  { %v3772_v6 = vmul.f32 0.2, %v7246_v47  ;;  %v7490_v39 = vmul.f32 0.2, %v7250_v30  ;;  %vm3711_vm13 = vcmp.gt.f32.partialorder %v7258_v16, 0.0  ;;  %8402 = vst [vmem:[#allocation23_spill] sm:$0xff] %v7510_v56 }
 0x3fc   :  { %v7499_v37 = vmul.f32 0.2, %v7254_v33  ;;  %v7502_v17 = vmul.f32 0.2, %v7258_v16  ;;  %v7505_v8 = vmul.f32 0.2, %v7262_v12 }
 0x3fd   :  { %vm3712_vm14 = vcmp.gt.f32.partialorder %v7262_v12, 0.0  ;;  %v7514_v35 = vmul.f32 0.2, %v7266_v61  ;;  %v7517_v43 = vmul.f32 0.2, %v7270_v45  ;;  %8404 = vst [vmem:[#allocation3_spill] sm:$0xff] %v7525_v4 }
 0x3fe   :  { %v7520_v1 = vmul.f32 0.2, %v7274_v7  ;;  %vm3713_vm15 = vcmp.gt.f32.partialorder %v7266_v61, 0.0  ;;  %v7529_v11 = vmul.f32 0.2, %v7278_v57  ;;  %vm3714_vm0 = vcmp.gt.f32.partialorder %v7270_v45, 0.0 }
 0x3ff   :  { %v7532_v44 = vmul.f32 0.2, %v7282_v50  ;;  %v7535_v56 = vmul.f32 0.2, %v7286_v10  ;;  %v7544_v55 = vmul.f32 0.2, %v7290_v20 }
 0x400   :  { %8403 = vst [vmem:[#allocation2_spill] sm:$0xff] %v7520_v1  ;;  %v7540_v1 = vsel %vm3702_vm4, %v7222_v23, %v3766_v0  ;;  %v7547_v63 = vmul.f32 0.2, %v7294_v36  ;;  %v7550_v4 = vmul.f32 0.2, %v7298_v28  ;;  %vm3715_vm1 = vcmp.gt.f32.partialorder %v7274_v7, 0.0 }
 0x401   :  { %8405 = vst [vmem:[#allocation4_spill] sm:$0xff] %v7535_v56  ;;  %8406 = vst [vmem:[#allocation5_spill] sm:$0xff] %v7540_v1  ;;  %v7555_v56 = vsel %vm3703_vm5, %v7226_v2, %v3767_v24  ;;  %v7559_v23 = vmul.f32 0.2, %v7302_v41  ;;  %v7562_v0 = vmul.f32 0.2, %v7306_v58 }
 0x402   :  { %8407 = vst [vmem:[#allocation6_spill] sm:$0xff] %v7550_v4  ;;  %8408 = vst [vmem:[#allocation29_spill] sm:$0xff] %v7555_v56  ;;  %v7565_v1 = vmul.f32 0.2, %v7310_v3  ;;  %v7570_v4 = vsel %vm3704_vm6, %v7230_v51, %v3768_v42  ;;  %vm3716_vm2 = vcmp.gt.f32.partialorder %v7278_v57, 0.0  ;;  %vm3717_vm3 = vcmp.gt.f32.partialorder %v7282_v50, 0.0 }
 0x403   :  { %8410 = vst [vmem:[#allocation31_spill] sm:$0xff] %v7570_v4  ;;  %v7574_v2 = vmul.f32 0.2, %v7314_v14  ;;  %v7577_v24 = vmul.f32 0.2, %v7318_v9  ;;  %vm3720_vm6 = vcmp.gt.f32.partialorder %v7294_v36, 0.0 }
 0x404   :  { %8409 = vst [vmem:[#allocation30_spill] sm:$0xff] %v7565_v1  ;;  %v7580_v56 = vmul.f32 0.2, %v7322_v52  ;;  %v7585_v1 = vsel %vm3705_vm7, %v7234_v48, %v3769_v53  ;;  %v7591_v51 = vmul.f32 0.2, %v7326_v40  ;;  %v7602_v48 = vsel %vm3706_vm8, %v7238_v59, %v3770_v46 }
 0x405   :  { %8411 = vst [vmem:[#allocation32_spill] sm:$0xff] %v7585_v1  ;;  %v7594_v42 = vmul.f32 0.2, %v7330_v19  ;;  %v7597_v4 = vmul.f32 0.2, %v7334_v25  ;;  %8413 = vst [vmem:[#allocation34_spill] sm:$0xff] %v7602_v48  ;;  %v7620_v59 = vsel %vm3707_vm9, %v7242_v18, %v3771_v62  ;;  %v7638_v18 = vsel %vm3708_vm10, %v7246_v47, %v3772_v6 }
 0x406   :  { %v7609_v53 = vmul.f32 0.2, %v7338_v34  ;;  %v7612_v1 = vmul.f32 0.2, %v7342_v32  ;;  %8415 = vst [vmem:[#allocation36_spill] sm:$0xff] %v7620_v59  ;;  %vm3724_vm8 = vcmp.gt.f32.partialorder %v7310_v3, 0.0  ;;  %v7657_v47 = vsel %vm3709_vm11, %v7250_v30, %v7490_v39 }
 0x407   :  { %8412 = vst [vmem:[#allocation33_spill] sm:$0xff] %v7597_v4  ;;  %v7615_v4 = vmul.f32 0.2, %v7346_v5  ;;  %v7627_v46 = vmul.f32 0.2, %v7350_v60  ;;  %8417 = vst [vmem:[#allocation38_spill] sm:$0xff] %v7638_v18  ;;  %v7676_v30 = vsel %vm3710_vm12, %v7254_v33, %v7499_v37  ;;  %v7695_v33 = vsel %vm3711_vm13, %v7258_v16, %v7502_v17 }
 0x408   :  { %v7630_v48 = vmul.f32 0.2, %v7354_v38  ;;  %vm3728_vm9 = vcmp.gt.f32.partialorder %v7326_v40, 0.0  ;;  %v7645_v62 = vmul.f32 0.2, %v7362_v29  ;;  %8419 = vst [vmem:[#allocation40_spill] sm:$0xff] %v7657_v47  ;;  %v7714_v16 = vsel %vm3712_vm14, %v7262_v12, %v7505_v8 }
 0x409   :  { %8414 = vst [vmem:[#allocation35_spill] sm:$0xff] %v7615_v4  ;;  %v7633_v4 = vmul.f32 0.2, %v7358_v27  ;;  %v7648_v59 = vmul.f32 0.2, %v7366_v54  ;;  %vm3732_vm10 = vcmp.gt.f32.partialorder %v7342_v32, 0.0  ;;  %v7733_v12 = vsel %vm3713_vm15, %v7266_v61, %v7514_v35 }
 0x40a   :  { %v7664_v6 = vmul.f32 0.2, %v7374_v15  ;;  %v7667_v18 = vmul.f32 0.2, %v7378_v13  ;;  %8423 = vst [vmem:[#allocation44_spill] sm:$0xff] %v7676_v30  ;;  %vm3736_vm11 = vcmp.gt.f32.partialorder %v7358_v27, 0.0  ;;  %v7746_v61 = vsel %vm3714_vm0, %v7270_v45, %v7517_v43 }
 0x40b   :  { %8416 = vst [vmem:[#allocation37_spill] sm:$0xff] %v7633_v4  ;;  %v7651_v4 = vmul.f32 0.2, %v7370_v49  ;;  %v7683_v39 = vmul.f32 0.2, %v7386_v31  ;;  %v8425_v47 = vld [vmem:[#allocation8_spill] sm:$0xff] }
 0x40c   :  { %8420 = vst [vmem:[#allocation41_spill] sm:$0xff] %v7664_v6  ;;  %8421 = vst [vmem:[#allocation42_spill] sm:$0xff] %v7667_v18  ;;  %v7686_v18 = vmul.f32 0.2, %v8425_v47  ;;  %vm3740_vm12 = vcmp.gt.f32.partialorder %v7374_v15, 0.0  ;;  %v8430_v37 = vld [vmem:[#allocation10_spill] sm:$0xff] }
 0x40d   :  { %8418 = vst [vmem:[#allocation39_spill] sm:$0xff] %v7651_v4  ;;  %v7670_v4 = vmul.f32 0.2, %v7382_v21  ;;  %8424 = vst [vmem:[#allocation45_spill] sm:$0xff] %v7683_v39  ;;  %v7702_v30 = vmul.f32 0.2, %v8430_v37 }
 0x40e   :  { %8426 = vst [vmem:[#allocation8_spill] sm:$0xff] %v7686_v18  ;;  %8429 = vst [vmem:[#allocation46_spill] sm:$0xff] %v7695_v33  ;;  %v8431_v18 = vld [vmem:[#allocation11_spill] sm:$0xff]  ;;  %vm3744_vm13 = vcmp.gt.f32.partialorder %v8425_v47, 0.0  ;;  %v8436_v17 = vld [vmem:[#allocation13_spill] sm:$0xff]  ;;  %vm8455_vm7 = vcmp.gt.f32.partialorder %v7286_v10, 0.0 }
 0x40f   :  { %8422 = vst [vmem:[#allocation43_spill] sm:$0xff] %v7670_v4  ;;  %v8427_v4 = vld [vmem:[#allocation9_spill] sm:$0xff]  ;;  %v7705_v39 = vmul.f32 0.2, %v8431_v18  ;;  %8435 = vst [vmem:[#allocation49_spill] sm:$0xff] %v7714_v16  ;;  %v8441_v8 = vld [vmem:[#allocation16_spill] sm:$0xff] }
 0x410   :  { %v7689_v6 = vmul.f32 0.2, %v8427_v4  ;;  %v7721_v33 = vmul.f32 0.2, %v8436_v17  ;;  %8440 = vst [vmem:[#allocation53_spill] sm:$0xff] %v7733_v12  ;;  %v8443_v18 = vld [vmem:[#allocation18_spill] sm:$0xff] }
 0x411   :  { %8432 = vst [vmem:[#allocation47_spill] sm:$0xff] %v7705_v39  ;;  %v7724_v39 = vmul.f32 0.2, %v7414_v22  ;;  %v3816_v16 = vmul.f32 0.2, %v8441_v8  ;;  %8444 = vst [vmem:[#allocation54_spill] sm:$0xff] %v7746_v61 }
 0x412   :  { %8428 = vst [vmem:[#allocation9_spill] sm:$0xff] %v7689_v6  ;;  %v8433_v6 = vld [vmem:[#allocation12_spill] sm:$0xff]  ;;  %8437 = vst [vmem:[#allocation50_spill] sm:$0xff] %v7721_v33  ;;  %vm3752_vm15 = vcmp.gt.f32.partialorder %v8441_v8, 0.0  ;;  %v8445_v35 = vld [vmem:[#allocation19_spill] sm:$0xff] }
 0x413   :  { %v7708_v49 = vmul.f32 0.2, %v8433_v6  ;;  %8438 = vst [vmem:[#allocation51_spill] sm:$0xff] %v7724_v39  ;;  %vm3748_vm14 = vcmp.gt.f32.partialorder %v8433_v6, 0.0  ;;  %v8442_v39 = vld [vmem:[#allocation17_spill] sm:$0xff]  ;;  %v8448_v37 = vld [vmem:[#allocation2_spill] sm:$0xff] }
 0x414   :  { %v3817_v33 = vmul.f32 0.2, %v8442_v39  ;;  %v3819_v12 = vmul.f32 0.2, %v8445_v35  ;;  %v8447_v17 = vld [vmem:[#allocation21_spill] sm:$0xff]  ;;  %v7759_v45 = vsel %vm3715_vm1, %v7274_v7, %v8448_v37  ;;  %v8450_v43 = vld [vmem:[#allocation24_spill] sm:$0xff]  ;;  %v7772_v7 = vsel %vm3716_vm2, %v7278_v57, %v7529_v11 }
 0x415   :  { %8434 = vst [vmem:[#allocation48_spill] sm:$0xff] %v7708_v49  ;;  %v7727_v49 = vmul.f32 0.2, %v7418_v26  ;;  %v8446_v26 = vld [vmem:[#allocation20_spill] sm:$0xff]  ;;  %v3821_v6 = vmul.f32 0.2, %v8447_v17  ;;  %v7799_v11 = vsel %vm3720_vm6, %v7294_v36, %v7547_v63 }
 0x416   :  { %v3820_v22 = vmul.f32 0.2, %v8446_v26  ;;  %8449 = vst [vmem:[#allocation20_spill] sm:$0xff] %v7759_v45  ;;  %vm3756_vm0 = vcmp.gt.f32.partialorder %v8446_v26, 0.0  ;;  %vm3758_vm4 = vcmp.gt.f32.partialorder %v8450_v43, 0.0  ;;  %v8451_v61 = vld [vmem:[#allocation25_spill] sm:$0xff] }
 0x417   :  { %8439 = vst [vmem:[#allocation52_spill] sm:$0xff] %v7727_v49  ;;  %v3818_v49 = vmul.f32 0.2, %v8443_v18  ;;  %v3822_v35 = vmul.f32 0.2, %v8450_v43  ;;  %v8452_v39 = vld [vmem:[#allocation26_spill] sm:$0xff]  ;;  %v7781_v43 = vsel %vm3717_vm3, %v7282_v50, %v7532_v44 }
 0x418   :  { %v3823_v18 = vmul.f32 0.2, %v8451_v61  ;;  %v3824_v8 = vmul.f32 0.2, %v8452_v39  ;;  %vm3760_vm1 = vcmp.gt.f32.partialorder %v8452_v39, 0.0  ;;  %v8453_v37 = vld [vmem:[#allocation27_spill] sm:$0xff] }
 0x419   :  { %vm3761_vm5 = vcmp.gt.f32.partialorder %v8453_v37, 0.0  ;;  %v3825_v45 = vmul.f32 0.2, %v8453_v37  ;;  %v8454_v61 = vld [vmem:[#allocation4_spill] sm:$0xff]  ;;  %vm8456_vm2 = vcmp.gt.f32.partialorder %v7290_v20, 0.0  ;;  %v8457_v50 = vld [vmem:[#allocation6_spill] sm:$0xff] }
 0x41a   :  { %v7787_v17 = vsel %vm8455_vm7, %v7286_v10, %v8454_v61  ;;  %v7793_v57 = vsel %vm8456_vm2, %v7290_v20, %v7544_v55  ;;  %vm8458_vm3 = vcmp.gt.f32.partialorder %v7298_v28, 0.0  ;;  %vm8459_vm7 = vcmp.gt.f32.partialorder %v7302_v41, 0.0  ;;  %v8461_v36 = vld [vmem:[#allocation30_spill] sm:$0xff] }
 0x41b   :  { %v7805_v44 = vsel %vm8458_vm3, %v7298_v28, %v8457_v50  ;;  %v7811_v10 = vsel %vm8459_vm7, %v7302_v41, %v7559_v23  ;;  %vm8460_vm2 = vcmp.gt.f32.partialorder %v7306_v58, 0.0  ;;  %v7823_v55 = vsel %vm3724_vm8, %v7310_v3, %v8461_v36  ;;  %v8477_v23 = vld [vmem:[#allocation7_spill] sm:$0xff]  ;;  %v8495_v50 = vld [vmem:[#allocation12_spill] sm:$0xff] }
 0x41c   :  { %v7817_v20 = vsel %vm8460_vm2, %v7306_v58, %v7562_v0  ;;  %vm8462_vm6 = vcmp.gt.f32.partialorder %v7314_v14, 0.0  ;;  %vm8463_vm3 = vcmp.gt.f32.partialorder %v7318_v9, 0.0  ;;  %vm8464_vm7 = vcmp.gt.f32.partialorder %v7322_v52, 0.0 }
 0x41d   :  { %v7829_v28 = vsel %vm8462_vm6, %v7314_v14, %v7574_v2  ;;  %v7835_v41 = vsel %vm8463_vm3, %v7318_v9, %v7577_v24  ;;  %v7841_v58 = vsel %vm8464_vm7, %v7322_v52, %v7580_v56  ;;  %v7847_v3 = vsel %vm3728_vm9, %v7326_v40, %v7591_v51  ;;  %v8466_v9 = vld [vmem:[#allocation33_spill] sm:$0xff] }
 0x41e   :  { %vm8465_vm8 = vcmp.gt.f32.partialorder %v7330_v19, 0.0  ;;  %vm8467_vm2 = vcmp.gt.f32.partialorder %v7334_v25, 0.0  ;;  %vm8468_vm6 = vcmp.gt.f32.partialorder %v7338_v34, 0.0  ;;  %v7871_v40 = vsel %vm3732_vm10, %v7342_v32, %v7612_v1  ;;  %v8473_v32 = vld [vmem:[#allocation37_spill] sm:$0xff] }
 0x41f   :  { %v7853_v14 = vsel %vm8465_vm8, %v7330_v19, %v7594_v42  ;;  %v7859_v63 = vsel %vm8467_vm2, %v7334_v25, %v8466_v9  ;;  %v7865_v52 = vsel %vm8468_vm6, %v7338_v34, %v7609_v53  ;;  %v8469_v19 = vld [vmem:[#allocation35_spill] sm:$0xff]  ;;  %vm8470_vm9 = vcmp.gt.f32.partialorder %v7346_v5, 0.0  ;;  %v8484_v42 = vld [vmem:[#allocation45_spill] sm:$0xff] }
 0x420   :  { %v7877_v56 = vsel %vm8470_vm9, %v7346_v5, %v8469_v19  ;;  %vm8471_vm3 = vcmp.gt.f32.partialorder %v7350_v60, 0.0  ;;  %vm8472_vm7 = vcmp.gt.f32.partialorder %v7354_v38, 0.0  ;;  %v7895_v1 = vsel %vm3736_vm11, %v7358_v27, %v8473_v32  ;;  %v8479_v27 = vld [vmem:[#allocation41_spill] sm:$0xff]  ;;  %v8500_v32 = vld [vmem:[#allocation14_spill] sm:$0xff] }
 0x421   :  { %v7883_v25 = vsel %vm8471_vm3, %v7350_v60, %v7627_v46  ;;  %v7889_v34 = vsel %vm8472_vm7, %v7354_v38, %v7630_v48  ;;  %vm8474_vm10 = vcmp.gt.f32.partialorder %v7362_v29, 0.0  ;;  %vm8475_vm8 = vcmp.gt.f32.partialorder %v7366_v54, 0.0  ;;  %v8476_v38 = vld [vmem:[#allocation39_spill] sm:$0xff]  ;;  %v8497_v9 = vld [vmem:[#allocation13_spill] sm:$0xff] }
 0x422   :  { %v7901_v5 = vsel %vm8474_vm10, %v7362_v29, %v7645_v62  ;;  %v7907_v60 = vsel %vm8475_vm8, %v7366_v54, %v7648_v59  ;;  %vm8478_vm2 = vcmp.gt.f32.partialorder %v8477_v23, 0.0  ;;  %v7919_v2 = vsel %vm3740_vm12, %v7374_v15, %v8479_v27  ;;  %v8480_v29 = vld [vmem:[#allocation42_spill] sm:$0xff]  ;;  %v8482_v54 = vld [vmem:[#allocation43_spill] sm:$0xff]  ;;  %v8486_v15 = vld [vmem:[#allocation8_spill] sm:$0xff] }
 0x423   :  { %v7913_v0 = vsel %vm8478_vm2, %v8477_v23, %v8476_v38  ;;  %vm8481_vm11 = vcmp.gt.f32.partialorder %v7378_v13, 0.0  ;;  %vm8483_vm6 = vcmp.gt.f32.partialorder %v7382_v21, 0.0  ;;  %vm8485_vm9 = vcmp.gt.f32.partialorder %v7386_v31, 0.0  ;;  %v8492_v62 = vld [vmem:[#allocation11_spill] sm:$0xff]  ;;  %v8502_v23 = vld [vmem:[#allocation52_spill] sm:$0xff] }
 0x424   :  { %v7925_v24 = vsel %vm8481_vm11, %v7378_v13, %v8480_v29  ;;  %v7931_v51 = vsel %vm8483_vm6, %v7382_v21, %v8482_v54  ;;  %v7937_v48 = vsel %vm8485_vm9, %v7386_v31, %v8484_v42  ;;  %v7943_v53 = vsel %vm3744_vm13, %v8425_v47, %v8486_v15  ;;  %v8487_v13 = vld [vmem:[#allocation9_spill] sm:$0xff]  ;;  %v8489_v21 = vld [vmem:[#allocation10_spill] sm:$0xff]  ;;  %v8491_v31 = vld [vmem:[#allocation47_spill] sm:$0xff] }
 0x425   :  { %vm8488_vm12 = vcmp.gt.f32.partialorder %v8427_v4, 0.0  ;;  %vm8490_vm3 = vcmp.gt.f32.partialorder %v8489_v21, 0.0  ;;  %vm8493_vm7 = vcmp.gt.f32.partialorder %v8492_v62, 0.0  ;;  %v8494_v47 = vld [vmem:[#allocation48_spill] sm:$0xff]  ;;  %vm8498_vm13 = vcmp.gt.f32.partialorder %v8497_v9, 0.0  ;;  %v8503_v27 = vld [vmem:[#allocation15_spill] sm:$0xff] }
 0x426   :  { %v7949_v59 = vsel %vm8488_vm12, %v8427_v4, %v8487_v13  ;;  %v7955_v46 = vsel %vm8490_vm3, %v8489_v21, %v7702_v30  ;;  %v7961_v61 = vsel %vm8493_vm7, %v8492_v62, %v8491_v31  ;;  %v7967_v36 = vsel %vm3748_vm14, %v8495_v50, %v8494_v47  ;;  %v8496_v4 = vld [vmem:[#allocation50_spill] sm:$0xff]  ;;  %v8499_v30 = vld [vmem:[#allocation51_spill] sm:$0xff]  ;;  %v8505_v54 = vld [vmem:[#allocation16_spill] sm:$0xff] }
 0x427   :  { %v7973_v19 = vsel %vm8498_vm13, %v8497_v9, %v8496_v4  ;;  %vm8501_vm10 = vcmp.gt.f32.partialorder %v8500_v32, 0.0  ;;  %vm8504_vm8 = vcmp.gt.f32.partialorder %v8503_v27, 0.0  ;;  %v7990_v42 = vsel %vm3752_vm15, %v8505_v54, %v3816_v16  ;;  %v8506_v15 = vld [vmem:[#allocation17_spill] sm:$0xff]  ;;  %v8508_v21 = vld [vmem:[#allocation18_spill] sm:$0xff]  ;;  %v8510_v62 = vld [vmem:[#allocation19_spill] sm:$0xff] }
 0x428   :  { %v7979_v38 = vsel %vm8501_vm10, %v8500_v32, %v8499_v30  ;;  %v7985_v29 = vsel %vm8504_vm8, %v8503_v27, %v8502_v23  ;;  %vm8507_vm14 = vcmp.gt.f32.partialorder %v8506_v15, 0.0  ;;  %vm8509_vm2 = vcmp.gt.f32.partialorder %v8508_v21, 0.0  ;;  %v8512_v50 = vld [vmem:[#allocation21_spill] sm:$0xff]  ;;  %v8514_v4 = vld [vmem:[#allocation24_spill] sm:$0xff]  ;;  %v8520_v30 = vld [vmem:[#allocation22_spill] sm:$0xff] }
 0x429   :  { %v7995_v13 = vsel %vm8507_vm14, %v8506_v15, %v3817_v33  ;;  %v8000_v31 = vsel %vm8509_vm2, %v8508_v21, %v3818_v49  ;;  %vm8511_vm11 = vcmp.gt.f32.partialorder %v8510_v62, 0.0  ;;  %v8010_v16 = vsel %vm3756_vm0, %v8446_v26, %v3820_v22  ;;  %v8515_v9 = vld [vmem:[#allocation25_spill] sm:$0xff]  ;;  %v8522_v23 = vld [vmem:[#allocation3_spill] sm:$0xff] }
 0x42a   :  { %v8005_v47 = vsel %vm8511_vm11, %v8510_v62, %v3819_v12  ;;  %vm8513_vm15 = vcmp.gt.f32.partialorder %v8512_v50, 0.0  ;;  %v8020_v49 = vsel %vm3758_vm4, %v8514_v4, %v3822_v35  ;;  %vm8516_vm6 = vcmp.gt.f32.partialorder %v8515_v9, 0.0  ;;  %v8521_v35 = vld [vmem:[#allocation23_spill] sm:$0xff]  ;;  %v8523_v54 = vld [vmem:[#allocation5_spill] sm:$0xff]  ;;  %v8526_v62 = vld [vmem:[#allocation32_spill] sm:$0xff] }
 0x42b   :  { %v8015_v33 = vsel %vm8513_vm15, %v8512_v50, %v3821_v6  ;;  %v8025_v12 = vsel %vm8516_vm6, %v8515_v9, %v3823_v18  ;;  %v8030_v22 = vsel %vm3760_vm1, %v8452_v39, %v3824_v8  ;;  %v8035_v26 = vsel %vm3761_vm5, %v8453_v37, %v3825_v45  ;;  %v8519_v6 = vld [vmem:[#allocation28_spill] sm:$0xff]  ;;  %v8524_v15 = vld [vmem:[#allocation29_spill] sm:$0xff]  ;;  %v8525_v21 = vld [vmem:[#allocation31_spill] sm:$0xff] }
 0x42c   :  { %8517 = vst [vmem:[#allocation2_spill] sm:$0xff] %v8025_v12  ;;  %8518 = vst [vmem:[#allocation26_spill] sm:$0xff] %v8030_v22  ;;  %v4667_v32 = vpack.c.bf16 %v8520_v30, %v8519_v6  ;;  %v4672_v27 = vpack.c.bf16 %v8522_v23, %v8521_v35  ;;  %v4677_v18 = vpack.c.bf16 %v8524_v15, %v8523_v54  ;;  %v8527_v4 = vld [vmem:[#allocation34_spill] sm:$0xff]  ;;  %v8528_v39 = vld [vmem:[#allocation36_spill] sm:$0xff] }
 0x42d   :  { %v4682_v50 = vpack.c.bf16 %v8526_v62, %v8525_v21  ;;  %v4687_v8 = vpack.c.bf16 %v8528_v39, %v8527_v4  ;;  %v8529_v9 = vld [vmem:[#allocation38_spill] sm:$0xff]  ;;  %v8530_v22 = vld [vmem:[#allocation40_spill] sm:$0xff]  ;;  %v8533_v30 = vld [vmem:[#allocation49_spill] sm:$0xff] }
 0x42e   :  { %v4692_v12 = vpack.c.bf16 %v8530_v22, %v8529_v9  ;;  %4668 = vst [vmem:[%s8201_s4] sm:$0xff] %v4667_v32   ;;  %4824 = vst [vmem:[%s8201_s4 + $0x8] sm:$0xff] %v4672_v27   ;;  %v8531_v45 = vld [vmem:[#allocation44_spill] sm:$0xff]  ;;  %v8532_v37 = vld [vmem:[#allocation46_spill] sm:$0xff]  ;;  %v4712_v22 = vpack.c.bf16 %v7781_v43, %v7772_v7  ;;  %v4717_v32 = vpack.c.bf16 %v7793_v57, %v7787_v17 }
 0x42f   :  { %v4697_v6 = vpack.c.bf16 %v8532_v37, %v8531_v45  ;;  %v8534_v35 = vld [vmem:[#allocation53_spill] sm:$0xff]  ;;  %v8535_v54 = vld [vmem:[#allocation54_spill] sm:$0xff]  ;;  %v8536_v15 = vld [vmem:[#allocation20_spill] sm:$0xff]  ;;  %4825 = vst [vmem:[%s8201_s4 + $0x10] sm:$0xff] %v4677_v18   ;;  %v4722_v43 = vpack.c.bf16 %v7805_v44, %v7799_v11  ;;  %v4727_v7 = vpack.c.bf16 %v7817_v20, %v7811_v10  ;;  %v4732_v27 = vpack.c.bf16 %v7829_v28, %v7823_v55 }
 0x430   :  { %v4702_v23 = vpack.c.bf16 %v8534_v35, %v8533_v30  ;;  %v4707_v21 = vpack.c.bf16 %v8536_v15, %v8535_v54  ;;  %4826 = vst [vmem:[%s8201_s4 + $0x18] sm:$0xff] %v4682_v50   ;;  %4827 = vst [vmem:[%s8201_s4 + $0x20] sm:$0xff] %v4687_v8   ;;  %v4737_v17 = vpack.c.bf16 %v7841_v58, %v7835_v41 }
 0x431   :  { %4828 = vst [vmem:[%s8201_s4 + $0x28] sm:$0xff] %v4692_v12   ;;  %4829 = vst [vmem:[%s8201_s4 + $0x30] sm:$0xff] %v4697_v6   ;;  %v4742_v57 = vpack.c.bf16 %v7853_v14, %v7847_v3  ;;  %v4747_v11 = vpack.c.bf16 %v7865_v52, %v7859_v63  ;;  %v4752_v44 = vpack.c.bf16 %v7877_v56, %v7871_v40 }
 0x432   :  { %4830 = vst [vmem:[%s8201_s4 + $0x38] sm:$0xff] %v4702_v23   ;;  %4831 = vst [vmem:[%s8201_s4 + $0x40] sm:$0xff] %v4707_v21   ;;  %v4757_v10 = vpack.c.bf16 %v7889_v34, %v7883_v25  ;;  %v4762_v20 = vpack.c.bf16 %v7901_v5, %v7895_v1  ;;  %v4767_v55 = vpack.c.bf16 %v7913_v0, %v7907_v60 }
 0x433   :  { %4832 = vst [vmem:[%s8201_s4 + $0x48] sm:$0xff] %v4712_v22   ;;  %4833 = vst [vmem:[%s8201_s4 + $0x50] sm:$0xff] %v4717_v32   ;;  %v4772_v28 = vpack.c.bf16 %v7925_v24, %v7919_v2  ;;  %v4777_v41 = vpack.c.bf16 %v7937_v48, %v7931_v51  ;;  %v4782_v58 = vpack.c.bf16 %v7949_v59, %v7943_v53  ;;  %v8537_v25 = vld [vmem:[#allocation2_spill] sm:$0xff] }
 0x434   :  { %4834 = vst [vmem:[%s8201_s4 + $0x58] sm:$0xff] %v4722_v43   ;;  %4835 = vst [vmem:[%s8201_s4 + $0x60] sm:$0xff] %v4727_v7   ;;  %v4787_v3 = vpack.c.bf16 %v7961_v61, %v7955_v46  ;;  %v4792_v14 = vpack.c.bf16 %v7973_v19, %v7967_v36  ;;  %v4797_v63 = vpack.c.bf16 %v7985_v29, %v7979_v38  ;;  %v8538_v1 = vld [vmem:[#allocation26_spill] sm:$0xff] }
 0x435   :  { %4836 = vst [vmem:[%s8201_s4 + $0x68] sm:$0xff] %v4732_v27   ;;  %4837 = vst [vmem:[%s8201_s4 + $0x70] sm:$0xff] %v4737_v17   ;;  %v4802_v52 = vpack.c.bf16 %v7995_v13, %v7990_v42  ;;  %v4807_v40 = vpack.c.bf16 %v8005_v47, %v8000_v31  ;;  %v4812_v56 = vpack.c.bf16 %v8015_v33, %v8010_v16 }
 0x436   :  { %4838 = vst [vmem:[%s8201_s4 + $0x78] sm:$0xff] %v4742_v57   ;;  %4839 = vst [vmem:[%s8201_s4 + $0x80] sm:$0xff] %v4747_v11   ;;  %v4817_v34 = vpack.c.bf16 %v8537_v25, %v8020_v49  ;;  %v4822_v5 = vpack.c.bf16 %v8035_v26, %v8538_v1 }
 0x437   :  { %4840 = vst [vmem:[%s8201_s4 + $0x88] sm:$0xff] %v4752_v44   ;;  %4841 = vst [vmem:[%s8201_s4 + $0x90] sm:$0xff] %v4757_v10  }
 0x438   :  { %4842 = vst [vmem:[%s8201_s4 + $0x98] sm:$0xff] %v4762_v20   ;;  %4843 = vst [vmem:[%s8201_s4 + $0xa0] sm:$0xff] %v4767_v55  }
 0x439   :  { %4844 = vst [vmem:[%s8201_s4 + $0xa8] sm:$0xff] %v4772_v28   ;;  %4845 = vst [vmem:[%s8201_s4 + $0xb0] sm:$0xff] %v4777_v41  }
 0x43a   :  { %4846 = vst [vmem:[%s8201_s4 + $0xb8] sm:$0xff] %v4782_v58   ;;  %4847 = vst [vmem:[%s8201_s4 + $0xc0] sm:$0xff] %v4787_v3  }
 0x43b   :  { %4848 = vst [vmem:[%s8201_s4 + $0xc8] sm:$0xff] %v4792_v14   ;;  %4849 = vst [vmem:[%s8201_s4 + $0xd0] sm:$0xff] %v4797_v63  }
 0x43c   :  { %4850 = vst [vmem:[%s8201_s4 + $0xd8] sm:$0xff] %v4802_v52   ;;  %4851 = vst [vmem:[%s8201_s4 + $0xe0] sm:$0xff] %v4807_v40  }
 0x43d   :  { %4852 = vst [vmem:[%s8201_s4 + $0xe8] sm:$0xff] %v4812_v56   ;;  %4853 = vst [vmem:[%s8201_s4 + $0xf0] sm:$0xff] %v4817_v34  }
 0x43e   :  { %4854 = vst [vmem:[%s8201_s4 + $0xf8] sm:$0xff] %v4822_v5  }

// kernel: discriminator_forward.6
= control target key start
LH: loop header
LB: loop body
LE: loop exit
PB: predicated region body
PF: predicated region fallthrough
CT: control target
= control target key end

     0   :  { %s6383_s1 = inlined_call_operand.vmem [shape: bf16[2048,256], index: 1, kind: input, shape index: {}]   ;;  %s6384_s0 = inlined_call_operand.vmem [shape: bf16[128,2048], index: 0, kind: input, shape index: {}]   ;;  %s6385_s2 = inlined_call_operand.vmem [shape: f32[1,256], index: 2, kind: input, shape index: {}]   ;;  %s6386_s3 = inlined_call_operand.vmem [shape: f32[1,256], index: 3, kind: input, shape index: {}]   ;;  %s6387_s4 = inlined_call_operand.vmem [shape: bf16[128,256], index: 4, kind: output, shape index: {}]  }
   0x1   :  { %v4353_v0 = vld [vmem:[%s6383_s1 + $0x4] ss:$8 sps:$4 sm:$0xff]   ;;  %v4357_v2 = vld [vmem:[%s6383_s1] ss:$8 sps:$4 sm:$0xff]   ;;  %v4359_v4 = vld [vmem:[%s6383_s1 + $0x14] ss:$8 sps:$4 sm:$0xff]  }
   0x2   :  { %v4355_v1 = vld [vmem:[%s6383_s1 + $0x404] ss:$8 sps:$4 sm:$0xff]   ;;  %2321 = vmatprep.subr.bf16.mxu1 %v4353_v0  ;;  %v4358_v3 = vld [vmem:[%s6383_s1 + $0x400] ss:$8 sps:$4 sm:$0xff]   ;;  %v4361_v5 = vld [vmem:[%s6383_s1 + $0x414] ss:$8 sps:$4 sm:$0xff]  }
   0x3   :  { %2773 = vmatprep.subr.bf16.mxu0 %v4355_v1  ;;  %2322 = vmatpush1.bf16.msra.mxu1 %v4357_v2  ;;  %v4363_v6 = vld [vmem:[%s6383_s1 + $0x10] ss:$8 sps:$4 sm:$0xff]   ;;  %v4365_v8 = vld [vmem:[%s6383_s1 + $0x24] ss:$8 sps:$4 sm:$0xff]   ;;  %v4369_v10 = vld [vmem:[%s6383_s1 + $0x20] ss:$8 sps:$4 sm:$0xff]  }
   0x4   :  { %2774 = vmatpush1.bf16.msra.mxu0 %v4358_v3  ;;  %2323 = vmatprep.subr.bf16.mxu1 %v4359_v4  ;;  %v4364_v7 = vld [vmem:[%s6383_s1 + $0x410] ss:$8 sps:$4 sm:$0xff]   ;;  %v4367_v9 = vld [vmem:[%s6383_s1 + $0x424] ss:$8 sps:$4 sm:$0xff]   ;;  %v4370_v11 = vld [vmem:[%s6383_s1 + $0x420] ss:$8 sps:$4 sm:$0xff]  }
   0x5   :  { %2775 = vmatprep.subr.bf16.mxu0 %v4361_v5  ;;  %v4371_v12 = vld [vmem:[%s6383_s1 + $0x34] ss:$8 sps:$4 sm:$0xff]   ;;  %v4375_v14 = vld [vmem:[%s6383_s1 + $0x30] ss:$8 sps:$4 sm:$0xff]   ;;  %v4377_v16 = vld [vmem:[%s6383_s1 + $0x44] ss:$8 sps:$4 sm:$0xff]  }
   0x6   :  { %v4373_v13 = vld [vmem:[%s6383_s1 + $0x434] ss:$8 sps:$4 sm:$0xff]   ;;  %v4376_v15 = vld [vmem:[%s6383_s1 + $0x430] ss:$8 sps:$4 sm:$0xff]   ;;  %v4379_v17 = vld [vmem:[%s6383_s1 + $0x444] ss:$8 sps:$4 sm:$0xff]  }
   0x7   :  { %2324 = vmatpush1.bf16.msra.mxu1 %v4363_v6  ;;  %v4381_v18 = vld [vmem:[%s6383_s1 + $0x40] ss:$8 sps:$4 sm:$0xff]   ;;  %v4383_v20 = vld [vmem:[%s6383_s1 + $0x54] ss:$8 sps:$4 sm:$0xff]   ;;  %v4387_v22 = vld [vmem:[%s6383_s1 + $0x50] ss:$8 sps:$4 sm:$0xff]  }
   0x8   :  { %2776 = vmatpush1.bf16.msra.mxu0 %v4364_v7  ;;  %2325 = vmatprep.subr.bf16.mxu1 %v4365_v8  ;;  %v4382_v19 = vld [vmem:[%s6383_s1 + $0x440] ss:$8 sps:$4 sm:$0xff]   ;;  %v4385_v21 = vld [vmem:[%s6383_s1 + $0x454] ss:$8 sps:$4 sm:$0xff]   ;;  %v4388_v23 = vld [vmem:[%s6383_s1 + $0x450] ss:$8 sps:$4 sm:$0xff]  }
   0x9   :  { %2777 = vmatprep.subr.bf16.mxu0 %v4367_v9  ;;  %v4389_v24 = vld [vmem:[%s6383_s1 + $0x64] ss:$8 sps:$4 sm:$0xff]   ;;  %v4393_v26 = vld [vmem:[%s6383_s1 + $0x60] ss:$8 sps:$4 sm:$0xff]   ;;  %v4395_v28 = vld [vmem:[%s6383_s1 + $0x74] ss:$8 sps:$4 sm:$0xff]  }
   0xa   :  { %v4391_v25 = vld [vmem:[%s6383_s1 + $0x464] ss:$8 sps:$4 sm:$0xff]   ;;  %v4394_v27 = vld [vmem:[%s6383_s1 + $0x460] ss:$8 sps:$4 sm:$0xff]   ;;  %v4397_v29 = vld [vmem:[%s6383_s1 + $0x474] ss:$8 sps:$4 sm:$0xff]  }
   0xb   :  { %2326 = vmatpush1.bf16.msra.mxu1 %v4369_v10  ;;  %v4399_v30 = vld [vmem:[%s6383_s1 + $0x70] ss:$8 sps:$4 sm:$0xff]   ;;  %v4401_v32 = vld [vmem:[%s6383_s1 + $0x84] ss:$8 sps:$4 sm:$0xff]   ;;  %v4405_v34 = vld [vmem:[%s6383_s1 + $0x80] ss:$8 sps:$4 sm:$0xff]  }
   0xc   :  { %2778 = vmatpush1.bf16.msra.mxu0 %v4370_v11  ;;  %2327 = vmatprep.subr.bf16.mxu1 %v4371_v12  ;;  %v4400_v31 = vld [vmem:[%s6383_s1 + $0x470] ss:$8 sps:$4 sm:$0xff]   ;;  %v4403_v33 = vld [vmem:[%s6383_s1 + $0x484] ss:$8 sps:$4 sm:$0xff]   ;;  %v4406_v35 = vld [vmem:[%s6383_s1 + $0x480] ss:$8 sps:$4 sm:$0xff]  }
   0xd   :  { %2779 = vmatprep.subr.bf16.mxu0 %v4373_v13  ;;  %v4407_v36 = vld [vmem:[%s6383_s1 + $0x94] ss:$8 sps:$4 sm:$0xff]   ;;  %v4411_v38 = vld [vmem:[%s6383_s1 + $0x90] ss:$8 sps:$4 sm:$0xff]   ;;  %v4413_v40 = vld [vmem:[%s6383_s1 + $0xa4] ss:$8 sps:$4 sm:$0xff]  }
   0xe   :  { %v4409_v37 = vld [vmem:[%s6383_s1 + $0x494] ss:$8 sps:$4 sm:$0xff]   ;;  %v4412_v39 = vld [vmem:[%s6383_s1 + $0x490] ss:$8 sps:$4 sm:$0xff]   ;;  %v4415_v41 = vld [vmem:[%s6383_s1 + $0x4a4] ss:$8 sps:$4 sm:$0xff]  }
   0xf   :  { %2328 = vmatpush1.bf16.msra.mxu1 %v4375_v14  ;;  %v4417_v42 = vld [vmem:[%s6383_s1 + $0xa0] ss:$8 sps:$4 sm:$0xff]   ;;  %v4419_v44 = vld [vmem:[%s6383_s1 + $0xb4] ss:$8 sps:$4 sm:$0xff]   ;;  %v4423_v46 = vld [vmem:[%s6383_s1 + $0xb0] ss:$8 sps:$4 sm:$0xff]  }
  0x10   :  { %2780 = vmatpush1.bf16.msra.mxu0 %v4376_v15  ;;  %2329 = vmatprep.subr.bf16.mxu1 %v4377_v16  ;;  %v4418_v43 = vld [vmem:[%s6383_s1 + $0x4a0] ss:$8 sps:$4 sm:$0xff]   ;;  %v4421_v45 = vld [vmem:[%s6383_s1 + $0x4b4] ss:$8 sps:$4 sm:$0xff]   ;;  %v4424_v47 = vld [vmem:[%s6383_s1 + $0x4b0] ss:$8 sps:$4 sm:$0xff]  }
  0x11   :  { %2781 = vmatprep.subr.bf16.mxu0 %v4379_v17  ;;  %v17_v48 = vld [vmem:[%s6384_s0] sm:$0xff]  ;;  %v4431_v58 = vld [vmem:[%s6383_s1 + $0xd4] ss:$8 sps:$4 sm:$0xff]   ;;  %v4435_v60 = vld [vmem:[%s6383_s1 + $0xd0] ss:$8 sps:$4 sm:$0xff]  }
  0x12   :  { %v25_v49 = vld [vmem:[%s6384_s0 + $0x40] sm:$0xff]  ;;  %v4433_v59 = vld [vmem:[%s6383_s1 + $0x4d4] ss:$8 sps:$4 sm:$0xff]   ;;  %v4436_v61 = vld [vmem:[%s6383_s1 + $0x4d0] ss:$8 sps:$4 sm:$0xff]  }
  0x13   :  { %2330 = vmatpush1.bf16.msra.mxu1 %v4381_v18  ;;  %v21_v50 = vld [vmem:[%s6384_s0 + $0x20] sm:$0xff]  ;;  %v3714_v53 = vcombine.high %v17_v48, %v25_v49  ;;  %v4443_v2 = vld [vmem:[%s6383_s1 + $0xf4] ss:$8 sps:$4 sm:$0xff]   ;;  %v4447_v4 = vld [vmem:[%s6383_s1 + $0xf0] ss:$8 sps:$4 sm:$0xff]   ;;  %v3713_v11 = vcombine.low %v17_v48, %v25_v49 }
  0x14   :  { %2782 = vmatpush1.bf16.msra.mxu0 %v4382_v19  ;;  %2331 = vmatprep.subr.bf16.mxu1 %v4383_v20  ;;  %v29_v51 = vld [vmem:[%s6384_s0 + $0x60] sm:$0xff]  ;;  %v4445_v3 = vld [vmem:[%s6383_s1 + $0x4f4] ss:$8 sps:$4 sm:$0xff]   ;;  %v4448_v5 = vld [vmem:[%s6383_s1 + $0x4f0] ss:$8 sps:$4 sm:$0xff]  }
  0x15   :  { %2783 = vmatprep.subr.bf16.mxu0 %v4385_v21  ;;  %v4425_v52 = vld [vmem:[%s6383_s1 + $0xc4] ss:$8 sps:$4 sm:$0xff]   ;;  %v3722_v55 = vcombine.high %v21_v50, %v29_v51  ;;  %2353 = vmatprep.mubr.bf16.mxu1 %v3714_v53  ;;  %v4429_v56 = vld [vmem:[%s6383_s1 + $0xc0] ss:$8 sps:$4 sm:$0xff]   ;;  %v3721_v12 = vcombine.low %v21_v50, %v29_v51  ;;  %v4457_v16 = vld [vmem:[%s6383_s1 + $0x114] ss:$8 sps:$4 sm:$0xff]  }
  0x16   :  { %v4427_v54 = vld [vmem:[%s6383_s1 + $0x4c4] ss:$8 sps:$4 sm:$0xff]   ;;  %v4430_v57 = vld [vmem:[%s6383_s1 + $0x4c0] ss:$8 sps:$4 sm:$0xff]   ;;  %v4460_v17 = vld [vmem:[%s6383_s1 + $0x514] ss:$8 sps:$4 sm:$0xff]  }
  0x17   :  { %2332 = vmatpush1.bf16.msra.mxu1 %v4387_v22  ;;  %2805 = vmatprep.mubr.bf16.mxu0 %v3722_v55  ;;  %v4437_v62 = vld [vmem:[%s6383_s1 + $0xe4] ss:$8 sps:$4 sm:$0xff]   ;;  %v4441_v0 = vld [vmem:[%s6383_s1 + $0xe0] ss:$8 sps:$4 sm:$0xff]   ;;  %v4455_v20 = vld [vmem:[%s6383_s1 + $0x110] ss:$8 sps:$4 sm:$0xff]  }
  0x18   :  { %2784 = vmatpush1.bf16.msra.mxu0 %v4388_v23  ;;  %2333 = vmatprep.subr.bf16.mxu1 %v4389_v24  ;;  %v4439_v63 = vld [vmem:[%s6383_s1 + $0x4e4] ss:$8 sps:$4 sm:$0xff]   ;;  %v4442_v1 = vld [vmem:[%s6383_s1 + $0x4e0] ss:$8 sps:$4 sm:$0xff]   ;;  %v4458_v21 = vld [vmem:[%s6383_s1 + $0x510] ss:$8 sps:$4 sm:$0xff]  }
  0x19   :  { %2785 = vmatprep.subr.bf16.mxu0 %v4391_v25  ;;  %v4451_v6 = vld [vmem:[%s6383_s1 + $0x104] ss:$8 sps:$4 sm:$0xff]   ;;  %v4449_v8 = vld [vmem:[%s6383_s1 + $0x100] ss:$8 sps:$4 sm:$0xff]   ;;  %v4481_v48 = vld [vmem:[%s6383_s1 + $0x154] ss:$8 sps:$4 sm:$0xff]  }
  0x1a   :  { %v4454_v7 = vld [vmem:[%s6383_s1 + $0x504] ss:$8 sps:$4 sm:$0xff]   ;;  %v4452_v9 = vld [vmem:[%s6383_s1 + $0x500] ss:$8 sps:$4 sm:$0xff]   ;;  %v4484_v49 = vld [vmem:[%s6383_s1 + $0x554] ss:$8 sps:$4 sm:$0xff]  }
  0x1b   :  { %2334 = vmatpush1.bf16.msra.mxu1 %v4393_v26  ;;  %v33_v10 = vld [vmem:[%s6384_s0 + $0x80] sm:$0xff]  ;;  %v4482_v53 = vld [vmem:[%s6383_s1 + $0x550] ss:$8 sps:$4 sm:$0xff]  }
  0x1c   :  { %2786 = vmatpush1.bf16.msra.mxu0 %v4394_v27  ;;  %2335 = vmatprep.subr.bf16.mxu1 %v4395_v28  ;;  %v41_v13 = vld [vmem:[%s6384_s0 + $0xc0] sm:$0xff] }
  0x1d   :  { %2787 = vmatprep.subr.bf16.mxu0 %v4397_v29  ;;  %v37_v14 = vld [vmem:[%s6384_s0 + $0xa0] sm:$0xff]  ;;  %v3730_v18 = vcombine.high %v33_v10, %v41_v13  ;;  %v3729_v28 = vcombine.low %v33_v10, %v41_v13 }
  0x1e   :  { %v45_v15 = vld [vmem:[%s6384_s0 + $0xe0] sm:$0xff] }
  0x1f   :  { %2336 = vmatpush1.bf16.msra.mxu1 %v4399_v30  ;;  %v3738_v19 = vcombine.high %v37_v14, %v45_v15  ;;  %v4463_v22 = vld [vmem:[%s6383_s1 + $0x124] ss:$8 sps:$4 sm:$0xff]   ;;  %v4461_v24 = vld [vmem:[%s6383_s1 + $0x120] ss:$8 sps:$4 sm:$0xff]   ;;  %v3737_v29 = vcombine.low %v37_v14, %v45_v15 }
  0x20   :  { %2788 = vmatpush1.bf16.msra.mxu0 %v4400_v31  ;;  %2337 = vmatprep.subr.bf16.mxu1 %v4401_v32  ;;  %v4466_v23 = vld [vmem:[%s6383_s1 + $0x524] ss:$8 sps:$4 sm:$0xff]   ;;  %v4464_v25 = vld [vmem:[%s6383_s1 + $0x520] ss:$8 sps:$4 sm:$0xff]   ;;  %v4469_v32 = vld [vmem:[%s6383_s1 + $0x134] ss:$8 sps:$4 sm:$0xff]  }
  0x21   :  { %2789 = vmatprep.subr.bf16.mxu0 %v4403_v33  ;;  %v49_v26 = vld [vmem:[%s6384_s0 + $0x100] sm:$0xff]  ;;  %v4472_v33 = vld [vmem:[%s6383_s1 + $0x534] ss:$8 sps:$4 sm:$0xff]  }
  0x22   :  { %v57_v27 = vld [vmem:[%s6384_s0 + $0x140] sm:$0xff] }
  0x23   :  { %2338 = vmatpush1.bf16.msra.mxu1 %v4405_v34  ;;  %v53_v30 = vld [vmem:[%s6384_s0 + $0x120] sm:$0xff]  ;;  %v3746_v34 = vcombine.high %v49_v26, %v57_v27 }
  0x24   :  { %2790 = vmatpush1.bf16.msra.mxu0 %v4406_v35  ;;  %2339 = vmatprep.subr.bf16.mxu1 %v4407_v36  ;;  %v61_v31 = vld [vmem:[%s6384_s0 + $0x160] sm:$0xff]  ;;  %v4467_v36 = vld [vmem:[%s6383_s1 + $0x130] ss:$8 sps:$4 sm:$0xff]  }
  0x25   :  { %2791 = vmatprep.subr.bf16.mxu0 %v4409_v37  ;;  %v3754_v35 = vcombine.high %v53_v30, %v61_v31  ;;  %v4470_v37 = vld [vmem:[%s6383_s1 + $0x530] ss:$8 sps:$4 sm:$0xff]   ;;  %v4490_v55 = vld [vmem:[%s6383_s1 + $0x564] ss:$8 sps:$4 sm:$0xff]   ;;  %v4497_v14 = vld [vmem:[%s6383_s1 + $0x180] ss:$8 sps:$4 sm:$0xff]  }
  0x26   :  { %v109_v13 = vld [vmem:[%s6384_s0 + $0x2e0] sm:$0xff] }
  0x27   :  { %2340 = vmatpush1.bf16.msra.mxu1 %v4411_v38  ;;  %v4475_v38 = vld [vmem:[%s6383_s1 + $0x144] ss:$8 sps:$4 sm:$0xff]   ;;  %v4500_v15 = vld [vmem:[%s6383_s1 + $0x580] ss:$8 sps:$4 sm:$0xff]  }
  0x28   :  { %2792 = vmatpush1.bf16.msra.mxu0 %v4412_v39  ;;  %2341 = vmatprep.subr.bf16.mxu1 %v4413_v40  ;;  %v4478_v39 = vld [vmem:[%s6383_s1 + $0x544] ss:$8 sps:$4 sm:$0xff]   ;;  %v4473_v40 = vld [vmem:[%s6383_s1 + $0x140] ss:$8 sps:$4 sm:$0xff]  }
  0x29   :  { %2793 = vmatprep.subr.bf16.mxu0 %v4415_v41  ;;  %v4476_v41 = vld [vmem:[%s6383_s1 + $0x540] ss:$8 sps:$4 sm:$0xff]  }
  0x2b   :  { %2342 = vmatpush1.bf16.msra.mxu1 %v4417_v42  ;;  %v65_v42 = vld [vmem:[%s6384_s0 + $0x180] sm:$0xff] }
  0x2c   :  { %2794 = vmatpush1.bf16.msra.mxu0 %v4418_v43  ;;  %2343 = vmatprep.subr.bf16.mxu1 %v4419_v44  ;;  %v73_v43 = vld [vmem:[%s6384_s0 + $0x1c0] sm:$0xff]  ;;  %v3745_v44 = vcombine.low %v49_v26, %v57_v27 }
  0x2d   :  { %2795 = vmatprep.subr.bf16.mxu0 %v4421_v45  ;;  %v3753_v45 = vcombine.low %v53_v30, %v61_v31  ;;  %v3762_v50 = vcombine.high %v65_v42, %v73_v43  ;;  %v113_v26 = vld [vmem:[%s6384_s0 + $0x300] sm:$0xff] }
  0x2e   :  { %v117_v30 = vld [vmem:[%s6384_s0 + $0x320] sm:$0xff] }
  0x2f   :  { %2344 = vmatpush1.bf16.msra.mxu1 %v4423_v46  ;;  %v69_v46 = vld [vmem:[%s6384_s0 + $0x1a0] sm:$0xff] }
  0x30   :  { %2796 = vmatpush1.bf16.msra.mxu0 %v4424_v47  ;;  %2345 = vmatprep.subr.bf16.mxu1 %v4425_v52  ;;  %v77_v47 = vld [vmem:[%s6384_s0 + $0x1e0] sm:$0xff]  ;;  %v4479_v52 = vld [vmem:[%s6383_s1 + $0x150] ss:$8 sps:$4 sm:$0xff]  }
  0x31   :  { %2797 = vmatprep.subr.bf16.mxu0 %v4427_v54  ;;  %v3770_v51 = vcombine.high %v69_v46, %v77_v47  ;;  %v4487_v54 = vld [vmem:[%s6383_s1 + $0x164] ss:$8 sps:$4 sm:$0xff]  }
  0x32   :  { %v125_v31 = vld [vmem:[%s6384_s0 + $0x360] sm:$0xff] }
  0x33   :  { %2346 = vmatpush1.bf16.msra.mxu1 %v4429_v56  ;;  %v4485_v56 = vld [vmem:[%s6383_s1 + $0x160] ss:$8 sps:$4 sm:$0xff]  }
  0x34   :  { %2798 = vmatpush1.bf16.msra.mxu0 %v4430_v57  ;;  %2347 = vmatprep.subr.bf16.mxu1 %v4431_v58  ;;  %v81_v57 = vld [vmem:[%s6384_s0 + $0x200] sm:$0xff] }
  0x35   :  { %2799 = vmatprep.subr.bf16.mxu0 %v4433_v59  ;;  %v89_v58 = vld [vmem:[%s6384_s0 + $0x240] sm:$0xff]  ;;  %v3761_v59 = vcombine.low %v65_v42, %v73_v43 }
  0x36   :  { %v3777_v10 = vcombine.low %v81_v57, %v89_v58  ;;  %v129_v42 = vld [vmem:[%s6384_s0 + $0x380] sm:$0xff] }
  0x37   :  { %2348 = vmatpush1.bf16.msra.mxu1 %v4435_v60  ;;  %v3769_v60 = vcombine.low %v69_v46, %v77_v47  ;;  %v137_v43 = vld [vmem:[%s6384_s0 + $0x3c0] sm:$0xff] }
  0x38   :  { %2800 = vmatpush1.bf16.msra.mxu0 %v4436_v61  ;;  %2349 = vmatprep.subr.bf16.mxu1 %v4437_v62  ;;  %v85_v61 = vld [vmem:[%s6384_s0 + $0x220] sm:$0xff] }
  0x39   :  { %2801 = vmatprep.subr.bf16.mxu0 %v4439_v63  ;;  %v93_v62 = vld [vmem:[%s6384_s0 + $0x260] sm:$0xff] }
  0x3a   :  { %v4488_v63 = vld [vmem:[%s6383_s1 + $0x560] ss:$8 sps:$4 sm:$0xff]  }
  0x3b   :  { %2350 = vmatpush1.bf16.msra.mxu1 %v4441_v0  ;;  %v4493_v0 = vld [vmem:[%s6383_s1 + $0x174] ss:$8 sps:$4 sm:$0xff]   ;;  %v133_v46 = vld [vmem:[%s6384_s0 + $0x3a0] sm:$0xff] }
  0x3c   :  { %2802 = vmatpush1.bf16.msra.mxu0 %v4442_v1  ;;  %2351 = vmatprep.subr.bf16.mxu1 %v4443_v2  ;;  %v4496_v1 = vld [vmem:[%s6383_s1 + $0x574] ss:$8 sps:$4 sm:$0xff]   ;;  %v3778_v2 = vcombine.high %v81_v57, %v89_v58  ;;  %v141_v47 = vld [vmem:[%s6384_s0 + $0x3e0] sm:$0xff]  ;;  %v18_v58 = vld [vmem:[%s6384_s0 + $0x8] sm:$0xff] }
  0x3d   :  { %2803 = vmatprep.subr.bf16.mxu0 %v4445_v3  ;;  %v3786_v3 = vcombine.high %v85_v61, %v93_v62  ;;  %v4536_v57 = vld [vmem:[%s6383_s1 + $0x5e0] ss:$8 sps:$4 sm:$0xff]  }
  0x3f   :  { %2352 = vmatpush1.bf16.msra.mxu1 %v4447_v4  ;;  %v4491_v4 = vld [vmem:[%s6383_s1 + $0x170] ss:$8 sps:$4 sm:$0xff]  }
  0x40   :  { %2804 = vmatpush1.bf16.msra.mxu0 %v4448_v5  ;;  %2434 = vmatprep.subr.bf16.mxu1 %v4451_v6  ;;  %v4494_v5 = vld [vmem:[%s6383_s1 + $0x570] ss:$8 sps:$4 sm:$0xff]   ;;  %v4499_v6 = vld [vmem:[%s6383_s1 + $0x184] ss:$8 sps:$4 sm:$0xff]  }
  0x41   :  { %2886 = vmatprep.subr.bf16.mxu0 %v4454_v7  ;;  %v4502_v7 = vld [vmem:[%s6383_s1 + $0x584] ss:$8 sps:$4 sm:$0xff]  }
  0x42   :  { %2354 = vmatmul.mubr.bf16.vlgmr.msra.gmra.mrb[0].mxu1 %v3713_v11  ;;  %v3785_v11 = vcombine.low %v85_v61, %v93_v62  ;;  %v3833_v61 = vcombine.low %v133_v46, %v141_v47  ;;  %v22_v62 = vld [vmem:[%s6384_s0 + $0x28] sm:$0xff] }
  0x43   :  { %2806 = vmatmul.mubr.bf16.vlgmr.msra.gmra.mrb[0].mxu0 %v3721_v12  ;;  %2435 = vmatpush1.bf16.msra.mxu1 %v4449_v8  ;;  %v97_v8 = vld [vmem:[%s6384_s0 + $0x280] sm:$0xff] }
  0x44   :  { %2887 = vmatpush1.bf16.msra.mxu0 %v4452_v9  ;;  %2436 = vmatprep.subr.bf16.mxu1 %v4457_v16  ;;  %v105_v9 = vld [vmem:[%s6384_s0 + $0x2c0] sm:$0xff]  ;;  %v4505_v16 = vld [vmem:[%s6383_s1 + $0x194] ss:$8 sps:$4 sm:$0xff]  }
  0x45   :  { %2888 = vmatprep.subr.bf16.mxu0 %v4460_v17  ;;  %2363 = vmatprep.mubr.bf16.mxu1 %v3730_v18  ;;  %v101_v12 = vld [vmem:[%s6384_s0 + $0x2a0] sm:$0xff]  ;;  %v4508_v17 = vld [vmem:[%s6383_s1 + $0x594] ss:$8 sps:$4 sm:$0xff]   ;;  %v3794_v18 = vcombine.high %v97_v8, %v105_v9  ;;  %v3793_v27 = vcombine.low %v97_v8, %v105_v9  ;;  %v34_v9 = vld [vmem:[%s6384_s0 + $0x88] sm:$0xff] }
  0x46   :  { %2815 = vmatprep.mubr.bf16.mxu0 %v3738_v19  ;;  %v3802_v19 = vcombine.high %v101_v12, %v109_v13  ;;  %v4545_v8 = vld [vmem:[%s6383_s1 + $0x200] ss:$8 sps:$4 sm:$0xff]  }
  0x47   :  { %2437 = vmatpush1.bf16.msra.mxu1 %v4455_v20  ;;  %v4503_v20 = vld [vmem:[%s6383_s1 + $0x190] ss:$8 sps:$4 sm:$0xff]  }
  0x48   :  { %2889 = vmatpush1.bf16.msra.mxu0 %v4458_v21  ;;  %2438 = vmatprep.subr.bf16.mxu1 %v4463_v22  ;;  %v4506_v21 = vld [vmem:[%s6383_s1 + $0x590] ss:$8 sps:$4 sm:$0xff]   ;;  %v4511_v22 = vld [vmem:[%s6383_s1 + $0x1a4] ss:$8 sps:$4 sm:$0xff]  }
  0x49   :  { %2890 = vmatprep.subr.bf16.mxu0 %v4466_v23  ;;  %v4514_v23 = vld [vmem:[%s6383_s1 + $0x5a4] ss:$8 sps:$4 sm:$0xff]  }
  0x4a   :  { %2364 = vmatmul.mubr.bf16.gmra.mrb[4].mxu1 %v3729_v28  ;;  %v3801_v28 = vcombine.low %v101_v12, %v109_v13  ;;  %v38_v13 = vld [vmem:[%s6384_s0 + $0xa8] sm:$0xff] }
  0x4b   :  { %2816 = vmatmul.mubr.bf16.gmra.mrb[4].mxu0 %v3737_v29  ;;  %2439 = vmatpush1.bf16.msra.mxu1 %v4461_v24  ;;  %v4509_v24 = vld [vmem:[%s6383_s1 + $0x1a0] ss:$8 sps:$4 sm:$0xff]  }
  0x4c   :  { %2891 = vmatpush1.bf16.msra.mxu0 %v4464_v25  ;;  %2440 = vmatprep.subr.bf16.mxu1 %v4469_v32  ;;  %v4512_v25 = vld [vmem:[%s6383_s1 + $0x5a0] ss:$8 sps:$4 sm:$0xff]   ;;  %v4517_v32 = vld [vmem:[%s6383_s1 + $0x1b4] ss:$8 sps:$4 sm:$0xff]  }
  0x4d   :  { %2892 = vmatprep.subr.bf16.mxu0 %v4472_v33  ;;  %2373 = vmatprep.mubr.bf16.mxu1 %v3746_v34  ;;  %v121_v29 = vld [vmem:[%s6384_s0 + $0x340] sm:$0xff]  ;;  %v4520_v33 = vld [vmem:[%s6383_s1 + $0x5b4] ss:$8 sps:$4 sm:$0xff]  }
  0x4e   :  { %2825 = vmatprep.mubr.bf16.mxu0 %v3754_v35  ;;  %v3810_v34 = vcombine.high %v113_v26, %v121_v29  ;;  %v3818_v35 = vcombine.high %v117_v30, %v125_v31 }
  0x4f   :  { %2441 = vmatpush1.bf16.msra.mxu1 %v4467_v36  ;;  %v4515_v36 = vld [vmem:[%s6383_s1 + $0x1b0] ss:$8 sps:$4 sm:$0xff]  }
  0x50   :  { %2893 = vmatpush1.bf16.msra.mxu0 %v4470_v37  ;;  %2442 = vmatprep.subr.bf16.mxu1 %v4475_v38  ;;  %v4518_v37 = vld [vmem:[%s6383_s1 + $0x5b0] ss:$8 sps:$4 sm:$0xff]   ;;  %v4523_v38 = vld [vmem:[%s6383_s1 + $0x1c4] ss:$8 sps:$4 sm:$0xff]  }
  0x51   :  { %2894 = vmatprep.subr.bf16.mxu0 %v4478_v39  ;;  %v4526_v39 = vld [vmem:[%s6383_s1 + $0x5c4] ss:$8 sps:$4 sm:$0xff]  }
  0x52   :  { %2374 = vmatmul.mubr.bf16.gmra.mrb[8].mxu1 %v3745_v44  ;;  %v3809_v44 = vcombine.low %v113_v26, %v121_v29  ;;  %v62_v29 = vld [vmem:[%s6384_s0 + $0x168] sm:$0xff] }
  0x53   :  { %2826 = vmatmul.mubr.bf16.gmra.mrb[8].mxu0 %v3753_v45  ;;  %2443 = vmatpush1.bf16.msra.mxu1 %v4473_v40  ;;  %v4521_v40 = vld [vmem:[%s6383_s1 + $0x1c0] ss:$8 sps:$4 sm:$0xff]   ;;  %v3817_v45 = vcombine.low %v117_v30, %v125_v31 }
  0x54   :  { %2895 = vmatpush1.bf16.msra.mxu0 %v4476_v41  ;;  %2444 = vmatprep.subr.bf16.mxu1 %v4481_v48  ;;  %v4524_v41 = vld [vmem:[%s6383_s1 + $0x5c0] ss:$8 sps:$4 sm:$0xff]   ;;  %v4529_v48 = vld [vmem:[%s6383_s1 + $0x1d4] ss:$8 sps:$4 sm:$0xff]  }
  0x55   :  { %2896 = vmatprep.subr.bf16.mxu0 %v4484_v49  ;;  %2383 = vmatprep.mubr.bf16.mxu1 %v3762_v50  ;;  %v4532_v49 = vld [vmem:[%s6383_s1 + $0x5d4] ss:$8 sps:$4 sm:$0xff]   ;;  %v3826_v50 = vcombine.high %v129_v42, %v137_v43  ;;  %v4557_v30 = vld [vmem:[%s6383_s1 + $0x220] ss:$8 sps:$4 sm:$0xff]  }
  0x56   :  { %2835 = vmatprep.mubr.bf16.mxu0 %v3770_v51  ;;  %v3834_v51 = vcombine.high %v133_v46, %v141_v47  ;;  %v4560_v31 = vld [vmem:[%s6383_s1 + $0x620] ss:$8 sps:$4 sm:$0xff]  }
  0x57   :  { %2445 = vmatpush1.bf16.msra.mxu1 %v4479_v52  ;;  %v4527_v52 = vld [vmem:[%s6383_s1 + $0x1d0] ss:$8 sps:$4 sm:$0xff]   ;;  %v70_v46 = vld [vmem:[%s6384_s0 + $0x1a8] sm:$0xff] }
  0x58   :  { %2897 = vmatpush1.bf16.msra.mxu0 %v4482_v53  ;;  %2446 = vmatprep.subr.bf16.mxu1 %v4487_v54  ;;  %v4530_v53 = vld [vmem:[%s6383_s1 + $0x5d0] ss:$8 sps:$4 sm:$0xff]   ;;  %v4535_v54 = vld [vmem:[%s6383_s1 + $0x1e4] ss:$8 sps:$4 sm:$0xff]  }
  0x59   :  { %2898 = vmatprep.subr.bf16.mxu0 %v4490_v55  ;;  %v4538_v55 = vld [vmem:[%s6383_s1 + $0x5e4] ss:$8 sps:$4 sm:$0xff]  }
  0x5a   :  { %2384 = vmatmul.mubr.bf16.gmra.mrb[12].mxu1 %v3761_v59  ;;  %v26_v59 = vld [vmem:[%s6384_s0 + $0x48] sm:$0xff] }
  0x5b   :  { %2836 = vmatmul.mubr.bf16.gmra.mrb[12].mxu0 %v3769_v60  ;;  %2447 = vmatpush1.bf16.msra.mxu1 %v4485_v56  ;;  %v4533_v56 = vld [vmem:[%s6383_s1 + $0x1e0] ss:$8 sps:$4 sm:$0xff]   ;;  %v3825_v60 = vcombine.low %v129_v42, %v137_v43 }
  0x5c   :  { %2899 = vmatpush1.bf16.msra.mxu0 %v4488_v63  ;;  %2448 = vmatprep.subr.bf16.mxu1 %v4493_v0  ;;  %v30_v63 = vld [vmem:[%s6384_s0 + $0x68] sm:$0xff]  ;;  %v4541_v0 = vld [vmem:[%s6383_s1 + $0x1f4] ss:$8 sps:$4 sm:$0xff]  }
  0x5d   :  { %2900 = vmatprep.subr.bf16.mxu0 %v4496_v1  ;;  %2393 = vmatprep.mubr.bf16.mxu1 %v3778_v2  ;;  %v4544_v1 = vld [vmem:[%s6383_s1 + $0x5f4] ss:$8 sps:$4 sm:$0xff]   ;;  %v3716_v2 = vcombine.high %v18_v58, %v26_v59  ;;  %v3723_v12 = vcombine.low %v22_v62, %v30_v63  ;;  %v66_v42 = vld [vmem:[%s6384_s0 + $0x188] sm:$0xff] }
  0x5e   :  { %2845 = vmatprep.mubr.bf16.mxu0 %v3786_v3  ;;  %v3724_v3 = vcombine.high %v22_v62, %v30_v63  ;;  %v78_v47 = vld [vmem:[%s6384_s0 + $0x1e8] sm:$0xff] }
  0x5f   :  { %2449 = vmatpush1.bf16.msra.mxu1 %v4491_v4  ;;  %v4539_v4 = vld [vmem:[%s6383_s1 + $0x1f0] ss:$8 sps:$4 sm:$0xff]   ;;  %v86_v62 = vld [vmem:[%s6384_s0 + $0x228] sm:$0xff] }
  0x60   :  { %2901 = vmatpush1.bf16.msra.mxu0 %v4494_v5  ;;  %2450 = vmatprep.subr.bf16.mxu1 %v4499_v6  ;;  %v4542_v5 = vld [vmem:[%s6383_s1 + $0x5f0] ss:$8 sps:$4 sm:$0xff]   ;;  %v4547_v6 = vld [vmem:[%s6383_s1 + $0x204] ss:$8 sps:$4 sm:$0xff]  }
  0x61   :  { %2902 = vmatprep.subr.bf16.mxu0 %v4502_v7  ;;  %v4550_v7 = vld [vmem:[%s6383_s1 + $0x604] ss:$8 sps:$4 sm:$0xff]  }
  0x62   :  { %2394 = vmatmul.mubr.bf16.gmra.mrb[16].mxu1 %v3777_v10  ;;  %v42_v10 = vld [vmem:[%s6384_s0 + $0xc8] sm:$0xff] }
  0x63   :  { %2846 = vmatmul.mubr.bf16.gmra.mrb[16].mxu0 %v3785_v11  ;;  %2451 = vmatpush1.bf16.msra.mxu1 %v4497_v14  ;;  %v3715_v11 = vcombine.low %v18_v58, %v26_v59  ;;  %v46_v14 = vld [vmem:[%s6384_s0 + $0xe8] sm:$0xff]  ;;  %v3731_v26 = vcombine.low %v34_v9, %v42_v10 }
  0x64   :  { %2903 = vmatpush1.bf16.msra.mxu0 %v4500_v15  ;;  %2452 = vmatprep.subr.bf16.mxu1 %v4505_v16  ;;  %v4548_v15 = vld [vmem:[%s6383_s1 + $0x600] ss:$8 sps:$4 sm:$0xff]   ;;  %v4553_v16 = vld [vmem:[%s6383_s1 + $0x214] ss:$8 sps:$4 sm:$0xff]  }
  0x65   :  { %2904 = vmatprep.subr.bf16.mxu0 %v4508_v17  ;;  %2403 = vmatprep.mubr.bf16.mxu1 %v3794_v18  ;;  %v4556_v17 = vld [vmem:[%s6383_s1 + $0x614] ss:$8 sps:$4 sm:$0xff]   ;;  %v3732_v18 = vcombine.high %v34_v9, %v42_v10  ;;  %v82_v58 = vld [vmem:[%s6384_s0 + $0x208] sm:$0xff] }
  0x66   :  { %2855 = vmatprep.mubr.bf16.mxu0 %v3802_v19  ;;  %v3740_v19 = vcombine.high %v38_v13, %v46_v14  ;;  %v90_v59 = vld [vmem:[%s6384_s0 + $0x248] sm:$0xff] }
  0x67   :  { %2453 = vmatpush1.bf16.msra.mxu1 %v4503_v20  ;;  %v4551_v20 = vld [vmem:[%s6383_s1 + $0x210] ss:$8 sps:$4 sm:$0xff]   ;;  %v94_v63 = vld [vmem:[%s6384_s0 + $0x268] sm:$0xff] }
  0x68   :  { %2905 = vmatpush1.bf16.msra.mxu0 %v4506_v21  ;;  %2454 = vmatprep.subr.bf16.mxu1 %v4511_v22  ;;  %v4554_v21 = vld [vmem:[%s6383_s1 + $0x610] ss:$8 sps:$4 sm:$0xff]   ;;  %v4559_v22 = vld [vmem:[%s6383_s1 + $0x224] ss:$8 sps:$4 sm:$0xff]   ;;  %v4596_v9 = vld [vmem:[%s6383_s1 + $0x680] ss:$8 sps:$4 sm:$0xff]  }
  0x69   :  { %2906 = vmatprep.subr.bf16.mxu0 %v4514_v23  ;;  %v4562_v23 = vld [vmem:[%s6383_s1 + $0x624] ss:$8 sps:$4 sm:$0xff]  }
  0x6a   :  { %2404 = vmatmul.mubr.bf16.gmra.mrb[20].mxu1 %v3793_v27  ;;  %v3739_v27 = vcombine.low %v38_v13, %v46_v14  ;;  %v98_v10 = vld [vmem:[%s6384_s0 + $0x288] sm:$0xff]  ;;  %v3787_v13 = vcombine.low %v86_v62, %v94_v63 }
  0x6b   :  { %2856 = vmatmul.mubr.bf16.gmra.mrb[20].mxu0 %v3801_v28  ;;  %2455 = vmatpush1.bf16.msra.mxu1 %v4509_v24  ;;  %v50_v24 = vld [vmem:[%s6384_s0 + $0x108] sm:$0xff] }
  0x6c   :  { %2907 = vmatpush1.bf16.msra.mxu0 %v4512_v25  ;;  %2456 = vmatprep.subr.bf16.mxu1 %v4517_v32  ;;  %v58_v25 = vld [vmem:[%s6384_s0 + $0x148] sm:$0xff]  ;;  %v4565_v32 = vld [vmem:[%s6383_s1 + $0x234] ss:$8 sps:$4 sm:$0xff]  }
  0x6d   :  { %2908 = vmatprep.subr.bf16.mxu0 %v4520_v33  ;;  %2413 = vmatprep.mubr.bf16.mxu1 %v3810_v34  ;;  %v54_v28 = vld [vmem:[%s6384_s0 + $0x128] sm:$0xff]  ;;  %v4568_v33 = vld [vmem:[%s6383_s1 + $0x634] ss:$8 sps:$4 sm:$0xff]   ;;  %v3748_v34 = vcombine.high %v50_v24, %v58_v25  ;;  %v3747_v43 = vcombine.low %v50_v24, %v58_v25 }
  0x6e   :  { %2865 = vmatprep.mubr.bf16.mxu0 %v3818_v35  ;;  %v3756_v35 = vcombine.high %v54_v28, %v62_v29  ;;  %v102_v14 = vld [vmem:[%s6384_s0 + $0x2a8] sm:$0xff] }
  0x6f   :  { %2457 = vmatpush1.bf16.msra.mxu1 %v4515_v36  ;;  %v4563_v36 = vld [vmem:[%s6383_s1 + $0x230] ss:$8 sps:$4 sm:$0xff]   ;;  %v4605_v24 = vld [vmem:[%s6383_s1 + $0x2a0] ss:$8 sps:$4 sm:$0xff]  }
  0x70   :  { %2909 = vmatpush1.bf16.msra.mxu0 %v4518_v37  ;;  %2458 = vmatprep.subr.bf16.mxu1 %v4523_v38  ;;  %v4566_v37 = vld [vmem:[%s6383_s1 + $0x630] ss:$8 sps:$4 sm:$0xff]   ;;  %v4571_v38 = vld [vmem:[%s6383_s1 + $0x244] ss:$8 sps:$4 sm:$0xff]  }
  0x71   :  { %2910 = vmatprep.subr.bf16.mxu0 %v4526_v39  ;;  %v4574_v39 = vld [vmem:[%s6383_s1 + $0x644] ss:$8 sps:$4 sm:$0xff]  }
  0x72   :  { %2414 = vmatmul.mubr.bf16.gmra.mrb[24].mxu1 %v3809_v44  ;;  %v3755_v44 = vcombine.low %v54_v28, %v62_v29  ;;  %v114_v25 = vld [vmem:[%s6384_s0 + $0x308] sm:$0xff] }
  0x73   :  { %2866 = vmatmul.mubr.bf16.gmra.mrb[24].mxu0 %v3817_v45  ;;  %2459 = vmatpush1.bf16.msra.mxu1 %v4521_v40  ;;  %v4569_v40 = vld [vmem:[%s6383_s1 + $0x240] ss:$8 sps:$4 sm:$0xff]  }
  0x74   :  { %2911 = vmatpush1.bf16.msra.mxu0 %v4524_v41  ;;  %2460 = vmatprep.subr.bf16.mxu1 %v4529_v48  ;;  %v4572_v41 = vld [vmem:[%s6383_s1 + $0x640] ss:$8 sps:$4 sm:$0xff]   ;;  %v4577_v48 = vld [vmem:[%s6383_s1 + $0x254] ss:$8 sps:$4 sm:$0xff]  }
  0x75   :  { %2912 = vmatprep.subr.bf16.mxu0 %v4532_v49  ;;  %2423 = vmatprep.mubr.bf16.mxu1 %v3826_v50  ;;  %v74_v45 = vld [vmem:[%s6384_s0 + $0x1c8] sm:$0xff]  ;;  %v4580_v49 = vld [vmem:[%s6383_s1 + $0x654] ss:$8 sps:$4 sm:$0xff]  }
  0x76   :  { %2875 = vmatprep.mubr.bf16.mxu0 %v3834_v51  ;;  %v3764_v50 = vcombine.high %v66_v42, %v74_v45  ;;  %v3772_v51 = vcombine.high %v70_v46, %v78_v47  ;;  %v118_v29 = vld [vmem:[%s6384_s0 + $0x328] sm:$0xff] }
  0x77   :  { %2461 = vmatpush1.bf16.msra.mxu1 %v4527_v52  ;;  %v4575_v52 = vld [vmem:[%s6383_s1 + $0x250] ss:$8 sps:$4 sm:$0xff]  }
  0x78   :  { %2913 = vmatpush1.bf16.msra.mxu0 %v4530_v53  ;;  %2462 = vmatprep.subr.bf16.mxu1 %v4535_v54  ;;  %v4578_v53 = vld [vmem:[%s6383_s1 + $0x650] ss:$8 sps:$4 sm:$0xff]   ;;  %v4583_v54 = vld [vmem:[%s6383_s1 + $0x264] ss:$8 sps:$4 sm:$0xff]  }
  0x79   :  { %2914 = vmatprep.subr.bf16.mxu0 %v4538_v55  ;;  %v4586_v55 = vld [vmem:[%s6383_s1 + $0x664] ss:$8 sps:$4 sm:$0xff]  }
  0x7a   :  { %2424 = vmatmul.mubr.bf16.gmra.mrb[28].mxu1 %v3825_v60  ;;  %v3763_v60 = vcombine.low %v66_v42, %v74_v45  ;;  %v142_v45 = vld [vmem:[%s6384_s0 + $0x3e8] sm:$0xff] }
  0x7b   :  { %2876 = vmatmul.mubr.bf16.gmra.mrb[28].mxu0 %v3833_v61  ;;  %2463 = vmatpush1.bf16.msra.mxu1 %v4533_v56  ;;  %v4581_v56 = vld [vmem:[%s6383_s1 + $0x260] ss:$8 sps:$4 sm:$0xff]   ;;  %v3771_v61 = vcombine.low %v70_v46, %v78_v47 }
  0x7c   :  { %2915 = vmatpush1.bf16.msra.mxu0 %v4536_v57  ;;  %2464 = vmatprep.subr.bf16.mxu1 %v4541_v0  ;;  %v4584_v57 = vld [vmem:[%s6383_s1 + $0x660] ss:$8 sps:$4 sm:$0xff]   ;;  %v4589_v0 = vld [vmem:[%s6383_s1 + $0x274] ss:$8 sps:$4 sm:$0xff]  }
  0x7d   :  { %2916 = vmatprep.subr.bf16.mxu0 %v4544_v1  ;;  %2466 = vmatprep.mubr.bf16.mxu1 %v3716_v2  ;;  %v4592_v1 = vld [vmem:[%s6383_s1 + $0x674] ss:$8 sps:$4 sm:$0xff]   ;;  %v3780_v2 = vcombine.high %v82_v58, %v90_v59  ;;  %v4617_v46 = vld [vmem:[%s6383_s1 + $0x2c0] ss:$8 sps:$4 sm:$0xff]  }
  0x7e   :  { %2918 = vmatprep.mubr.bf16.mxu0 %v3724_v3  ;;  %v3788_v3 = vcombine.high %v86_v62, %v94_v63  ;;  %v4620_v47 = vld [vmem:[%s6383_s1 + $0x6c0] ss:$8 sps:$4 sm:$0xff]   ;;  %v23_v62 = vld [vmem:[%s6384_s0 + $0x30] sm:$0xff] }
  0x7f   :  { %2465 = vmatpush1.bf16.msra.mxu1 %v4539_v4  ;;  %v4587_v4 = vld [vmem:[%s6383_s1 + $0x270] ss:$8 sps:$4 sm:$0xff]  }
  0x80   :  { %2917 = vmatpush1.bf16.msra.mxu0 %v4542_v5  ;;  %2547 = vmatprep.subr.bf16.mxu1 %v4547_v6  ;;  %v4590_v5 = vld [vmem:[%s6383_s1 + $0x670] ss:$8 sps:$4 sm:$0xff]   ;;  %v4595_v6 = vld [vmem:[%s6383_s1 + $0x284] ss:$8 sps:$4 sm:$0xff]  }
  0x81   :  { %2999 = vmatprep.subr.bf16.mxu0 %v4550_v7  ;;  %v4598_v7 = vld [vmem:[%s6383_s1 + $0x684] ss:$8 sps:$4 sm:$0xff]   ;;  %v31_v63 = vld [vmem:[%s6384_s0 + $0x70] sm:$0xff] }
  0x82   :  { %2467 = vmatmul.mubr.bf16.vlgmr.msra.gmra.mrb[0].mxu1 %v3715_v11  ;;  %v106_v11 = vld [vmem:[%s6384_s0 + $0x2c8] sm:$0xff] }
  0x83   :  { %2919 = vmatmul.mubr.bf16.vlgmr.msra.gmra.mrb[0].mxu0 %v3723_v12  ;;  %2548 = vmatpush1.bf16.msra.mxu1 %v4545_v8  ;;  %v4593_v8 = vld [vmem:[%s6383_s1 + $0x280] ss:$8 sps:$4 sm:$0xff]   ;;  %v3779_v12 = vcombine.low %v82_v58, %v90_v59  ;;  %v19_v58 = vld [vmem:[%s6384_s0 + $0x10] sm:$0xff] }
  0x84   :  { %3000 = vmatpush1.bf16.msra.mxu0 %v4548_v15  ;;  %2549 = vmatprep.subr.bf16.mxu1 %v4553_v16  ;;  %v110_v15 = vld [vmem:[%s6384_s0 + $0x2e8] sm:$0xff]  ;;  %v4601_v16 = vld [vmem:[%s6383_s1 + $0x294] ss:$8 sps:$4 sm:$0xff]  }
  0x85   :  { %3001 = vmatprep.subr.bf16.mxu0 %v4556_v17  ;;  %2476 = vmatprep.mubr.bf16.mxu1 %v3732_v18  ;;  %v4604_v17 = vld [vmem:[%s6383_s1 + $0x694] ss:$8 sps:$4 sm:$0xff]   ;;  %v3796_v18 = vcombine.high %v98_v10, %v106_v11  ;;  %v3803_v28 = vcombine.low %v102_v14, %v110_v15 }
  0x86   :  { %2928 = vmatprep.mubr.bf16.mxu0 %v3740_v19  ;;  %v3804_v19 = vcombine.high %v102_v14, %v110_v15  ;;  %v39_v14 = vld [vmem:[%s6384_s0 + $0xb0] sm:$0xff] }
  0x87   :  { %2550 = vmatpush1.bf16.msra.mxu1 %v4551_v20  ;;  %v4599_v20 = vld [vmem:[%s6383_s1 + $0x290] ss:$8 sps:$4 sm:$0xff]  }
  0x88   :  { %3002 = vmatpush1.bf16.msra.mxu0 %v4554_v21  ;;  %2551 = vmatprep.subr.bf16.mxu1 %v4559_v22  ;;  %v4602_v21 = vld [vmem:[%s6383_s1 + $0x690] ss:$8 sps:$4 sm:$0xff]   ;;  %v4607_v22 = vld [vmem:[%s6383_s1 + $0x2a4] ss:$8 sps:$4 sm:$0xff]  }
  0x89   :  { %3003 = vmatprep.subr.bf16.mxu0 %v4562_v23  ;;  %v4610_v23 = vld [vmem:[%s6383_s1 + $0x6a4] ss:$8 sps:$4 sm:$0xff]   ;;  %v47_v15 = vld [vmem:[%s6384_s0 + $0xf0] sm:$0xff] }
  0x8a   :  { %2477 = vmatmul.mubr.bf16.gmra.mrb[4].mxu1 %v3731_v26  ;;  %v122_v26 = vld [vmem:[%s6384_s0 + $0x348] sm:$0xff] }
  0x8b   :  { %2929 = vmatmul.mubr.bf16.gmra.mrb[4].mxu0 %v3739_v27  ;;  %2552 = vmatpush1.bf16.msra.mxu1 %v4557_v30  ;;  %v3795_v27 = vcombine.low %v98_v10, %v106_v11  ;;  %v126_v30 = vld [vmem:[%s6384_s0 + $0x368] sm:$0xff]  ;;  %v3811_v42 = vcombine.low %v114_v25, %v122_v26  ;;  %v35_v10 = vld [vmem:[%s6384_s0 + $0x90] sm:$0xff] }
  0x8c   :  { %3004 = vmatpush1.bf16.msra.mxu0 %v4560_v31  ;;  %2553 = vmatprep.subr.bf16.mxu1 %v4565_v32  ;;  %v4608_v31 = vld [vmem:[%s6383_s1 + $0x6a0] ss:$8 sps:$4 sm:$0xff]   ;;  %v4613_v32 = vld [vmem:[%s6383_s1 + $0x2b4] ss:$8 sps:$4 sm:$0xff]  }
  0x8d   :  { %3005 = vmatprep.subr.bf16.mxu0 %v4568_v33  ;;  %2486 = vmatprep.mubr.bf16.mxu1 %v3748_v34  ;;  %v4616_v33 = vld [vmem:[%s6383_s1 + $0x6b4] ss:$8 sps:$4 sm:$0xff]   ;;  %v3812_v34 = vcombine.high %v114_v25, %v122_v26  ;;  %v4656_v25 = vld [vmem:[%s6383_s1 + $0x720] ss:$8 sps:$4 sm:$0xff]  }
  0x8e   :  { %2938 = vmatprep.mubr.bf16.mxu0 %v3756_v35  ;;  %v3820_v35 = vcombine.high %v118_v29, %v126_v30  ;;  %v43_v11 = vld [vmem:[%s6384_s0 + $0xd0] sm:$0xff] }
  0x8f   :  { %2554 = vmatpush1.bf16.msra.mxu1 %v4563_v36  ;;  %v4611_v36 = vld [vmem:[%s6383_s1 + $0x2b0] ss:$8 sps:$4 sm:$0xff]  }
  0x90   :  { %3006 = vmatpush1.bf16.msra.mxu0 %v4566_v37  ;;  %2555 = vmatprep.subr.bf16.mxu1 %v4571_v38  ;;  %v4614_v37 = vld [vmem:[%s6383_s1 + $0x6b0] ss:$8 sps:$4 sm:$0xff]   ;;  %v4619_v38 = vld [vmem:[%s6383_s1 + $0x2c4] ss:$8 sps:$4 sm:$0xff]  }
  0x91   :  { %3007 = vmatprep.subr.bf16.mxu0 %v4574_v39  ;;  %v4622_v39 = vld [vmem:[%s6383_s1 + $0x6c4] ss:$8 sps:$4 sm:$0xff]   ;;  %v51_v26 = vld [vmem:[%s6384_s0 + $0x110] sm:$0xff] }
  0x92   :  { %2487 = vmatmul.mubr.bf16.gmra.mrb[8].mxu1 %v3747_v43  ;;  %v3819_v43 = vcombine.low %v118_v29, %v126_v30  ;;  %v3741_v29 = vcombine.low %v39_v14, %v47_v15  ;;  %v55_v30 = vld [vmem:[%s6384_s0 + $0x130] sm:$0xff] }
  0x93   :  { %2939 = vmatmul.mubr.bf16.gmra.mrb[8].mxu0 %v3755_v44  ;;  %2556 = vmatpush1.bf16.msra.mxu1 %v4569_v40  ;;  %v130_v40 = vld [vmem:[%s6384_s0 + $0x388] sm:$0xff] }
  0x94   :  { %3008 = vmatpush1.bf16.msra.mxu0 %v4572_v41  ;;  %2557 = vmatprep.subr.bf16.mxu1 %v4577_v48  ;;  %v138_v41 = vld [vmem:[%s6384_s0 + $0x3c8] sm:$0xff]  ;;  %v4625_v48 = vld [vmem:[%s6383_s1 + $0x2d4] ss:$8 sps:$4 sm:$0xff]  }
  0x95   :  { %3009 = vmatprep.subr.bf16.mxu0 %v4580_v49  ;;  %2496 = vmatprep.mubr.bf16.mxu1 %v3764_v50  ;;  %v134_v44 = vld [vmem:[%s6384_s0 + $0x3a8] sm:$0xff]  ;;  %v4628_v49 = vld [vmem:[%s6383_s1 + $0x6d4] ss:$8 sps:$4 sm:$0xff]   ;;  %v3828_v50 = vcombine.high %v130_v40, %v138_v41  ;;  %v3827_v59 = vcombine.low %v130_v40, %v138_v41 }
  0x96   :  { %2948 = vmatprep.mubr.bf16.mxu0 %v3772_v51  ;;  %v3836_v51 = vcombine.high %v134_v44, %v142_v45  ;;  %v67_v40 = vld [vmem:[%s6384_s0 + $0x190] sm:$0xff] }
  0x97   :  { %2558 = vmatpush1.bf16.msra.mxu1 %v4575_v52  ;;  %v4623_v52 = vld [vmem:[%s6383_s1 + $0x2d0] ss:$8 sps:$4 sm:$0xff]  }
  0x98   :  { %3010 = vmatpush1.bf16.msra.mxu0 %v4578_v53  ;;  %2559 = vmatprep.subr.bf16.mxu1 %v4583_v54  ;;  %v4626_v53 = vld [vmem:[%s6383_s1 + $0x6d0] ss:$8 sps:$4 sm:$0xff]   ;;  %v4631_v54 = vld [vmem:[%s6383_s1 + $0x2e4] ss:$8 sps:$4 sm:$0xff]  }
  0x99   :  { %3011 = vmatprep.subr.bf16.mxu0 %v4586_v55  ;;  %v4634_v55 = vld [vmem:[%s6383_s1 + $0x6e4] ss:$8 sps:$4 sm:$0xff]  }
  0x9a   :  { %2497 = vmatmul.mubr.bf16.gmra.mrb[12].mxu1 %v3763_v60  ;;  %v3835_v60 = vcombine.low %v134_v44, %v142_v45  ;;  %v71_v44 = vld [vmem:[%s6384_s0 + $0x1b0] sm:$0xff] }
  0x9b   :  { %2949 = vmatmul.mubr.bf16.gmra.mrb[12].mxu0 %v3771_v61  ;;  %2560 = vmatpush1.bf16.msra.mxu1 %v4581_v56  ;;  %v4629_v56 = vld [vmem:[%s6383_s1 + $0x2e0] ss:$8 sps:$4 sm:$0xff]   ;;  %v27_v61 = vld [vmem:[%s6384_s0 + $0x50] sm:$0xff] }
  0x9c   :  { %3012 = vmatpush1.bf16.msra.mxu0 %v4584_v57  ;;  %2561 = vmatprep.subr.bf16.mxu1 %v4589_v0  ;;  %v4632_v57 = vld [vmem:[%s6383_s1 + $0x6e0] ss:$8 sps:$4 sm:$0xff]   ;;  %v4637_v0 = vld [vmem:[%s6383_s1 + $0x2f4] ss:$8 sps:$4 sm:$0xff]  }
  0x9d   :  { %3013 = vmatprep.subr.bf16.mxu0 %v4592_v1  ;;  %2506 = vmatprep.mubr.bf16.mxu1 %v3780_v2  ;;  %v4640_v1 = vld [vmem:[%s6383_s1 + $0x6f4] ss:$8 sps:$4 sm:$0xff]   ;;  %v3718_v2 = vcombine.high %v19_v58, %v27_v61 }
  0x9e   :  { %2958 = vmatprep.mubr.bf16.mxu0 %v3788_v3  ;;  %v3726_v3 = vcombine.high %v23_v62, %v31_v63  ;;  %v79_v45 = vld [vmem:[%s6384_s0 + $0x1f0] sm:$0xff] }
  0x9f   :  { %2562 = vmatpush1.bf16.msra.mxu1 %v4587_v4  ;;  %v4635_v4 = vld [vmem:[%s6383_s1 + $0x2f0] ss:$8 sps:$4 sm:$0xff]  }
  0xa0   :  { %3014 = vmatpush1.bf16.msra.mxu0 %v4590_v5  ;;  %2563 = vmatprep.subr.bf16.mxu1 %v4595_v6  ;;  %v4638_v5 = vld [vmem:[%s6383_s1 + $0x6f0] ss:$8 sps:$4 sm:$0xff]   ;;  %v4643_v6 = vld [vmem:[%s6383_s1 + $0x304] ss:$8 sps:$4 sm:$0xff]  }
  0xa1   :  { %3015 = vmatprep.subr.bf16.mxu0 %v4598_v7  ;;  %v4646_v7 = vld [vmem:[%s6383_s1 + $0x704] ss:$8 sps:$4 sm:$0xff]  }
  0xa2   :  { %2507 = vmatmul.mubr.bf16.gmra.mrb[16].mxu1 %v3779_v12  ;;  %v3717_v12 = vcombine.low %v19_v58, %v27_v61  ;;  %v3773_v58 = vcombine.low %v71_v44, %v79_v45  ;;  %v95_v61 = vld [vmem:[%s6384_s0 + $0x270] sm:$0xff] }
  0xa3   :  { %2959 = vmatmul.mubr.bf16.gmra.mrb[16].mxu0 %v3787_v13  ;;  %2564 = vmatpush1.bf16.msra.mxu1 %v4593_v8  ;;  %v4641_v8 = vld [vmem:[%s6383_s1 + $0x300] ss:$8 sps:$4 sm:$0xff]   ;;  %v3725_v13 = vcombine.low %v23_v62, %v31_v63 }
  0xa4   :  { %3016 = vmatpush1.bf16.msra.mxu0 %v4596_v9  ;;  %2565 = vmatprep.subr.bf16.mxu1 %v4601_v16  ;;  %v4644_v9 = vld [vmem:[%s6383_s1 + $0x700] ss:$8 sps:$4 sm:$0xff]   ;;  %v4649_v16 = vld [vmem:[%s6383_s1 + $0x314] ss:$8 sps:$4 sm:$0xff]  }
  0xa5   :  { %3017 = vmatprep.subr.bf16.mxu0 %v4604_v17  ;;  %2516 = vmatprep.mubr.bf16.mxu1 %v3796_v18  ;;  %v4652_v17 = vld [vmem:[%s6383_s1 + $0x714] ss:$8 sps:$4 sm:$0xff]   ;;  %v3734_v18 = vcombine.high %v35_v10, %v43_v11  ;;  %v4677_v62 = vld [vmem:[%s6383_s1 + $0x360] ss:$8 sps:$4 sm:$0xff]  }
  0xa6   :  { %2968 = vmatprep.mubr.bf16.mxu0 %v3804_v19  ;;  %v3742_v19 = vcombine.high %v39_v14, %v47_v15  ;;  %v4680_v63 = vld [vmem:[%s6383_s1 + $0x760] ss:$8 sps:$4 sm:$0xff]  }
  0xa7   :  { %2566 = vmatpush1.bf16.msra.mxu1 %v4599_v20  ;;  %v4647_v20 = vld [vmem:[%s6383_s1 + $0x310] ss:$8 sps:$4 sm:$0xff]   ;;  %v4689_v14 = vld [vmem:[%s6383_s1 + $0x380] ss:$8 sps:$4 sm:$0xff]  }
  0xa8   :  { %3018 = vmatpush1.bf16.msra.mxu0 %v4602_v21  ;;  %2567 = vmatprep.subr.bf16.mxu1 %v4607_v22  ;;  %v4650_v21 = vld [vmem:[%s6383_s1 + $0x710] ss:$8 sps:$4 sm:$0xff]   ;;  %v4655_v22 = vld [vmem:[%s6383_s1 + $0x324] ss:$8 sps:$4 sm:$0xff]   ;;  %v4692_v15 = vld [vmem:[%s6383_s1 + $0x780] ss:$8 sps:$4 sm:$0xff]  }
  0xa9   :  { %3019 = vmatprep.subr.bf16.mxu0 %v4610_v23  ;;  %v4658_v23 = vld [vmem:[%s6383_s1 + $0x724] ss:$8 sps:$4 sm:$0xff]  }
  0xaa   :  { %2517 = vmatmul.mubr.bf16.gmra.mrb[20].mxu1 %v3795_v27  ;;  %v59_v27 = vld [vmem:[%s6384_s0 + $0x150] sm:$0xff] }
  0xab   :  { %2969 = vmatmul.mubr.bf16.gmra.mrb[20].mxu0 %v3803_v28  ;;  %2568 = vmatpush1.bf16.msra.mxu1 %v4605_v24  ;;  %v4653_v24 = vld [vmem:[%s6383_s1 + $0x320] ss:$8 sps:$4 sm:$0xff]   ;;  %v3733_v28 = vcombine.low %v35_v10, %v43_v11  ;;  %v3749_v41 = vcombine.low %v51_v26, %v59_v27  ;;  %v107_v11 = vld [vmem:[%s6384_s0 + $0x2d0] sm:$0xff] }
  0xac   :  { %3020 = vmatpush1.bf16.msra.mxu0 %v4608_v31  ;;  %2569 = vmatprep.subr.bf16.mxu1 %v4613_v32  ;;  %v63_v31 = vld [vmem:[%s6384_s0 + $0x170] sm:$0xff] }
  0xad   :  { %3021 = vmatprep.subr.bf16.mxu0 %v4616_v33  ;;  %2526 = vmatprep.mubr.bf16.mxu1 %v3812_v34  ;;  %v4661_v32 = vld [vmem:[%s6383_s1 + $0x334] ss:$8 sps:$4 sm:$0xff]   ;;  %v3750_v34 = vcombine.high %v51_v26, %v59_v27 }
  0xae   :  { %2978 = vmatprep.mubr.bf16.mxu0 %v3820_v35  ;;  %v4664_v33 = vld [vmem:[%s6383_s1 + $0x734] ss:$8 sps:$4 sm:$0xff]   ;;  %v3758_v35 = vcombine.high %v55_v30, %v63_v31 }
  0xaf   :  { %2570 = vmatpush1.bf16.msra.mxu1 %v4611_v36  ;;  %v4659_v36 = vld [vmem:[%s6383_s1 + $0x330] ss:$8 sps:$4 sm:$0xff]  }
  0xb0   :  { %3022 = vmatpush1.bf16.msra.mxu0 %v4614_v37  ;;  %2571 = vmatprep.subr.bf16.mxu1 %v4619_v38  ;;  %v4662_v37 = vld [vmem:[%s6383_s1 + $0x730] ss:$8 sps:$4 sm:$0xff]   ;;  %v4667_v38 = vld [vmem:[%s6383_s1 + $0x344] ss:$8 sps:$4 sm:$0xff]  }
  0xb1   :  { %3023 = vmatprep.subr.bf16.mxu0 %v4622_v39  ;;  %v4670_v39 = vld [vmem:[%s6383_s1 + $0x744] ss:$8 sps:$4 sm:$0xff]   ;;  %v123_v27 = vld [vmem:[%s6384_s0 + $0x350] sm:$0xff] }
  0xb2   :  { %2527 = vmatmul.mubr.bf16.gmra.mrb[24].mxu1 %v3811_v42  ;;  %v3757_v42 = vcombine.low %v55_v30, %v63_v31  ;;  %v4701_v30 = vld [vmem:[%s6383_s1 + $0x3a0] ss:$8 sps:$4 sm:$0xff]  }
  0xb3   :  { %2979 = vmatmul.mubr.bf16.gmra.mrb[24].mxu0 %v3819_v43  ;;  %2572 = vmatpush1.bf16.msra.mxu1 %v4617_v46  ;;  %v75_v43 = vld [vmem:[%s6384_s0 + $0x1d0] sm:$0xff]  ;;  %v4665_v46 = vld [vmem:[%s6383_s1 + $0x340] ss:$8 sps:$4 sm:$0xff]  }
  0xb4   :  { %3024 = vmatpush1.bf16.msra.mxu0 %v4620_v47  ;;  %2573 = vmatprep.subr.bf16.mxu1 %v4625_v48  ;;  %v4668_v47 = vld [vmem:[%s6383_s1 + $0x740] ss:$8 sps:$4 sm:$0xff]   ;;  %v4673_v48 = vld [vmem:[%s6383_s1 + $0x354] ss:$8 sps:$4 sm:$0xff]  }
  0xb5   :  { %3025 = vmatprep.subr.bf16.mxu0 %v4628_v49  ;;  %2536 = vmatprep.mubr.bf16.mxu1 %v3828_v50  ;;  %v4676_v49 = vld [vmem:[%s6383_s1 + $0x754] ss:$8 sps:$4 sm:$0xff]   ;;  %v3766_v50 = vcombine.high %v67_v40, %v75_v43  ;;  %v4704_v31 = vld [vmem:[%s6383_s1 + $0x7a0] ss:$8 sps:$4 sm:$0xff]  }
  0xb6   :  { %2988 = vmatprep.mubr.bf16.mxu0 %v3836_v51  ;;  %v3774_v51 = vcombine.high %v71_v44, %v79_v45  ;;  %v135_v44 = vld [vmem:[%s6384_s0 + $0x3b0] sm:$0xff] }
  0xb7   :  { %2574 = vmatpush1.bf16.msra.mxu1 %v4623_v52  ;;  %v4671_v52 = vld [vmem:[%s6383_s1 + $0x350] ss:$8 sps:$4 sm:$0xff]  }
  0xb8   :  { %3026 = vmatpush1.bf16.msra.mxu0 %v4626_v53  ;;  %2575 = vmatprep.subr.bf16.mxu1 %v4631_v54  ;;  %v4674_v53 = vld [vmem:[%s6383_s1 + $0x750] ss:$8 sps:$4 sm:$0xff]   ;;  %v4679_v54 = vld [vmem:[%s6383_s1 + $0x364] ss:$8 sps:$4 sm:$0xff]  }
  0xb9   :  { %3027 = vmatprep.subr.bf16.mxu0 %v4634_v55  ;;  %v4682_v55 = vld [vmem:[%s6383_s1 + $0x764] ss:$8 sps:$4 sm:$0xff]   ;;  %v143_v45 = vld [vmem:[%s6384_s0 + $0x3f0] sm:$0xff] }
  0xba   :  { %2537 = vmatmul.mubr.bf16.gmra.mrb[28].mxu1 %v3827_v59  ;;  %v91_v59 = vld [vmem:[%s6384_s0 + $0x250] sm:$0xff] }
  0xbb   :  { %2989 = vmatmul.mubr.bf16.gmra.mrb[28].mxu0 %v3835_v60  ;;  %2576 = vmatpush1.bf16.msra.mxu1 %v4629_v56  ;;  %v83_v56 = vld [vmem:[%s6384_s0 + $0x210] sm:$0xff] }
  0xbc   :  { %3028 = vmatpush1.bf16.msra.mxu0 %v4632_v57  ;;  %2577 = vmatprep.subr.bf16.mxu1 %v4637_v0  ;;  %v3765_v57 = vcombine.low %v67_v40, %v75_v43  ;;  %v87_v60 = vld [vmem:[%s6384_s0 + $0x230] sm:$0xff] }
  0xbd   :  { %3029 = vmatprep.subr.bf16.mxu0 %v4640_v1  ;;  %2579 = vmatprep.mubr.bf16.mxu1 %v3718_v2  ;;  %v4685_v0 = vld [vmem:[%s6383_s1 + $0x374] ss:$8 sps:$4 sm:$0xff]   ;;  %v3782_v2 = vcombine.high %v83_v56, %v91_v59  ;;  %v3789_v10 = vcombine.low %v87_v60, %v95_v61 }
  0xbe   :  { %3031 = vmatprep.mubr.bf16.mxu0 %v3726_v3  ;;  %v4688_v1 = vld [vmem:[%s6383_s1 + $0x774] ss:$8 sps:$4 sm:$0xff]   ;;  %v3790_v3 = vcombine.high %v87_v60, %v95_v61 }
  0xbf   :  { %2578 = vmatpush1.bf16.msra.mxu1 %v4635_v4  ;;  %v4683_v4 = vld [vmem:[%s6383_s1 + $0x370] ss:$8 sps:$4 sm:$0xff]  }
  0xc0   :  { %3030 = vmatpush1.bf16.msra.mxu0 %v4638_v5  ;;  %2660 = vmatprep.subr.bf16.mxu1 %v4643_v6  ;;  %v4686_v5 = vld [vmem:[%s6383_s1 + $0x770] ss:$8 sps:$4 sm:$0xff]   ;;  %v4691_v6 = vld [vmem:[%s6383_s1 + $0x384] ss:$8 sps:$4 sm:$0xff]  }
  0xc1   :  { %3112 = vmatprep.subr.bf16.mxu0 %v4646_v7  ;;  %v4694_v7 = vld [vmem:[%s6383_s1 + $0x784] ss:$8 sps:$4 sm:$0xff]   ;;  %v131_v40 = vld [vmem:[%s6384_s0 + $0x390] sm:$0xff]  ;;  %v24_v60 = vld [vmem:[%s6384_s0 + $0x38] sm:$0xff] }
  0xc2   :  { %2580 = vmatmul.mubr.bf16.vlgmr.msra.gmra.mrb[0].mxu1 %v3717_v12  ;;  %v103_v12 = vld [vmem:[%s6384_s0 + $0x2b0] sm:$0xff]  ;;  %v32_v61 = vld [vmem:[%s6384_s0 + $0x78] sm:$0xff] }
  0xc3   :  { %3032 = vmatmul.mubr.bf16.vlgmr.msra.gmra.mrb[0].mxu0 %v3725_v13  ;;  %2661 = vmatpush1.bf16.msra.mxu1 %v4641_v8  ;;  %v99_v8 = vld [vmem:[%s6384_s0 + $0x290] sm:$0xff] }
  0xc4   :  { %3113 = vmatpush1.bf16.msra.mxu0 %v4644_v9  ;;  %2662 = vmatprep.subr.bf16.mxu1 %v4649_v16  ;;  %v3781_v9 = vcombine.low %v83_v56, %v91_v59  ;;  %v111_v13 = vld [vmem:[%s6384_s0 + $0x2f0] sm:$0xff]  ;;  %v20_v56 = vld [vmem:[%s6384_s0 + $0x18] sm:$0xff] }
  0xc5   :  { %3114 = vmatprep.subr.bf16.mxu0 %v4652_v17  ;;  %2589 = vmatprep.mubr.bf16.mxu1 %v3734_v18  ;;  %v4697_v16 = vld [vmem:[%s6383_s1 + $0x394] ss:$8 sps:$4 sm:$0xff]   ;;  %v3798_v18 = vcombine.high %v99_v8, %v107_v11  ;;  %v3805_v26 = vcombine.low %v103_v12, %v111_v13 }
  0xc6   :  { %3041 = vmatprep.mubr.bf16.mxu0 %v3742_v19  ;;  %v4700_v17 = vld [vmem:[%s6383_s1 + $0x794] ss:$8 sps:$4 sm:$0xff]   ;;  %v3806_v19 = vcombine.high %v103_v12, %v111_v13 }
  0xc7   :  { %2663 = vmatpush1.bf16.msra.mxu1 %v4647_v20  ;;  %v4695_v20 = vld [vmem:[%s6383_s1 + $0x390] ss:$8 sps:$4 sm:$0xff]  }
  0xc8   :  { %3115 = vmatpush1.bf16.msra.mxu0 %v4650_v21  ;;  %2664 = vmatprep.subr.bf16.mxu1 %v4655_v22  ;;  %v4698_v21 = vld [vmem:[%s6383_s1 + $0x790] ss:$8 sps:$4 sm:$0xff]   ;;  %v4703_v22 = vld [vmem:[%s6383_s1 + $0x3a4] ss:$8 sps:$4 sm:$0xff]  }
  0xc9   :  { %3116 = vmatprep.subr.bf16.mxu0 %v4658_v23  ;;  %v4706_v23 = vld [vmem:[%s6383_s1 + $0x7a4] ss:$8 sps:$4 sm:$0xff]   ;;  %v139_v43 = vld [vmem:[%s6384_s0 + $0x3d0] sm:$0xff]  ;;  %v28_v59 = vld [vmem:[%s6384_s0 + $0x58] sm:$0xff] }
  0xca   :  { %2590 = vmatmul.mubr.bf16.gmra.mrb[4].mxu1 %v3733_v28  ;;  %v119_v28 = vld [vmem:[%s6384_s0 + $0x330] sm:$0xff] }
  0xcb   :  { %3042 = vmatmul.mubr.bf16.gmra.mrb[4].mxu0 %v3741_v29  ;;  %2665 = vmatpush1.bf16.msra.mxu1 %v4653_v24  ;;  %v115_v24 = vld [vmem:[%s6384_s0 + $0x310] sm:$0xff] }
  0xcc   :  { %3117 = vmatpush1.bf16.msra.mxu0 %v4656_v25  ;;  %2666 = vmatprep.subr.bf16.mxu1 %v4661_v32  ;;  %v3797_v25 = vcombine.low %v99_v8, %v107_v11  ;;  %v127_v29 = vld [vmem:[%s6384_s0 + $0x370] sm:$0xff]  ;;  %v40_v8 = vld [vmem:[%s6384_s0 + $0xb8] sm:$0xff]  ;;  %v3727_v11 = vcombine.low %v24_v60, %v32_v61 }
  0xcd   :  { %3118 = vmatprep.subr.bf16.mxu0 %v4664_v33  ;;  %2599 = vmatprep.mubr.bf16.mxu1 %v3750_v34  ;;  %v4709_v32 = vld [vmem:[%s6383_s1 + $0x3b4] ss:$8 sps:$4 sm:$0xff]   ;;  %v3814_v34 = vcombine.high %v115_v24, %v123_v27 }
  0xce   :  { %3051 = vmatprep.mubr.bf16.mxu0 %v3758_v35  ;;  %v4712_v33 = vld [vmem:[%s6383_s1 + $0x7b4] ss:$8 sps:$4 sm:$0xff]   ;;  %v3822_v35 = vcombine.high %v119_v28, %v127_v29 }
  0xcf   :  { %2667 = vmatpush1.bf16.msra.mxu1 %v4659_v36  ;;  %v4707_v36 = vld [vmem:[%s6383_s1 + $0x3b0] ss:$8 sps:$4 sm:$0xff]  }
  0xd0   :  { %3119 = vmatpush1.bf16.msra.mxu0 %v4662_v37  ;;  %2668 = vmatprep.subr.bf16.mxu1 %v4667_v38  ;;  %v4710_v37 = vld [vmem:[%s6383_s1 + $0x7b0] ss:$8 sps:$4 sm:$0xff]   ;;  %v4715_v38 = vld [vmem:[%s6383_s1 + $0x3c4] ss:$8 sps:$4 sm:$0xff]  }
  0xd1   :  { %3120 = vmatprep.subr.bf16.mxu0 %v4670_v39  ;;  %v4718_v39 = vld [vmem:[%s6383_s1 + $0x7c4] ss:$8 sps:$4 sm:$0xff]  }
  0xd2   :  { %2600 = vmatmul.mubr.bf16.gmra.mrb[8].mxu1 %v3749_v41  ;;  %v3813_v41 = vcombine.low %v115_v24, %v123_v27  ;;  %v72_v24 = vld [vmem:[%s6384_s0 + $0x1b8] sm:$0xff] }
  0xd3   :  { %3052 = vmatmul.mubr.bf16.gmra.mrb[8].mxu0 %v3757_v42  ;;  %2669 = vmatpush1.bf16.msra.mxu1 %v4665_v46  ;;  %v3821_v42 = vcombine.low %v119_v28, %v127_v29  ;;  %v4713_v46 = vld [vmem:[%s6383_s1 + $0x3c0] ss:$8 sps:$4 sm:$0xff]  }
  0xd4   :  { %3121 = vmatpush1.bf16.msra.mxu0 %v4668_v47  ;;  %2670 = vmatprep.subr.bf16.mxu1 %v4673_v48  ;;  %v4716_v47 = vld [vmem:[%s6383_s1 + $0x7c0] ss:$8 sps:$4 sm:$0xff]   ;;  %v4721_v48 = vld [vmem:[%s6383_s1 + $0x3d4] ss:$8 sps:$4 sm:$0xff]  }
  0xd5   :  { %3122 = vmatprep.subr.bf16.mxu0 %v4676_v49  ;;  %2609 = vmatprep.mubr.bf16.mxu1 %v3766_v50  ;;  %v4724_v49 = vld [vmem:[%s6383_s1 + $0x7d4] ss:$8 sps:$4 sm:$0xff]   ;;  %v3830_v50 = vcombine.high %v131_v40, %v139_v43 }
  0xd6   :  { %3061 = vmatprep.mubr.bf16.mxu0 %v3774_v51  ;;  %v3838_v51 = vcombine.high %v135_v44, %v143_v45 }
  0xd7   :  { %2671 = vmatpush1.bf16.msra.mxu1 %v4671_v52  ;;  %v4719_v52 = vld [vmem:[%s6383_s1 + $0x3d0] ss:$8 sps:$4 sm:$0xff]  }
  0xd8   :  { %3123 = vmatpush1.bf16.msra.mxu0 %v4674_v53  ;;  %2672 = vmatprep.subr.bf16.mxu1 %v4679_v54  ;;  %v4722_v53 = vld [vmem:[%s6383_s1 + $0x7d0] ss:$8 sps:$4 sm:$0xff]   ;;  %v4727_v54 = vld [vmem:[%s6383_s1 + $0x3e4] ss:$8 sps:$4 sm:$0xff]  }
  0xd9   :  { %3124 = vmatprep.subr.bf16.mxu0 %v4682_v55  ;;  %v4730_v55 = vld [vmem:[%s6383_s1 + $0x7e4] ss:$8 sps:$4 sm:$0xff]  }
  0xda   :  { %2610 = vmatmul.mubr.bf16.gmra.mrb[12].mxu1 %v3765_v57  ;;  %v3829_v57 = vcombine.low %v131_v40, %v139_v43  ;;  %v104_v40 = vld [vmem:[%s6384_s0 + $0x2b8] sm:$0xff] }
  0xdb   :  { %3062 = vmatmul.mubr.bf16.gmra.mrb[12].mxu0 %v3773_v58  ;;  %2673 = vmatpush1.bf16.msra.mxu1 %v4677_v62  ;;  %v3837_v58 = vcombine.low %v135_v44, %v143_v45  ;;  %v4725_v62 = vld [vmem:[%s6383_s1 + $0x3e0] ss:$8 sps:$4 sm:$0xff]  }
  0xdc   :  { %3125 = vmatpush1.bf16.msra.mxu0 %v4680_v63  ;;  %2674 = vmatprep.subr.bf16.mxu1 %v4685_v0  ;;  %v4728_v63 = vld [vmem:[%s6383_s1 + $0x7e0] ss:$8 sps:$4 sm:$0xff]   ;;  %v4733_v0 = vld [vmem:[%s6383_s1 + $0x3f4] ss:$8 sps:$4 sm:$0xff]  }
  0xdd   :  { %3126 = vmatprep.subr.bf16.mxu0 %v4688_v1  ;;  %2619 = vmatprep.mubr.bf16.mxu1 %v3782_v2  ;;  %v4736_v1 = vld [vmem:[%s6383_s1 + $0x7f4] ss:$8 sps:$4 sm:$0xff]   ;;  %v3720_v2 = vcombine.high %v20_v56, %v28_v59 }
  0xde   :  { %3071 = vmatprep.mubr.bf16.mxu0 %v3790_v3  ;;  %v3728_v3 = vcombine.high %v24_v60, %v32_v61 }
  0xdf   :  { %2675 = vmatpush1.bf16.msra.mxu1 %v4683_v4  ;;  %v4731_v4 = vld [vmem:[%s6383_s1 + $0x3f0] ss:$8 sps:$4 sm:$0xff]  }
  0xe0   :  { %3127 = vmatpush1.bf16.msra.mxu0 %v4686_v5  ;;  %2676 = vmatprep.subr.bf16.mxu1 %v4691_v6  ;;  %v4734_v5 = vld [vmem:[%s6383_s1 + $0x7f0] ss:$8 sps:$4 sm:$0xff]  }
  0xe1   :  { %3128 = vmatprep.subr.bf16.mxu0 %v4694_v7  ;;  %v36_v6 = vld [vmem:[%s6384_s0 + $0x98] sm:$0xff] }
  0xe2   :  { %2620 = vmatmul.mubr.bf16.gmra.mrb[16].mxu1 %v3781_v9  ;;  %v44_v7 = vld [vmem:[%s6384_s0 + $0xd8] sm:$0xff] }
  0xe3   :  { %3072 = vmatmul.mubr.bf16.gmra.mrb[16].mxu0 %v3789_v10  ;;  %2677 = vmatpush1.bf16.msra.mxu1 %v4689_v14  ;;  %v48_v9 = vld [vmem:[%s6384_s0 + $0xf8] sm:$0xff]  ;;  %v3719_v10 = vcombine.low %v20_v56, %v28_v59  ;;  %v3736_v12 = vcombine.high %v36_v6, %v44_v7 }
  0xe4   :  { %3129 = vmatpush1.bf16.msra.mxu0 %v4692_v15  ;;  %2678 = vmatprep.subr.bf16.mxu1 %v4697_v16  ;;  %v3744_v13 = vcombine.high %v40_v8, %v48_v9  ;;  %v52_v14 = vld [vmem:[%s6384_s0 + $0x118] sm:$0xff] }
  0xe5   :  { %3130 = vmatprep.subr.bf16.mxu0 %v4700_v17  ;;  %2629 = vmatprep.mubr.bf16.mxu1 %v3798_v18  ;;  %v60_v15 = vld [vmem:[%s6384_s0 + $0x158] sm:$0xff]  ;;  %v3735_v18 = vcombine.low %v36_v6, %v44_v7 }
  0xe6   :  { %3081 = vmatprep.mubr.bf16.mxu0 %v3806_v19  ;;  %v56_v16 = vld [vmem:[%s6384_s0 + $0x138] sm:$0xff]  ;;  %v3743_v19 = vcombine.low %v40_v8, %v48_v9 }
  0xe7   :  { %2679 = vmatpush1.bf16.msra.mxu1 %v4695_v20  ;;  %v64_v17 = vld [vmem:[%s6384_s0 + $0x178] sm:$0xff]  ;;  %v3752_v20 = vcombine.high %v52_v14, %v60_v15 }
  0xe8   :  { %3131 = vmatpush1.bf16.msra.mxu0 %v4698_v21  ;;  %2680 = vmatprep.subr.bf16.mxu1 %v4703_v22  ;;  %v3760_v21 = vcombine.high %v56_v16, %v64_v17  ;;  %v68_v22 = vld [vmem:[%s6384_s0 + $0x198] sm:$0xff]  ;;  %v3759_v27 = vcombine.low %v56_v16, %v64_v17 }
  0xe9   :  { %3132 = vmatprep.subr.bf16.mxu0 %v4706_v23  ;;  %v76_v23 = vld [vmem:[%s6384_s0 + $0x1d8] sm:$0xff] }
  0xea   :  { %2630 = vmatmul.mubr.bf16.gmra.mrb[20].mxu1 %v3797_v25  ;;  %v80_v25 = vld [vmem:[%s6384_s0 + $0x1f8] sm:$0xff]  ;;  %v3768_v28 = vcombine.high %v68_v22, %v76_v23 }
  0xeb   :  { %3082 = vmatmul.mubr.bf16.gmra.mrb[20].mxu0 %v3805_v26  ;;  %2681 = vmatpush1.bf16.msra.mxu1 %v4701_v30  ;;  %v3751_v26 = vcombine.low %v52_v14, %v60_v15  ;;  %v3776_v29 = vcombine.high %v72_v24, %v80_v25  ;;  %v84_v30 = vld [vmem:[%s6384_s0 + $0x218] sm:$0xff] }
  0xec   :  { %3133 = vmatpush1.bf16.msra.mxu0 %v4704_v31  ;;  %2682 = vmatprep.subr.bf16.mxu1 %v4709_v32  ;;  %v92_v31 = vld [vmem:[%s6384_s0 + $0x258] sm:$0xff] }
  0xed   :  { %3134 = vmatprep.subr.bf16.mxu0 %v4712_v33  ;;  %2639 = vmatprep.mubr.bf16.mxu1 %v3814_v34  ;;  %v88_v32 = vld [vmem:[%s6384_s0 + $0x238] sm:$0xff]  ;;  %v3767_v34 = vcombine.low %v68_v22, %v76_v23 }
  0xee   :  { %3091 = vmatprep.mubr.bf16.mxu0 %v3822_v35  ;;  %v96_v33 = vld [vmem:[%s6384_s0 + $0x278] sm:$0xff]  ;;  %v3775_v35 = vcombine.low %v72_v24, %v80_v25 }
  0xef   :  { %2683 = vmatpush1.bf16.msra.mxu1 %v4707_v36  ;;  %v3784_v36 = vcombine.high %v84_v30, %v92_v31  ;;  %v3791_v43 = vcombine.low %v88_v32, %v96_v33  ;;  %v136_v56 = vld [vmem:[%s6384_s0 + $0x3b8] sm:$0xff] }
  0xf0   :  { %3135 = vmatpush1.bf16.msra.mxu0 %v4710_v37  ;;  %2684 = vmatprep.subr.bf16.mxu1 %v4715_v38  ;;  %v3792_v37 = vcombine.high %v88_v32, %v96_v33  ;;  %v100_v38 = vld [vmem:[%s6384_s0 + $0x298] sm:$0xff] }
  0xf1   :  { %3136 = vmatprep.subr.bf16.mxu0 %v4718_v39  ;;  %v108_v39 = vld [vmem:[%s6384_s0 + $0x2d8] sm:$0xff] }
  0xf2   :  { %2640 = vmatmul.mubr.bf16.gmra.mrb[24].mxu1 %v3813_v41  ;;  %v112_v41 = vld [vmem:[%s6384_s0 + $0x2f8] sm:$0xff]  ;;  %v3800_v44 = vcombine.high %v100_v38, %v108_v39 }
  0xf3   :  { %3092 = vmatmul.mubr.bf16.gmra.mrb[24].mxu0 %v3821_v42  ;;  %2685 = vmatpush1.bf16.msra.mxu1 %v4713_v46  ;;  %v3783_v42 = vcombine.low %v84_v30, %v92_v31  ;;  %v3808_v45 = vcombine.high %v104_v40, %v112_v41  ;;  %v116_v46 = vld [vmem:[%s6384_s0 + $0x318] sm:$0xff] }
  0xf4   :  { %3137 = vmatpush1.bf16.msra.mxu0 %v4716_v47  ;;  %2686 = vmatprep.subr.bf16.mxu1 %v4721_v48  ;;  %v124_v47 = vld [vmem:[%s6384_s0 + $0x358] sm:$0xff] }
  0xf5   :  { %3138 = vmatprep.subr.bf16.mxu0 %v4724_v49  ;;  %2649 = vmatprep.mubr.bf16.mxu1 %v3830_v50  ;;  %v120_v48 = vld [vmem:[%s6384_s0 + $0x338] sm:$0xff]  ;;  %v3799_v50 = vcombine.low %v100_v38, %v108_v39 }
  0xf6   :  { %3101 = vmatprep.mubr.bf16.mxu0 %v3838_v51  ;;  %v128_v49 = vld [vmem:[%s6384_s0 + $0x378] sm:$0xff]  ;;  %v3807_v51 = vcombine.low %v104_v40, %v112_v41 }
  0xf7   :  { %2687 = vmatpush1.bf16.msra.mxu1 %v4719_v52  ;;  %v3816_v52 = vcombine.high %v116_v46, %v124_v47  ;;  %v3823_v59 = vcombine.low %v120_v48, %v128_v49 }
  0xf8   :  { %3139 = vmatpush1.bf16.msra.mxu0 %v4722_v53  ;;  %2688 = vmatprep.subr.bf16.mxu1 %v4727_v54  ;;  %v3824_v53 = vcombine.high %v120_v48, %v128_v49  ;;  %v132_v54 = vld [vmem:[%s6384_s0 + $0x398] sm:$0xff] }
  0xf9   :  { %3140 = vmatprep.subr.bf16.mxu0 %v4730_v55  ;;  %v140_v55 = vld [vmem:[%s6384_s0 + $0x3d8] sm:$0xff] }
  0xfa   :  { %2650 = vmatmul.mubr.bf16.gmra.mrb[28].mxu1 %v3829_v57  ;;  %v144_v57 = vld [vmem:[%s6384_s0 + $0x3f8] sm:$0xff]  ;;  %v3832_v60 = vcombine.high %v132_v54, %v140_v55 }
  0xfb   :  { %3102 = vmatmul.mubr.bf16.gmra.mrb[28].mxu0 %v3837_v58  ;;  %2689 = vmatpush1.bf16.msra.mxu1 %v4725_v62  ;;  %v3815_v58 = vcombine.low %v116_v46, %v124_v47  ;;  %v3840_v61 = vcombine.high %v136_v56, %v144_v57  ;;  %v3831_v62 = vcombine.low %v132_v54, %v140_v55 }
  0xfc   :  { %3141 = vmatpush1.bf16.msra.mxu0 %v4728_v63  ;;  %2690 = vmatprep.subr.bf16.mxu1 %v4733_v0  ;;  %v3839_v63 = vcombine.low %v136_v56, %v144_v57 }
  0xfd   :  { %3142 = vmatprep.subr.bf16.mxu0 %v4736_v1  ;;  %2692 = vmatprep.mubr.bf16.mxu1 %v3720_v2 }
  0xfe   :  { %3144 = vmatprep.mubr.bf16.mxu0 %v3728_v3 }
  0xff   :  { %2691 = vmatpush1.bf16.msra.mxu1 %v4731_v4 }
 0x100   :  { %3143 = vmatpush1.bf16.msra.mxu0 %v4734_v5 }
 0x102   :  { %2693 = vmatmul.mubr.bf16.vlgmr.msra.gmra.mrb[0].mxu1 %v3719_v10 }
 0x103   :  { %3145 = vmatmul.mubr.bf16.vlgmr.msra.gmra.mrb[0].mxu0 %v3727_v11  ;;  %2702 = vmatprep.mubr.bf16.mxu1 %v3736_v12 }
 0x104   :  { %3154 = vmatprep.mubr.bf16.mxu0 %v3744_v13 }
 0x10a   :  { %2703 = vmatmul.mubr.bf16.gmra.mrb[4].mxu1 %v3735_v18 }
 0x10b   :  { %3155 = vmatmul.mubr.bf16.gmra.mrb[4].mxu0 %v3743_v19  ;;  %2712 = vmatprep.mubr.bf16.mxu1 %v3752_v20 }
 0x10c   :  { %3164 = vmatprep.mubr.bf16.mxu0 %v3760_v21 }
 0x112   :  { %2713 = vmatmul.mubr.bf16.gmra.mrb[8].mxu1 %v3751_v26 }
 0x113   :  { %3165 = vmatmul.mubr.bf16.gmra.mrb[8].mxu0 %v3759_v27  ;;  %2722 = vmatprep.mubr.bf16.mxu1 %v3768_v28 }
 0x114   :  { %3174 = vmatprep.mubr.bf16.mxu0 %v3776_v29 }
 0x11a   :  { %2723 = vmatmul.mubr.bf16.gmra.mrb[12].mxu1 %v3767_v34 }
 0x11b   :  { %3175 = vmatmul.mubr.bf16.gmra.mrb[12].mxu0 %v3775_v35  ;;  %2732 = vmatprep.mubr.bf16.mxu1 %v3784_v36 }
 0x11c   :  { %3184 = vmatprep.mubr.bf16.mxu0 %v3792_v37 }
 0x122   :  { %2733 = vmatmul.mubr.bf16.gmra.mrb[16].mxu1 %v3783_v42 }
 0x123   :  { %3185 = vmatmul.mubr.bf16.gmra.mrb[16].mxu0 %v3791_v43  ;;  %2742 = vmatprep.mubr.bf16.mxu1 %v3800_v44 }
 0x124   :  { %3194 = vmatprep.mubr.bf16.mxu0 %v3808_v45 }
 0x12a   :  { %2743 = vmatmul.mubr.bf16.gmra.mrb[20].mxu1 %v3799_v50 }
 0x12b   :  { %3195 = vmatmul.mubr.bf16.gmra.mrb[20].mxu0 %v3807_v51  ;;  %2752 = vmatprep.mubr.bf16.mxu1 %v3816_v52 }
 0x12c   :  { %3204 = vmatprep.mubr.bf16.mxu0 %v3824_v53 }
 0x132   :  { %2753 = vmatmul.mubr.bf16.gmra.mrb[24].mxu1 %v3815_v58 }
 0x133   :  { %3205 = vmatmul.mubr.bf16.gmra.mrb[24].mxu0 %v3823_v59  ;;  %2762 = vmatprep.mubr.bf16.mxu1 %v3832_v60 }
 0x134   :  { %3214 = vmatprep.mubr.bf16.mxu0 %v3840_v61 }
 0x13a   :  { %2763 = vmatmul.mubr.bf16.gmra.mrb[28].mxu1 %v3831_v62 }
 0x13b   :  { %3215 = vmatmul.mubr.bf16.gmra.mrb[28].mxu0 %v3839_v63 }
 0x1d5   :  { %v2694_v0 = vpop.f32.mrb[0].mxu1 }
 0x1d6   :  { %v3146_v1 = vpop.f32.mrb[0].mxu0  ;;  %v2696_v3 = vpop.f32.mrb[1].mxu1 }
 0x1d7   :  { %v5918_v2 = vadd.f32 %v3146_v1, %v2694_v0  ;;  %v3148_v4 = vpop.f32.mrb[1].mxu0  ;;  %v2698_v6 = vpop.f32.mrb[2].mxu1 }
 0x1d8   :  { %v5920_v5 = vadd.f32 %v3148_v4, %v2696_v3  ;;  %v3150_v7 = vpop.f32.mrb[2].mxu0  ;;  %v2700_v9 = vpop.f32.mrb[3].mxu1 }
 0x1d9   :  { %v5922_v8 = vadd.f32 %v3150_v7, %v2698_v6  ;;  %v3152_v10 = vpop.f32.mrb[3].mxu0 }
 0x1da   :  { %v5924_v11 = vadd.f32 %v3152_v10, %v2700_v9 }
 0x1db   :  { %v3225_v12 = vadd.f32 %v5922_v8, %v5918_v2 }
 0x1dc   :  { %v3246_v13 = vadd.f32 %v5924_v11, %v5920_v5 }
 0x1dd   :  { %v2704_v14 = vpop.f32.mrb[4].mxu1 }
 0x1de   :  { %v3156_v15 = vpop.f32.mrb[4].mxu0  ;;  %v2706_v17 = vpop.f32.mrb[5].mxu1 }
 0x1df   :  { %v5930_v16 = vadd.f32 %v3156_v15, %v2704_v14  ;;  %v3158_v18 = vpop.f32.mrb[5].mxu0  ;;  %v2708_v20 = vpop.f32.mrb[6].mxu1 }
 0x1e0   :  { %v5932_v19 = vadd.f32 %v3158_v18, %v2706_v17  ;;  %v3160_v21 = vpop.f32.mrb[6].mxu0  ;;  %v2710_v24 = vpop.f32.mrb[7].mxu1 }
 0x1e1   :  { %v3226_v22 = vadd.f32 %v5930_v16, %v3225_v12  ;;  %v5935_v23 = vadd.f32 %v3160_v21, %v2708_v20  ;;  %v3162_v25 = vpop.f32.mrb[7].mxu0 }
 0x1e2   :  { %v3247_v26 = vadd.f32 %v5932_v19, %v3246_v13  ;;  %v5938_v27 = vadd.f32 %v3162_v25, %v2710_v24 }
 0x1e3   :  { %v3227_v28 = vadd.f32 %v5935_v23, %v3226_v22 }
 0x1e4   :  { %v3248_v29 = vadd.f32 %v5938_v27, %v3247_v26 }
 0x1e5   :  { %v2714_v30 = vpop.f32.mrb[8].mxu1 }
 0x1e6   :  { %v3166_v31 = vpop.f32.mrb[8].mxu0  ;;  %v2716_v33 = vpop.f32.mrb[9].mxu1 }
 0x1e7   :  { %v5942_v32 = vadd.f32 %v3166_v31, %v2714_v30  ;;  %v3168_v34 = vpop.f32.mrb[9].mxu0  ;;  %v2718_v36 = vpop.f32.mrb[10].mxu1 }
 0x1e8   :  { %v5944_v35 = vadd.f32 %v3168_v34, %v2716_v33  ;;  %v3170_v37 = vpop.f32.mrb[10].mxu0  ;;  %v2720_v40 = vpop.f32.mrb[11].mxu1 }
 0x1e9   :  { %v3228_v38 = vadd.f32 %v5942_v32, %v3227_v28  ;;  %v5947_v39 = vadd.f32 %v3170_v37, %v2718_v36  ;;  %v3172_v41 = vpop.f32.mrb[11].mxu0 }
 0x1ea   :  { %v3249_v42 = vadd.f32 %v5944_v35, %v3248_v29  ;;  %v5950_v43 = vadd.f32 %v3172_v41, %v2720_v40 }
 0x1eb   :  { %v3229_v44 = vadd.f32 %v5947_v39, %v3228_v38 }
 0x1ec   :  { %v3250_v45 = vadd.f32 %v5950_v43, %v3249_v42 }
 0x1ed   :  { %v2724_v46 = vpop.f32.mrb[12].mxu1 }
 0x1ee   :  { %v3176_v47 = vpop.f32.mrb[12].mxu0  ;;  %v2726_v49 = vpop.f32.mrb[13].mxu1 }
 0x1ef   :  { %v5954_v48 = vadd.f32 %v3176_v47, %v2724_v46  ;;  %v3178_v50 = vpop.f32.mrb[13].mxu0  ;;  %v2728_v52 = vpop.f32.mrb[14].mxu1 }
 0x1f0   :  { %v5956_v51 = vadd.f32 %v3178_v50, %v2726_v49  ;;  %v3180_v53 = vpop.f32.mrb[14].mxu0  ;;  %v2730_v56 = vpop.f32.mrb[15].mxu1 }
 0x1f1   :  { %v3230_v54 = vadd.f32 %v5954_v48, %v3229_v44  ;;  %v5959_v55 = vadd.f32 %v3180_v53, %v2728_v52  ;;  %v3182_v57 = vpop.f32.mrb[15].mxu0 }
 0x1f2   :  { %v3251_v58 = vadd.f32 %v5956_v51, %v3250_v45  ;;  %v5962_v59 = vadd.f32 %v3182_v57, %v2730_v56 }
 0x1f3   :  { %v3231_v60 = vadd.f32 %v5959_v55, %v3230_v54 }
 0x1f4   :  { %v3252_v61 = vadd.f32 %v5962_v59, %v3251_v58 }
 0x1f5   :  { %v2734_v62 = vpop.f32.mrb[16].mxu1 }
 0x1f6   :  { %v3186_v63 = vpop.f32.mrb[16].mxu0  ;;  %v2736_v1 = vpop.f32.mrb[17].mxu1 }
 0x1f7   :  { %v5966_v0 = vadd.f32 %v3186_v63, %v2734_v62  ;;  %v3188_v3 = vpop.f32.mrb[17].mxu0  ;;  %v2738_v6 = vpop.f32.mrb[18].mxu1 }
 0x1f8   :  { %v5968_v4 = vadd.f32 %v3188_v3, %v2736_v1  ;;  %v3190_v7 = vpop.f32.mrb[18].mxu0  ;;  %v2740_v12 = vpop.f32.mrb[19].mxu1 }
 0x1f9   :  { %v3232_v9 = vadd.f32 %v5966_v0, %v3231_v60  ;;  %v5971_v10 = vadd.f32 %v3190_v7, %v2738_v6  ;;  %v3192_v13 = vpop.f32.mrb[19].mxu0 }
 0x1fa   :  { %v3253_v14 = vadd.f32 %v5968_v4, %v3252_v61  ;;  %v5974_v15 = vadd.f32 %v3192_v13, %v2740_v12 }
 0x1fb   :  { %v3233_v17 = vadd.f32 %v5971_v10, %v3232_v9 }
 0x1fc   :  { %v3254_v18 = vadd.f32 %v5974_v15, %v3253_v14 }
 0x1fd   :  { %v2744_v20 = vpop.f32.mrb[20].mxu1 }
 0x1fe   :  { %v3196_v21 = vpop.f32.mrb[20].mxu0  ;;  %v2746_v24 = vpop.f32.mrb[21].mxu1 }
 0x1ff   :  { %v5978_v22 = vadd.f32 %v3196_v21, %v2744_v20  ;;  %v3198_v25 = vpop.f32.mrb[21].mxu0  ;;  %v2748_v28 = vpop.f32.mrb[22].mxu1 }
 0x200   :  { %v5980_v26 = vadd.f32 %v3198_v25, %v2746_v24  ;;  %v3200_v29 = vpop.f32.mrb[22].mxu0  ;;  %v2750_v33 = vpop.f32.mrb[23].mxu1 }
 0x201   :  { %v3234_v30 = vadd.f32 %v5978_v22, %v3233_v17  ;;  %v5983_v31 = vadd.f32 %v3200_v29, %v2748_v28  ;;  %v3202_v34 = vpop.f32.mrb[23].mxu0 }
 0x202   :  { %v3255_v36 = vadd.f32 %v5980_v26, %v3254_v18  ;;  %v5986_v37 = vadd.f32 %v3202_v34, %v2750_v33 }
 0x203   :  { %v3235_v38 = vadd.f32 %v5983_v31, %v3234_v30 }
 0x204   :  { %v3256_v40 = vadd.f32 %v5986_v37, %v3255_v36 }
 0x205   :  { %v2754_v41 = vpop.f32.mrb[24].mxu1 }
 0x206   :  { %v3206_v42 = vpop.f32.mrb[24].mxu0  ;;  %v2756_v45 = vpop.f32.mrb[25].mxu1 }
 0x207   :  { %v4153_v44 = vadd.f32 %v3206_v42, %v2754_v41  ;;  %v3208_v46 = vpop.f32.mrb[25].mxu0  ;;  %v2758_v49 = vpop.f32.mrb[26].mxu1 }
 0x208   :  { %v5990_v47 = vadd.f32 %v3208_v46, %v2756_v45  ;;  %v3210_v50 = vpop.f32.mrb[26].mxu0  ;;  %v2760_v54 = vpop.f32.mrb[27].mxu1 }
 0x209   :  { %v3236_v52 = vadd.f32 %v4153_v44, %v3235_v38  ;;  %v4155_v53 = vadd.f32 %v3210_v50, %v2758_v49  ;;  %v3212_v56 = vpop.f32.mrb[27].mxu0 }
 0x20a   :  { %v3257_v57 = vadd.f32 %v5990_v47, %v3256_v40  ;;  %v5993_v58 = vadd.f32 %v3212_v56, %v2760_v54 }
 0x20b   :  { %v3237_v60 = vadd.f32 %v4155_v53, %v3236_v52 }
 0x20c   :  { %v3258_v61 = vadd.f32 %v5993_v58, %v3257_v57 }
 0x20d   :  { %v2764_v62 = vpop.f32.mrb[28].mxu1 }
 0x20e   :  { %v3216_v63 = vpop.f32.mrb[28].mxu0  ;;  %v2766_v3 = vpop.f32.mrb[29].mxu1 }
 0x20f   :  { %v4157_v1 = vadd.f32 %v3216_v63, %v2764_v62  ;;  %v3218_v6 = vpop.f32.mrb[29].mxu0  ;;  %v2768_v9 = vpop.f32.mrb[30].mxu1 }
 0x210   :  { %v5996_v7 = vadd.f32 %v3218_v6, %v2766_v3  ;;  %v3220_v12 = vpop.f32.mrb[30].mxu0  ;;  %v2770_v17 = vpop.f32.mrb[31].mxu1 }
 0x211   :  { %v3238_v13 = vadd.f32 %v4157_v1, %v3237_v60  ;;  %v4159_v14 = vadd.f32 %v3220_v12, %v2768_v9  ;;  %v3222_v18 = vpop.f32.mrb[31].mxu0 }
 0x212   :  { %v3259_v20 = vadd.f32 %v5996_v7, %v3258_v61  ;;  %v4160_v21 = vadd.f32 %v3222_v18, %v2770_v17 }
 0x213   :  { %v3239_v24 = vadd.f32 %v4159_v14, %v3238_v13 }
 0x214   :  { %v3260_v25 = vadd.f32 %v4160_v21, %v3259_v20 }
 0x215   :  { %v3240_v28 = vrot.slane %v3239_v24, 4 }
 0x216   :  { %v3261_v29 = vrot.slane %v3260_v25, 4 }
 0x217   :  { %v3241_v30 = vadd.f32 %v3240_v28, %v3239_v24 }
 0x218   :  { %v3262_v33 = vadd.f32 %v3261_v29, %v3260_v25 }
 0x219   :  { %v3242_v34 = vrot.slane %v3241_v30, 2 }
 0x21a   :  { %v3263_v36 = vrot.slane %v3262_v33, 2 }
 0x21b   :  { %v3243_v38 = vadd.f32 %v3242_v34, %v3241_v30 }
 0x21c   :  { %v3264_v40 = vadd.f32 %v3263_v36, %v3262_v33 }
 0x21d   :  { %v3244_v41 = vrot.slane %v3243_v38, 1 }
 0x21e   :  { %v3265_v42 = vrot.slane %v3264_v40, 1 }
 0x21f   :  { %v3245_v45 = vadd.f32 %v3244_v41, %v3243_v38 }
 0x220   :  { %v3266_v49 = vadd.f32 %v3265_v42, %v3264_v40 }
 0x221   :  { %v3267_v46 = vmul.f32 0.0078125, %v3245_v45 }
 0x222   :  { %v3268_v63 = vmul.f32 0.0078125, %v3266_v49 }
 0x223   :  { %v6000_v50 = vsub.f32 %v5918_v2, %v3267_v46  ;;  %v6003_v52 = vsub.f32 %v5922_v8, %v3267_v46  ;;  %v6006_v54 = vsub.f32 %v5930_v16, %v3267_v46  ;;  %v6009_v56 = vsub.f32 %v5935_v23, %v3267_v46 }
 0x224   :  { %v6012_v57 = vsub.f32 %v5942_v32, %v3267_v46  ;;  %v6015_v60 = vsub.f32 %v5947_v39, %v3267_v46  ;;  %v6018_v61 = vsub.f32 %v5954_v48, %v3267_v46  ;;  %v6021_v2 = vsub.f32 %v5959_v55, %v3267_v46 }
 0x225   :  { %v6024_v8 = vsub.f32 %v5966_v0, %v3267_v46  ;;  %v6027_v16 = vsub.f32 %v5971_v10, %v3267_v46  ;;  %v6030_v23 = vsub.f32 %v5978_v22, %v3267_v46  ;;  %v6033_v32 = vsub.f32 %v5983_v31, %v3267_v46 }
 0x226   :  { %v6035_v39 = vsub.f32 %v4153_v44, %v3267_v46  ;;  %v6037_v62 = vsub.f32 %v4155_v53, %v3267_v46  ;;  %v6039_v48 = vsub.f32 %v4157_v1, %v3267_v46  ;;  %v6041_v55 = vsub.f32 %v4159_v14, %v3267_v46 }
 0x227   :  { %v3301_v0 = vmul.f32 %v6000_v50, %v6000_v50  ;;  %v3303_v10 = vmul.f32 %v6003_v52, %v6003_v52  ;;  %v3305_v22 = vmul.f32 %v6006_v54, %v6006_v54  ;;  %v3307_v31 = vmul.f32 %v6009_v56, %v6009_v56 }
 0x228   :  { %v6052_v53 = vsub.f32 %v5920_v5, %v3268_v63  ;;  %v6055_v1 = vsub.f32 %v5924_v11, %v3268_v63  ;;  %v6058_v3 = vsub.f32 %v5932_v19, %v3268_v63  ;;  %v6061_v6 = vsub.f32 %v5938_v27, %v3268_v63 }
 0x229   :  { %v3333_v44 = vadd.f32 %v3303_v10, %v3301_v0  ;;  %v6064_v9 = vsub.f32 %v5944_v35, %v3268_v63  ;;  %v6067_v12 = vsub.f32 %v5950_v43, %v3268_v63  ;;  %v6070_v13 = vsub.f32 %v5956_v51, %v3268_v63 }
 0x22a   :  { %v6073_v14 = vsub.f32 %v5962_v59, %v3268_v63  ;;  %v6076_v11 = vsub.f32 %v5968_v4, %v3268_v63  ;;  %v6079_v19 = vsub.f32 %v5974_v15, %v3268_v63  ;;  %v6082_v27 = vsub.f32 %v5980_v26, %v3268_v63 }
 0x22b   :  { %v3334_v5 = vadd.f32 %v3333_v44, %v3305_v22  ;;  %v6085_v35 = vsub.f32 %v5986_v37, %v3268_v63  ;;  %v6088_v43 = vsub.f32 %v5990_v47, %v3268_v63  ;;  %v6091_v51 = vsub.f32 %v5993_v58, %v3268_v63 }
 0x22c   :  { %v3309_v59 = vmul.f32 %v6012_v57, %v6012_v57  ;;  %v6096_v17 = vsub.f32 %v5996_v7, %v3268_v63  ;;  %v6098_v15 = vsub.f32 %v4160_v21, %v3268_v63  ;;  %v3302_v26 = vmul.f32 %v6052_v53, %v6052_v53 }
 0x22d   :  { %v3335_v4 = vadd.f32 %v3334_v5, %v3307_v31  ;;  %v3304_v37 = vmul.f32 %v6055_v1, %v6055_v1  ;;  %v3311_v47 = vmul.f32 %v6015_v60, %v6015_v60  ;;  %v3313_v18 = vmul.f32 %v6018_v61, %v6018_v61 }
 0x22e   :  { %v3306_v7 = vmul.f32 %v6058_v3, %v6058_v3  ;;  %v3315_v21 = vmul.f32 %v6021_v2, %v6021_v2  ;;  %v3308_v28 = vmul.f32 %v6061_v6, %v6061_v6  ;;  %v3317_v30 = vmul.f32 %v6024_v8, %v6024_v8 }
 0x22f   :  { %v3336_v58 = vadd.f32 %v3335_v4, %v3309_v59  ;;  %v3354_v24 = vadd.f32 %v3304_v37, %v3302_v26  ;;  %v3310_v34 = vmul.f32 %v6064_v9, %v6064_v9  ;;  %v3319_v38 = vmul.f32 %v6027_v16, %v6027_v16 }
 0x230   :  { %v3312_v41 = vmul.f32 %v6067_v12, %v6067_v12  ;;  %v3321_v45 = vmul.f32 %v6030_v23, %v6030_v23  ;;  %v3314_v49 = vmul.f32 %v6070_v13, %v6070_v13  ;;  %v3323_v10 = vmul.f32 %v6033_v32, %v6033_v32 }
 0x231   :  { %v3337_v20 = vadd.f32 %v3336_v58, %v3311_v47  ;;  %v3355_v29 = vadd.f32 %v3354_v24, %v3306_v7  ;;  %v3316_v22 = vmul.f32 %v6073_v14, %v6073_v14  ;;  %v3325_v44 = vmul.f32 %v6035_v39, %v6035_v39 }
 0x232   :  { %v3318_v59 = vmul.f32 %v6076_v11, %v6076_v11  ;;  %v3327_v26 = vmul.f32 %v6037_v62, %v6037_v62  ;;  %v3320_v47 = vmul.f32 %v6079_v19, %v6079_v19  ;;  %v3322_v7 = vmul.f32 %v6082_v27, %v6082_v27 }
 0x233   :  { %v3338_v25 = vadd.f32 %v3337_v20, %v3313_v18  ;;  %v3356_v36 = vadd.f32 %v3355_v29, %v3308_v28  ;;  %v3329_v18 = vmul.f32 %v6039_v48, %v6039_v48  ;;  %v3324_v28 = vmul.f32 %v6085_v35, %v6085_v35 }
 0x235   :  { %v3339_v33 = vadd.f32 %v3338_v25, %v3315_v21  ;;  %v3357_v42 = vadd.f32 %v3356_v36, %v3310_v34  ;;  %v3331_v21 = vmul.f32 %v6041_v55, %v6041_v55 }
 0x237   :  { %v3340_v40 = vadd.f32 %v3339_v33, %v3317_v30  ;;  %v3358_v0 = vadd.f32 %v3357_v42, %v3312_v41  ;;  %v3326_v33 = vmul.f32 %v6088_v43, %v6088_v43  ;;  %v3330_v42 = vmul.f32 %v6096_v17, %v6096_v17 }
 0x239   :  { %v3341_v46 = vadd.f32 %v3340_v40, %v3319_v38  ;;  %v3359_v31 = vadd.f32 %v3358_v0, %v3314_v49  ;;  %v3328_v38 = vmul.f32 %v6091_v51, %v6091_v51  ;;  %v3332_v49 = vmul.f32 %v6098_v15, %v6098_v15 }
 0x23b   :  { %v3342_v63 = vadd.f32 %v3341_v46, %v3321_v45  ;;  %v3360_v4 = vadd.f32 %v3359_v31, %v3316_v22 }
 0x23d   :  { %v3343_v5 = vadd.f32 %v3342_v63, %v3323_v10  ;;  %v3361_v58 = vadd.f32 %v3360_v4, %v3318_v59 }
 0x23f   :  { %v3344_v37 = vadd.f32 %v3343_v5, %v3325_v44  ;;  %v3362_v24 = vadd.f32 %v3361_v58, %v3320_v47 }
 0x241   :  { %v3345_v20 = vadd.f32 %v3344_v37, %v3327_v26  ;;  %v3363_v29 = vadd.f32 %v3362_v24, %v3322_v7  ;;  %v3415_v37 = vlaneseq }
 0x243   :  { %v3346_v25 = vadd.f32 %v3345_v20, %v3329_v18  ;;  %v3364_v34 = vadd.f32 %v3363_v29, %v3324_v28  ;;  %v6154_v18 = vshrl.u32 %v3415_v37, 7 }
 0x245   :  { %v3347_v30 = vadd.f32 %v3346_v25, %v3331_v21  ;;  %v3365_v40 = vadd.f32 %v3364_v34, %v3326_v33  ;;  %v3417_v24 = vsub.s32 0, %v6154_v18  ;;  %v6160_v21 = vld [vmem:[%s6385_s2] sm:$0x3] }
 0x247   :  { %v3348_v36 = vrot.slane %v3347_v30, 4  ;;  %v3366_v45 = vadd.f32 %v3365_v40, %v3328_v38  ;;  %v3418_v29 = vrot.slane %v6160_v21, %v3417_v24 }
 0x249   :  { %v3349_v41 = vadd.f32 %v3348_v36, %v3347_v30  ;;  %v3367_v0 = vadd.f32 %v3366_v45, %v3330_v42  ;;  %v6174_v45 = vld [vmem:[%s6386_s3] sm:$0x3] }
 0x24b   :  { %v3350_v46 = vrot.slane %v3349_v41, 2  ;;  %v3368_v63 = vadd.f32 %v3367_v0, %v3332_v49  ;;  %v3462_v0 = vrot.slane %v6174_v45, %v3417_v24 }
 0x24d   :  { %v3351_v10 = vadd.f32 %v3350_v46, %v3349_v41  ;;  %v3369_v31 = vrot.slane %v3368_v63, 4 }
 0x24f   :  { %v3352_v22 = vrot.slane %v3351_v10, 1  ;;  %v3370_v5 = vadd.f32 %v3369_v31, %v3368_v63 }
 0x251   :  { %v3353_v44 = vadd.f32 %v3352_v22, %v3351_v10  ;;  %v3371_v4 = vrot.slane %v3370_v5, 2 }
 0x253   :  { %v3375_v59 = vmul.f32 0.0078125, %v3353_v44  ;;  %v3372_v47 = vadd.f32 %v3371_v4, %v3370_v5 }
 0x255   :  { %v3377_v26 = vadd.f32 1e-05, %v3375_v59  ;;  %v3373_v58 = vrot.slane %v3372_v47, 1 }
 0x257   :  { %4737 = vrsqrt.f32 %v3377_v26  ;;  %v3374_v20 = vadd.f32 %v3373_v58, %v3372_v47 }
 0x259   :  { %v3376_v7 = vmul.f32 0.0078125, %v3374_v20 }
 0x25b   :  { %v3378_v25 = vadd.f32 1e-05, %v3376_v7 }
 0x25d   :  { %4739 = vrsqrt.f32 %v3378_v25 }
 0x261   :  { %v4738_v28 = vpop.eup %4737 }
 0x262   :  { %v3381_v30 = vmul.f32 %v4738_v28, %v6000_v50  ;;  %v3383_v33 = vmul.f32 %v4738_v28, %v6003_v52  ;;  %v3385_v34 = vmul.f32 %v4738_v28, %v6006_v54  ;;  %v3387_v36 = vmul.f32 %v4738_v28, %v6009_v56 }
 0x263   :  { %v3389_v38 = vmul.f32 %v4738_v28, %v6012_v57  ;;  %v3391_v40 = vmul.f32 %v4738_v28, %v6015_v60  ;;  %v3393_v41 = vmul.f32 %v4738_v28, %v6018_v61  ;;  %v3395_v42 = vmul.f32 %v4738_v28, %v6021_v2 }
 0x264   :  { %v3397_v50 = vmul.f32 %v4738_v28, %v6024_v8  ;;  %v3399_v52 = vmul.f32 %v4738_v28, %v6027_v16  ;;  %v3401_v54 = vmul.f32 %v4738_v28, %v6030_v23  ;;  %v3403_v56 = vmul.f32 %v4738_v28, %v6033_v32 }
 0x265   :  { %v3405_v57 = vmul.f32 %v4738_v28, %v6035_v39  ;;  %v3407_v60 = vmul.f32 %v4738_v28, %v6037_v62  ;;  %v3409_v61 = vmul.f32 %v4738_v28, %v6039_v48  ;;  %v3411_v2 = vmul.f32 %v4738_v28, %v6041_v55 }
 0x266   :  { %v3425_v46 = vmul.f32 %v3418_v29, %v3381_v30  ;;  %v3427_v49 = vmul.f32 %v3418_v29, %v3383_v33  ;;  %v3421_v8 = vsub.s32 1, %v6154_v18  ;;  %v3429_v10 = vmul.f32 %v3418_v29, %v3385_v34 }
 0x267   :  { %v3431_v16 = vmul.f32 %v3418_v29, %v3387_v36  ;;  %v3433_v63 = vmul.f32 %v3418_v29, %v3389_v38  ;;  %v3435_v23 = vmul.f32 %v3418_v29, %v3391_v40  ;;  %v3437_v22 = vmul.f32 %v3418_v29, %v3393_v41  ;;  %v6186_v37 = vpop.eup %4739 }
 0x268   :  { %v3439_v32 = vmul.f32 %v3418_v29, %v3395_v42  ;;  %v3441_v31 = vmul.f32 %v3418_v29, %v3397_v50  ;;  %v3443_v39 = vmul.f32 %v3418_v29, %v3399_v52  ;;  %v3445_v44 = vmul.f32 %v3418_v29, %v3401_v54 }
 0x269   :  { %v3447_v62 = vmul.f32 %v3418_v29, %v3403_v56  ;;  %v3449_v5 = vmul.f32 %v3418_v29, %v3405_v57  ;;  %v3451_v48 = vmul.f32 %v3418_v29, %v3407_v60  ;;  %v3453_v59 = vmul.f32 %v3418_v29, %v3409_v61 }
 0x26a   :  { %v3455_v55 = vmul.f32 %v3418_v29, %v3411_v2  ;;  %v3469_v4 = vadd.f32 %v3462_v0, %v3425_v46  ;;  %v3471_v26 = vadd.f32 %v3462_v0, %v3427_v49  ;;  %v3473_v47 = vadd.f32 %v3462_v0, %v3429_v10 }
 0x26b   :  { %v3475_v58 = vadd.f32 %v3462_v0, %v3431_v16  ;;  %v3477_v18 = vadd.f32 %v3462_v0, %v3433_v63  ;;  %v3479_v20 = vadd.f32 %v3462_v0, %v3435_v23  ;;  %v3481_v7 = vadd.f32 %v3462_v0, %v3437_v22 }
 0x26c   :  { %v3483_v24 = vadd.f32 %v3462_v0, %v3439_v32  ;;  %v3485_v25 = vadd.f32 %v3462_v0, %v3441_v31  ;;  %v3487_v28 = vadd.f32 %v3462_v0, %v3443_v39  ;;  %v3489_v30 = vadd.f32 %v3462_v0, %v3445_v44 }
 0x26d   :  { %v3491_v33 = vadd.f32 %v3462_v0, %v3447_v62  ;;  %v3493_v34 = vadd.f32 %v3462_v0, %v3449_v5  ;;  %v3495_v36 = vadd.f32 %v3462_v0, %v3451_v48  ;;  %v6188_v38 = vadd.f32 %v3462_v0, %v3453_v59 }
 0x26e   :  { %v6190_v40 = vadd.f32 %v3462_v0, %v3455_v55  ;;  %vm3501_vm0 = vcmp.gt.f32.partialorder %v3469_v4, 0.0  ;;  %vm3503_vm1 = vcmp.gt.f32.partialorder %v3471_v26, 0.0  ;;  %vm3505_vm2 = vcmp.gt.f32.partialorder %v3473_v47, 0.0 }
 0x26f   :  { %vm3507_vm3 = vcmp.gt.f32.partialorder %v3475_v58, 0.0  ;;  %vm3509_vm4 = vcmp.gt.f32.partialorder %v3477_v18, 0.0  ;;  %vm3511_vm5 = vcmp.gt.f32.partialorder %v3479_v20, 0.0  ;;  %vm3513_vm6 = vcmp.gt.f32.partialorder %v3481_v7, 0.0 }
 0x270   :  { %vm3515_vm7 = vcmp.gt.f32.partialorder %v3483_v24, 0.0  ;;  %vm3517_vm8 = vcmp.gt.f32.partialorder %v3485_v25, 0.0  ;;  %vm3519_vm9 = vcmp.gt.f32.partialorder %v3487_v28, 0.0  ;;  %vm3521_vm10 = vcmp.gt.f32.partialorder %v3489_v30, 0.0 }
 0x271   :  { %vm3523_vm11 = vcmp.gt.f32.partialorder %v3491_v33, 0.0  ;;  %vm3525_vm12 = vcmp.gt.f32.partialorder %v3493_v34, 0.0  ;;  %vm3527_vm13 = vcmp.gt.f32.partialorder %v3495_v36, 0.0  ;;  %v3533_v29 = vmul.f32 0.2, %v3469_v4 }
 0x272   :  { %v3535_v41 = vmul.f32 0.2, %v3471_v26  ;;  %v3537_v42 = vmul.f32 0.2, %v3473_v47  ;;  %v3382_v50 = vmul.f32 %v6186_v37, %v6052_v53  ;;  %v3539_v52 = vmul.f32 0.2, %v3475_v58 }
 0x273   :  { %v3541_v54 = vmul.f32 0.2, %v3477_v18  ;;  %v3543_v56 = vmul.f32 0.2, %v3479_v20  ;;  %v3384_v57 = vmul.f32 %v6186_v37, %v6055_v1  ;;  %v3545_v60 = vmul.f32 0.2, %v3481_v7 }
 0x274   :  { %v3547_v61 = vmul.f32 0.2, %v3483_v24  ;;  %v3549_v2 = vmul.f32 0.2, %v3485_v25  ;;  %v3422_v46 = vrot.slane %v6160_v21, %v3421_v8  ;;  %v3551_v49 = vmul.f32 0.2, %v3487_v28 }
 0x275   :  { %v3553_v0 = vmul.f32 0.2, %v3489_v30  ;;  %v3555_v10 = vmul.f32 0.2, %v3491_v33  ;;  %v6198_v16 = vrot.slane %v6174_v45, %v3421_v8  ;;  %v3557_v63 = vmul.f32 0.2, %v3493_v34 }
 0x276   :  { %v3559_v23 = vmul.f32 0.2, %v3495_v36  ;;  %v6201_v53 = vsel %vm3501_vm0, %v3469_v4, %v3533_v29  ;;  %v6204_v22 = vsel %vm3503_vm1, %v3471_v26, %v3535_v41  ;;  %v6207_v1 = vmul.f32 0.2, %v6188_v38 }
 0x277   :  { %v6210_v32 = vmul.f32 0.2, %v6190_v40  ;;  %v6213_v21 = vsel %vm3505_vm2, %v3473_v47, %v3537_v42  ;;  %v6216_v45 = vsel %vm3507_vm3, %v3475_v58, %v3539_v52  ;;  %v6219_v8 = vsel %vm3509_vm4, %v3477_v18, %v3541_v54 }
 0x278   :  { %v6222_v31 = vsel %vm3511_vm5, %v3479_v20, %v3543_v56  ;;  %v6225_v39 = vsel %vm3513_vm6, %v3481_v7, %v3545_v60  ;;  %v6228_v44 = vsel %vm3515_vm7, %v3483_v24, %v3547_v61  ;;  %v6231_v62 = vsel %vm3517_vm8, %v3485_v25, %v3549_v2 }
 0x279   :  { %v6234_v5 = vsel %vm3519_vm9, %v3487_v28, %v3551_v49  ;;  %v6237_v48 = vsel %vm3521_vm10, %v3489_v30, %v3553_v0  ;;  %v6240_v59 = vsel %vm3523_vm11, %v3491_v33, %v3555_v10  ;;  %v6243_v55 = vsel %vm3525_vm12, %v3493_v34, %v3557_v63 }
 0x27a   :  { %v6246_v4 = vsel %vm3527_vm13, %v3495_v36, %v3559_v23  ;;  %v3386_v26 = vmul.f32 %v6186_v37, %v6058_v3  ;;  %v3388_v47 = vmul.f32 %v6186_v37, %v6061_v6  ;;  %v3390_v58 = vmul.f32 %v6186_v37, %v6064_v9 }
 0x27b   :  { %v3392_v18 = vmul.f32 %v6186_v37, %v6067_v12  ;;  %v3394_v20 = vmul.f32 %v6186_v37, %v6070_v13  ;;  %v3396_v7 = vmul.f32 %v6186_v37, %v6073_v14  ;;  %v3398_v24 = vmul.f32 %v6186_v37, %v6076_v11 }
 0x27c   :  { %v3400_v3 = vmul.f32 %v6186_v37, %v6079_v19  ;;  %v3402_v6 = vmul.f32 %v6186_v37, %v6082_v27  ;;  %v3404_v9 = vmul.f32 %v6186_v37, %v6085_v35  ;;  %v3406_v12 = vmul.f32 %v6186_v37, %v6088_v43 }
 0x27d   :  { %v3408_v13 = vmul.f32 %v6186_v37, %v6091_v51  ;;  %v3410_v14 = vmul.f32 %v6186_v37, %v6096_v17  ;;  %v3412_v11 = vmul.f32 %v6186_v37, %v6098_v15  ;;  %v3426_v25 = vmul.f32 %v3422_v46, %v3382_v50 }
 0x27e   :  { %v3428_v19 = vmul.f32 %v3422_v46, %v3384_v57  ;;  %v3430_v28 = vmul.f32 %v3422_v46, %v3386_v26  ;;  %v3432_v30 = vmul.f32 %v3422_v46, %v3388_v47  ;;  %v3434_v27 = vmul.f32 %v3422_v46, %v3390_v58 }
 0x27f   :  { %v3436_v35 = vmul.f32 %v3422_v46, %v3392_v18  ;;  %v3438_v33 = vmul.f32 %v3422_v46, %v3394_v20  ;;  %v3440_v34 = vmul.f32 %v3422_v46, %v3396_v7  ;;  %v3442_v43 = vmul.f32 %v3422_v46, %v3398_v24 }
 0x280   :  { %v3444_v51 = vmul.f32 %v3422_v46, %v3400_v3  ;;  %v3446_v36 = vmul.f32 %v3422_v46, %v3402_v6  ;;  %v3448_v29 = vmul.f32 %v3422_v46, %v3404_v9  ;;  %v3450_v17 = vmul.f32 %v3422_v46, %v3406_v12 }
 0x281   :  { %v3452_v41 = vmul.f32 %v3422_v46, %v3408_v13  ;;  %v3454_v42 = vmul.f32 %v3422_v46, %v3410_v14  ;;  %v3456_v15 = vmul.f32 %v3422_v46, %v3412_v11  ;;  %v3470_v37 = vadd.f32 %v6198_v16, %v3426_v25 }
 0x282   :  { %v3472_v50 = vadd.f32 %v6198_v16, %v3428_v19  ;;  %v3474_v52 = vadd.f32 %v6198_v16, %v3430_v28  ;;  %v3476_v54 = vadd.f32 %v6198_v16, %v3432_v30  ;;  %v3478_v56 = vadd.f32 %v6198_v16, %v3434_v27 }
 0x283   :  { %v3480_v57 = vadd.f32 %v6198_v16, %v3436_v35  ;;  %v3482_v60 = vadd.f32 %v6198_v16, %v3438_v33  ;;  %v3484_v61 = vadd.f32 %v6198_v16, %v3440_v34  ;;  %v3486_v2 = vadd.f32 %v6198_v16, %v3442_v43 }
 0x284   :  { %v3488_v46 = vadd.f32 %v6198_v16, %v3444_v51  ;;  %v3490_v49 = vadd.f32 %v6198_v16, %v3446_v36  ;;  %v3492_v0 = vadd.f32 %v6198_v16, %v3448_v29  ;;  %v3494_v10 = vadd.f32 %v6198_v16, %v3450_v17 }
 0x285   :  { %v3496_v63 = vadd.f32 %v6198_v16, %v3452_v41  ;;  %v3498_v23 = vadd.f32 %v6198_v16, %v3454_v42  ;;  %v3500_v26 = vadd.f32 %v6198_v16, %v3456_v15  ;;  %vm3504_vm1 = vcmp.gt.f32.partialorder %v3472_v50, 0.0 }
 0x286   :  { %vm3506_vm2 = vcmp.gt.f32.partialorder %v3474_v52, 0.0  ;;  %vm3508_vm3 = vcmp.gt.f32.partialorder %v3476_v54, 0.0  ;;  %vm3510_vm4 = vcmp.gt.f32.partialorder %v3478_v56, 0.0  ;;  %vm3512_vm5 = vcmp.gt.f32.partialorder %v3480_v57, 0.0 }
 0x287   :  { %vm3514_vm6 = vcmp.gt.f32.partialorder %v3482_v60, 0.0  ;;  %vm3516_vm7 = vcmp.gt.f32.partialorder %v3484_v61, 0.0  ;;  %vm3520_vm9 = vcmp.gt.f32.partialorder %v3488_v46, 0.0  ;;  %vm3522_vm10 = vcmp.gt.f32.partialorder %v3490_v49, 0.0 }
 0x288   :  { %vm3524_vm11 = vcmp.gt.f32.partialorder %v3492_v0, 0.0  ;;  %vm3526_vm12 = vcmp.gt.f32.partialorder %v3494_v10, 0.0  ;;  %vm3528_vm13 = vcmp.gt.f32.partialorder %v3496_v63, 0.0  ;;  %vm3530_vm15 = vcmp.gt.f32.partialorder %v3498_v23, 0.0 }
 0x289   :  { %vm6388_vm0 = vcmp.gt.f32.partialorder %v6188_v38, 0.0  ;;  %v3534_v47 = vmul.f32 0.2, %v3470_v37  ;;  %v3536_v58 = vmul.f32 0.2, %v3472_v50  ;;  %vm6389_vm8 = vcmp.gt.f32.partialorder %v6190_v40, 0.0 }
 0x28a   :  { %v6298_v16 = vsel %vm6388_vm0, %v6188_v38, %v6207_v1  ;;  %v3538_v18 = vmul.f32 0.2, %v3474_v52  ;;  %v3595_v20 = vsel %vm6389_vm8, %v6190_v40, %v6210_v32  ;;  %v3540_v7 = vmul.f32 0.2, %v3476_v54 }
 0x28b   :  { %v3542_v24 = vmul.f32 0.2, %v3478_v56  ;;  %v3544_v3 = vmul.f32 0.2, %v3480_v57  ;;  %v3546_v6 = vmul.f32 0.2, %v3482_v60  ;;  %v3568_v1 = vsel %vm3504_vm1, %v3472_v50, %v3536_v58 }
 0x28c   :  { %v3548_v9 = vmul.f32 0.2, %v3484_v61  ;;  %v3550_v12 = vmul.f32 0.2, %v3486_v2  ;;  %vm6390_vm14 = vcmp.gt.f32.partialorder %v3470_v37, 0.0  ;;  %v3570_v30 = vsel %vm3506_vm2, %v3474_v52, %v3538_v18 }
 0x28d   :  { %v3566_v13 = vsel %vm6390_vm14, %v3470_v37, %v3534_v47  ;;  %v3552_v14 = vmul.f32 0.2, %v3488_v46  ;;  %v3554_v11 = vmul.f32 0.2, %v3490_v49  ;;  %v3556_v38 = vmul.f32 0.2, %v3492_v0 }
 0x28e   :  { %v3558_v25 = vmul.f32 0.2, %v3494_v10  ;;  %v3560_v19 = vmul.f32 0.2, %v3496_v63  ;;  %v3562_v28 = vmul.f32 0.2, %v3498_v23  ;;  %v3572_v40 = vsel %vm3508_vm3, %v3476_v54, %v3540_v7 }
 0x28f   :  { %v3564_v27 = vmul.f32 0.2, %v3500_v26  ;;  %v3574_v32 = vsel %vm3510_vm4, %v3478_v56, %v3542_v24  ;;  %v3576_v35 = vsel %vm3512_vm5, %v3480_v57, %v3544_v3  ;;  %v3578_v33 = vsel %vm3514_vm6, %v3482_v60, %v3546_v6 }
 0x290   :  { %v3580_v34 = vsel %vm3516_vm7, %v3484_v61, %v3548_v9  ;;  %vm6391_vm14 = vcmp.gt.f32.partialorder %v3486_v2, 0.0  ;;  %v3584_v51 = vsel %vm3520_vm9, %v3488_v46, %v3552_v14  ;;  %v3586_v36 = vsel %vm3522_vm10, %v3490_v49, %v3554_v11 }
 0x291   :  { %v3582_v43 = vsel %vm6391_vm14, %v3486_v2, %v3550_v12  ;;  %v3588_v29 = vsel %vm3524_vm11, %v3492_v0, %v3556_v38  ;;  %v3590_v17 = vsel %vm3526_vm12, %v3494_v10, %v3558_v25  ;;  %v3592_v41 = vsel %vm3528_vm13, %v3496_v63, %v3560_v19 }
 0x292   :  { %v3594_v42 = vsel %vm3530_vm15, %v3498_v23, %v3562_v28  ;;  %vm6392_vm0 = vcmp.gt.f32.partialorder %v3500_v26, 0.0  ;;  %v4113_v37 = vpack.c.bf16 %v3566_v13, %v6201_v53  ;;  %v4114_v50 = vpack.c.bf16 %v3568_v1, %v6204_v22 }
 0x293   :  { %v3596_v15 = vsel %vm6392_vm0, %v3500_v26, %v3564_v27  ;;  %v4115_v52 = vpack.c.bf16 %v3570_v30, %v6213_v21  ;;  %v4116_v54 = vpack.c.bf16 %v3572_v40, %v6216_v45  ;;  %v4117_v56 = vpack.c.bf16 %v3574_v32, %v6219_v8 }
 0x294   :  { %v4118_v57 = vpack.c.bf16 %v3576_v35, %v6222_v31  ;;  %v4119_v60 = vpack.c.bf16 %v3578_v33, %v6225_v39  ;;  %v4120_v61 = vpack.c.bf16 %v3580_v34, %v6228_v44  ;;  %v4121_v2 = vpack.c.bf16 %v3582_v43, %v6231_v62  ;;  %3693 = vst [vmem:[%s6387_s4] sm:$0xff] %v4113_v37 }
 0x295   :  { %v4122_v46 = vpack.c.bf16 %v3584_v51, %v6234_v5  ;;  %3694 = vst [vmem:[%s6387_s4 + $0x8] sm:$0xff] %v4114_v50  ;;  %v4123_v53 = vpack.c.bf16 %v3586_v36, %v6237_v48  ;;  %v4124_v22 = vpack.c.bf16 %v3588_v29, %v6240_v59  ;;  %v4125_v21 = vpack.c.bf16 %v3590_v17, %v6243_v55 }
 0x296   :  { %v4126_v45 = vpack.c.bf16 %v3592_v41, %v6246_v4  ;;  %3695 = vst [vmem:[%s6387_s4 + $0x10] sm:$0xff] %v4115_v52  ;;  %3696 = vst [vmem:[%s6387_s4 + $0x18] sm:$0xff] %v4116_v54  ;;  %v4127_v8 = vpack.c.bf16 %v3594_v42, %v6298_v16  ;;  %v4128_v31 = vpack.c.bf16 %v3596_v15, %v3595_v20 }
 0x297   :  { %3697 = vst [vmem:[%s6387_s4 + $0x20] sm:$0xff] %v4117_v56  ;;  %3698 = vst [vmem:[%s6387_s4 + $0x28] sm:$0xff] %v4118_v57 }
 0x298   :  { %3699 = vst [vmem:[%s6387_s4 + $0x30] sm:$0xff] %v4119_v60  ;;  %3700 = vst [vmem:[%s6387_s4 + $0x38] sm:$0xff] %v4120_v61 }
 0x299   :  { %3701 = vst [vmem:[%s6387_s4 + $0x40] sm:$0xff] %v4121_v2  ;;  %3702 = vst [vmem:[%s6387_s4 + $0x48] sm:$0xff] %v4122_v46 }
 0x29a   :  { %3703 = vst [vmem:[%s6387_s4 + $0x50] sm:$0xff] %v4123_v53  ;;  %3704 = vst [vmem:[%s6387_s4 + $0x58] sm:$0xff] %v4124_v22 }
 0x29b   :  { %3705 = vst [vmem:[%s6387_s4 + $0x60] sm:$0xff] %v4125_v21  ;;  %3706 = vst [vmem:[%s6387_s4 + $0x68] sm:$0xff] %v4126_v45 }
 0x29c   :  { %3707 = vst [vmem:[%s6387_s4 + $0x70] sm:$0xff] %v4127_v8  ;;  %3708 = vst [vmem:[%s6387_s4 + $0x78] sm:$0xff] %v4128_v31 }

// kernel: discriminator_forward.7
= control target key start
LH: loop header
LB: loop body
LE: loop exit
PB: predicated region body
PF: predicated region fallthrough
CT: control target
= control target key end

     0   :  { %s15288_s1 = inlined_call_operand.vmem [shape: bf16[4096,512], index: 1, kind: input, shape index: {}]   ;;  %s15289_s0 = inlined_call_operand.vmem [shape: bf16[32,4096], index: 0, kind: input, shape index: {}]   ;;  %s15290_s2 = inlined_call_operand.vmem [shape: f32[1,512], index: 2, kind: input, shape index: {}]   ;;  %s15291_s3 = inlined_call_operand.vmem [shape: f32[1,512], index: 3, kind: input, shape index: {}]   ;;  %s15292_s4 = inlined_call_operand.vmem [shape: f32[32,512], index: 4, kind: input, shape index: {}]   ;;  %s15293_s5 = inlined_call_operand.vmem [shape: f32[2,32], index: 5, kind: input, shape index: {}]   ;;  %s15294_s6 = inlined_call_operand.<no memory space> [shape: f32[1,1], index: 6, kind: input, shape index: {}]   ;;  %s15295_s7 = inlined_call_operand.vmem [shape: f32[2,1], index: 7, kind: output, shape index: {}]  }
   0x1   :  { %v10070_v0 = vld [vmem:[%s15288_s1 + $0x4] ss:$16 sps:$4 sm:$0xff]   ;;  %v10072_v1 = vld [vmem:[%s15288_s1 + $0xc] ss:$16 sps:$4 sm:$0xff]   ;;  %v10074_v2 = vld [vmem:[%s15288_s1] ss:$16 sps:$4 sm:$0xff]  }
   0x2   :  { %6556 = vmatprep.subr.bf16.mxu0 %v10070_v0  ;;  %v10075_v3 = vld [vmem:[%s15288_s1 + $0x8] ss:$16 sps:$4 sm:$0xff]   ;;  %7404 = vmatprep.subr.bf16.mxu1 %v10072_v1  ;;  %v10076_v4 = vld [vmem:[%s15288_s1 + $0x24] ss:$16 sps:$4 sm:$0xff]   ;;  %v10078_v5 = vld [vmem:[%s15288_s1 + $0x2c] ss:$16 sps:$4 sm:$0xff]  }
   0x3   :  { %6557 = vmatpush1.bf16.msra.mxu0 %v10074_v2  ;;  %7405 = vmatpush1.bf16.msra.mxu1 %v10075_v3  ;;  %v10080_v6 = vld [vmem:[%s15288_s1 + $0x20] ss:$16 sps:$4 sm:$0xff]   ;;  %v10081_v7 = vld [vmem:[%s15288_s1 + $0x28] ss:$16 sps:$4 sm:$0xff]   ;;  %v10082_v8 = vld [vmem:[%s15288_s1 + $0x44] ss:$16 sps:$4 sm:$0xff]  }
   0x4   :  { %6558 = vmatprep.subr.bf16.mxu0 %v10076_v4  ;;  %7406 = vmatprep.subr.bf16.mxu1 %v10078_v5  ;;  %v10084_v9 = vld [vmem:[%s15288_s1 + $0x4c] ss:$16 sps:$4 sm:$0xff]   ;;  %v10086_v10 = vld [vmem:[%s15288_s1 + $0x40] ss:$16 sps:$4 sm:$0xff]   ;;  %v10087_v11 = vld [vmem:[%s15288_s1 + $0x48] ss:$16 sps:$4 sm:$0xff]  }
   0x5   :  { %v10088_v12 = vld [vmem:[%s15288_s1 + $0x64] ss:$16 sps:$4 sm:$0xff]   ;;  %v10090_v13 = vld [vmem:[%s15288_s1 + $0x6c] ss:$16 sps:$4 sm:$0xff]   ;;  %v10092_v14 = vld [vmem:[%s15288_s1 + $0x60] ss:$16 sps:$4 sm:$0xff]  }
   0x6   :  { %v10093_v15 = vld [vmem:[%s15288_s1 + $0x68] ss:$16 sps:$4 sm:$0xff]   ;;  %v10094_v16 = vld [vmem:[%s15288_s1 + $0x84] ss:$16 sps:$4 sm:$0xff]   ;;  %v10096_v17 = vld [vmem:[%s15288_s1 + $0x8c] ss:$16 sps:$4 sm:$0xff]  }
   0x7   :  { %6559 = vmatpush1.bf16.msra.mxu0 %v10080_v6  ;;  %7407 = vmatpush1.bf16.msra.mxu1 %v10081_v7  ;;  %v10098_v18 = vld [vmem:[%s15288_s1 + $0x80] ss:$16 sps:$4 sm:$0xff]   ;;  %v10099_v19 = vld [vmem:[%s15288_s1 + $0x88] ss:$16 sps:$4 sm:$0xff]   ;;  %v10100_v20 = vld [vmem:[%s15288_s1 + $0xa4] ss:$16 sps:$4 sm:$0xff]  }
   0x8   :  { %6560 = vmatprep.subr.bf16.mxu0 %v10082_v8  ;;  %7408 = vmatprep.subr.bf16.mxu1 %v10084_v9  ;;  %v10102_v21 = vld [vmem:[%s15288_s1 + $0xac] ss:$16 sps:$4 sm:$0xff]   ;;  %v10104_v22 = vld [vmem:[%s15288_s1 + $0xa0] ss:$16 sps:$4 sm:$0xff]   ;;  %v10105_v23 = vld [vmem:[%s15288_s1 + $0xa8] ss:$16 sps:$4 sm:$0xff]  }
   0x9   :  { %v10106_v24 = vld [vmem:[%s15288_s1 + $0xc4] ss:$16 sps:$4 sm:$0xff]   ;;  %v10108_v25 = vld [vmem:[%s15288_s1 + $0xcc] ss:$16 sps:$4 sm:$0xff]   ;;  %v10110_v26 = vld [vmem:[%s15288_s1 + $0xc0] ss:$16 sps:$4 sm:$0xff]  }
   0xa   :  { %v10111_v27 = vld [vmem:[%s15288_s1 + $0xc8] ss:$16 sps:$4 sm:$0xff]   ;;  %v10112_v28 = vld [vmem:[%s15288_s1 + $0xe4] ss:$16 sps:$4 sm:$0xff]   ;;  %v10114_v29 = vld [vmem:[%s15288_s1 + $0xec] ss:$16 sps:$4 sm:$0xff]  }
   0xb   :  { %6561 = vmatpush1.bf16.msra.mxu0 %v10086_v10  ;;  %7409 = vmatpush1.bf16.msra.mxu1 %v10087_v11  ;;  %v10116_v30 = vld [vmem:[%s15288_s1 + $0xe0] ss:$16 sps:$4 sm:$0xff]   ;;  %v10117_v31 = vld [vmem:[%s15288_s1 + $0xe8] ss:$16 sps:$4 sm:$0xff]   ;;  %v10118_v32 = vld [vmem:[%s15288_s1 + $0x104] ss:$16 sps:$4 sm:$0xff]  }
   0xc   :  { %6562 = vmatprep.subr.bf16.mxu0 %v10088_v12  ;;  %7410 = vmatprep.subr.bf16.mxu1 %v10090_v13  ;;  %v10120_v33 = vld [vmem:[%s15288_s1 + $0x10c] ss:$16 sps:$4 sm:$0xff]   ;;  %v10122_v34 = vld [vmem:[%s15288_s1 + $0x100] ss:$16 sps:$4 sm:$0xff]   ;;  %v10123_v35 = vld [vmem:[%s15288_s1 + $0x108] ss:$16 sps:$4 sm:$0xff]  }
   0xd   :  { %v10124_v36 = vld [vmem:[%s15288_s1 + $0x124] ss:$16 sps:$4 sm:$0xff]   ;;  %v10126_v37 = vld [vmem:[%s15288_s1 + $0x12c] ss:$16 sps:$4 sm:$0xff]   ;;  %v10128_v38 = vld [vmem:[%s15288_s1 + $0x120] ss:$16 sps:$4 sm:$0xff]  }
   0xe   :  { %v10129_v39 = vld [vmem:[%s15288_s1 + $0x128] ss:$16 sps:$4 sm:$0xff]   ;;  %v10130_v40 = vld [vmem:[%s15288_s1 + $0x144] ss:$16 sps:$4 sm:$0xff]   ;;  %v10132_v41 = vld [vmem:[%s15288_s1 + $0x14c] ss:$16 sps:$4 sm:$0xff]  }
   0xf   :  { %6563 = vmatpush1.bf16.msra.mxu0 %v10092_v14  ;;  %7411 = vmatpush1.bf16.msra.mxu1 %v10093_v15  ;;  %v10134_v42 = vld [vmem:[%s15288_s1 + $0x140] ss:$16 sps:$4 sm:$0xff]   ;;  %v10135_v43 = vld [vmem:[%s15288_s1 + $0x148] ss:$16 sps:$4 sm:$0xff]   ;;  %v10136_v44 = vld [vmem:[%s15288_s1 + $0x164] ss:$16 sps:$4 sm:$0xff]  }
  0x10   :  { %6564 = vmatprep.subr.bf16.mxu0 %v10094_v16  ;;  %7412 = vmatprep.subr.bf16.mxu1 %v10096_v17  ;;  %v10138_v45 = vld [vmem:[%s15288_s1 + $0x16c] ss:$16 sps:$4 sm:$0xff]   ;;  %v28_v46 = vld [vmem:[%s15289_s0] sm:$0xff]  ;;  %v10141_v49 = vld [vmem:[%s15288_s1 + $0x168] ss:$16 sps:$4 sm:$0xff]  }
  0x11   :  { %v44_v47 = vld [vmem:[%s15289_s0 + $0x80] sm:$0xff]  ;;  %v10144_v52 = vld [vmem:[%s15288_s1 + $0x18c] ss:$16 sps:$4 sm:$0xff]   ;;  %v10147_v54 = vld [vmem:[%s15288_s1 + $0x188] ss:$16 sps:$4 sm:$0xff]  }
  0x12   :  { %v10140_v48 = vld [vmem:[%s15288_s1 + $0x160] ss:$16 sps:$4 sm:$0xff]   ;;  %v8722_v50 = vcombine.high %v28_v46, %v44_v47  ;;  %v10142_v51 = vld [vmem:[%s15288_s1 + $0x184] ss:$16 sps:$4 sm:$0xff]   ;;  %v10150_v56 = vld [vmem:[%s15288_s1 + $0x1ac] ss:$16 sps:$4 sm:$0xff]   ;;  %v8721_v5 = vcombine.low %v28_v46, %v44_v47 }
  0x13   :  { %6565 = vmatpush1.bf16.msra.mxu0 %v10098_v18  ;;  %7413 = vmatpush1.bf16.msra.mxu1 %v10099_v19  ;;  %v10146_v53 = vld [vmem:[%s15288_s1 + $0x180] ss:$16 sps:$4 sm:$0xff]   ;;  %v10148_v55 = vld [vmem:[%s15288_s1 + $0x1a4] ss:$16 sps:$4 sm:$0xff]   ;;  %v10153_v58 = vld [vmem:[%s15288_s1 + $0x1a8] ss:$16 sps:$4 sm:$0xff]  }
  0x14   :  { %6566 = vmatprep.subr.bf16.mxu0 %v10100_v20  ;;  %7414 = vmatprep.subr.bf16.mxu1 %v10102_v21  ;;  %v10152_v57 = vld [vmem:[%s15288_s1 + $0x1a0] ss:$16 sps:$4 sm:$0xff]   ;;  %v10154_v59 = vld [vmem:[%s15288_s1 + $0x1c4] ss:$16 sps:$4 sm:$0xff]   ;;  %v10156_v60 = vld [vmem:[%s15288_s1 + $0x1cc] ss:$16 sps:$4 sm:$0xff]  }
  0x15   :  { %6588 = vmatprep.mubr.bf16.mxu0 %v8722_v50  ;;  %7436 = vmatprep.mubr.bf16.mxu1 %v8722_v50  ;;  %v10158_v61 = vld [vmem:[%s15288_s1 + $0x1c0] ss:$16 sps:$4 sm:$0xff]   ;;  %v10159_v62 = vld [vmem:[%s15288_s1 + $0x1c8] ss:$16 sps:$4 sm:$0xff]   ;;  %v10160_v63 = vld [vmem:[%s15288_s1 + $0x1e4] ss:$16 sps:$4 sm:$0xff]  }
  0x16   :  { %v10162_v0 = vld [vmem:[%s15288_s1 + $0x1ec] ss:$16 sps:$4 sm:$0xff]   ;;  %v10164_v1 = vld [vmem:[%s15288_s1 + $0x1e0] ss:$16 sps:$4 sm:$0xff]   ;;  %v10165_v2 = vld [vmem:[%s15288_s1 + $0x1e8] ss:$16 sps:$4 sm:$0xff]  }
  0x17   :  { %6567 = vmatpush1.bf16.msra.mxu0 %v10104_v22  ;;  %7415 = vmatpush1.bf16.msra.mxu1 %v10105_v23  ;;  %v10168_v3 = vld [vmem:[%s15288_s1 + $0x204] ss:$16 sps:$4 sm:$0xff]   ;;  %v10171_v4 = vld [vmem:[%s15288_s1 + $0x20c] ss:$16 sps:$4 sm:$0xff]   ;;  %v10166_v6 = vld [vmem:[%s15288_s1 + $0x200] ss:$16 sps:$4 sm:$0xff]  }
  0x18   :  { %6568 = vmatprep.subr.bf16.mxu0 %v10106_v24  ;;  %7416 = vmatprep.subr.bf16.mxu1 %v10108_v25  ;;  %v10169_v7 = vld [vmem:[%s15288_s1 + $0x208] ss:$16 sps:$4 sm:$0xff]   ;;  %v10174_v8 = vld [vmem:[%s15288_s1 + $0x224] ss:$16 sps:$4 sm:$0xff]   ;;  %v10177_v9 = vld [vmem:[%s15288_s1 + $0x22c] ss:$16 sps:$4 sm:$0xff]  }
  0x19   :  { %v10172_v10 = vld [vmem:[%s15288_s1 + $0x220] ss:$16 sps:$4 sm:$0xff]   ;;  %v10175_v11 = vld [vmem:[%s15288_s1 + $0x228] ss:$16 sps:$4 sm:$0xff]   ;;  %v10180_v12 = vld [vmem:[%s15288_s1 + $0x244] ss:$16 sps:$4 sm:$0xff]  }
  0x1a   :  { %v10183_v13 = vld [vmem:[%s15288_s1 + $0x24c] ss:$16 sps:$4 sm:$0xff]   ;;  %v10178_v14 = vld [vmem:[%s15288_s1 + $0x240] ss:$16 sps:$4 sm:$0xff]   ;;  %v10181_v15 = vld [vmem:[%s15288_s1 + $0x248] ss:$16 sps:$4 sm:$0xff]  }
  0x1b   :  { %6569 = vmatpush1.bf16.msra.mxu0 %v10110_v26  ;;  %7417 = vmatpush1.bf16.msra.mxu1 %v10111_v27  ;;  %v10186_v16 = vld [vmem:[%s15288_s1 + $0x264] ss:$16 sps:$4 sm:$0xff]   ;;  %v10189_v17 = vld [vmem:[%s15288_s1 + $0x26c] ss:$16 sps:$4 sm:$0xff]   ;;  %v10184_v18 = vld [vmem:[%s15288_s1 + $0x260] ss:$16 sps:$4 sm:$0xff]  }
  0x1c   :  { %6570 = vmatprep.subr.bf16.mxu0 %v10112_v28  ;;  %7418 = vmatprep.subr.bf16.mxu1 %v10114_v29  ;;  %v10187_v19 = vld [vmem:[%s15288_s1 + $0x268] ss:$16 sps:$4 sm:$0xff]   ;;  %v10192_v20 = vld [vmem:[%s15288_s1 + $0x284] ss:$16 sps:$4 sm:$0xff]   ;;  %v10195_v21 = vld [vmem:[%s15288_s1 + $0x28c] ss:$16 sps:$4 sm:$0xff]  }
  0x1d   :  { %v10190_v22 = vld [vmem:[%s15288_s1 + $0x280] ss:$16 sps:$4 sm:$0xff]   ;;  %v10193_v23 = vld [vmem:[%s15288_s1 + $0x288] ss:$16 sps:$4 sm:$0xff]   ;;  %v10198_v24 = vld [vmem:[%s15288_s1 + $0x2a4] ss:$16 sps:$4 sm:$0xff]  }
  0x1e   :  { %v10201_v25 = vld [vmem:[%s15288_s1 + $0x2ac] ss:$16 sps:$4 sm:$0xff]   ;;  %v60_v26 = vld [vmem:[%s15289_s0 + $0x100] sm:$0xff]  ;;  %v10217_v46 = vld [vmem:[%s15288_s1 + $0x308] ss:$16 sps:$4 sm:$0xff]  }
  0x1f   :  { %6571 = vmatpush1.bf16.msra.mxu0 %v10116_v30  ;;  %7419 = vmatpush1.bf16.msra.mxu1 %v10117_v31  ;;  %v76_v27 = vld [vmem:[%s15289_s0 + $0x180] sm:$0xff]  ;;  %v10199_v30 = vld [vmem:[%s15288_s1 + $0x2a8] ss:$16 sps:$4 sm:$0xff]  }
  0x20   :  { %6572 = vmatprep.subr.bf16.mxu0 %v10118_v32  ;;  %7420 = vmatprep.subr.bf16.mxu1 %v10120_v33  ;;  %v8754_v28 = vcombine.high %v60_v26, %v76_v27  ;;  %v10196_v29 = vld [vmem:[%s15288_s1 + $0x2a0] ss:$16 sps:$4 sm:$0xff]   ;;  %v8753_v31 = vcombine.low %v60_v26, %v76_v27  ;;  %v10204_v32 = vld [vmem:[%s15288_s1 + $0x2c4] ss:$16 sps:$4 sm:$0xff]   ;;  %v10207_v33 = vld [vmem:[%s15288_s1 + $0x2cc] ss:$16 sps:$4 sm:$0xff]  }
  0x21   :  { %v10222_v47 = vld [vmem:[%s15288_s1 + $0x324] ss:$16 sps:$4 sm:$0xff]   ;;  %v10223_v50 = vld [vmem:[%s15288_s1 + $0x328] ss:$16 sps:$4 sm:$0xff]  }
  0x22   :  { %v12113_v27 = vld [vmem:[%s15289_s0 + $0x90] sm:$0xff] }
  0x23   :  { %6573 = vmatpush1.bf16.msra.mxu0 %v10122_v34  ;;  %7421 = vmatpush1.bf16.msra.mxu1 %v10123_v35  ;;  %v11944_v34 = vld [vmem:[%s15289_s0 + $0x8] sm:$0xff] }
  0x24   :  { %6574 = vmatprep.subr.bf16.mxu0 %v10124_v36  ;;  %7422 = vmatprep.subr.bf16.mxu1 %v10126_v37  ;;  %v11949_v35 = vld [vmem:[%s15289_s0 + $0x88] sm:$0xff]  ;;  %v10202_v36 = vld [vmem:[%s15288_s1 + $0x2c0] ss:$16 sps:$4 sm:$0xff]  }
  0x25   :  { %v10205_v37 = vld [vmem:[%s15288_s1 + $0x2c8] ss:$16 sps:$4 sm:$0xff]  }
  0x27   :  { %6575 = vmatpush1.bf16.msra.mxu0 %v10128_v38  ;;  %7423 = vmatpush1.bf16.msra.mxu1 %v10129_v39  ;;  %v8724_v38 = vcombine.high %v11944_v34, %v11949_v35  ;;  %v10210_v39 = vld [vmem:[%s15288_s1 + $0x2e4] ss:$16 sps:$4 sm:$0xff]  }
  0x28   :  { %6576 = vmatprep.subr.bf16.mxu0 %v10130_v40  ;;  %7424 = vmatprep.subr.bf16.mxu1 %v10132_v41  ;;  %v10213_v40 = vld [vmem:[%s15288_s1 + $0x2ec] ss:$16 sps:$4 sm:$0xff]   ;;  %v10208_v41 = vld [vmem:[%s15288_s1 + $0x2e0] ss:$16 sps:$4 sm:$0xff]  }
  0x2b   :  { %6577 = vmatpush1.bf16.msra.mxu0 %v10134_v42  ;;  %7425 = vmatpush1.bf16.msra.mxu1 %v10135_v43  ;;  %v10211_v42 = vld [vmem:[%s15288_s1 + $0x2e8] ss:$16 sps:$4 sm:$0xff]   ;;  %v10216_v43 = vld [vmem:[%s15288_s1 + $0x304] ss:$16 sps:$4 sm:$0xff]  }
  0x2c   :  { %6578 = vmatprep.subr.bf16.mxu0 %v10136_v44  ;;  %7426 = vmatprep.subr.bf16.mxu1 %v10138_v45  ;;  %v10219_v44 = vld [vmem:[%s15288_s1 + $0x30c] ss:$16 sps:$4 sm:$0xff]   ;;  %v10214_v45 = vld [vmem:[%s15288_s1 + $0x300] ss:$16 sps:$4 sm:$0xff]  }
  0x2f   :  { %6579 = vmatpush1.bf16.msra.mxu0 %v10140_v48  ;;  %7427 = vmatpush1.bf16.msra.mxu1 %v10141_v49  ;;  %v10225_v48 = vld [vmem:[%s15288_s1 + $0x32c] ss:$16 sps:$4 sm:$0xff]   ;;  %v10220_v49 = vld [vmem:[%s15288_s1 + $0x320] ss:$16 sps:$4 sm:$0xff]  }
  0x30   :  { %6580 = vmatprep.subr.bf16.mxu0 %v10142_v51  ;;  %7428 = vmatprep.subr.bf16.mxu1 %v10144_v52  ;;  %v10228_v51 = vld [vmem:[%s15288_s1 + $0x344] ss:$16 sps:$4 sm:$0xff]   ;;  %v10231_v52 = vld [vmem:[%s15288_s1 + $0x34c] ss:$16 sps:$4 sm:$0xff]  }
  0x33   :  { %6581 = vmatpush1.bf16.msra.mxu0 %v10146_v53  ;;  %7429 = vmatpush1.bf16.msra.mxu1 %v10147_v54  ;;  %v10226_v53 = vld [vmem:[%s15288_s1 + $0x340] ss:$16 sps:$4 sm:$0xff]   ;;  %v10229_v54 = vld [vmem:[%s15288_s1 + $0x348] ss:$16 sps:$4 sm:$0xff]  }
  0x34   :  { %6582 = vmatprep.subr.bf16.mxu0 %v10148_v55  ;;  %7430 = vmatprep.subr.bf16.mxu1 %v10150_v56  ;;  %v10234_v55 = vld [vmem:[%s15288_s1 + $0x364] ss:$16 sps:$4 sm:$0xff]   ;;  %v10237_v56 = vld [vmem:[%s15288_s1 + $0x36c] ss:$16 sps:$4 sm:$0xff]  }
  0x37   :  { %6583 = vmatpush1.bf16.msra.mxu0 %v10152_v57  ;;  %7431 = vmatpush1.bf16.msra.mxu1 %v10153_v58  ;;  %v10232_v57 = vld [vmem:[%s15288_s1 + $0x360] ss:$16 sps:$4 sm:$0xff]   ;;  %v10235_v58 = vld [vmem:[%s15288_s1 + $0x368] ss:$16 sps:$4 sm:$0xff]  }
  0x38   :  { %6584 = vmatprep.subr.bf16.mxu0 %v10154_v59  ;;  %7432 = vmatprep.subr.bf16.mxu1 %v10156_v60  ;;  %v10240_v59 = vld [vmem:[%s15288_s1 + $0x384] ss:$16 sps:$4 sm:$0xff]   ;;  %v10243_v60 = vld [vmem:[%s15288_s1 + $0x38c] ss:$16 sps:$4 sm:$0xff]  }
  0x3b   :  { %6585 = vmatpush1.bf16.msra.mxu0 %v10158_v61  ;;  %7433 = vmatpush1.bf16.msra.mxu1 %v10159_v62  ;;  %v10238_v61 = vld [vmem:[%s15288_s1 + $0x380] ss:$16 sps:$4 sm:$0xff]   ;;  %v10241_v62 = vld [vmem:[%s15288_s1 + $0x388] ss:$16 sps:$4 sm:$0xff]  }
  0x3c   :  { %6586 = vmatprep.subr.bf16.mxu0 %v10160_v63  ;;  %7434 = vmatprep.subr.bf16.mxu1 %v10162_v0  ;;  %v10246_v63 = vld [vmem:[%s15288_s1 + $0x3a4] ss:$16 sps:$4 sm:$0xff]   ;;  %v10249_v0 = vld [vmem:[%s15288_s1 + $0x3ac] ss:$16 sps:$4 sm:$0xff]  }
  0x3f   :  { %6587 = vmatpush1.bf16.msra.mxu0 %v10164_v1  ;;  %7435 = vmatpush1.bf16.msra.mxu1 %v10165_v2  ;;  %v10244_v1 = vld [vmem:[%s15288_s1 + $0x3a0] ss:$16 sps:$4 sm:$0xff]   ;;  %v10247_v2 = vld [vmem:[%s15288_s1 + $0x3a8] ss:$16 sps:$4 sm:$0xff]  }
  0x40   :  { %6609 = vmatprep.subr.bf16.mxu0 %v10168_v3  ;;  %7457 = vmatprep.subr.bf16.mxu1 %v10171_v4  ;;  %v10252_v3 = vld [vmem:[%s15288_s1 + $0x3c4] ss:$16 sps:$4 sm:$0xff]   ;;  %v10255_v4 = vld [vmem:[%s15288_s1 + $0x3cc] ss:$16 sps:$4 sm:$0xff]  }
  0x42   :  { %6589 = vmatmul.mubr.bf16.vlgmr.msra.gmra.mrb[0].mxu0 %v8721_v5  ;;  %7437 = vmatmul.mubr.bf16.vlgmr.msra.gmra.mrb[0].mxu1 %v8721_v5  ;;  %v10250_v5 = vld [vmem:[%s15288_s1 + $0x3c0] ss:$16 sps:$4 sm:$0xff]  }
  0x43   :  { %6610 = vmatpush1.bf16.msra.mxu0 %v10166_v6  ;;  %7458 = vmatpush1.bf16.msra.mxu1 %v10169_v7  ;;  %v10253_v6 = vld [vmem:[%s15288_s1 + $0x3c8] ss:$16 sps:$4 sm:$0xff]   ;;  %v10258_v7 = vld [vmem:[%s15288_s1 + $0x3e4] ss:$16 sps:$4 sm:$0xff]  }
  0x44   :  { %6611 = vmatprep.subr.bf16.mxu0 %v10174_v8  ;;  %7459 = vmatprep.subr.bf16.mxu1 %v10177_v9  ;;  %v10261_v8 = vld [vmem:[%s15288_s1 + $0x3ec] ss:$16 sps:$4 sm:$0xff]   ;;  %v10256_v9 = vld [vmem:[%s15288_s1 + $0x3e0] ss:$16 sps:$4 sm:$0xff]  }
  0x45   :  { %6598 = vmatprep.mubr.bf16.mxu0 %v8754_v28  ;;  %7446 = vmatprep.mubr.bf16.mxu1 %v8754_v28  ;;  %v10274_v28 = vld [vmem:[%s15288_s1 + $0x440] ss:$16 sps:$4 sm:$0xff]  }
  0x47   :  { %6612 = vmatpush1.bf16.msra.mxu0 %v10172_v10  ;;  %7460 = vmatpush1.bf16.msra.mxu1 %v10175_v11  ;;  %v10259_v10 = vld [vmem:[%s15288_s1 + $0x3e8] ss:$16 sps:$4 sm:$0xff]   ;;  %v10264_v11 = vld [vmem:[%s15288_s1 + $0x404] ss:$16 sps:$4 sm:$0xff]  }
  0x48   :  { %6613 = vmatprep.subr.bf16.mxu0 %v10180_v12  ;;  %7461 = vmatprep.subr.bf16.mxu1 %v10183_v13  ;;  %v10267_v12 = vld [vmem:[%s15288_s1 + $0x40c] ss:$16 sps:$4 sm:$0xff]   ;;  %v10262_v13 = vld [vmem:[%s15288_s1 + $0x400] ss:$16 sps:$4 sm:$0xff]  }
  0x4a   :  { %6599 = vmatmul.mubr.bf16.gmra.mrb[4].mxu0 %v8753_v31  ;;  %7447 = vmatmul.mubr.bf16.gmra.mrb[4].mxu1 %v8753_v31  ;;  %v10285_v31 = vld [vmem:[%s15288_s1 + $0x46c] ss:$16 sps:$4 sm:$0xff]  }
  0x4b   :  { %6614 = vmatpush1.bf16.msra.mxu0 %v10178_v14  ;;  %7462 = vmatpush1.bf16.msra.mxu1 %v10181_v15  ;;  %v10265_v14 = vld [vmem:[%s15288_s1 + $0x408] ss:$16 sps:$4 sm:$0xff]   ;;  %v8723_v15 = vcombine.low %v11944_v34, %v11949_v35  ;;  %v10288_v35 = vld [vmem:[%s15288_s1 + $0x484] ss:$16 sps:$4 sm:$0xff]  }
  0x4c   :  { %6615 = vmatprep.subr.bf16.mxu0 %v10186_v16  ;;  %7463 = vmatprep.subr.bf16.mxu1 %v10189_v17  ;;  %v61_v16 = vld [vmem:[%s15289_s0 + $0x108] sm:$0xff] }
  0x4d   :  { %6641 = vmatprep.mubr.bf16.mxu0 %v8724_v38  ;;  %7489 = vmatprep.mubr.bf16.mxu1 %v8724_v38  ;;  %v77_v17 = vld [vmem:[%s15289_s0 + $0x188] sm:$0xff] }
  0x4e   :  { %v8755_v26 = vcombine.low %v61_v16, %v77_v17  ;;  %v10283_v34 = vld [vmem:[%s15288_s1 + $0x468] ss:$16 sps:$4 sm:$0xff]  }
  0x4f   :  { %6616 = vmatpush1.bf16.msra.mxu0 %v10184_v18  ;;  %7464 = vmatpush1.bf16.msra.mxu1 %v10187_v19  ;;  %v10270_v18 = vld [vmem:[%s15288_s1 + $0x424] ss:$16 sps:$4 sm:$0xff]   ;;  %v10273_v19 = vld [vmem:[%s15288_s1 + $0x42c] ss:$16 sps:$4 sm:$0xff]   ;;  %v10289_v38 = vld [vmem:[%s15288_s1 + $0x488] ss:$16 sps:$4 sm:$0xff]  }
  0x50   :  { %6617 = vmatprep.subr.bf16.mxu0 %v10192_v20  ;;  %7465 = vmatprep.subr.bf16.mxu1 %v10195_v21  ;;  %v8756_v20 = vcombine.high %v61_v16, %v77_v17  ;;  %v10268_v21 = vld [vmem:[%s15288_s1 + $0x420] ss:$16 sps:$4 sm:$0xff]   ;;  %v10357_v16 = vld [vmem:[%s15288_s1 + $0x5ec] ss:$16 sps:$4 sm:$0xff]  }
  0x51   :  { %v10352_v17 = vld [vmem:[%s15288_s1 + $0x5e0] ss:$16 sps:$4 sm:$0xff]  }
  0x53   :  { %6618 = vmatpush1.bf16.msra.mxu0 %v10190_v22  ;;  %7466 = vmatpush1.bf16.msra.mxu1 %v10193_v23  ;;  %v10271_v22 = vld [vmem:[%s15288_s1 + $0x428] ss:$16 sps:$4 sm:$0xff]   ;;  %v10276_v23 = vld [vmem:[%s15288_s1 + $0x444] ss:$16 sps:$4 sm:$0xff]  }
  0x54   :  { %6619 = vmatprep.subr.bf16.mxu0 %v10198_v24  ;;  %7467 = vmatprep.subr.bf16.mxu1 %v10201_v25  ;;  %v10279_v24 = vld [vmem:[%s15288_s1 + $0x44c] ss:$16 sps:$4 sm:$0xff]   ;;  %v12108_v25 = vld [vmem:[%s15289_s0 + $0x10] sm:$0xff] }
  0x57   :  { %6620 = vmatpush1.bf16.msra.mxu0 %v10196_v29  ;;  %7468 = vmatpush1.bf16.msra.mxu1 %v10199_v30  ;;  %v10277_v29 = vld [vmem:[%s15288_s1 + $0x448] ss:$16 sps:$4 sm:$0xff]   ;;  %v10282_v30 = vld [vmem:[%s15288_s1 + $0x464] ss:$16 sps:$4 sm:$0xff]  }
  0x58   :  { %6621 = vmatprep.subr.bf16.mxu0 %v10204_v32  ;;  %7469 = vmatprep.subr.bf16.mxu1 %v10207_v33  ;;  %v8726_v32 = vcombine.high %v12108_v25, %v12113_v27  ;;  %v10280_v33 = vld [vmem:[%s15288_s1 + $0x460] ss:$16 sps:$4 sm:$0xff]  }
  0x5b   :  { %6622 = vmatpush1.bf16.msra.mxu0 %v10202_v36  ;;  %7470 = vmatpush1.bf16.msra.mxu1 %v10205_v37  ;;  %v10291_v36 = vld [vmem:[%s15288_s1 + $0x48c] ss:$16 sps:$4 sm:$0xff]   ;;  %v10286_v37 = vld [vmem:[%s15288_s1 + $0x480] ss:$16 sps:$4 sm:$0xff]  }
  0x5c   :  { %6623 = vmatprep.subr.bf16.mxu0 %v10210_v39  ;;  %7471 = vmatprep.subr.bf16.mxu1 %v10213_v40  ;;  %v10294_v39 = vld [vmem:[%s15288_s1 + $0x4a4] ss:$16 sps:$4 sm:$0xff]   ;;  %v10297_v40 = vld [vmem:[%s15288_s1 + $0x4ac] ss:$16 sps:$4 sm:$0xff]  }
  0x5f   :  { %6624 = vmatpush1.bf16.msra.mxu0 %v10208_v41  ;;  %7472 = vmatpush1.bf16.msra.mxu1 %v10211_v42  ;;  %v10292_v41 = vld [vmem:[%s15288_s1 + $0x4a0] ss:$16 sps:$4 sm:$0xff]   ;;  %v10295_v42 = vld [vmem:[%s15288_s1 + $0x4a8] ss:$16 sps:$4 sm:$0xff]  }
  0x60   :  { %6625 = vmatprep.subr.bf16.mxu0 %v10216_v43  ;;  %7473 = vmatprep.subr.bf16.mxu1 %v10219_v44  ;;  %v10300_v43 = vld [vmem:[%s15288_s1 + $0x4c4] ss:$16 sps:$4 sm:$0xff]   ;;  %v10303_v44 = vld [vmem:[%s15288_s1 + $0x4cc] ss:$16 sps:$4 sm:$0xff]  }
  0x63   :  { %6626 = vmatpush1.bf16.msra.mxu0 %v10214_v45  ;;  %7474 = vmatpush1.bf16.msra.mxu1 %v10217_v46  ;;  %v10298_v45 = vld [vmem:[%s15288_s1 + $0x4c0] ss:$16 sps:$4 sm:$0xff]   ;;  %v10301_v46 = vld [vmem:[%s15288_s1 + $0x4c8] ss:$16 sps:$4 sm:$0xff]  }
  0x64   :  { %6627 = vmatprep.subr.bf16.mxu0 %v10222_v47  ;;  %7475 = vmatprep.subr.bf16.mxu1 %v10225_v48  ;;  %v10306_v47 = vld [vmem:[%s15288_s1 + $0x4e4] ss:$16 sps:$4 sm:$0xff]   ;;  %v10309_v48 = vld [vmem:[%s15288_s1 + $0x4ec] ss:$16 sps:$4 sm:$0xff]  }
  0x67   :  { %6628 = vmatpush1.bf16.msra.mxu0 %v10220_v49  ;;  %7476 = vmatpush1.bf16.msra.mxu1 %v10223_v50  ;;  %v10304_v49 = vld [vmem:[%s15288_s1 + $0x4e0] ss:$16 sps:$4 sm:$0xff]   ;;  %v10307_v50 = vld [vmem:[%s15288_s1 + $0x4e8] ss:$16 sps:$4 sm:$0xff]  }
  0x68   :  { %6629 = vmatprep.subr.bf16.mxu0 %v10228_v51  ;;  %7477 = vmatprep.subr.bf16.mxu1 %v10231_v52  ;;  %v10312_v51 = vld [vmem:[%s15288_s1 + $0x504] ss:$16 sps:$4 sm:$0xff]   ;;  %v10315_v52 = vld [vmem:[%s15288_s1 + $0x50c] ss:$16 sps:$4 sm:$0xff]  }
  0x6b   :  { %6630 = vmatpush1.bf16.msra.mxu0 %v10226_v53  ;;  %7478 = vmatpush1.bf16.msra.mxu1 %v10229_v54  ;;  %v10310_v53 = vld [vmem:[%s15288_s1 + $0x500] ss:$16 sps:$4 sm:$0xff]   ;;  %v10313_v54 = vld [vmem:[%s15288_s1 + $0x508] ss:$16 sps:$4 sm:$0xff]  }
  0x6c   :  { %6631 = vmatprep.subr.bf16.mxu0 %v10234_v55  ;;  %7479 = vmatprep.subr.bf16.mxu1 %v10237_v56  ;;  %v10318_v55 = vld [vmem:[%s15288_s1 + $0x524] ss:$16 sps:$4 sm:$0xff]   ;;  %v10321_v56 = vld [vmem:[%s15288_s1 + $0x52c] ss:$16 sps:$4 sm:$0xff]  }
  0x6f   :  { %6632 = vmatpush1.bf16.msra.mxu0 %v10232_v57  ;;  %7480 = vmatpush1.bf16.msra.mxu1 %v10235_v58  ;;  %v10316_v57 = vld [vmem:[%s15288_s1 + $0x520] ss:$16 sps:$4 sm:$0xff]   ;;  %v10319_v58 = vld [vmem:[%s15288_s1 + $0x528] ss:$16 sps:$4 sm:$0xff]  }
  0x70   :  { %6633 = vmatprep.subr.bf16.mxu0 %v10240_v59  ;;  %7481 = vmatprep.subr.bf16.mxu1 %v10243_v60  ;;  %v10324_v59 = vld [vmem:[%s15288_s1 + $0x544] ss:$16 sps:$4 sm:$0xff]   ;;  %v10327_v60 = vld [vmem:[%s15288_s1 + $0x54c] ss:$16 sps:$4 sm:$0xff]  }
  0x73   :  { %6634 = vmatpush1.bf16.msra.mxu0 %v10238_v61  ;;  %7482 = vmatpush1.bf16.msra.mxu1 %v10241_v62  ;;  %v10322_v61 = vld [vmem:[%s15288_s1 + $0x540] ss:$16 sps:$4 sm:$0xff]   ;;  %v10325_v62 = vld [vmem:[%s15288_s1 + $0x548] ss:$16 sps:$4 sm:$0xff]  }
  0x74   :  { %6635 = vmatprep.subr.bf16.mxu0 %v10246_v63  ;;  %7483 = vmatprep.subr.bf16.mxu1 %v10249_v0  ;;  %v10330_v63 = vld [vmem:[%s15288_s1 + $0x564] ss:$16 sps:$4 sm:$0xff]   ;;  %v10333_v0 = vld [vmem:[%s15288_s1 + $0x56c] ss:$16 sps:$4 sm:$0xff]  }
  0x77   :  { %6636 = vmatpush1.bf16.msra.mxu0 %v10244_v1  ;;  %7484 = vmatpush1.bf16.msra.mxu1 %v10247_v2  ;;  %v10328_v1 = vld [vmem:[%s15288_s1 + $0x560] ss:$16 sps:$4 sm:$0xff]   ;;  %v10331_v2 = vld [vmem:[%s15288_s1 + $0x568] ss:$16 sps:$4 sm:$0xff]  }
  0x78   :  { %6637 = vmatprep.subr.bf16.mxu0 %v10252_v3  ;;  %7485 = vmatprep.subr.bf16.mxu1 %v10255_v4  ;;  %v10336_v3 = vld [vmem:[%s15288_s1 + $0x584] ss:$16 sps:$4 sm:$0xff]   ;;  %v10339_v4 = vld [vmem:[%s15288_s1 + $0x58c] ss:$16 sps:$4 sm:$0xff]  }
  0x7b   :  { %6638 = vmatpush1.bf16.msra.mxu0 %v10250_v5  ;;  %7486 = vmatpush1.bf16.msra.mxu1 %v10253_v6  ;;  %v10334_v5 = vld [vmem:[%s15288_s1 + $0x580] ss:$16 sps:$4 sm:$0xff]   ;;  %v10337_v6 = vld [vmem:[%s15288_s1 + $0x588] ss:$16 sps:$4 sm:$0xff]  }
  0x7c   :  { %6639 = vmatprep.subr.bf16.mxu0 %v10258_v7  ;;  %7487 = vmatprep.subr.bf16.mxu1 %v10261_v8  ;;  %v10342_v7 = vld [vmem:[%s15288_s1 + $0x5a4] ss:$16 sps:$4 sm:$0xff]   ;;  %v10345_v8 = vld [vmem:[%s15288_s1 + $0x5ac] ss:$16 sps:$4 sm:$0xff]  }
  0x7f   :  { %6640 = vmatpush1.bf16.msra.mxu0 %v10256_v9  ;;  %7488 = vmatpush1.bf16.msra.mxu1 %v10259_v10  ;;  %v10340_v9 = vld [vmem:[%s15288_s1 + $0x5a0] ss:$16 sps:$4 sm:$0xff]   ;;  %v10343_v10 = vld [vmem:[%s15288_s1 + $0x5a8] ss:$16 sps:$4 sm:$0xff]  }
  0x80   :  { %6662 = vmatprep.subr.bf16.mxu0 %v10264_v11  ;;  %7510 = vmatprep.subr.bf16.mxu1 %v10267_v12  ;;  %v10348_v11 = vld [vmem:[%s15288_s1 + $0x5c4] ss:$16 sps:$4 sm:$0xff]   ;;  %v10351_v12 = vld [vmem:[%s15288_s1 + $0x5cc] ss:$16 sps:$4 sm:$0xff]  }
  0x82   :  { %6642 = vmatmul.mubr.bf16.vlgmr.msra.gmra.mrb[0].mxu0 %v8723_v15  ;;  %7490 = vmatmul.mubr.bf16.vlgmr.msra.gmra.mrb[0].mxu1 %v8723_v15  ;;  %v10354_v15 = vld [vmem:[%s15288_s1 + $0x5e4] ss:$16 sps:$4 sm:$0xff]  }
  0x83   :  { %6663 = vmatpush1.bf16.msra.mxu0 %v10262_v13  ;;  %7511 = vmatpush1.bf16.msra.mxu1 %v10265_v14  ;;  %v10346_v13 = vld [vmem:[%s15288_s1 + $0x5c0] ss:$16 sps:$4 sm:$0xff]   ;;  %v10349_v14 = vld [vmem:[%s15288_s1 + $0x5c8] ss:$16 sps:$4 sm:$0xff]  }
  0x84   :  { %6664 = vmatprep.subr.bf16.mxu0 %v10270_v18  ;;  %7512 = vmatprep.subr.bf16.mxu1 %v10273_v19  ;;  %v10355_v18 = vld [vmem:[%s15288_s1 + $0x5e8] ss:$16 sps:$4 sm:$0xff]   ;;  %v10360_v19 = vld [vmem:[%s15288_s1 + $0x604] ss:$16 sps:$4 sm:$0xff]  }
  0x85   :  { %6651 = vmatprep.mubr.bf16.mxu0 %v8756_v20  ;;  %7499 = vmatprep.mubr.bf16.mxu1 %v8756_v20  ;;  %v10363_v20 = vld [vmem:[%s15288_s1 + $0x60c] ss:$16 sps:$4 sm:$0xff]  }
  0x87   :  { %6665 = vmatpush1.bf16.msra.mxu0 %v10268_v21  ;;  %7513 = vmatpush1.bf16.msra.mxu1 %v10271_v22  ;;  %v62_v21 = vld [vmem:[%s15289_s0 + $0x110] sm:$0xff]  ;;  %v8725_v22 = vcombine.low %v12108_v25, %v12113_v27  ;;  %v10369_v27 = vld [vmem:[%s15288_s1 + $0x62c] ss:$16 sps:$4 sm:$0xff]  }
  0x88   :  { %6666 = vmatprep.subr.bf16.mxu0 %v10276_v23  ;;  %7514 = vmatprep.subr.bf16.mxu1 %v10279_v24  ;;  %v78_v23 = vld [vmem:[%s15289_s0 + $0x190] sm:$0xff] }
  0x89   :  { %v10358_v24 = vld [vmem:[%s15288_s1 + $0x600] ss:$16 sps:$4 sm:$0xff]   ;;  %v10366_v25 = vld [vmem:[%s15288_s1 + $0x624] ss:$16 sps:$4 sm:$0xff]  }
  0x8a   :  { %6652 = vmatmul.mubr.bf16.gmra.mrb[4].mxu0 %v8755_v26  ;;  %7500 = vmatmul.mubr.bf16.gmra.mrb[4].mxu1 %v8755_v26  ;;  %v10361_v26 = vld [vmem:[%s15288_s1 + $0x608] ss:$16 sps:$4 sm:$0xff]  }
  0x8b   :  { %6667 = vmatpush1.bf16.msra.mxu0 %v10274_v28  ;;  %7515 = vmatpush1.bf16.msra.mxu1 %v10277_v29  ;;  %v8758_v28 = vcombine.high %v62_v21, %v78_v23  ;;  %v10364_v29 = vld [vmem:[%s15288_s1 + $0x620] ss:$16 sps:$4 sm:$0xff]  }
  0x8c   :  { %6668 = vmatprep.subr.bf16.mxu0 %v10282_v30  ;;  %7516 = vmatprep.subr.bf16.mxu1 %v10285_v31  ;;  %v10367_v30 = vld [vmem:[%s15288_s1 + $0x628] ss:$16 sps:$4 sm:$0xff]   ;;  %v10372_v31 = vld [vmem:[%s15288_s1 + $0x644] ss:$16 sps:$4 sm:$0xff]  }
  0x8d   :  { %6694 = vmatprep.mubr.bf16.mxu0 %v8726_v32  ;;  %7542 = vmatprep.mubr.bf16.mxu1 %v8726_v32  ;;  %v10375_v32 = vld [vmem:[%s15288_s1 + $0x64c] ss:$16 sps:$4 sm:$0xff]  }
  0x8f   :  { %6669 = vmatpush1.bf16.msra.mxu0 %v10280_v33  ;;  %7517 = vmatpush1.bf16.msra.mxu1 %v10283_v34  ;;  %v12320_v33 = vld [vmem:[%s15289_s0 + $0x18] sm:$0xff]  ;;  %v8757_v34 = vcombine.low %v62_v21, %v78_v23  ;;  %v10442_v21 = vld [vmem:[%s15288_s1 + $0x7c0] ss:$16 sps:$4 sm:$0xff]   ;;  %v10450_v23 = vld [vmem:[%s15288_s1 + $0x7e4] ss:$16 sps:$4 sm:$0xff]  }
  0x90   :  { %6670 = vmatprep.subr.bf16.mxu0 %v10288_v35  ;;  %7518 = vmatprep.subr.bf16.mxu1 %v10291_v36  ;;  %v12325_v35 = vld [vmem:[%s15289_s0 + $0x98] sm:$0xff]  ;;  %v10370_v36 = vld [vmem:[%s15288_s1 + $0x640] ss:$16 sps:$4 sm:$0xff]  }
  0x93   :  { %6671 = vmatpush1.bf16.msra.mxu0 %v10286_v37  ;;  %7519 = vmatpush1.bf16.msra.mxu1 %v10289_v38  ;;  %v10373_v37 = vld [vmem:[%s15288_s1 + $0x648] ss:$16 sps:$4 sm:$0xff]   ;;  %v10378_v38 = vld [vmem:[%s15288_s1 + $0x664] ss:$16 sps:$4 sm:$0xff]  }
  0x94   :  { %6672 = vmatprep.subr.bf16.mxu0 %v10294_v39  ;;  %7520 = vmatprep.subr.bf16.mxu1 %v10297_v40  ;;  %v10381_v39 = vld [vmem:[%s15288_s1 + $0x66c] ss:$16 sps:$4 sm:$0xff]   ;;  %v8728_v40 = vcombine.high %v12320_v33, %v12325_v35 }
  0x97   :  { %6673 = vmatpush1.bf16.msra.mxu0 %v10292_v41  ;;  %7521 = vmatpush1.bf16.msra.mxu1 %v10295_v42  ;;  %v10376_v41 = vld [vmem:[%s15288_s1 + $0x660] ss:$16 sps:$4 sm:$0xff]   ;;  %v10379_v42 = vld [vmem:[%s15288_s1 + $0x668] ss:$16 sps:$4 sm:$0xff]  }
  0x98   :  { %6674 = vmatprep.subr.bf16.mxu0 %v10300_v43  ;;  %7522 = vmatprep.subr.bf16.mxu1 %v10303_v44  ;;  %v10384_v43 = vld [vmem:[%s15288_s1 + $0x684] ss:$16 sps:$4 sm:$0xff]   ;;  %v10387_v44 = vld [vmem:[%s15288_s1 + $0x68c] ss:$16 sps:$4 sm:$0xff]  }
  0x9b   :  { %6675 = vmatpush1.bf16.msra.mxu0 %v10298_v45  ;;  %7523 = vmatpush1.bf16.msra.mxu1 %v10301_v46  ;;  %v10382_v45 = vld [vmem:[%s15288_s1 + $0x680] ss:$16 sps:$4 sm:$0xff]   ;;  %v10385_v46 = vld [vmem:[%s15288_s1 + $0x688] ss:$16 sps:$4 sm:$0xff]  }
  0x9c   :  { %6676 = vmatprep.subr.bf16.mxu0 %v10306_v47  ;;  %7524 = vmatprep.subr.bf16.mxu1 %v10309_v48  ;;  %v10390_v47 = vld [vmem:[%s15288_s1 + $0x6a4] ss:$16 sps:$4 sm:$0xff]   ;;  %v10393_v48 = vld [vmem:[%s15288_s1 + $0x6ac] ss:$16 sps:$4 sm:$0xff]  }
  0x9f   :  { %6677 = vmatpush1.bf16.msra.mxu0 %v10304_v49  ;;  %7525 = vmatpush1.bf16.msra.mxu1 %v10307_v50  ;;  %v10388_v49 = vld [vmem:[%s15288_s1 + $0x6a0] ss:$16 sps:$4 sm:$0xff]   ;;  %v10391_v50 = vld [vmem:[%s15288_s1 + $0x6a8] ss:$16 sps:$4 sm:$0xff]  }
  0xa0   :  { %6678 = vmatprep.subr.bf16.mxu0 %v10312_v51  ;;  %7526 = vmatprep.subr.bf16.mxu1 %v10315_v52  ;;  %v10396_v51 = vld [vmem:[%s15288_s1 + $0x6c4] ss:$16 sps:$4 sm:$0xff]   ;;  %v10399_v52 = vld [vmem:[%s15288_s1 + $0x6cc] ss:$16 sps:$4 sm:$0xff]  }
  0xa3   :  { %6679 = vmatpush1.bf16.msra.mxu0 %v10310_v53  ;;  %7527 = vmatpush1.bf16.msra.mxu1 %v10313_v54  ;;  %v10394_v53 = vld [vmem:[%s15288_s1 + $0x6c0] ss:$16 sps:$4 sm:$0xff]   ;;  %v10397_v54 = vld [vmem:[%s15288_s1 + $0x6c8] ss:$16 sps:$4 sm:$0xff]  }
  0xa4   :  { %6680 = vmatprep.subr.bf16.mxu0 %v10318_v55  ;;  %7528 = vmatprep.subr.bf16.mxu1 %v10321_v56  ;;  %v10402_v55 = vld [vmem:[%s15288_s1 + $0x6e4] ss:$16 sps:$4 sm:$0xff]   ;;  %v10405_v56 = vld [vmem:[%s15288_s1 + $0x6ec] ss:$16 sps:$4 sm:$0xff]  }
  0xa7   :  { %6681 = vmatpush1.bf16.msra.mxu0 %v10316_v57  ;;  %7529 = vmatpush1.bf16.msra.mxu1 %v10319_v58  ;;  %v10400_v57 = vld [vmem:[%s15288_s1 + $0x6e0] ss:$16 sps:$4 sm:$0xff]   ;;  %v10403_v58 = vld [vmem:[%s15288_s1 + $0x6e8] ss:$16 sps:$4 sm:$0xff]  }
  0xa8   :  { %6682 = vmatprep.subr.bf16.mxu0 %v10324_v59  ;;  %7530 = vmatprep.subr.bf16.mxu1 %v10327_v60  ;;  %v10408_v59 = vld [vmem:[%s15288_s1 + $0x704] ss:$16 sps:$4 sm:$0xff]   ;;  %v10411_v60 = vld [vmem:[%s15288_s1 + $0x70c] ss:$16 sps:$4 sm:$0xff]  }
  0xab   :  { %6683 = vmatpush1.bf16.msra.mxu0 %v10322_v61  ;;  %7531 = vmatpush1.bf16.msra.mxu1 %v10325_v62  ;;  %v10406_v61 = vld [vmem:[%s15288_s1 + $0x700] ss:$16 sps:$4 sm:$0xff]   ;;  %v10409_v62 = vld [vmem:[%s15288_s1 + $0x708] ss:$16 sps:$4 sm:$0xff]  }
  0xac   :  { %6684 = vmatprep.subr.bf16.mxu0 %v10330_v63  ;;  %7532 = vmatprep.subr.bf16.mxu1 %v10333_v0  ;;  %v10414_v63 = vld [vmem:[%s15288_s1 + $0x724] ss:$16 sps:$4 sm:$0xff]   ;;  %v10417_v0 = vld [vmem:[%s15288_s1 + $0x72c] ss:$16 sps:$4 sm:$0xff]  }
  0xaf   :  { %6685 = vmatpush1.bf16.msra.mxu0 %v10328_v1  ;;  %7533 = vmatpush1.bf16.msra.mxu1 %v10331_v2  ;;  %v10412_v1 = vld [vmem:[%s15288_s1 + $0x720] ss:$16 sps:$4 sm:$0xff]   ;;  %v10415_v2 = vld [vmem:[%s15288_s1 + $0x728] ss:$16 sps:$4 sm:$0xff]  }
  0xb0   :  { %6686 = vmatprep.subr.bf16.mxu0 %v10336_v3  ;;  %7534 = vmatprep.subr.bf16.mxu1 %v10339_v4  ;;  %v10420_v3 = vld [vmem:[%s15288_s1 + $0x744] ss:$16 sps:$4 sm:$0xff]   ;;  %v10423_v4 = vld [vmem:[%s15288_s1 + $0x74c] ss:$16 sps:$4 sm:$0xff]  }
  0xb3   :  { %6687 = vmatpush1.bf16.msra.mxu0 %v10334_v5  ;;  %7535 = vmatpush1.bf16.msra.mxu1 %v10337_v6  ;;  %v10418_v5 = vld [vmem:[%s15288_s1 + $0x740] ss:$16 sps:$4 sm:$0xff]   ;;  %v10421_v6 = vld [vmem:[%s15288_s1 + $0x748] ss:$16 sps:$4 sm:$0xff]  }
  0xb4   :  { %6688 = vmatprep.subr.bf16.mxu0 %v10342_v7  ;;  %7536 = vmatprep.subr.bf16.mxu1 %v10345_v8  ;;  %v10426_v7 = vld [vmem:[%s15288_s1 + $0x764] ss:$16 sps:$4 sm:$0xff]   ;;  %v10429_v8 = vld [vmem:[%s15288_s1 + $0x76c] ss:$16 sps:$4 sm:$0xff]  }
  0xb7   :  { %6689 = vmatpush1.bf16.msra.mxu0 %v10340_v9  ;;  %7537 = vmatpush1.bf16.msra.mxu1 %v10343_v10  ;;  %v10424_v9 = vld [vmem:[%s15288_s1 + $0x760] ss:$16 sps:$4 sm:$0xff]   ;;  %v10427_v10 = vld [vmem:[%s15288_s1 + $0x768] ss:$16 sps:$4 sm:$0xff]  }
  0xb8   :  { %6690 = vmatprep.subr.bf16.mxu0 %v10348_v11  ;;  %7538 = vmatprep.subr.bf16.mxu1 %v10351_v12  ;;  %v10432_v11 = vld [vmem:[%s15288_s1 + $0x784] ss:$16 sps:$4 sm:$0xff]   ;;  %v10435_v12 = vld [vmem:[%s15288_s1 + $0x78c] ss:$16 sps:$4 sm:$0xff]  }
  0xbb   :  { %6691 = vmatpush1.bf16.msra.mxu0 %v10346_v13  ;;  %7539 = vmatpush1.bf16.msra.mxu1 %v10349_v14  ;;  %v10430_v13 = vld [vmem:[%s15288_s1 + $0x780] ss:$16 sps:$4 sm:$0xff]   ;;  %v10433_v14 = vld [vmem:[%s15288_s1 + $0x788] ss:$16 sps:$4 sm:$0xff]  }
  0xbc   :  { %6692 = vmatprep.subr.bf16.mxu0 %v10354_v15  ;;  %7540 = vmatprep.subr.bf16.mxu1 %v10357_v16  ;;  %v10438_v15 = vld [vmem:[%s15288_s1 + $0x7a4] ss:$16 sps:$4 sm:$0xff]   ;;  %v10441_v16 = vld [vmem:[%s15288_s1 + $0x7ac] ss:$16 sps:$4 sm:$0xff]  }
  0xbf   :  { %6693 = vmatpush1.bf16.msra.mxu0 %v10352_v17  ;;  %7541 = vmatpush1.bf16.msra.mxu1 %v10355_v18  ;;  %v10436_v17 = vld [vmem:[%s15288_s1 + $0x7a0] ss:$16 sps:$4 sm:$0xff]   ;;  %v10439_v18 = vld [vmem:[%s15288_s1 + $0x7a8] ss:$16 sps:$4 sm:$0xff]  }
  0xc0   :  { %6715 = vmatprep.subr.bf16.mxu0 %v10360_v19  ;;  %7563 = vmatprep.subr.bf16.mxu1 %v10363_v20  ;;  %v10444_v19 = vld [vmem:[%s15288_s1 + $0x7c4] ss:$16 sps:$4 sm:$0xff]   ;;  %v10447_v20 = vld [vmem:[%s15288_s1 + $0x7cc] ss:$16 sps:$4 sm:$0xff]  }
  0xc2   :  { %6695 = vmatmul.mubr.bf16.vlgmr.msra.gmra.mrb[0].mxu0 %v8725_v22  ;;  %7543 = vmatmul.mubr.bf16.vlgmr.msra.gmra.mrb[0].mxu1 %v8725_v22  ;;  %v10445_v22 = vld [vmem:[%s15288_s1 + $0x7c8] ss:$16 sps:$4 sm:$0xff]  }
  0xc3   :  { %6716 = vmatpush1.bf16.msra.mxu0 %v10358_v24  ;;  %7564 = vmatpush1.bf16.msra.mxu1 %v10361_v26  ;;  %v10453_v24 = vld [vmem:[%s15288_s1 + $0x7ec] ss:$16 sps:$4 sm:$0xff]   ;;  %v10448_v26 = vld [vmem:[%s15288_s1 + $0x7e0] ss:$16 sps:$4 sm:$0xff]  }
  0xc4   :  { %6717 = vmatprep.subr.bf16.mxu0 %v10366_v25  ;;  %7565 = vmatprep.subr.bf16.mxu1 %v10369_v27  ;;  %v10451_v25 = vld [vmem:[%s15288_s1 + $0x7e8] ss:$16 sps:$4 sm:$0xff]   ;;  %v10456_v27 = vld [vmem:[%s15288_s1 + $0x804] ss:$16 sps:$4 sm:$0xff]  }
  0xc5   :  { %6704 = vmatprep.mubr.bf16.mxu0 %v8758_v28  ;;  %7552 = vmatprep.mubr.bf16.mxu1 %v8758_v28  ;;  %v10459_v28 = vld [vmem:[%s15288_s1 + $0x80c] ss:$16 sps:$4 sm:$0xff]  }
  0xc7   :  { %6718 = vmatpush1.bf16.msra.mxu0 %v10364_v29  ;;  %7566 = vmatpush1.bf16.msra.mxu1 %v10367_v30  ;;  %v63_v29 = vld [vmem:[%s15289_s0 + $0x118] sm:$0xff]  ;;  %v8727_v30 = vcombine.low %v12320_v33, %v12325_v35 }
  0xc8   :  { %6719 = vmatprep.subr.bf16.mxu0 %v10372_v31  ;;  %7567 = vmatprep.subr.bf16.mxu1 %v10375_v32  ;;  %v79_v31 = vld [vmem:[%s15289_s0 + $0x198] sm:$0xff]  ;;  %v10454_v32 = vld [vmem:[%s15288_s1 + $0x800] ss:$16 sps:$4 sm:$0xff]  }
  0xc9   :  { %v10465_v33 = vld [vmem:[%s15288_s1 + $0x82c] ss:$16 sps:$4 sm:$0xff]   ;;  %v8760_v35 = vcombine.high %v63_v29, %v79_v31 }
  0xca   :  { %6705 = vmatmul.mubr.bf16.gmra.mrb[4].mxu0 %v8757_v34  ;;  %7553 = vmatmul.mubr.bf16.gmra.mrb[4].mxu1 %v8757_v34  ;;  %v10457_v34 = vld [vmem:[%s15288_s1 + $0x808] ss:$16 sps:$4 sm:$0xff]  }
  0xcb   :  { %6720 = vmatpush1.bf16.msra.mxu0 %v10370_v36  ;;  %7568 = vmatpush1.bf16.msra.mxu1 %v10373_v37  ;;  %v10462_v36 = vld [vmem:[%s15288_s1 + $0x824] ss:$16 sps:$4 sm:$0xff]   ;;  %v10460_v37 = vld [vmem:[%s15288_s1 + $0x820] ss:$16 sps:$4 sm:$0xff]  }
  0xcc   :  { %6721 = vmatprep.subr.bf16.mxu0 %v10378_v38  ;;  %7569 = vmatprep.subr.bf16.mxu1 %v10381_v39  ;;  %v10463_v38 = vld [vmem:[%s15288_s1 + $0x828] ss:$16 sps:$4 sm:$0xff]   ;;  %v10468_v39 = vld [vmem:[%s15288_s1 + $0x844] ss:$16 sps:$4 sm:$0xff]  }
  0xcd   :  { %6747 = vmatprep.mubr.bf16.mxu0 %v8728_v40  ;;  %7595 = vmatprep.mubr.bf16.mxu1 %v8728_v40  ;;  %v10471_v40 = vld [vmem:[%s15288_s1 + $0x84c] ss:$16 sps:$4 sm:$0xff]  }
  0xcf   :  { %6722 = vmatpush1.bf16.msra.mxu0 %v10376_v41  ;;  %7570 = vmatpush1.bf16.msra.mxu1 %v10379_v42  ;;  %v12532_v41 = vld [vmem:[%s15289_s0 + $0x20] sm:$0xff]  ;;  %v8759_v42 = vcombine.low %v63_v29, %v79_v31 }
  0xd0   :  { %6723 = vmatprep.subr.bf16.mxu0 %v10384_v43  ;;  %7571 = vmatprep.subr.bf16.mxu1 %v10387_v44  ;;  %v12537_v43 = vld [vmem:[%s15289_s0 + $0xa0] sm:$0xff] }
  0xd1   :  { %v10466_v44 = vld [vmem:[%s15288_s1 + $0x840] ss:$16 sps:$4 sm:$0xff]   ;;  %v10546_v31 = vld [vmem:[%s15288_s1 + $0x9e4] ss:$16 sps:$4 sm:$0xff]  }
  0xd2   :  { %v10538_v29 = vld [vmem:[%s15288_s1 + $0x9c0] ss:$16 sps:$4 sm:$0xff]  }
  0xd3   :  { %6724 = vmatpush1.bf16.msra.mxu0 %v10382_v45  ;;  %7572 = vmatpush1.bf16.msra.mxu1 %v10385_v46  ;;  %v10469_v45 = vld [vmem:[%s15288_s1 + $0x848] ss:$16 sps:$4 sm:$0xff]   ;;  %v10474_v46 = vld [vmem:[%s15288_s1 + $0x864] ss:$16 sps:$4 sm:$0xff]  }
  0xd4   :  { %6725 = vmatprep.subr.bf16.mxu0 %v10390_v47  ;;  %7573 = vmatprep.subr.bf16.mxu1 %v10393_v48  ;;  %v10477_v47 = vld [vmem:[%s15288_s1 + $0x86c] ss:$16 sps:$4 sm:$0xff]   ;;  %v8730_v48 = vcombine.high %v12532_v41, %v12537_v43 }
  0xd7   :  { %6726 = vmatpush1.bf16.msra.mxu0 %v10388_v49  ;;  %7574 = vmatpush1.bf16.msra.mxu1 %v10391_v50  ;;  %v10472_v49 = vld [vmem:[%s15288_s1 + $0x860] ss:$16 sps:$4 sm:$0xff]   ;;  %v10475_v50 = vld [vmem:[%s15288_s1 + $0x868] ss:$16 sps:$4 sm:$0xff]  }
  0xd8   :  { %6727 = vmatprep.subr.bf16.mxu0 %v10396_v51  ;;  %7575 = vmatprep.subr.bf16.mxu1 %v10399_v52  ;;  %v10480_v51 = vld [vmem:[%s15288_s1 + $0x884] ss:$16 sps:$4 sm:$0xff]   ;;  %v10483_v52 = vld [vmem:[%s15288_s1 + $0x88c] ss:$16 sps:$4 sm:$0xff]  }
  0xdb   :  { %6728 = vmatpush1.bf16.msra.mxu0 %v10394_v53  ;;  %7576 = vmatpush1.bf16.msra.mxu1 %v10397_v54  ;;  %v10478_v53 = vld [vmem:[%s15288_s1 + $0x880] ss:$16 sps:$4 sm:$0xff]   ;;  %v10481_v54 = vld [vmem:[%s15288_s1 + $0x888] ss:$16 sps:$4 sm:$0xff]  }
  0xdc   :  { %6729 = vmatprep.subr.bf16.mxu0 %v10402_v55  ;;  %7577 = vmatprep.subr.bf16.mxu1 %v10405_v56  ;;  %v10486_v55 = vld [vmem:[%s15288_s1 + $0x8a4] ss:$16 sps:$4 sm:$0xff]   ;;  %v10489_v56 = vld [vmem:[%s15288_s1 + $0x8ac] ss:$16 sps:$4 sm:$0xff]  }
  0xdf   :  { %6730 = vmatpush1.bf16.msra.mxu0 %v10400_v57  ;;  %7578 = vmatpush1.bf16.msra.mxu1 %v10403_v58  ;;  %v10484_v57 = vld [vmem:[%s15288_s1 + $0x8a0] ss:$16 sps:$4 sm:$0xff]   ;;  %v10487_v58 = vld [vmem:[%s15288_s1 + $0x8a8] ss:$16 sps:$4 sm:$0xff]  }
  0xe0   :  { %6731 = vmatprep.subr.bf16.mxu0 %v10408_v59  ;;  %7579 = vmatprep.subr.bf16.mxu1 %v10411_v60  ;;  %v10492_v59 = vld [vmem:[%s15288_s1 + $0x8c4] ss:$16 sps:$4 sm:$0xff]   ;;  %v10495_v60 = vld [vmem:[%s15288_s1 + $0x8cc] ss:$16 sps:$4 sm:$0xff]  }
  0xe3   :  { %6732 = vmatpush1.bf16.msra.mxu0 %v10406_v61  ;;  %7580 = vmatpush1.bf16.msra.mxu1 %v10409_v62  ;;  %v10490_v61 = vld [vmem:[%s15288_s1 + $0x8c0] ss:$16 sps:$4 sm:$0xff]   ;;  %v10493_v62 = vld [vmem:[%s15288_s1 + $0x8c8] ss:$16 sps:$4 sm:$0xff]  }
  0xe4   :  { %6733 = vmatprep.subr.bf16.mxu0 %v10414_v63  ;;  %7581 = vmatprep.subr.bf16.mxu1 %v10417_v0  ;;  %v10498_v63 = vld [vmem:[%s15288_s1 + $0x8e4] ss:$16 sps:$4 sm:$0xff]   ;;  %v10501_v0 = vld [vmem:[%s15288_s1 + $0x8ec] ss:$16 sps:$4 sm:$0xff]  }
  0xe7   :  { %6734 = vmatpush1.bf16.msra.mxu0 %v10412_v1  ;;  %7582 = vmatpush1.bf16.msra.mxu1 %v10415_v2  ;;  %v10496_v1 = vld [vmem:[%s15288_s1 + $0x8e0] ss:$16 sps:$4 sm:$0xff]   ;;  %v10499_v2 = vld [vmem:[%s15288_s1 + $0x8e8] ss:$16 sps:$4 sm:$0xff]  }
  0xe8   :  { %6735 = vmatprep.subr.bf16.mxu0 %v10420_v3  ;;  %7583 = vmatprep.subr.bf16.mxu1 %v10423_v4  ;;  %v10504_v3 = vld [vmem:[%s15288_s1 + $0x904] ss:$16 sps:$4 sm:$0xff]   ;;  %v10507_v4 = vld [vmem:[%s15288_s1 + $0x90c] ss:$16 sps:$4 sm:$0xff]  }
  0xeb   :  { %6736 = vmatpush1.bf16.msra.mxu0 %v10418_v5  ;;  %7584 = vmatpush1.bf16.msra.mxu1 %v10421_v6  ;;  %v10502_v5 = vld [vmem:[%s15288_s1 + $0x900] ss:$16 sps:$4 sm:$0xff]   ;;  %v10505_v6 = vld [vmem:[%s15288_s1 + $0x908] ss:$16 sps:$4 sm:$0xff]  }
  0xec   :  { %6737 = vmatprep.subr.bf16.mxu0 %v10426_v7  ;;  %7585 = vmatprep.subr.bf16.mxu1 %v10429_v8  ;;  %v10510_v7 = vld [vmem:[%s15288_s1 + $0x924] ss:$16 sps:$4 sm:$0xff]   ;;  %v10513_v8 = vld [vmem:[%s15288_s1 + $0x92c] ss:$16 sps:$4 sm:$0xff]  }
  0xef   :  { %6738 = vmatpush1.bf16.msra.mxu0 %v10424_v9  ;;  %7586 = vmatpush1.bf16.msra.mxu1 %v10427_v10  ;;  %v10508_v9 = vld [vmem:[%s15288_s1 + $0x920] ss:$16 sps:$4 sm:$0xff]   ;;  %v10511_v10 = vld [vmem:[%s15288_s1 + $0x928] ss:$16 sps:$4 sm:$0xff]  }
  0xf0   :  { %6739 = vmatprep.subr.bf16.mxu0 %v10432_v11  ;;  %7587 = vmatprep.subr.bf16.mxu1 %v10435_v12  ;;  %v10516_v11 = vld [vmem:[%s15288_s1 + $0x944] ss:$16 sps:$4 sm:$0xff]   ;;  %v10519_v12 = vld [vmem:[%s15288_s1 + $0x94c] ss:$16 sps:$4 sm:$0xff]  }
  0xf3   :  { %6740 = vmatpush1.bf16.msra.mxu0 %v10430_v13  ;;  %7588 = vmatpush1.bf16.msra.mxu1 %v10433_v14  ;;  %v10514_v13 = vld [vmem:[%s15288_s1 + $0x940] ss:$16 sps:$4 sm:$0xff]   ;;  %v10517_v14 = vld [vmem:[%s15288_s1 + $0x948] ss:$16 sps:$4 sm:$0xff]  }
  0xf4   :  { %6741 = vmatprep.subr.bf16.mxu0 %v10438_v15  ;;  %7589 = vmatprep.subr.bf16.mxu1 %v10441_v16  ;;  %v10522_v15 = vld [vmem:[%s15288_s1 + $0x964] ss:$16 sps:$4 sm:$0xff]   ;;  %v10525_v16 = vld [vmem:[%s15288_s1 + $0x96c] ss:$16 sps:$4 sm:$0xff]  }
  0xf7   :  { %6742 = vmatpush1.bf16.msra.mxu0 %v10436_v17  ;;  %7590 = vmatpush1.bf16.msra.mxu1 %v10439_v18  ;;  %v10520_v17 = vld [vmem:[%s15288_s1 + $0x960] ss:$16 sps:$4 sm:$0xff]   ;;  %v10523_v18 = vld [vmem:[%s15288_s1 + $0x968] ss:$16 sps:$4 sm:$0xff]  }
  0xf8   :  { %6743 = vmatprep.subr.bf16.mxu0 %v10444_v19  ;;  %7591 = vmatprep.subr.bf16.mxu1 %v10447_v20  ;;  %v10528_v19 = vld [vmem:[%s15288_s1 + $0x984] ss:$16 sps:$4 sm:$0xff]   ;;  %v10531_v20 = vld [vmem:[%s15288_s1 + $0x98c] ss:$16 sps:$4 sm:$0xff]  }
  0xfb   :  { %6744 = vmatpush1.bf16.msra.mxu0 %v10442_v21  ;;  %7592 = vmatpush1.bf16.msra.mxu1 %v10445_v22  ;;  %v10526_v21 = vld [vmem:[%s15288_s1 + $0x980] ss:$16 sps:$4 sm:$0xff]   ;;  %v10529_v22 = vld [vmem:[%s15288_s1 + $0x988] ss:$16 sps:$4 sm:$0xff]  }
  0xfc   :  { %6745 = vmatprep.subr.bf16.mxu0 %v10450_v23  ;;  %7593 = vmatprep.subr.bf16.mxu1 %v10453_v24  ;;  %v10534_v23 = vld [vmem:[%s15288_s1 + $0x9a4] ss:$16 sps:$4 sm:$0xff]   ;;  %v10537_v24 = vld [vmem:[%s15288_s1 + $0x9ac] ss:$16 sps:$4 sm:$0xff]  }
  0xff   :  { %6746 = vmatpush1.bf16.msra.mxu0 %v10448_v26  ;;  %7594 = vmatpush1.bf16.msra.mxu1 %v10451_v25  ;;  %v10532_v26 = vld [vmem:[%s15288_s1 + $0x9a0] ss:$16 sps:$4 sm:$0xff]   ;;  %v10535_v25 = vld [vmem:[%s15288_s1 + $0x9a8] ss:$16 sps:$4 sm:$0xff]  }
 0x100   :  { %6768 = vmatprep.subr.bf16.mxu0 %v10456_v27  ;;  %7616 = vmatprep.subr.bf16.mxu1 %v10459_v28  ;;  %v10540_v27 = vld [vmem:[%s15288_s1 + $0x9c4] ss:$16 sps:$4 sm:$0xff]   ;;  %v10543_v28 = vld [vmem:[%s15288_s1 + $0x9cc] ss:$16 sps:$4 sm:$0xff]  }
 0x102   :  { %6748 = vmatmul.mubr.bf16.vlgmr.msra.gmra.mrb[0].mxu0 %v8727_v30  ;;  %7596 = vmatmul.mubr.bf16.vlgmr.msra.gmra.mrb[0].mxu1 %v8727_v30  ;;  %v10541_v30 = vld [vmem:[%s15288_s1 + $0x9c8] ss:$16 sps:$4 sm:$0xff]  }
 0x103   :  { %6769 = vmatpush1.bf16.msra.mxu0 %v10454_v32  ;;  %7617 = vmatpush1.bf16.msra.mxu1 %v10457_v34  ;;  %v10549_v32 = vld [vmem:[%s15288_s1 + $0x9ec] ss:$16 sps:$4 sm:$0xff]   ;;  %v10544_v34 = vld [vmem:[%s15288_s1 + $0x9e0] ss:$16 sps:$4 sm:$0xff]  }
 0x104   :  { %6770 = vmatprep.subr.bf16.mxu0 %v10462_v36  ;;  %7618 = vmatprep.subr.bf16.mxu1 %v10465_v33  ;;  %v10547_v36 = vld [vmem:[%s15288_s1 + $0x9e8] ss:$16 sps:$4 sm:$0xff]   ;;  %v10552_v33 = vld [vmem:[%s15288_s1 + $0xa04] ss:$16 sps:$4 sm:$0xff]  }
 0x105   :  { %6757 = vmatprep.mubr.bf16.mxu0 %v8760_v35  ;;  %7605 = vmatprep.mubr.bf16.mxu1 %v8760_v35  ;;  %v10555_v35 = vld [vmem:[%s15288_s1 + $0xa0c] ss:$16 sps:$4 sm:$0xff]  }
 0x107   :  { %6771 = vmatpush1.bf16.msra.mxu0 %v10460_v37  ;;  %7619 = vmatpush1.bf16.msra.mxu1 %v10463_v38  ;;  %v64_v37 = vld [vmem:[%s15289_s0 + $0x120] sm:$0xff] }
 0x108   :  { %6772 = vmatprep.subr.bf16.mxu0 %v10468_v39  ;;  %7620 = vmatprep.subr.bf16.mxu1 %v10471_v40  ;;  %v80_v38 = vld [vmem:[%s15289_s0 + $0x1a0] sm:$0xff]  ;;  %v8729_v39 = vcombine.low %v12532_v41, %v12537_v43  ;;  %v10561_v41 = vld [vmem:[%s15288_s1 + $0xa2c] ss:$16 sps:$4 sm:$0xff]  }
 0x109   :  { %v10550_v40 = vld [vmem:[%s15288_s1 + $0xa00] ss:$16 sps:$4 sm:$0xff]  }
 0x10a   :  { %6758 = vmatmul.mubr.bf16.gmra.mrb[4].mxu0 %v8759_v42  ;;  %7606 = vmatmul.mubr.bf16.gmra.mrb[4].mxu1 %v8759_v42  ;;  %v10553_v42 = vld [vmem:[%s15288_s1 + $0xa08] ss:$16 sps:$4 sm:$0xff]   ;;  %v10556_v43 = vld [vmem:[%s15288_s1 + $0xa20] ss:$16 sps:$4 sm:$0xff]  }
 0x10b   :  { %6773 = vmatpush1.bf16.msra.mxu0 %v10466_v44  ;;  %7621 = vmatpush1.bf16.msra.mxu1 %v10469_v45  ;;  %v10558_v44 = vld [vmem:[%s15288_s1 + $0xa24] ss:$16 sps:$4 sm:$0xff]   ;;  %v10559_v45 = vld [vmem:[%s15288_s1 + $0xa28] ss:$16 sps:$4 sm:$0xff]  }
 0x10c   :  { %6774 = vmatprep.subr.bf16.mxu0 %v10474_v46  ;;  %7622 = vmatprep.subr.bf16.mxu1 %v10477_v47  ;;  %v8762_v46 = vcombine.high %v64_v37, %v80_v38  ;;  %v10564_v47 = vld [vmem:[%s15288_s1 + $0xa44] ss:$16 sps:$4 sm:$0xff]  }
 0x10d   :  { %6800 = vmatprep.mubr.bf16.mxu0 %v8730_v48  ;;  %7648 = vmatprep.mubr.bf16.mxu1 %v8730_v48  ;;  %v10567_v48 = vld [vmem:[%s15288_s1 + $0xa4c] ss:$16 sps:$4 sm:$0xff]  }
 0x10f   :  { %6775 = vmatpush1.bf16.msra.mxu0 %v10472_v49  ;;  %7623 = vmatpush1.bf16.msra.mxu1 %v10475_v50  ;;  %v12744_v49 = vld [vmem:[%s15289_s0 + $0x28] sm:$0xff] }
 0x110   :  { %6776 = vmatprep.subr.bf16.mxu0 %v10480_v51  ;;  %7624 = vmatprep.subr.bf16.mxu1 %v10483_v52  ;;  %v12749_v50 = vld [vmem:[%s15289_s0 + $0xa8] sm:$0xff]  ;;  %v8761_v51 = vcombine.low %v64_v37, %v80_v38  ;;  %v10562_v52 = vld [vmem:[%s15288_s1 + $0xa40] ss:$16 sps:$4 sm:$0xff]  }
 0x111   :  { %v10634_v37 = vld [vmem:[%s15288_s1 + $0xbc0] ss:$16 sps:$4 sm:$0xff]   ;;  %v10637_v38 = vld [vmem:[%s15288_s1 + $0xbc8] ss:$16 sps:$4 sm:$0xff]  }
 0x113   :  { %6777 = vmatpush1.bf16.msra.mxu0 %v10478_v53  ;;  %7625 = vmatpush1.bf16.msra.mxu1 %v10481_v54  ;;  %v10565_v53 = vld [vmem:[%s15288_s1 + $0xa48] ss:$16 sps:$4 sm:$0xff]   ;;  %v10570_v54 = vld [vmem:[%s15288_s1 + $0xa64] ss:$16 sps:$4 sm:$0xff]  }
 0x114   :  { %6778 = vmatprep.subr.bf16.mxu0 %v10486_v55  ;;  %7626 = vmatprep.subr.bf16.mxu1 %v10489_v56  ;;  %v10573_v55 = vld [vmem:[%s15288_s1 + $0xa6c] ss:$16 sps:$4 sm:$0xff]   ;;  %v8732_v56 = vcombine.high %v12744_v49, %v12749_v50 }
 0x117   :  { %6779 = vmatpush1.bf16.msra.mxu0 %v10484_v57  ;;  %7627 = vmatpush1.bf16.msra.mxu1 %v10487_v58  ;;  %v10568_v57 = vld [vmem:[%s15288_s1 + $0xa60] ss:$16 sps:$4 sm:$0xff]   ;;  %v10571_v58 = vld [vmem:[%s15288_s1 + $0xa68] ss:$16 sps:$4 sm:$0xff]  }
 0x118   :  { %6780 = vmatprep.subr.bf16.mxu0 %v10492_v59  ;;  %7628 = vmatprep.subr.bf16.mxu1 %v10495_v60  ;;  %v10576_v59 = vld [vmem:[%s15288_s1 + $0xa84] ss:$16 sps:$4 sm:$0xff]   ;;  %v10579_v60 = vld [vmem:[%s15288_s1 + $0xa8c] ss:$16 sps:$4 sm:$0xff]  }
 0x11b   :  { %6781 = vmatpush1.bf16.msra.mxu0 %v10490_v61  ;;  %7629 = vmatpush1.bf16.msra.mxu1 %v10493_v62  ;;  %v10574_v61 = vld [vmem:[%s15288_s1 + $0xa80] ss:$16 sps:$4 sm:$0xff]   ;;  %v10577_v62 = vld [vmem:[%s15288_s1 + $0xa88] ss:$16 sps:$4 sm:$0xff]  }
 0x11c   :  { %6782 = vmatprep.subr.bf16.mxu0 %v10498_v63  ;;  %7630 = vmatprep.subr.bf16.mxu1 %v10501_v0  ;;  %v10582_v63 = vld [vmem:[%s15288_s1 + $0xaa4] ss:$16 sps:$4 sm:$0xff]   ;;  %v10585_v0 = vld [vmem:[%s15288_s1 + $0xaac] ss:$16 sps:$4 sm:$0xff]  }
 0x11f   :  { %6783 = vmatpush1.bf16.msra.mxu0 %v10496_v1  ;;  %7631 = vmatpush1.bf16.msra.mxu1 %v10499_v2  ;;  %v10580_v1 = vld [vmem:[%s15288_s1 + $0xaa0] ss:$16 sps:$4 sm:$0xff]   ;;  %v10583_v2 = vld [vmem:[%s15288_s1 + $0xaa8] ss:$16 sps:$4 sm:$0xff]  }
 0x120   :  { %6784 = vmatprep.subr.bf16.mxu0 %v10504_v3  ;;  %7632 = vmatprep.subr.bf16.mxu1 %v10507_v4  ;;  %v10588_v3 = vld [vmem:[%s15288_s1 + $0xac4] ss:$16 sps:$4 sm:$0xff]   ;;  %v10591_v4 = vld [vmem:[%s15288_s1 + $0xacc] ss:$16 sps:$4 sm:$0xff]  }
 0x123   :  { %6785 = vmatpush1.bf16.msra.mxu0 %v10502_v5  ;;  %7633 = vmatpush1.bf16.msra.mxu1 %v10505_v6  ;;  %v10586_v5 = vld [vmem:[%s15288_s1 + $0xac0] ss:$16 sps:$4 sm:$0xff]   ;;  %v10589_v6 = vld [vmem:[%s15288_s1 + $0xac8] ss:$16 sps:$4 sm:$0xff]  }
 0x124   :  { %6786 = vmatprep.subr.bf16.mxu0 %v10510_v7  ;;  %7634 = vmatprep.subr.bf16.mxu1 %v10513_v8  ;;  %v10594_v7 = vld [vmem:[%s15288_s1 + $0xae4] ss:$16 sps:$4 sm:$0xff]   ;;  %v10597_v8 = vld [vmem:[%s15288_s1 + $0xaec] ss:$16 sps:$4 sm:$0xff]  }
 0x127   :  { %6787 = vmatpush1.bf16.msra.mxu0 %v10508_v9  ;;  %7635 = vmatpush1.bf16.msra.mxu1 %v10511_v10  ;;  %v10592_v9 = vld [vmem:[%s15288_s1 + $0xae0] ss:$16 sps:$4 sm:$0xff]   ;;  %v10595_v10 = vld [vmem:[%s15288_s1 + $0xae8] ss:$16 sps:$4 sm:$0xff]  }
 0x128   :  { %6788 = vmatprep.subr.bf16.mxu0 %v10516_v11  ;;  %7636 = vmatprep.subr.bf16.mxu1 %v10519_v12  ;;  %v10600_v11 = vld [vmem:[%s15288_s1 + $0xb04] ss:$16 sps:$4 sm:$0xff]   ;;  %v10603_v12 = vld [vmem:[%s15288_s1 + $0xb0c] ss:$16 sps:$4 sm:$0xff]  }
 0x12b   :  { %6789 = vmatpush1.bf16.msra.mxu0 %v10514_v13  ;;  %7637 = vmatpush1.bf16.msra.mxu1 %v10517_v14  ;;  %v10598_v13 = vld [vmem:[%s15288_s1 + $0xb00] ss:$16 sps:$4 sm:$0xff]   ;;  %v10601_v14 = vld [vmem:[%s15288_s1 + $0xb08] ss:$16 sps:$4 sm:$0xff]  }
 0x12c   :  { %6790 = vmatprep.subr.bf16.mxu0 %v10522_v15  ;;  %7638 = vmatprep.subr.bf16.mxu1 %v10525_v16  ;;  %v10606_v15 = vld [vmem:[%s15288_s1 + $0xb24] ss:$16 sps:$4 sm:$0xff]   ;;  %v10609_v16 = vld [vmem:[%s15288_s1 + $0xb2c] ss:$16 sps:$4 sm:$0xff]  }
 0x12f   :  { %6791 = vmatpush1.bf16.msra.mxu0 %v10520_v17  ;;  %7639 = vmatpush1.bf16.msra.mxu1 %v10523_v18  ;;  %v10604_v17 = vld [vmem:[%s15288_s1 + $0xb20] ss:$16 sps:$4 sm:$0xff]   ;;  %v10607_v18 = vld [vmem:[%s15288_s1 + $0xb28] ss:$16 sps:$4 sm:$0xff]  }
 0x130   :  { %6792 = vmatprep.subr.bf16.mxu0 %v10528_v19  ;;  %7640 = vmatprep.subr.bf16.mxu1 %v10531_v20  ;;  %v10612_v19 = vld [vmem:[%s15288_s1 + $0xb44] ss:$16 sps:$4 sm:$0xff]   ;;  %v10615_v20 = vld [vmem:[%s15288_s1 + $0xb4c] ss:$16 sps:$4 sm:$0xff]  }
 0x133   :  { %6793 = vmatpush1.bf16.msra.mxu0 %v10526_v21  ;;  %7641 = vmatpush1.bf16.msra.mxu1 %v10529_v22  ;;  %v10610_v21 = vld [vmem:[%s15288_s1 + $0xb40] ss:$16 sps:$4 sm:$0xff]   ;;  %v10613_v22 = vld [vmem:[%s15288_s1 + $0xb48] ss:$16 sps:$4 sm:$0xff]  }
 0x134   :  { %6794 = vmatprep.subr.bf16.mxu0 %v10534_v23  ;;  %7642 = vmatprep.subr.bf16.mxu1 %v10537_v24  ;;  %v10618_v23 = vld [vmem:[%s15288_s1 + $0xb64] ss:$16 sps:$4 sm:$0xff]   ;;  %v10621_v24 = vld [vmem:[%s15288_s1 + $0xb6c] ss:$16 sps:$4 sm:$0xff]  }
 0x137   :  { %6795 = vmatpush1.bf16.msra.mxu0 %v10532_v26  ;;  %7643 = vmatpush1.bf16.msra.mxu1 %v10535_v25  ;;  %v10616_v26 = vld [vmem:[%s15288_s1 + $0xb60] ss:$16 sps:$4 sm:$0xff]   ;;  %v10619_v25 = vld [vmem:[%s15288_s1 + $0xb68] ss:$16 sps:$4 sm:$0xff]  }
 0x138   :  { %6796 = vmatprep.subr.bf16.mxu0 %v10540_v27  ;;  %7644 = vmatprep.subr.bf16.mxu1 %v10543_v28  ;;  %v10624_v27 = vld [vmem:[%s15288_s1 + $0xb84] ss:$16 sps:$4 sm:$0xff]   ;;  %v10627_v28 = vld [vmem:[%s15288_s1 + $0xb8c] ss:$16 sps:$4 sm:$0xff]  }
 0x13b   :  { %6797 = vmatpush1.bf16.msra.mxu0 %v10538_v29  ;;  %7645 = vmatpush1.bf16.msra.mxu1 %v10541_v30  ;;  %v10622_v29 = vld [vmem:[%s15288_s1 + $0xb80] ss:$16 sps:$4 sm:$0xff]   ;;  %v10625_v30 = vld [vmem:[%s15288_s1 + $0xb88] ss:$16 sps:$4 sm:$0xff]  }
 0x13c   :  { %6798 = vmatprep.subr.bf16.mxu0 %v10546_v31  ;;  %7646 = vmatprep.subr.bf16.mxu1 %v10549_v32  ;;  %v10630_v31 = vld [vmem:[%s15288_s1 + $0xba4] ss:$16 sps:$4 sm:$0xff]   ;;  %v10633_v32 = vld [vmem:[%s15288_s1 + $0xbac] ss:$16 sps:$4 sm:$0xff]  }
 0x13f   :  { %6799 = vmatpush1.bf16.msra.mxu0 %v10544_v34  ;;  %7647 = vmatpush1.bf16.msra.mxu1 %v10547_v36  ;;  %v10628_v34 = vld [vmem:[%s15288_s1 + $0xba0] ss:$16 sps:$4 sm:$0xff]   ;;  %v10631_v36 = vld [vmem:[%s15288_s1 + $0xba8] ss:$16 sps:$4 sm:$0xff]  }
 0x140   :  { %6821 = vmatprep.subr.bf16.mxu0 %v10552_v33  ;;  %7669 = vmatprep.subr.bf16.mxu1 %v10555_v35  ;;  %v10636_v33 = vld [vmem:[%s15288_s1 + $0xbc4] ss:$16 sps:$4 sm:$0xff]   ;;  %v10639_v35 = vld [vmem:[%s15288_s1 + $0xbcc] ss:$16 sps:$4 sm:$0xff]  }
 0x142   :  { %6801 = vmatmul.mubr.bf16.vlgmr.msra.gmra.mrb[0].mxu0 %v8729_v39  ;;  %7649 = vmatmul.mubr.bf16.vlgmr.msra.gmra.mrb[0].mxu1 %v8729_v39  ;;  %v10642_v39 = vld [vmem:[%s15288_s1 + $0xbe4] ss:$16 sps:$4 sm:$0xff]  }
 0x143   :  { %6822 = vmatpush1.bf16.msra.mxu0 %v10550_v40  ;;  %7670 = vmatpush1.bf16.msra.mxu1 %v10553_v42  ;;  %v10645_v40 = vld [vmem:[%s15288_s1 + $0xbec] ss:$16 sps:$4 sm:$0xff]   ;;  %v10640_v42 = vld [vmem:[%s15288_s1 + $0xbe0] ss:$16 sps:$4 sm:$0xff]  }
 0x144   :  { %6823 = vmatprep.subr.bf16.mxu0 %v10558_v44  ;;  %7671 = vmatprep.subr.bf16.mxu1 %v10561_v41  ;;  %v10643_v44 = vld [vmem:[%s15288_s1 + $0xbe8] ss:$16 sps:$4 sm:$0xff]   ;;  %v10648_v41 = vld [vmem:[%s15288_s1 + $0xc04] ss:$16 sps:$4 sm:$0xff]  }
 0x145   :  { %6810 = vmatprep.mubr.bf16.mxu0 %v8762_v46  ;;  %7658 = vmatprep.mubr.bf16.mxu1 %v8762_v46  ;;  %v81_v46 = vld [vmem:[%s15289_s0 + $0x1a8] sm:$0xff] }
 0x147   :  { %6824 = vmatpush1.bf16.msra.mxu0 %v10556_v43  ;;  %7672 = vmatpush1.bf16.msra.mxu1 %v10559_v45  ;;  %v10651_v43 = vld [vmem:[%s15288_s1 + $0xc0c] ss:$16 sps:$4 sm:$0xff]  }
 0x148   :  { %6825 = vmatprep.subr.bf16.mxu0 %v10564_v47  ;;  %7673 = vmatprep.subr.bf16.mxu1 %v10567_v48  ;;  %v65_v45 = vld [vmem:[%s15289_s0 + $0x128] sm:$0xff]  ;;  %v8731_v47 = vcombine.low %v12744_v49, %v12749_v50  ;;  %v10646_v48 = vld [vmem:[%s15288_s1 + $0xc00] ss:$16 sps:$4 sm:$0xff]  }
 0x149   :  { %v10657_v49 = vld [vmem:[%s15288_s1 + $0xc2c] ss:$16 sps:$4 sm:$0xff]   ;;  %v10652_v50 = vld [vmem:[%s15288_s1 + $0xc20] ss:$16 sps:$4 sm:$0xff]  }
 0x14a   :  { %6811 = vmatmul.mubr.bf16.gmra.mrb[4].mxu0 %v8761_v51  ;;  %7659 = vmatmul.mubr.bf16.gmra.mrb[4].mxu1 %v8761_v51  ;;  %v10649_v51 = vld [vmem:[%s15288_s1 + $0xc08] ss:$16 sps:$4 sm:$0xff]  }
 0x14b   :  { %6826 = vmatpush1.bf16.msra.mxu0 %v10562_v52  ;;  %7674 = vmatpush1.bf16.msra.mxu1 %v10565_v53  ;;  %v10654_v52 = vld [vmem:[%s15288_s1 + $0xc24] ss:$16 sps:$4 sm:$0xff]   ;;  %v10655_v53 = vld [vmem:[%s15288_s1 + $0xc28] ss:$16 sps:$4 sm:$0xff]  }
 0x14c   :  { %6827 = vmatprep.subr.bf16.mxu0 %v10570_v54  ;;  %7675 = vmatprep.subr.bf16.mxu1 %v10573_v55  ;;  %v8764_v54 = vcombine.high %v65_v45, %v81_v46  ;;  %v10660_v55 = vld [vmem:[%s15288_s1 + $0xc44] ss:$16 sps:$4 sm:$0xff]  }
 0x14d   :  { %6853 = vmatprep.mubr.bf16.mxu0 %v8732_v56  ;;  %7701 = vmatprep.mubr.bf16.mxu1 %v8732_v56  ;;  %v10663_v56 = vld [vmem:[%s15288_s1 + $0xc4c] ss:$16 sps:$4 sm:$0xff]  }
 0x14f   :  { %6828 = vmatpush1.bf16.msra.mxu0 %v10568_v57  ;;  %7676 = vmatpush1.bf16.msra.mxu1 %v10571_v58  ;;  %v12956_v57 = vld [vmem:[%s15289_s0 + $0x30] sm:$0xff] }
 0x150   :  { %6829 = vmatprep.subr.bf16.mxu0 %v10576_v59  ;;  %7677 = vmatprep.subr.bf16.mxu1 %v10579_v60  ;;  %v12961_v58 = vld [vmem:[%s15289_s0 + $0xb0] sm:$0xff]  ;;  %v8763_v59 = vcombine.low %v65_v45, %v81_v46  ;;  %v10733_v46 = vld [vmem:[%s15288_s1 + $0xdc8] ss:$16 sps:$4 sm:$0xff]  }
 0x151   :  { %v10658_v60 = vld [vmem:[%s15288_s1 + $0xc40] ss:$16 sps:$4 sm:$0xff]  }
 0x152   :  { %v10730_v45 = vld [vmem:[%s15288_s1 + $0xdc0] ss:$16 sps:$4 sm:$0xff]  }
 0x153   :  { %6830 = vmatpush1.bf16.msra.mxu0 %v10574_v61  ;;  %7678 = vmatpush1.bf16.msra.mxu1 %v10577_v62  ;;  %v10661_v61 = vld [vmem:[%s15288_s1 + $0xc48] ss:$16 sps:$4 sm:$0xff]   ;;  %v10666_v62 = vld [vmem:[%s15288_s1 + $0xc64] ss:$16 sps:$4 sm:$0xff]  }
 0x154   :  { %6831 = vmatprep.subr.bf16.mxu0 %v10582_v63  ;;  %7679 = vmatprep.subr.bf16.mxu1 %v10585_v0  ;;  %v10669_v63 = vld [vmem:[%s15288_s1 + $0xc6c] ss:$16 sps:$4 sm:$0xff]   ;;  %v8734_v0 = vcombine.high %v12956_v57, %v12961_v58 }
 0x157   :  { %6832 = vmatpush1.bf16.msra.mxu0 %v10580_v1  ;;  %7680 = vmatpush1.bf16.msra.mxu1 %v10583_v2  ;;  %v10664_v1 = vld [vmem:[%s15288_s1 + $0xc60] ss:$16 sps:$4 sm:$0xff]   ;;  %v10667_v2 = vld [vmem:[%s15288_s1 + $0xc68] ss:$16 sps:$4 sm:$0xff]  }
 0x158   :  { %6833 = vmatprep.subr.bf16.mxu0 %v10588_v3  ;;  %7681 = vmatprep.subr.bf16.mxu1 %v10591_v4  ;;  %v10672_v3 = vld [vmem:[%s15288_s1 + $0xc84] ss:$16 sps:$4 sm:$0xff]   ;;  %v10675_v4 = vld [vmem:[%s15288_s1 + $0xc8c] ss:$16 sps:$4 sm:$0xff]  }
 0x15b   :  { %6834 = vmatpush1.bf16.msra.mxu0 %v10586_v5  ;;  %7682 = vmatpush1.bf16.msra.mxu1 %v10589_v6  ;;  %v10670_v5 = vld [vmem:[%s15288_s1 + $0xc80] ss:$16 sps:$4 sm:$0xff]   ;;  %v10673_v6 = vld [vmem:[%s15288_s1 + $0xc88] ss:$16 sps:$4 sm:$0xff]  }
 0x15c   :  { %6835 = vmatprep.subr.bf16.mxu0 %v10594_v7  ;;  %7683 = vmatprep.subr.bf16.mxu1 %v10597_v8  ;;  %v10678_v7 = vld [vmem:[%s15288_s1 + $0xca4] ss:$16 sps:$4 sm:$0xff]   ;;  %v10681_v8 = vld [vmem:[%s15288_s1 + $0xcac] ss:$16 sps:$4 sm:$0xff]  }
 0x15f   :  { %6836 = vmatpush1.bf16.msra.mxu0 %v10592_v9  ;;  %7684 = vmatpush1.bf16.msra.mxu1 %v10595_v10  ;;  %v10676_v9 = vld [vmem:[%s15288_s1 + $0xca0] ss:$16 sps:$4 sm:$0xff]   ;;  %v10679_v10 = vld [vmem:[%s15288_s1 + $0xca8] ss:$16 sps:$4 sm:$0xff]  }
 0x160   :  { %6837 = vmatprep.subr.bf16.mxu0 %v10600_v11  ;;  %7685 = vmatprep.subr.bf16.mxu1 %v10603_v12  ;;  %v10684_v11 = vld [vmem:[%s15288_s1 + $0xcc4] ss:$16 sps:$4 sm:$0xff]   ;;  %v10687_v12 = vld [vmem:[%s15288_s1 + $0xccc] ss:$16 sps:$4 sm:$0xff]  }
 0x163   :  { %6838 = vmatpush1.bf16.msra.mxu0 %v10598_v13  ;;  %7686 = vmatpush1.bf16.msra.mxu1 %v10601_v14  ;;  %v10682_v13 = vld [vmem:[%s15288_s1 + $0xcc0] ss:$16 sps:$4 sm:$0xff]   ;;  %v10685_v14 = vld [vmem:[%s15288_s1 + $0xcc8] ss:$16 sps:$4 sm:$0xff]  }
 0x164   :  { %6839 = vmatprep.subr.bf16.mxu0 %v10606_v15  ;;  %7687 = vmatprep.subr.bf16.mxu1 %v10609_v16  ;;  %v10690_v15 = vld [vmem:[%s15288_s1 + $0xce4] ss:$16 sps:$4 sm:$0xff]   ;;  %v10693_v16 = vld [vmem:[%s15288_s1 + $0xcec] ss:$16 sps:$4 sm:$0xff]  }
 0x167   :  { %6840 = vmatpush1.bf16.msra.mxu0 %v10604_v17  ;;  %7688 = vmatpush1.bf16.msra.mxu1 %v10607_v18  ;;  %v10688_v17 = vld [vmem:[%s15288_s1 + $0xce0] ss:$16 sps:$4 sm:$0xff]   ;;  %v10691_v18 = vld [vmem:[%s15288_s1 + $0xce8] ss:$16 sps:$4 sm:$0xff]  }
 0x168   :  { %6841 = vmatprep.subr.bf16.mxu0 %v10612_v19  ;;  %7689 = vmatprep.subr.bf16.mxu1 %v10615_v20  ;;  %v10696_v19 = vld [vmem:[%s15288_s1 + $0xd04] ss:$16 sps:$4 sm:$0xff]   ;;  %v10699_v20 = vld [vmem:[%s15288_s1 + $0xd0c] ss:$16 sps:$4 sm:$0xff]  }
 0x16b   :  { %6842 = vmatpush1.bf16.msra.mxu0 %v10610_v21  ;;  %7690 = vmatpush1.bf16.msra.mxu1 %v10613_v22  ;;  %v10694_v21 = vld [vmem:[%s15288_s1 + $0xd00] ss:$16 sps:$4 sm:$0xff]   ;;  %v10697_v22 = vld [vmem:[%s15288_s1 + $0xd08] ss:$16 sps:$4 sm:$0xff]  }
 0x16c   :  { %6843 = vmatprep.subr.bf16.mxu0 %v10618_v23  ;;  %7691 = vmatprep.subr.bf16.mxu1 %v10621_v24  ;;  %v10702_v23 = vld [vmem:[%s15288_s1 + $0xd24] ss:$16 sps:$4 sm:$0xff]   ;;  %v10705_v24 = vld [vmem:[%s15288_s1 + $0xd2c] ss:$16 sps:$4 sm:$0xff]  }
 0x16f   :  { %6844 = vmatpush1.bf16.msra.mxu0 %v10616_v26  ;;  %7692 = vmatpush1.bf16.msra.mxu1 %v10619_v25  ;;  %v10700_v26 = vld [vmem:[%s15288_s1 + $0xd20] ss:$16 sps:$4 sm:$0xff]   ;;  %v10703_v25 = vld [vmem:[%s15288_s1 + $0xd28] ss:$16 sps:$4 sm:$0xff]  }
 0x170   :  { %6845 = vmatprep.subr.bf16.mxu0 %v10624_v27  ;;  %7693 = vmatprep.subr.bf16.mxu1 %v10627_v28  ;;  %v10708_v27 = vld [vmem:[%s15288_s1 + $0xd44] ss:$16 sps:$4 sm:$0xff]   ;;  %v10711_v28 = vld [vmem:[%s15288_s1 + $0xd4c] ss:$16 sps:$4 sm:$0xff]  }
 0x173   :  { %6846 = vmatpush1.bf16.msra.mxu0 %v10622_v29  ;;  %7694 = vmatpush1.bf16.msra.mxu1 %v10625_v30  ;;  %v10706_v29 = vld [vmem:[%s15288_s1 + $0xd40] ss:$16 sps:$4 sm:$0xff]   ;;  %v10709_v30 = vld [vmem:[%s15288_s1 + $0xd48] ss:$16 sps:$4 sm:$0xff]  }
 0x174   :  { %6847 = vmatprep.subr.bf16.mxu0 %v10630_v31  ;;  %7695 = vmatprep.subr.bf16.mxu1 %v10633_v32  ;;  %v10714_v31 = vld [vmem:[%s15288_s1 + $0xd64] ss:$16 sps:$4 sm:$0xff]   ;;  %v10717_v32 = vld [vmem:[%s15288_s1 + $0xd6c] ss:$16 sps:$4 sm:$0xff]  }
 0x177   :  { %6848 = vmatpush1.bf16.msra.mxu0 %v10628_v34  ;;  %7696 = vmatpush1.bf16.msra.mxu1 %v10631_v36  ;;  %v10712_v34 = vld [vmem:[%s15288_s1 + $0xd60] ss:$16 sps:$4 sm:$0xff]   ;;  %v10715_v36 = vld [vmem:[%s15288_s1 + $0xd68] ss:$16 sps:$4 sm:$0xff]  }
 0x178   :  { %6849 = vmatprep.subr.bf16.mxu0 %v10636_v33  ;;  %7697 = vmatprep.subr.bf16.mxu1 %v10639_v35  ;;  %v10720_v33 = vld [vmem:[%s15288_s1 + $0xd84] ss:$16 sps:$4 sm:$0xff]   ;;  %v10723_v35 = vld [vmem:[%s15288_s1 + $0xd8c] ss:$16 sps:$4 sm:$0xff]  }
 0x17b   :  { %6850 = vmatpush1.bf16.msra.mxu0 %v10634_v37  ;;  %7698 = vmatpush1.bf16.msra.mxu1 %v10637_v38  ;;  %v10718_v37 = vld [vmem:[%s15288_s1 + $0xd80] ss:$16 sps:$4 sm:$0xff]   ;;  %v10721_v38 = vld [vmem:[%s15288_s1 + $0xd88] ss:$16 sps:$4 sm:$0xff]  }
 0x17c   :  { %6851 = vmatprep.subr.bf16.mxu0 %v10642_v39  ;;  %7699 = vmatprep.subr.bf16.mxu1 %v10645_v40  ;;  %v10726_v39 = vld [vmem:[%s15288_s1 + $0xda4] ss:$16 sps:$4 sm:$0xff]   ;;  %v10729_v40 = vld [vmem:[%s15288_s1 + $0xdac] ss:$16 sps:$4 sm:$0xff]  }
 0x17f   :  { %6852 = vmatpush1.bf16.msra.mxu0 %v10640_v42  ;;  %7700 = vmatpush1.bf16.msra.mxu1 %v10643_v44  ;;  %v10724_v42 = vld [vmem:[%s15288_s1 + $0xda0] ss:$16 sps:$4 sm:$0xff]   ;;  %v10727_v44 = vld [vmem:[%s15288_s1 + $0xda8] ss:$16 sps:$4 sm:$0xff]  }
 0x180   :  { %6874 = vmatprep.subr.bf16.mxu0 %v10648_v41  ;;  %7722 = vmatprep.subr.bf16.mxu1 %v10651_v43  ;;  %v10732_v41 = vld [vmem:[%s15288_s1 + $0xdc4] ss:$16 sps:$4 sm:$0xff]   ;;  %v10735_v43 = vld [vmem:[%s15288_s1 + $0xdcc] ss:$16 sps:$4 sm:$0xff]  }
 0x182   :  { %6854 = vmatmul.mubr.bf16.vlgmr.msra.gmra.mrb[0].mxu0 %v8731_v47  ;;  %7702 = vmatmul.mubr.bf16.vlgmr.msra.gmra.mrb[0].mxu1 %v8731_v47  ;;  %v10738_v47 = vld [vmem:[%s15288_s1 + $0xde4] ss:$16 sps:$4 sm:$0xff]  }
 0x183   :  { %6875 = vmatpush1.bf16.msra.mxu0 %v10646_v48  ;;  %7723 = vmatpush1.bf16.msra.mxu1 %v10649_v51  ;;  %v10741_v48 = vld [vmem:[%s15288_s1 + $0xdec] ss:$16 sps:$4 sm:$0xff]   ;;  %v10736_v51 = vld [vmem:[%s15288_s1 + $0xde0] ss:$16 sps:$4 sm:$0xff]  }
 0x184   :  { %6876 = vmatprep.subr.bf16.mxu0 %v10654_v52  ;;  %7724 = vmatprep.subr.bf16.mxu1 %v10657_v49  ;;  %v10739_v52 = vld [vmem:[%s15288_s1 + $0xde8] ss:$16 sps:$4 sm:$0xff]   ;;  %v10744_v49 = vld [vmem:[%s15288_s1 + $0xe04] ss:$16 sps:$4 sm:$0xff]  }
 0x185   :  { %6863 = vmatprep.mubr.bf16.mxu0 %v8764_v54  ;;  %7711 = vmatprep.mubr.bf16.mxu1 %v8764_v54  ;;  %v82_v54 = vld [vmem:[%s15289_s0 + $0x1b0] sm:$0xff] }
 0x187   :  { %6877 = vmatpush1.bf16.msra.mxu0 %v10652_v50  ;;  %7725 = vmatpush1.bf16.msra.mxu1 %v10655_v53  ;;  %v10747_v50 = vld [vmem:[%s15288_s1 + $0xe0c] ss:$16 sps:$4 sm:$0xff]   ;;  %v66_v53 = vld [vmem:[%s15289_s0 + $0x130] sm:$0xff] }
 0x188   :  { %6878 = vmatprep.subr.bf16.mxu0 %v10660_v55  ;;  %7726 = vmatprep.subr.bf16.mxu1 %v10663_v56  ;;  %v8733_v55 = vcombine.low %v12956_v57, %v12961_v58  ;;  %v10742_v56 = vld [vmem:[%s15288_s1 + $0xe00] ss:$16 sps:$4 sm:$0xff]   ;;  %v10753_v57 = vld [vmem:[%s15288_s1 + $0xe2c] ss:$16 sps:$4 sm:$0xff]  }
 0x189   :  { %v10748_v58 = vld [vmem:[%s15288_s1 + $0xe20] ss:$16 sps:$4 sm:$0xff]  }
 0x18a   :  { %6864 = vmatmul.mubr.bf16.gmra.mrb[4].mxu0 %v8763_v59  ;;  %7712 = vmatmul.mubr.bf16.gmra.mrb[4].mxu1 %v8763_v59  ;;  %v10745_v59 = vld [vmem:[%s15288_s1 + $0xe08] ss:$16 sps:$4 sm:$0xff]  }
 0x18b   :  { %6879 = vmatpush1.bf16.msra.mxu0 %v10658_v60  ;;  %7727 = vmatpush1.bf16.msra.mxu1 %v10661_v61  ;;  %v10750_v60 = vld [vmem:[%s15288_s1 + $0xe24] ss:$16 sps:$4 sm:$0xff]   ;;  %v10751_v61 = vld [vmem:[%s15288_s1 + $0xe28] ss:$16 sps:$4 sm:$0xff]  }
 0x18c   :  { %6880 = vmatprep.subr.bf16.mxu0 %v10666_v62  ;;  %7728 = vmatprep.subr.bf16.mxu1 %v10669_v63  ;;  %v8766_v62 = vcombine.high %v66_v53, %v82_v54  ;;  %v10756_v63 = vld [vmem:[%s15288_s1 + $0xe44] ss:$16 sps:$4 sm:$0xff]  }
 0x18d   :  { %6906 = vmatprep.mubr.bf16.mxu0 %v8734_v0  ;;  %7754 = vmatprep.mubr.bf16.mxu1 %v8734_v0  ;;  %v10759_v0 = vld [vmem:[%s15288_s1 + $0xe4c] ss:$16 sps:$4 sm:$0xff]  }
 0x18f   :  { %6881 = vmatpush1.bf16.msra.mxu0 %v10664_v1  ;;  %7729 = vmatpush1.bf16.msra.mxu1 %v10667_v2  ;;  %v13168_v1 = vld [vmem:[%s15289_s0 + $0x38] sm:$0xff] }
 0x190   :  { %6882 = vmatprep.subr.bf16.mxu0 %v10672_v3  ;;  %7730 = vmatprep.subr.bf16.mxu1 %v10675_v4  ;;  %v13173_v2 = vld [vmem:[%s15289_s0 + $0xb8] sm:$0xff]  ;;  %v8765_v3 = vcombine.low %v66_v53, %v82_v54  ;;  %v10754_v4 = vld [vmem:[%s15288_s1 + $0xe40] ss:$16 sps:$4 sm:$0xff]  }
 0x191   :  { %v10826_v53 = vld [vmem:[%s15288_s1 + $0xfc0] ss:$16 sps:$4 sm:$0xff]   ;;  %v10829_v54 = vld [vmem:[%s15288_s1 + $0xfc8] ss:$16 sps:$4 sm:$0xff]  }
 0x193   :  { %6883 = vmatpush1.bf16.msra.mxu0 %v10670_v5  ;;  %7731 = vmatpush1.bf16.msra.mxu1 %v10673_v6  ;;  %v10757_v5 = vld [vmem:[%s15288_s1 + $0xe48] ss:$16 sps:$4 sm:$0xff]   ;;  %v10762_v6 = vld [vmem:[%s15288_s1 + $0xe64] ss:$16 sps:$4 sm:$0xff]  }
 0x194   :  { %6884 = vmatprep.subr.bf16.mxu0 %v10678_v7  ;;  %7732 = vmatprep.subr.bf16.mxu1 %v10681_v8  ;;  %v10765_v7 = vld [vmem:[%s15288_s1 + $0xe6c] ss:$16 sps:$4 sm:$0xff]   ;;  %v8736_v8 = vcombine.high %v13168_v1, %v13173_v2 }
 0x197   :  { %6885 = vmatpush1.bf16.msra.mxu0 %v10676_v9  ;;  %7733 = vmatpush1.bf16.msra.mxu1 %v10679_v10  ;;  %v10760_v9 = vld [vmem:[%s15288_s1 + $0xe60] ss:$16 sps:$4 sm:$0xff]   ;;  %v10763_v10 = vld [vmem:[%s15288_s1 + $0xe68] ss:$16 sps:$4 sm:$0xff]  }
 0x198   :  { %6886 = vmatprep.subr.bf16.mxu0 %v10684_v11  ;;  %7734 = vmatprep.subr.bf16.mxu1 %v10687_v12  ;;  %v10768_v11 = vld [vmem:[%s15288_s1 + $0xe84] ss:$16 sps:$4 sm:$0xff]   ;;  %v10771_v12 = vld [vmem:[%s15288_s1 + $0xe8c] ss:$16 sps:$4 sm:$0xff]  }
 0x19b   :  { %6887 = vmatpush1.bf16.msra.mxu0 %v10682_v13  ;;  %7735 = vmatpush1.bf16.msra.mxu1 %v10685_v14  ;;  %v10766_v13 = vld [vmem:[%s15288_s1 + $0xe80] ss:$16 sps:$4 sm:$0xff]   ;;  %v10769_v14 = vld [vmem:[%s15288_s1 + $0xe88] ss:$16 sps:$4 sm:$0xff]  }
 0x19c   :  { %6888 = vmatprep.subr.bf16.mxu0 %v10690_v15  ;;  %7736 = vmatprep.subr.bf16.mxu1 %v10693_v16  ;;  %v10774_v15 = vld [vmem:[%s15288_s1 + $0xea4] ss:$16 sps:$4 sm:$0xff]   ;;  %v10777_v16 = vld [vmem:[%s15288_s1 + $0xeac] ss:$16 sps:$4 sm:$0xff]  }
 0x19f   :  { %6889 = vmatpush1.bf16.msra.mxu0 %v10688_v17  ;;  %7737 = vmatpush1.bf16.msra.mxu1 %v10691_v18  ;;  %v10772_v17 = vld [vmem:[%s15288_s1 + $0xea0] ss:$16 sps:$4 sm:$0xff]   ;;  %v10775_v18 = vld [vmem:[%s15288_s1 + $0xea8] ss:$16 sps:$4 sm:$0xff]  }
 0x1a0   :  { %6890 = vmatprep.subr.bf16.mxu0 %v10696_v19  ;;  %7738 = vmatprep.subr.bf16.mxu1 %v10699_v20  ;;  %v10780_v19 = vld [vmem:[%s15288_s1 + $0xec4] ss:$16 sps:$4 sm:$0xff]   ;;  %v10783_v20 = vld [vmem:[%s15288_s1 + $0xecc] ss:$16 sps:$4 sm:$0xff]  }
 0x1a3   :  { %6891 = vmatpush1.bf16.msra.mxu0 %v10694_v21  ;;  %7739 = vmatpush1.bf16.msra.mxu1 %v10697_v22  ;;  %v10778_v21 = vld [vmem:[%s15288_s1 + $0xec0] ss:$16 sps:$4 sm:$0xff]   ;;  %v10781_v22 = vld [vmem:[%s15288_s1 + $0xec8] ss:$16 sps:$4 sm:$0xff]  }
 0x1a4   :  { %6892 = vmatprep.subr.bf16.mxu0 %v10702_v23  ;;  %7740 = vmatprep.subr.bf16.mxu1 %v10705_v24  ;;  %v10786_v23 = vld [vmem:[%s15288_s1 + $0xee4] ss:$16 sps:$4 sm:$0xff]   ;;  %v10789_v24 = vld [vmem:[%s15288_s1 + $0xeec] ss:$16 sps:$4 sm:$0xff]  }
 0x1a7   :  { %6893 = vmatpush1.bf16.msra.mxu0 %v10700_v26  ;;  %7741 = vmatpush1.bf16.msra.mxu1 %v10703_v25  ;;  %v10784_v26 = vld [vmem:[%s15288_s1 + $0xee0] ss:$16 sps:$4 sm:$0xff]   ;;  %v10787_v25 = vld [vmem:[%s15288_s1 + $0xee8] ss:$16 sps:$4 sm:$0xff]  }
 0x1a8   :  { %6894 = vmatprep.subr.bf16.mxu0 %v10708_v27  ;;  %7742 = vmatprep.subr.bf16.mxu1 %v10711_v28  ;;  %v10792_v27 = vld [vmem:[%s15288_s1 + $0xf04] ss:$16 sps:$4 sm:$0xff]   ;;  %v10795_v28 = vld [vmem:[%s15288_s1 + $0xf0c] ss:$16 sps:$4 sm:$0xff]  }
 0x1ab   :  { %6895 = vmatpush1.bf16.msra.mxu0 %v10706_v29  ;;  %7743 = vmatpush1.bf16.msra.mxu1 %v10709_v30  ;;  %v10790_v29 = vld [vmem:[%s15288_s1 + $0xf00] ss:$16 sps:$4 sm:$0xff]   ;;  %v10793_v30 = vld [vmem:[%s15288_s1 + $0xf08] ss:$16 sps:$4 sm:$0xff]  }
 0x1ac   :  { %6896 = vmatprep.subr.bf16.mxu0 %v10714_v31  ;;  %7744 = vmatprep.subr.bf16.mxu1 %v10717_v32  ;;  %v10798_v31 = vld [vmem:[%s15288_s1 + $0xf24] ss:$16 sps:$4 sm:$0xff]   ;;  %v10801_v32 = vld [vmem:[%s15288_s1 + $0xf2c] ss:$16 sps:$4 sm:$0xff]  }
 0x1af   :  { %6897 = vmatpush1.bf16.msra.mxu0 %v10712_v34  ;;  %7745 = vmatpush1.bf16.msra.mxu1 %v10715_v36  ;;  %v10796_v34 = vld [vmem:[%s15288_s1 + $0xf20] ss:$16 sps:$4 sm:$0xff]   ;;  %v10799_v36 = vld [vmem:[%s15288_s1 + $0xf28] ss:$16 sps:$4 sm:$0xff]  }
 0x1b0   :  { %6898 = vmatprep.subr.bf16.mxu0 %v10720_v33  ;;  %7746 = vmatprep.subr.bf16.mxu1 %v10723_v35  ;;  %v10804_v33 = vld [vmem:[%s15288_s1 + $0xf44] ss:$16 sps:$4 sm:$0xff]   ;;  %v10807_v35 = vld [vmem:[%s15288_s1 + $0xf4c] ss:$16 sps:$4 sm:$0xff]  }
 0x1b3   :  { %6899 = vmatpush1.bf16.msra.mxu0 %v10718_v37  ;;  %7747 = vmatpush1.bf16.msra.mxu1 %v10721_v38  ;;  %v10802_v37 = vld [vmem:[%s15288_s1 + $0xf40] ss:$16 sps:$4 sm:$0xff]   ;;  %v10805_v38 = vld [vmem:[%s15288_s1 + $0xf48] ss:$16 sps:$4 sm:$0xff]  }
 0x1b4   :  { %6900 = vmatprep.subr.bf16.mxu0 %v10726_v39  ;;  %7748 = vmatprep.subr.bf16.mxu1 %v10729_v40  ;;  %v10810_v39 = vld [vmem:[%s15288_s1 + $0xf64] ss:$16 sps:$4 sm:$0xff]   ;;  %v10813_v40 = vld [vmem:[%s15288_s1 + $0xf6c] ss:$16 sps:$4 sm:$0xff]  }
 0x1b7   :  { %6901 = vmatpush1.bf16.msra.mxu0 %v10724_v42  ;;  %7749 = vmatpush1.bf16.msra.mxu1 %v10727_v44  ;;  %v10808_v42 = vld [vmem:[%s15288_s1 + $0xf60] ss:$16 sps:$4 sm:$0xff]   ;;  %v10811_v44 = vld [vmem:[%s15288_s1 + $0xf68] ss:$16 sps:$4 sm:$0xff]  }
 0x1b8   :  { %6902 = vmatprep.subr.bf16.mxu0 %v10732_v41  ;;  %7750 = vmatprep.subr.bf16.mxu1 %v10735_v43  ;;  %v10816_v41 = vld [vmem:[%s15288_s1 + $0xf84] ss:$16 sps:$4 sm:$0xff]   ;;  %v10819_v43 = vld [vmem:[%s15288_s1 + $0xf8c] ss:$16 sps:$4 sm:$0xff]  }
 0x1bb   :  { %6903 = vmatpush1.bf16.msra.mxu0 %v10730_v45  ;;  %7751 = vmatpush1.bf16.msra.mxu1 %v10733_v46  ;;  %v10814_v45 = vld [vmem:[%s15288_s1 + $0xf80] ss:$16 sps:$4 sm:$0xff]   ;;  %v10817_v46 = vld [vmem:[%s15288_s1 + $0xf88] ss:$16 sps:$4 sm:$0xff]  }
 0x1bc   :  { %6904 = vmatprep.subr.bf16.mxu0 %v10738_v47  ;;  %7752 = vmatprep.subr.bf16.mxu1 %v10741_v48  ;;  %v10822_v47 = vld [vmem:[%s15288_s1 + $0xfa4] ss:$16 sps:$4 sm:$0xff]   ;;  %v10825_v48 = vld [vmem:[%s15288_s1 + $0xfac] ss:$16 sps:$4 sm:$0xff]  }
 0x1bf   :  { %6905 = vmatpush1.bf16.msra.mxu0 %v10736_v51  ;;  %7753 = vmatpush1.bf16.msra.mxu1 %v10739_v52  ;;  %v10820_v51 = vld [vmem:[%s15288_s1 + $0xfa0] ss:$16 sps:$4 sm:$0xff]   ;;  %v10823_v52 = vld [vmem:[%s15288_s1 + $0xfa8] ss:$16 sps:$4 sm:$0xff]  }
 0x1c0   :  { %6927 = vmatprep.subr.bf16.mxu0 %v10744_v49  ;;  %7775 = vmatprep.subr.bf16.mxu1 %v10747_v50  ;;  %v10828_v49 = vld [vmem:[%s15288_s1 + $0xfc4] ss:$16 sps:$4 sm:$0xff]   ;;  %v10831_v50 = vld [vmem:[%s15288_s1 + $0xfcc] ss:$16 sps:$4 sm:$0xff]  }
 0x1c2   :  { %6907 = vmatmul.mubr.bf16.vlgmr.msra.gmra.mrb[0].mxu0 %v8733_v55  ;;  %7755 = vmatmul.mubr.bf16.vlgmr.msra.gmra.mrb[0].mxu1 %v8733_v55  ;;  %v10834_v55 = vld [vmem:[%s15288_s1 + $0xfe4] ss:$16 sps:$4 sm:$0xff]  }
 0x1c3   :  { %6928 = vmatpush1.bf16.msra.mxu0 %v10742_v56  ;;  %7776 = vmatpush1.bf16.msra.mxu1 %v10745_v59  ;;  %v10837_v56 = vld [vmem:[%s15288_s1 + $0xfec] ss:$16 sps:$4 sm:$0xff]   ;;  %v10832_v59 = vld [vmem:[%s15288_s1 + $0xfe0] ss:$16 sps:$4 sm:$0xff]  }
 0x1c4   :  { %6929 = vmatprep.subr.bf16.mxu0 %v10750_v60  ;;  %7777 = vmatprep.subr.bf16.mxu1 %v10753_v57  ;;  %v10835_v60 = vld [vmem:[%s15288_s1 + $0xfe8] ss:$16 sps:$4 sm:$0xff]   ;;  %v10840_v57 = vld [vmem:[%s15288_s1 + $0x1004] ss:$16 sps:$4 sm:$0xff]  }
 0x1c5   :  { %6916 = vmatprep.mubr.bf16.mxu0 %v8766_v62  ;;  %7764 = vmatprep.mubr.bf16.mxu1 %v8766_v62  ;;  %v83_v62 = vld [vmem:[%s15289_s0 + $0x1b8] sm:$0xff] }
 0x1c7   :  { %6930 = vmatpush1.bf16.msra.mxu0 %v10748_v58  ;;  %7778 = vmatpush1.bf16.msra.mxu1 %v10751_v61  ;;  %v10843_v58 = vld [vmem:[%s15288_s1 + $0x100c] ss:$16 sps:$4 sm:$0xff]  }
 0x1c8   :  { %6931 = vmatprep.subr.bf16.mxu0 %v10756_v63  ;;  %7779 = vmatprep.subr.bf16.mxu1 %v10759_v0  ;;  %v67_v61 = vld [vmem:[%s15289_s0 + $0x138] sm:$0xff]  ;;  %v8735_v63 = vcombine.low %v13168_v1, %v13173_v2  ;;  %v10838_v0 = vld [vmem:[%s15288_s1 + $0x1000] ss:$16 sps:$4 sm:$0xff]  }
 0x1c9   :  { %v10849_v1 = vld [vmem:[%s15288_s1 + $0x102c] ss:$16 sps:$4 sm:$0xff]   ;;  %v10844_v2 = vld [vmem:[%s15288_s1 + $0x1020] ss:$16 sps:$4 sm:$0xff]  }
 0x1ca   :  { %6917 = vmatmul.mubr.bf16.gmra.mrb[4].mxu0 %v8765_v3  ;;  %7765 = vmatmul.mubr.bf16.gmra.mrb[4].mxu1 %v8765_v3  ;;  %v10841_v3 = vld [vmem:[%s15288_s1 + $0x1008] ss:$16 sps:$4 sm:$0xff]  }
 0x1cb   :  { %6932 = vmatpush1.bf16.msra.mxu0 %v10754_v4  ;;  %7780 = vmatpush1.bf16.msra.mxu1 %v10757_v5  ;;  %v10846_v4 = vld [vmem:[%s15288_s1 + $0x1024] ss:$16 sps:$4 sm:$0xff]   ;;  %v10847_v5 = vld [vmem:[%s15288_s1 + $0x1028] ss:$16 sps:$4 sm:$0xff]  }
 0x1cc   :  { %6933 = vmatprep.subr.bf16.mxu0 %v10762_v6  ;;  %7781 = vmatprep.subr.bf16.mxu1 %v10765_v7  ;;  %v8768_v6 = vcombine.high %v67_v61, %v83_v62  ;;  %v10852_v7 = vld [vmem:[%s15288_s1 + $0x1044] ss:$16 sps:$4 sm:$0xff]  }
 0x1cd   :  { %6959 = vmatprep.mubr.bf16.mxu0 %v8736_v8  ;;  %7807 = vmatprep.mubr.bf16.mxu1 %v8736_v8  ;;  %v10855_v8 = vld [vmem:[%s15288_s1 + $0x104c] ss:$16 sps:$4 sm:$0xff]  }
 0x1cf   :  { %6934 = vmatpush1.bf16.msra.mxu0 %v10760_v9  ;;  %7782 = vmatpush1.bf16.msra.mxu1 %v10763_v10  ;;  %v13380_v9 = vld [vmem:[%s15289_s0 + $0x40] sm:$0xff] }
 0x1d0   :  { %6935 = vmatprep.subr.bf16.mxu0 %v10768_v11  ;;  %7783 = vmatprep.subr.bf16.mxu1 %v10771_v12  ;;  %v13385_v10 = vld [vmem:[%s15289_s0 + $0xc0] sm:$0xff]  ;;  %v8767_v11 = vcombine.low %v67_v61, %v83_v62  ;;  %v10925_v62 = vld [vmem:[%s15288_s1 + $0x11c8] ss:$16 sps:$4 sm:$0xff]  }
 0x1d1   :  { %v10850_v12 = vld [vmem:[%s15288_s1 + $0x1040] ss:$16 sps:$4 sm:$0xff]  }
 0x1d2   :  { %v10922_v61 = vld [vmem:[%s15288_s1 + $0x11c0] ss:$16 sps:$4 sm:$0xff]  }
 0x1d3   :  { %6936 = vmatpush1.bf16.msra.mxu0 %v10766_v13  ;;  %7784 = vmatpush1.bf16.msra.mxu1 %v10769_v14  ;;  %v10853_v13 = vld [vmem:[%s15288_s1 + $0x1048] ss:$16 sps:$4 sm:$0xff]   ;;  %v10858_v14 = vld [vmem:[%s15288_s1 + $0x1064] ss:$16 sps:$4 sm:$0xff]  }
 0x1d4   :  { %6937 = vmatprep.subr.bf16.mxu0 %v10774_v15  ;;  %7785 = vmatprep.subr.bf16.mxu1 %v10777_v16  ;;  %v10861_v15 = vld [vmem:[%s15288_s1 + $0x106c] ss:$16 sps:$4 sm:$0xff]   ;;  %v8738_v16 = vcombine.high %v13380_v9, %v13385_v10 }
 0x1d7   :  { %6938 = vmatpush1.bf16.msra.mxu0 %v10772_v17  ;;  %7786 = vmatpush1.bf16.msra.mxu1 %v10775_v18  ;;  %v10856_v17 = vld [vmem:[%s15288_s1 + $0x1060] ss:$16 sps:$4 sm:$0xff]   ;;  %v10859_v18 = vld [vmem:[%s15288_s1 + $0x1068] ss:$16 sps:$4 sm:$0xff]  }
 0x1d8   :  { %6939 = vmatprep.subr.bf16.mxu0 %v10780_v19  ;;  %7787 = vmatprep.subr.bf16.mxu1 %v10783_v20  ;;  %v10864_v19 = vld [vmem:[%s15288_s1 + $0x1084] ss:$16 sps:$4 sm:$0xff]   ;;  %v10867_v20 = vld [vmem:[%s15288_s1 + $0x108c] ss:$16 sps:$4 sm:$0xff]  }
 0x1db   :  { %6940 = vmatpush1.bf16.msra.mxu0 %v10778_v21  ;;  %7788 = vmatpush1.bf16.msra.mxu1 %v10781_v22  ;;  %v10862_v21 = vld [vmem:[%s15288_s1 + $0x1080] ss:$16 sps:$4 sm:$0xff]   ;;  %v10865_v22 = vld [vmem:[%s15288_s1 + $0x1088] ss:$16 sps:$4 sm:$0xff]  }
 0x1dc   :  { %6941 = vmatprep.subr.bf16.mxu0 %v10786_v23  ;;  %7789 = vmatprep.subr.bf16.mxu1 %v10789_v24  ;;  %v10870_v23 = vld [vmem:[%s15288_s1 + $0x10a4] ss:$16 sps:$4 sm:$0xff]   ;;  %v10873_v24 = vld [vmem:[%s15288_s1 + $0x10ac] ss:$16 sps:$4 sm:$0xff]  }
 0x1df   :  { %6942 = vmatpush1.bf16.msra.mxu0 %v10784_v26  ;;  %7790 = vmatpush1.bf16.msra.mxu1 %v10787_v25  ;;  %v10868_v26 = vld [vmem:[%s15288_s1 + $0x10a0] ss:$16 sps:$4 sm:$0xff]   ;;  %v10871_v25 = vld [vmem:[%s15288_s1 + $0x10a8] ss:$16 sps:$4 sm:$0xff]  }
 0x1e0   :  { %6943 = vmatprep.subr.bf16.mxu0 %v10792_v27  ;;  %7791 = vmatprep.subr.bf16.mxu1 %v10795_v28  ;;  %v10876_v27 = vld [vmem:[%s15288_s1 + $0x10c4] ss:$16 sps:$4 sm:$0xff]   ;;  %v10879_v28 = vld [vmem:[%s15288_s1 + $0x10cc] ss:$16 sps:$4 sm:$0xff]  }
 0x1e3   :  { %6944 = vmatpush1.bf16.msra.mxu0 %v10790_v29  ;;  %7792 = vmatpush1.bf16.msra.mxu1 %v10793_v30  ;;  %v10874_v29 = vld [vmem:[%s15288_s1 + $0x10c0] ss:$16 sps:$4 sm:$0xff]   ;;  %v10877_v30 = vld [vmem:[%s15288_s1 + $0x10c8] ss:$16 sps:$4 sm:$0xff]  }
 0x1e4   :  { %6945 = vmatprep.subr.bf16.mxu0 %v10798_v31  ;;  %7793 = vmatprep.subr.bf16.mxu1 %v10801_v32  ;;  %v10882_v31 = vld [vmem:[%s15288_s1 + $0x10e4] ss:$16 sps:$4 sm:$0xff]   ;;  %v10885_v32 = vld [vmem:[%s15288_s1 + $0x10ec] ss:$16 sps:$4 sm:$0xff]  }
 0x1e7   :  { %6946 = vmatpush1.bf16.msra.mxu0 %v10796_v34  ;;  %7794 = vmatpush1.bf16.msra.mxu1 %v10799_v36  ;;  %v10880_v34 = vld [vmem:[%s15288_s1 + $0x10e0] ss:$16 sps:$4 sm:$0xff]   ;;  %v10883_v36 = vld [vmem:[%s15288_s1 + $0x10e8] ss:$16 sps:$4 sm:$0xff]  }
 0x1e8   :  { %6947 = vmatprep.subr.bf16.mxu0 %v10804_v33  ;;  %7795 = vmatprep.subr.bf16.mxu1 %v10807_v35  ;;  %v10888_v33 = vld [vmem:[%s15288_s1 + $0x1104] ss:$16 sps:$4 sm:$0xff]   ;;  %v10891_v35 = vld [vmem:[%s15288_s1 + $0x110c] ss:$16 sps:$4 sm:$0xff]  }
 0x1eb   :  { %6948 = vmatpush1.bf16.msra.mxu0 %v10802_v37  ;;  %7796 = vmatpush1.bf16.msra.mxu1 %v10805_v38  ;;  %v10886_v37 = vld [vmem:[%s15288_s1 + $0x1100] ss:$16 sps:$4 sm:$0xff]   ;;  %v10889_v38 = vld [vmem:[%s15288_s1 + $0x1108] ss:$16 sps:$4 sm:$0xff]  }
 0x1ec   :  { %6949 = vmatprep.subr.bf16.mxu0 %v10810_v39  ;;  %7797 = vmatprep.subr.bf16.mxu1 %v10813_v40  ;;  %v10894_v39 = vld [vmem:[%s15288_s1 + $0x1124] ss:$16 sps:$4 sm:$0xff]   ;;  %v10897_v40 = vld [vmem:[%s15288_s1 + $0x112c] ss:$16 sps:$4 sm:$0xff]  }
 0x1ef   :  { %6950 = vmatpush1.bf16.msra.mxu0 %v10808_v42  ;;  %7798 = vmatpush1.bf16.msra.mxu1 %v10811_v44  ;;  %v10892_v42 = vld [vmem:[%s15288_s1 + $0x1120] ss:$16 sps:$4 sm:$0xff]   ;;  %v10895_v44 = vld [vmem:[%s15288_s1 + $0x1128] ss:$16 sps:$4 sm:$0xff]  }
 0x1f0   :  { %6951 = vmatprep.subr.bf16.mxu0 %v10816_v41  ;;  %7799 = vmatprep.subr.bf16.mxu1 %v10819_v43  ;;  %v10900_v41 = vld [vmem:[%s15288_s1 + $0x1144] ss:$16 sps:$4 sm:$0xff]   ;;  %v10903_v43 = vld [vmem:[%s15288_s1 + $0x114c] ss:$16 sps:$4 sm:$0xff]  }
 0x1f3   :  { %6952 = vmatpush1.bf16.msra.mxu0 %v10814_v45  ;;  %7800 = vmatpush1.bf16.msra.mxu1 %v10817_v46  ;;  %v10898_v45 = vld [vmem:[%s15288_s1 + $0x1140] ss:$16 sps:$4 sm:$0xff]   ;;  %v10901_v46 = vld [vmem:[%s15288_s1 + $0x1148] ss:$16 sps:$4 sm:$0xff]  }
 0x1f4   :  { %6953 = vmatprep.subr.bf16.mxu0 %v10822_v47  ;;  %7801 = vmatprep.subr.bf16.mxu1 %v10825_v48  ;;  %v10906_v47 = vld [vmem:[%s15288_s1 + $0x1164] ss:$16 sps:$4 sm:$0xff]   ;;  %v10909_v48 = vld [vmem:[%s15288_s1 + $0x116c] ss:$16 sps:$4 sm:$0xff]  }
 0x1f7   :  { %6954 = vmatpush1.bf16.msra.mxu0 %v10820_v51  ;;  %7802 = vmatpush1.bf16.msra.mxu1 %v10823_v52  ;;  %v10904_v51 = vld [vmem:[%s15288_s1 + $0x1160] ss:$16 sps:$4 sm:$0xff]   ;;  %v10907_v52 = vld [vmem:[%s15288_s1 + $0x1168] ss:$16 sps:$4 sm:$0xff]  }
 0x1f8   :  { %6955 = vmatprep.subr.bf16.mxu0 %v10828_v49  ;;  %7803 = vmatprep.subr.bf16.mxu1 %v10831_v50  ;;  %v10912_v49 = vld [vmem:[%s15288_s1 + $0x1184] ss:$16 sps:$4 sm:$0xff]   ;;  %v10915_v50 = vld [vmem:[%s15288_s1 + $0x118c] ss:$16 sps:$4 sm:$0xff]  }
 0x1fb   :  { %6956 = vmatpush1.bf16.msra.mxu0 %v10826_v53  ;;  %7804 = vmatpush1.bf16.msra.mxu1 %v10829_v54  ;;  %v10910_v53 = vld [vmem:[%s15288_s1 + $0x1180] ss:$16 sps:$4 sm:$0xff]   ;;  %v10913_v54 = vld [vmem:[%s15288_s1 + $0x1188] ss:$16 sps:$4 sm:$0xff]  }
 0x1fc   :  { %6957 = vmatprep.subr.bf16.mxu0 %v10834_v55  ;;  %7805 = vmatprep.subr.bf16.mxu1 %v10837_v56  ;;  %v10918_v55 = vld [vmem:[%s15288_s1 + $0x11a4] ss:$16 sps:$4 sm:$0xff]   ;;  %v10921_v56 = vld [vmem:[%s15288_s1 + $0x11ac] ss:$16 sps:$4 sm:$0xff]  }
 0x1ff   :  { %6958 = vmatpush1.bf16.msra.mxu0 %v10832_v59  ;;  %7806 = vmatpush1.bf16.msra.mxu1 %v10835_v60  ;;  %v10916_v59 = vld [vmem:[%s15288_s1 + $0x11a0] ss:$16 sps:$4 sm:$0xff]   ;;  %v10919_v60 = vld [vmem:[%s15288_s1 + $0x11a8] ss:$16 sps:$4 sm:$0xff]  }
 0x200   :  { %6980 = vmatprep.subr.bf16.mxu0 %v10840_v57  ;;  %7828 = vmatprep.subr.bf16.mxu1 %v10843_v58  ;;  %v10924_v57 = vld [vmem:[%s15288_s1 + $0x11c4] ss:$16 sps:$4 sm:$0xff]   ;;  %v10927_v58 = vld [vmem:[%s15288_s1 + $0x11cc] ss:$16 sps:$4 sm:$0xff]  }
 0x202   :  { %6960 = vmatmul.mubr.bf16.vlgmr.msra.gmra.mrb[0].mxu0 %v8735_v63  ;;  %7808 = vmatmul.mubr.bf16.vlgmr.msra.gmra.mrb[0].mxu1 %v8735_v63  ;;  %v10930_v63 = vld [vmem:[%s15288_s1 + $0x11e4] ss:$16 sps:$4 sm:$0xff]  }
 0x203   :  { %6981 = vmatpush1.bf16.msra.mxu0 %v10838_v0  ;;  %7829 = vmatpush1.bf16.msra.mxu1 %v10841_v3  ;;  %v10933_v0 = vld [vmem:[%s15288_s1 + $0x11ec] ss:$16 sps:$4 sm:$0xff]   ;;  %v10928_v3 = vld [vmem:[%s15288_s1 + $0x11e0] ss:$16 sps:$4 sm:$0xff]  }
 0x204   :  { %6982 = vmatprep.subr.bf16.mxu0 %v10846_v4  ;;  %7830 = vmatprep.subr.bf16.mxu1 %v10849_v1  ;;  %v10931_v4 = vld [vmem:[%s15288_s1 + $0x11e8] ss:$16 sps:$4 sm:$0xff]   ;;  %v10936_v1 = vld [vmem:[%s15288_s1 + $0x1204] ss:$16 sps:$4 sm:$0xff]  }
 0x205   :  { %6969 = vmatprep.mubr.bf16.mxu0 %v8768_v6  ;;  %7817 = vmatprep.mubr.bf16.mxu1 %v8768_v6  ;;  %v84_v6 = vld [vmem:[%s15289_s0 + $0x1c0] sm:$0xff] }
 0x207   :  { %6983 = vmatpush1.bf16.msra.mxu0 %v10844_v2  ;;  %7831 = vmatpush1.bf16.msra.mxu1 %v10847_v5  ;;  %v10939_v2 = vld [vmem:[%s15288_s1 + $0x120c] ss:$16 sps:$4 sm:$0xff]   ;;  %v68_v5 = vld [vmem:[%s15289_s0 + $0x140] sm:$0xff] }
 0x208   :  { %6984 = vmatprep.subr.bf16.mxu0 %v10852_v7  ;;  %7832 = vmatprep.subr.bf16.mxu1 %v10855_v8  ;;  %v8737_v7 = vcombine.low %v13380_v9, %v13385_v10  ;;  %v10934_v8 = vld [vmem:[%s15288_s1 + $0x1200] ss:$16 sps:$4 sm:$0xff]   ;;  %v10945_v9 = vld [vmem:[%s15288_s1 + $0x122c] ss:$16 sps:$4 sm:$0xff]  }
 0x209   :  { %v10940_v10 = vld [vmem:[%s15288_s1 + $0x1220] ss:$16 sps:$4 sm:$0xff]  }
 0x20a   :  { %6970 = vmatmul.mubr.bf16.gmra.mrb[4].mxu0 %v8767_v11  ;;  %7818 = vmatmul.mubr.bf16.gmra.mrb[4].mxu1 %v8767_v11  ;;  %v10937_v11 = vld [vmem:[%s15288_s1 + $0x1208] ss:$16 sps:$4 sm:$0xff]  }
 0x20b   :  { %6985 = vmatpush1.bf16.msra.mxu0 %v10850_v12  ;;  %7833 = vmatpush1.bf16.msra.mxu1 %v10853_v13  ;;  %v10942_v12 = vld [vmem:[%s15288_s1 + $0x1224] ss:$16 sps:$4 sm:$0xff]   ;;  %v10943_v13 = vld [vmem:[%s15288_s1 + $0x1228] ss:$16 sps:$4 sm:$0xff]  }
 0x20c   :  { %6986 = vmatprep.subr.bf16.mxu0 %v10858_v14  ;;  %7834 = vmatprep.subr.bf16.mxu1 %v10861_v15  ;;  %v8770_v14 = vcombine.high %v68_v5, %v84_v6  ;;  %v10948_v15 = vld [vmem:[%s15288_s1 + $0x1244] ss:$16 sps:$4 sm:$0xff]  }
 0x20d   :  { %7012 = vmatprep.mubr.bf16.mxu0 %v8738_v16  ;;  %7860 = vmatprep.mubr.bf16.mxu1 %v8738_v16  ;;  %v10951_v16 = vld [vmem:[%s15288_s1 + $0x124c] ss:$16 sps:$4 sm:$0xff]  }
 0x20f   :  { %6987 = vmatpush1.bf16.msra.mxu0 %v10856_v17  ;;  %7835 = vmatpush1.bf16.msra.mxu1 %v10859_v18  ;;  %v13592_v17 = vld [vmem:[%s15289_s0 + $0x48] sm:$0xff] }
 0x210   :  { %6988 = vmatprep.subr.bf16.mxu0 %v10864_v19  ;;  %7836 = vmatprep.subr.bf16.mxu1 %v10867_v20  ;;  %v13597_v18 = vld [vmem:[%s15289_s0 + $0xc8] sm:$0xff]  ;;  %v8769_v19 = vcombine.low %v68_v5, %v84_v6  ;;  %v10946_v20 = vld [vmem:[%s15288_s1 + $0x1240] ss:$16 sps:$4 sm:$0xff]  }
 0x211   :  { %v11018_v5 = vld [vmem:[%s15288_s1 + $0x13c0] ss:$16 sps:$4 sm:$0xff]   ;;  %v11021_v6 = vld [vmem:[%s15288_s1 + $0x13c8] ss:$16 sps:$4 sm:$0xff]  }
 0x213   :  { %6989 = vmatpush1.bf16.msra.mxu0 %v10862_v21  ;;  %7837 = vmatpush1.bf16.msra.mxu1 %v10865_v22  ;;  %v10949_v21 = vld [vmem:[%s15288_s1 + $0x1248] ss:$16 sps:$4 sm:$0xff]   ;;  %v10954_v22 = vld [vmem:[%s15288_s1 + $0x1264] ss:$16 sps:$4 sm:$0xff]  }
 0x214   :  { %6990 = vmatprep.subr.bf16.mxu0 %v10870_v23  ;;  %7838 = vmatprep.subr.bf16.mxu1 %v10873_v24  ;;  %v10957_v23 = vld [vmem:[%s15288_s1 + $0x126c] ss:$16 sps:$4 sm:$0xff]   ;;  %v8740_v24 = vcombine.high %v13592_v17, %v13597_v18 }
 0x217   :  { %6991 = vmatpush1.bf16.msra.mxu0 %v10868_v26  ;;  %7839 = vmatpush1.bf16.msra.mxu1 %v10871_v25  ;;  %v10952_v26 = vld [vmem:[%s15288_s1 + $0x1260] ss:$16 sps:$4 sm:$0xff]   ;;  %v10955_v25 = vld [vmem:[%s15288_s1 + $0x1268] ss:$16 sps:$4 sm:$0xff]  }
 0x218   :  { %6992 = vmatprep.subr.bf16.mxu0 %v10876_v27  ;;  %7840 = vmatprep.subr.bf16.mxu1 %v10879_v28  ;;  %v10960_v27 = vld [vmem:[%s15288_s1 + $0x1284] ss:$16 sps:$4 sm:$0xff]   ;;  %v10963_v28 = vld [vmem:[%s15288_s1 + $0x128c] ss:$16 sps:$4 sm:$0xff]  }
 0x21b   :  { %6993 = vmatpush1.bf16.msra.mxu0 %v10874_v29  ;;  %7841 = vmatpush1.bf16.msra.mxu1 %v10877_v30  ;;  %v10958_v29 = vld [vmem:[%s15288_s1 + $0x1280] ss:$16 sps:$4 sm:$0xff]   ;;  %v10961_v30 = vld [vmem:[%s15288_s1 + $0x1288] ss:$16 sps:$4 sm:$0xff]  }
 0x21c   :  { %6994 = vmatprep.subr.bf16.mxu0 %v10882_v31  ;;  %7842 = vmatprep.subr.bf16.mxu1 %v10885_v32  ;;  %v10966_v31 = vld [vmem:[%s15288_s1 + $0x12a4] ss:$16 sps:$4 sm:$0xff]   ;;  %v10969_v32 = vld [vmem:[%s15288_s1 + $0x12ac] ss:$16 sps:$4 sm:$0xff]  }
 0x21f   :  { %6995 = vmatpush1.bf16.msra.mxu0 %v10880_v34  ;;  %7843 = vmatpush1.bf16.msra.mxu1 %v10883_v36  ;;  %v10964_v34 = vld [vmem:[%s15288_s1 + $0x12a0] ss:$16 sps:$4 sm:$0xff]   ;;  %v10967_v36 = vld [vmem:[%s15288_s1 + $0x12a8] ss:$16 sps:$4 sm:$0xff]  }
 0x220   :  { %6996 = vmatprep.subr.bf16.mxu0 %v10888_v33  ;;  %7844 = vmatprep.subr.bf16.mxu1 %v10891_v35  ;;  %v10972_v33 = vld [vmem:[%s15288_s1 + $0x12c4] ss:$16 sps:$4 sm:$0xff]   ;;  %v10975_v35 = vld [vmem:[%s15288_s1 + $0x12cc] ss:$16 sps:$4 sm:$0xff]  }
 0x223   :  { %6997 = vmatpush1.bf16.msra.mxu0 %v10886_v37  ;;  %7845 = vmatpush1.bf16.msra.mxu1 %v10889_v38  ;;  %v10970_v37 = vld [vmem:[%s15288_s1 + $0x12c0] ss:$16 sps:$4 sm:$0xff]   ;;  %v10973_v38 = vld [vmem:[%s15288_s1 + $0x12c8] ss:$16 sps:$4 sm:$0xff]  }
 0x224   :  { %6998 = vmatprep.subr.bf16.mxu0 %v10894_v39  ;;  %7846 = vmatprep.subr.bf16.mxu1 %v10897_v40  ;;  %v10978_v39 = vld [vmem:[%s15288_s1 + $0x12e4] ss:$16 sps:$4 sm:$0xff]   ;;  %v10981_v40 = vld [vmem:[%s15288_s1 + $0x12ec] ss:$16 sps:$4 sm:$0xff]  }
 0x227   :  { %6999 = vmatpush1.bf16.msra.mxu0 %v10892_v42  ;;  %7847 = vmatpush1.bf16.msra.mxu1 %v10895_v44  ;;  %v10976_v42 = vld [vmem:[%s15288_s1 + $0x12e0] ss:$16 sps:$4 sm:$0xff]   ;;  %v10979_v44 = vld [vmem:[%s15288_s1 + $0x12e8] ss:$16 sps:$4 sm:$0xff]  }
 0x228   :  { %7000 = vmatprep.subr.bf16.mxu0 %v10900_v41  ;;  %7848 = vmatprep.subr.bf16.mxu1 %v10903_v43  ;;  %v10984_v41 = vld [vmem:[%s15288_s1 + $0x1304] ss:$16 sps:$4 sm:$0xff]   ;;  %v10987_v43 = vld [vmem:[%s15288_s1 + $0x130c] ss:$16 sps:$4 sm:$0xff]  }
 0x22b   :  { %7001 = vmatpush1.bf16.msra.mxu0 %v10898_v45  ;;  %7849 = vmatpush1.bf16.msra.mxu1 %v10901_v46  ;;  %v10982_v45 = vld [vmem:[%s15288_s1 + $0x1300] ss:$16 sps:$4 sm:$0xff]   ;;  %v10985_v46 = vld [vmem:[%s15288_s1 + $0x1308] ss:$16 sps:$4 sm:$0xff]  }
 0x22c   :  { %7002 = vmatprep.subr.bf16.mxu0 %v10906_v47  ;;  %7850 = vmatprep.subr.bf16.mxu1 %v10909_v48  ;;  %v10990_v47 = vld [vmem:[%s15288_s1 + $0x1324] ss:$16 sps:$4 sm:$0xff]   ;;  %v10993_v48 = vld [vmem:[%s15288_s1 + $0x132c] ss:$16 sps:$4 sm:$0xff]  }
 0x22f   :  { %7003 = vmatpush1.bf16.msra.mxu0 %v10904_v51  ;;  %7851 = vmatpush1.bf16.msra.mxu1 %v10907_v52  ;;  %v10988_v51 = vld [vmem:[%s15288_s1 + $0x1320] ss:$16 sps:$4 sm:$0xff]   ;;  %v10991_v52 = vld [vmem:[%s15288_s1 + $0x1328] ss:$16 sps:$4 sm:$0xff]  }
 0x230   :  { %7004 = vmatprep.subr.bf16.mxu0 %v10912_v49  ;;  %7852 = vmatprep.subr.bf16.mxu1 %v10915_v50  ;;  %v10996_v49 = vld [vmem:[%s15288_s1 + $0x1344] ss:$16 sps:$4 sm:$0xff]   ;;  %v10999_v50 = vld [vmem:[%s15288_s1 + $0x134c] ss:$16 sps:$4 sm:$0xff]  }
 0x233   :  { %7005 = vmatpush1.bf16.msra.mxu0 %v10910_v53  ;;  %7853 = vmatpush1.bf16.msra.mxu1 %v10913_v54  ;;  %v10994_v53 = vld [vmem:[%s15288_s1 + $0x1340] ss:$16 sps:$4 sm:$0xff]   ;;  %v10997_v54 = vld [vmem:[%s15288_s1 + $0x1348] ss:$16 sps:$4 sm:$0xff]  }
 0x234   :  { %7006 = vmatprep.subr.bf16.mxu0 %v10918_v55  ;;  %7854 = vmatprep.subr.bf16.mxu1 %v10921_v56  ;;  %v11002_v55 = vld [vmem:[%s15288_s1 + $0x1364] ss:$16 sps:$4 sm:$0xff]   ;;  %v11005_v56 = vld [vmem:[%s15288_s1 + $0x136c] ss:$16 sps:$4 sm:$0xff]  }
 0x237   :  { %7007 = vmatpush1.bf16.msra.mxu0 %v10916_v59  ;;  %7855 = vmatpush1.bf16.msra.mxu1 %v10919_v60  ;;  %v11000_v59 = vld [vmem:[%s15288_s1 + $0x1360] ss:$16 sps:$4 sm:$0xff]   ;;  %v11003_v60 = vld [vmem:[%s15288_s1 + $0x1368] ss:$16 sps:$4 sm:$0xff]  }
 0x238   :  { %7008 = vmatprep.subr.bf16.mxu0 %v10924_v57  ;;  %7856 = vmatprep.subr.bf16.mxu1 %v10927_v58  ;;  %v11008_v57 = vld [vmem:[%s15288_s1 + $0x1384] ss:$16 sps:$4 sm:$0xff]   ;;  %v11011_v58 = vld [vmem:[%s15288_s1 + $0x138c] ss:$16 sps:$4 sm:$0xff]  }
 0x23b   :  { %7009 = vmatpush1.bf16.msra.mxu0 %v10922_v61  ;;  %7857 = vmatpush1.bf16.msra.mxu1 %v10925_v62  ;;  %v11006_v61 = vld [vmem:[%s15288_s1 + $0x1380] ss:$16 sps:$4 sm:$0xff]   ;;  %v11009_v62 = vld [vmem:[%s15288_s1 + $0x1388] ss:$16 sps:$4 sm:$0xff]  }
 0x23c   :  { %7010 = vmatprep.subr.bf16.mxu0 %v10930_v63  ;;  %7858 = vmatprep.subr.bf16.mxu1 %v10933_v0  ;;  %v11014_v63 = vld [vmem:[%s15288_s1 + $0x13a4] ss:$16 sps:$4 sm:$0xff]   ;;  %v11017_v0 = vld [vmem:[%s15288_s1 + $0x13ac] ss:$16 sps:$4 sm:$0xff]  }
 0x23f   :  { %7011 = vmatpush1.bf16.msra.mxu0 %v10928_v3  ;;  %7859 = vmatpush1.bf16.msra.mxu1 %v10931_v4  ;;  %v11012_v3 = vld [vmem:[%s15288_s1 + $0x13a0] ss:$16 sps:$4 sm:$0xff]   ;;  %v11015_v4 = vld [vmem:[%s15288_s1 + $0x13a8] ss:$16 sps:$4 sm:$0xff]  }
 0x240   :  { %7033 = vmatprep.subr.bf16.mxu0 %v10936_v1  ;;  %7881 = vmatprep.subr.bf16.mxu1 %v10939_v2  ;;  %v11020_v1 = vld [vmem:[%s15288_s1 + $0x13c4] ss:$16 sps:$4 sm:$0xff]   ;;  %v11023_v2 = vld [vmem:[%s15288_s1 + $0x13cc] ss:$16 sps:$4 sm:$0xff]  }
 0x242   :  { %7013 = vmatmul.mubr.bf16.vlgmr.msra.gmra.mrb[0].mxu0 %v8737_v7  ;;  %7861 = vmatmul.mubr.bf16.vlgmr.msra.gmra.mrb[0].mxu1 %v8737_v7  ;;  %v11026_v7 = vld [vmem:[%s15288_s1 + $0x13e4] ss:$16 sps:$4 sm:$0xff]  }
 0x243   :  { %7034 = vmatpush1.bf16.msra.mxu0 %v10934_v8  ;;  %7882 = vmatpush1.bf16.msra.mxu1 %v10937_v11  ;;  %v11029_v8 = vld [vmem:[%s15288_s1 + $0x13ec] ss:$16 sps:$4 sm:$0xff]   ;;  %v11024_v11 = vld [vmem:[%s15288_s1 + $0x13e0] ss:$16 sps:$4 sm:$0xff]  }
 0x244   :  { %7035 = vmatprep.subr.bf16.mxu0 %v10942_v12  ;;  %7883 = vmatprep.subr.bf16.mxu1 %v10945_v9  ;;  %v11027_v12 = vld [vmem:[%s15288_s1 + $0x13e8] ss:$16 sps:$4 sm:$0xff]   ;;  %v11032_v9 = vld [vmem:[%s15288_s1 + $0x1404] ss:$16 sps:$4 sm:$0xff]  }
 0x245   :  { %7022 = vmatprep.mubr.bf16.mxu0 %v8770_v14  ;;  %7870 = vmatprep.mubr.bf16.mxu1 %v8770_v14  ;;  %v69_v14 = vld [vmem:[%s15289_s0 + $0x148] sm:$0xff] }
 0x247   :  { %7036 = vmatpush1.bf16.msra.mxu0 %v10940_v10  ;;  %7884 = vmatpush1.bf16.msra.mxu1 %v10943_v13  ;;  %v11035_v10 = vld [vmem:[%s15288_s1 + $0x140c] ss:$16 sps:$4 sm:$0xff]   ;;  %v8739_v13 = vcombine.low %v13592_v17, %v13597_v18  ;;  %v11038_v17 = vld [vmem:[%s15288_s1 + $0x1424] ss:$16 sps:$4 sm:$0xff]  }
 0x248   :  { %7037 = vmatprep.subr.bf16.mxu0 %v10948_v15  ;;  %7885 = vmatprep.subr.bf16.mxu1 %v10951_v16  ;;  %v85_v15 = vld [vmem:[%s15289_s0 + $0x1c8] sm:$0xff]  ;;  %v11030_v16 = vld [vmem:[%s15288_s1 + $0x1400] ss:$16 sps:$4 sm:$0xff]  }
 0x249   :  { %v11041_v18 = vld [vmem:[%s15288_s1 + $0x142c] ss:$16 sps:$4 sm:$0xff]  }
 0x24a   :  { %7023 = vmatmul.mubr.bf16.gmra.mrb[4].mxu0 %v8769_v19  ;;  %7871 = vmatmul.mubr.bf16.gmra.mrb[4].mxu1 %v8769_v19  ;;  %v11033_v19 = vld [vmem:[%s15288_s1 + $0x1408] ss:$16 sps:$4 sm:$0xff]  }
 0x24b   :  { %7038 = vmatpush1.bf16.msra.mxu0 %v10946_v20  ;;  %7886 = vmatpush1.bf16.msra.mxu1 %v10949_v21  ;;  %v8772_v20 = vcombine.high %v69_v14, %v85_v15  ;;  %v11036_v21 = vld [vmem:[%s15288_s1 + $0x1420] ss:$16 sps:$4 sm:$0xff]  }
 0x24c   :  { %7039 = vmatprep.subr.bf16.mxu0 %v10954_v22  ;;  %7887 = vmatprep.subr.bf16.mxu1 %v10957_v23  ;;  %v11039_v22 = vld [vmem:[%s15288_s1 + $0x1428] ss:$16 sps:$4 sm:$0xff]   ;;  %v11044_v23 = vld [vmem:[%s15288_s1 + $0x1444] ss:$16 sps:$4 sm:$0xff]  }
 0x24d   :  { %7065 = vmatprep.mubr.bf16.mxu0 %v8740_v24  ;;  %7913 = vmatprep.mubr.bf16.mxu1 %v8740_v24  ;;  %v11047_v24 = vld [vmem:[%s15288_s1 + $0x144c] ss:$16 sps:$4 sm:$0xff]  }
 0x24f   :  { %7040 = vmatpush1.bf16.msra.mxu0 %v10952_v26  ;;  %7888 = vmatpush1.bf16.msra.mxu1 %v10955_v25  ;;  %v8771_v26 = vcombine.low %v69_v14, %v85_v15  ;;  %v13804_v25 = vld [vmem:[%s15289_s0 + $0x50] sm:$0xff]  ;;  %v11117_v14 = vld [vmem:[%s15288_s1 + $0x15c8] ss:$16 sps:$4 sm:$0xff]  }
 0x250   :  { %7041 = vmatprep.subr.bf16.mxu0 %v10960_v27  ;;  %7889 = vmatprep.subr.bf16.mxu1 %v10963_v28  ;;  %v13809_v27 = vld [vmem:[%s15289_s0 + $0xd0] sm:$0xff] }
 0x251   :  { %v11042_v28 = vld [vmem:[%s15288_s1 + $0x1440] ss:$16 sps:$4 sm:$0xff]   ;;  %v11122_v15 = vld [vmem:[%s15288_s1 + $0x15e4] ss:$16 sps:$4 sm:$0xff]  }
 0x253   :  { %7042 = vmatpush1.bf16.msra.mxu0 %v10958_v29  ;;  %7890 = vmatpush1.bf16.msra.mxu1 %v10961_v30  ;;  %v11045_v29 = vld [vmem:[%s15288_s1 + $0x1448] ss:$16 sps:$4 sm:$0xff]   ;;  %v11050_v30 = vld [vmem:[%s15288_s1 + $0x1464] ss:$16 sps:$4 sm:$0xff]  }
 0x254   :  { %7043 = vmatprep.subr.bf16.mxu0 %v10966_v31  ;;  %7891 = vmatprep.subr.bf16.mxu1 %v10969_v32  ;;  %v11053_v31 = vld [vmem:[%s15288_s1 + $0x146c] ss:$16 sps:$4 sm:$0xff]   ;;  %v8742_v32 = vcombine.high %v13804_v25, %v13809_v27 }
 0x257   :  { %7044 = vmatpush1.bf16.msra.mxu0 %v10964_v34  ;;  %7892 = vmatpush1.bf16.msra.mxu1 %v10967_v36  ;;  %v11048_v34 = vld [vmem:[%s15288_s1 + $0x1460] ss:$16 sps:$4 sm:$0xff]   ;;  %v11051_v36 = vld [vmem:[%s15288_s1 + $0x1468] ss:$16 sps:$4 sm:$0xff]  }
 0x258   :  { %7045 = vmatprep.subr.bf16.mxu0 %v10972_v33  ;;  %7893 = vmatprep.subr.bf16.mxu1 %v10975_v35  ;;  %v11056_v33 = vld [vmem:[%s15288_s1 + $0x1484] ss:$16 sps:$4 sm:$0xff]   ;;  %v11059_v35 = vld [vmem:[%s15288_s1 + $0x148c] ss:$16 sps:$4 sm:$0xff]  }
 0x25b   :  { %7046 = vmatpush1.bf16.msra.mxu0 %v10970_v37  ;;  %7894 = vmatpush1.bf16.msra.mxu1 %v10973_v38  ;;  %v11054_v37 = vld [vmem:[%s15288_s1 + $0x1480] ss:$16 sps:$4 sm:$0xff]   ;;  %v11057_v38 = vld [vmem:[%s15288_s1 + $0x1488] ss:$16 sps:$4 sm:$0xff]  }
 0x25c   :  { %7047 = vmatprep.subr.bf16.mxu0 %v10978_v39  ;;  %7895 = vmatprep.subr.bf16.mxu1 %v10981_v40  ;;  %v11062_v39 = vld [vmem:[%s15288_s1 + $0x14a4] ss:$16 sps:$4 sm:$0xff]   ;;  %v11065_v40 = vld [vmem:[%s15288_s1 + $0x14ac] ss:$16 sps:$4 sm:$0xff]  }
 0x25f   :  { %7048 = vmatpush1.bf16.msra.mxu0 %v10976_v42  ;;  %7896 = vmatpush1.bf16.msra.mxu1 %v10979_v44  ;;  %v11060_v42 = vld [vmem:[%s15288_s1 + $0x14a0] ss:$16 sps:$4 sm:$0xff]   ;;  %v11063_v44 = vld [vmem:[%s15288_s1 + $0x14a8] ss:$16 sps:$4 sm:$0xff]  }
 0x260   :  { %7049 = vmatprep.subr.bf16.mxu0 %v10984_v41  ;;  %7897 = vmatprep.subr.bf16.mxu1 %v10987_v43  ;;  %v11068_v41 = vld [vmem:[%s15288_s1 + $0x14c4] ss:$16 sps:$4 sm:$0xff]   ;;  %v11071_v43 = vld [vmem:[%s15288_s1 + $0x14cc] ss:$16 sps:$4 sm:$0xff]  }
 0x263   :  { %7050 = vmatpush1.bf16.msra.mxu0 %v10982_v45  ;;  %7898 = vmatpush1.bf16.msra.mxu1 %v10985_v46  ;;  %v11066_v45 = vld [vmem:[%s15288_s1 + $0x14c0] ss:$16 sps:$4 sm:$0xff]   ;;  %v11069_v46 = vld [vmem:[%s15288_s1 + $0x14c8] ss:$16 sps:$4 sm:$0xff]  }
 0x264   :  { %7051 = vmatprep.subr.bf16.mxu0 %v10990_v47  ;;  %7899 = vmatprep.subr.bf16.mxu1 %v10993_v48  ;;  %v11074_v47 = vld [vmem:[%s15288_s1 + $0x14e4] ss:$16 sps:$4 sm:$0xff]   ;;  %v11077_v48 = vld [vmem:[%s15288_s1 + $0x14ec] ss:$16 sps:$4 sm:$0xff]  }
 0x267   :  { %7052 = vmatpush1.bf16.msra.mxu0 %v10988_v51  ;;  %7900 = vmatpush1.bf16.msra.mxu1 %v10991_v52  ;;  %v11072_v51 = vld [vmem:[%s15288_s1 + $0x14e0] ss:$16 sps:$4 sm:$0xff]   ;;  %v11075_v52 = vld [vmem:[%s15288_s1 + $0x14e8] ss:$16 sps:$4 sm:$0xff]  }
 0x268   :  { %7053 = vmatprep.subr.bf16.mxu0 %v10996_v49  ;;  %7901 = vmatprep.subr.bf16.mxu1 %v10999_v50  ;;  %v11080_v49 = vld [vmem:[%s15288_s1 + $0x1504] ss:$16 sps:$4 sm:$0xff]   ;;  %v11083_v50 = vld [vmem:[%s15288_s1 + $0x150c] ss:$16 sps:$4 sm:$0xff]  }
 0x26b   :  { %7054 = vmatpush1.bf16.msra.mxu0 %v10994_v53  ;;  %7902 = vmatpush1.bf16.msra.mxu1 %v10997_v54  ;;  %v11078_v53 = vld [vmem:[%s15288_s1 + $0x1500] ss:$16 sps:$4 sm:$0xff]   ;;  %v11081_v54 = vld [vmem:[%s15288_s1 + $0x1508] ss:$16 sps:$4 sm:$0xff]  }
 0x26c   :  { %7055 = vmatprep.subr.bf16.mxu0 %v11002_v55  ;;  %7903 = vmatprep.subr.bf16.mxu1 %v11005_v56  ;;  %v11086_v55 = vld [vmem:[%s15288_s1 + $0x1524] ss:$16 sps:$4 sm:$0xff]   ;;  %v11089_v56 = vld [vmem:[%s15288_s1 + $0x152c] ss:$16 sps:$4 sm:$0xff]  }
 0x26f   :  { %7056 = vmatpush1.bf16.msra.mxu0 %v11000_v59  ;;  %7904 = vmatpush1.bf16.msra.mxu1 %v11003_v60  ;;  %v11084_v59 = vld [vmem:[%s15288_s1 + $0x1520] ss:$16 sps:$4 sm:$0xff]   ;;  %v11087_v60 = vld [vmem:[%s15288_s1 + $0x1528] ss:$16 sps:$4 sm:$0xff]  }
 0x270   :  { %7057 = vmatprep.subr.bf16.mxu0 %v11008_v57  ;;  %7905 = vmatprep.subr.bf16.mxu1 %v11011_v58  ;;  %v11092_v57 = vld [vmem:[%s15288_s1 + $0x1544] ss:$16 sps:$4 sm:$0xff]   ;;  %v11095_v58 = vld [vmem:[%s15288_s1 + $0x154c] ss:$16 sps:$4 sm:$0xff]  }
 0x273   :  { %7058 = vmatpush1.bf16.msra.mxu0 %v11006_v61  ;;  %7906 = vmatpush1.bf16.msra.mxu1 %v11009_v62  ;;  %v11090_v61 = vld [vmem:[%s15288_s1 + $0x1540] ss:$16 sps:$4 sm:$0xff]   ;;  %v11093_v62 = vld [vmem:[%s15288_s1 + $0x1548] ss:$16 sps:$4 sm:$0xff]  }
 0x274   :  { %7059 = vmatprep.subr.bf16.mxu0 %v11014_v63  ;;  %7907 = vmatprep.subr.bf16.mxu1 %v11017_v0  ;;  %v11098_v63 = vld [vmem:[%s15288_s1 + $0x1564] ss:$16 sps:$4 sm:$0xff]   ;;  %v11101_v0 = vld [vmem:[%s15288_s1 + $0x156c] ss:$16 sps:$4 sm:$0xff]  }
 0x277   :  { %7060 = vmatpush1.bf16.msra.mxu0 %v11012_v3  ;;  %7908 = vmatpush1.bf16.msra.mxu1 %v11015_v4  ;;  %v11096_v3 = vld [vmem:[%s15288_s1 + $0x1560] ss:$16 sps:$4 sm:$0xff]   ;;  %v11099_v4 = vld [vmem:[%s15288_s1 + $0x1568] ss:$16 sps:$4 sm:$0xff]  }
 0x278   :  { %7061 = vmatprep.subr.bf16.mxu0 %v11020_v1  ;;  %7909 = vmatprep.subr.bf16.mxu1 %v11023_v2  ;;  %v11104_v1 = vld [vmem:[%s15288_s1 + $0x1584] ss:$16 sps:$4 sm:$0xff]   ;;  %v11107_v2 = vld [vmem:[%s15288_s1 + $0x158c] ss:$16 sps:$4 sm:$0xff]  }
 0x27b   :  { %7062 = vmatpush1.bf16.msra.mxu0 %v11018_v5  ;;  %7910 = vmatpush1.bf16.msra.mxu1 %v11021_v6  ;;  %v11102_v5 = vld [vmem:[%s15288_s1 + $0x1580] ss:$16 sps:$4 sm:$0xff]   ;;  %v11105_v6 = vld [vmem:[%s15288_s1 + $0x1588] ss:$16 sps:$4 sm:$0xff]  }
 0x27c   :  { %7063 = vmatprep.subr.bf16.mxu0 %v11026_v7  ;;  %7911 = vmatprep.subr.bf16.mxu1 %v11029_v8  ;;  %v11110_v7 = vld [vmem:[%s15288_s1 + $0x15a4] ss:$16 sps:$4 sm:$0xff]   ;;  %v11113_v8 = vld [vmem:[%s15288_s1 + $0x15ac] ss:$16 sps:$4 sm:$0xff]  }
 0x27f   :  { %7064 = vmatpush1.bf16.msra.mxu0 %v11024_v11  ;;  %7912 = vmatpush1.bf16.msra.mxu1 %v11027_v12  ;;  %v11108_v11 = vld [vmem:[%s15288_s1 + $0x15a0] ss:$16 sps:$4 sm:$0xff]   ;;  %v11111_v12 = vld [vmem:[%s15288_s1 + $0x15a8] ss:$16 sps:$4 sm:$0xff]  }
 0x280   :  { %7086 = vmatprep.subr.bf16.mxu0 %v11032_v9  ;;  %7934 = vmatprep.subr.bf16.mxu1 %v11035_v10  ;;  %v11116_v9 = vld [vmem:[%s15288_s1 + $0x15c4] ss:$16 sps:$4 sm:$0xff]   ;;  %v11119_v10 = vld [vmem:[%s15288_s1 + $0x15cc] ss:$16 sps:$4 sm:$0xff]  }
 0x282   :  { %7066 = vmatmul.mubr.bf16.vlgmr.msra.gmra.mrb[0].mxu0 %v8739_v13  ;;  %7914 = vmatmul.mubr.bf16.vlgmr.msra.gmra.mrb[0].mxu1 %v8739_v13  ;;  %v11114_v13 = vld [vmem:[%s15288_s1 + $0x15c0] ss:$16 sps:$4 sm:$0xff]  }
 0x283   :  { %7087 = vmatpush1.bf16.msra.mxu0 %v11030_v16  ;;  %7935 = vmatpush1.bf16.msra.mxu1 %v11033_v19  ;;  %v11125_v16 = vld [vmem:[%s15288_s1 + $0x15ec] ss:$16 sps:$4 sm:$0xff]   ;;  %v11120_v19 = vld [vmem:[%s15288_s1 + $0x15e0] ss:$16 sps:$4 sm:$0xff]  }
 0x284   :  { %7088 = vmatprep.subr.bf16.mxu0 %v11038_v17  ;;  %7936 = vmatprep.subr.bf16.mxu1 %v11041_v18  ;;  %v11123_v17 = vld [vmem:[%s15288_s1 + $0x15e8] ss:$16 sps:$4 sm:$0xff]   ;;  %v11128_v18 = vld [vmem:[%s15288_s1 + $0x1604] ss:$16 sps:$4 sm:$0xff]  }
 0x285   :  { %7075 = vmatprep.mubr.bf16.mxu0 %v8772_v20  ;;  %7923 = vmatprep.mubr.bf16.mxu1 %v8772_v20  ;;  %v11131_v20 = vld [vmem:[%s15288_s1 + $0x160c] ss:$16 sps:$4 sm:$0xff]  }
 0x287   :  { %7089 = vmatpush1.bf16.msra.mxu0 %v11036_v21  ;;  %7937 = vmatpush1.bf16.msra.mxu1 %v11039_v22  ;;  %v8741_v21 = vcombine.low %v13804_v25, %v13809_v27  ;;  %v70_v22 = vld [vmem:[%s15289_s0 + $0x150] sm:$0xff]  ;;  %v11137_v27 = vld [vmem:[%s15288_s1 + $0x162c] ss:$16 sps:$4 sm:$0xff]  }
 0x288   :  { %7090 = vmatprep.subr.bf16.mxu0 %v11044_v23  ;;  %7938 = vmatprep.subr.bf16.mxu1 %v11047_v24  ;;  %v86_v23 = vld [vmem:[%s15289_s0 + $0x1d0] sm:$0xff] }
 0x289   :  { %v11126_v24 = vld [vmem:[%s15288_s1 + $0x1600] ss:$16 sps:$4 sm:$0xff]   ;;  %v11134_v25 = vld [vmem:[%s15288_s1 + $0x1624] ss:$16 sps:$4 sm:$0xff]  }
 0x28a   :  { %7076 = vmatmul.mubr.bf16.gmra.mrb[4].mxu0 %v8771_v26  ;;  %7924 = vmatmul.mubr.bf16.gmra.mrb[4].mxu1 %v8771_v26  ;;  %v11129_v26 = vld [vmem:[%s15288_s1 + $0x1608] ss:$16 sps:$4 sm:$0xff]  }
 0x28b   :  { %7091 = vmatpush1.bf16.msra.mxu0 %v11042_v28  ;;  %7939 = vmatpush1.bf16.msra.mxu1 %v11045_v29  ;;  %v8774_v28 = vcombine.high %v70_v22, %v86_v23  ;;  %v11132_v29 = vld [vmem:[%s15288_s1 + $0x1620] ss:$16 sps:$4 sm:$0xff]  }
 0x28c   :  { %7092 = vmatprep.subr.bf16.mxu0 %v11050_v30  ;;  %7940 = vmatprep.subr.bf16.mxu1 %v11053_v31  ;;  %v11135_v30 = vld [vmem:[%s15288_s1 + $0x1628] ss:$16 sps:$4 sm:$0xff]   ;;  %v11140_v31 = vld [vmem:[%s15288_s1 + $0x1644] ss:$16 sps:$4 sm:$0xff]  }
 0x28d   :  { %7118 = vmatprep.mubr.bf16.mxu0 %v8742_v32  ;;  %7966 = vmatprep.mubr.bf16.mxu1 %v8742_v32  ;;  %v11143_v32 = vld [vmem:[%s15288_s1 + $0x164c] ss:$16 sps:$4 sm:$0xff]  }
 0x28f   :  { %7093 = vmatpush1.bf16.msra.mxu0 %v11048_v34  ;;  %7941 = vmatpush1.bf16.msra.mxu1 %v11051_v36  ;;  %v8773_v34 = vcombine.low %v70_v22, %v86_v23  ;;  %v14016_v36 = vld [vmem:[%s15289_s0 + $0x58] sm:$0xff]  ;;  %v11218_v23 = vld [vmem:[%s15288_s1 + $0x17e4] ss:$16 sps:$4 sm:$0xff]  }
 0x290   :  { %7094 = vmatprep.subr.bf16.mxu0 %v11056_v33  ;;  %7942 = vmatprep.subr.bf16.mxu1 %v11059_v35  ;;  %v14021_v33 = vld [vmem:[%s15289_s0 + $0xd8] sm:$0xff]  ;;  %v11138_v35 = vld [vmem:[%s15288_s1 + $0x1640] ss:$16 sps:$4 sm:$0xff]  }
 0x291   :  { %v11213_v22 = vld [vmem:[%s15288_s1 + $0x17c8] ss:$16 sps:$4 sm:$0xff]  }
 0x293   :  { %7095 = vmatpush1.bf16.msra.mxu0 %v11054_v37  ;;  %7943 = vmatpush1.bf16.msra.mxu1 %v11057_v38  ;;  %v11141_v37 = vld [vmem:[%s15288_s1 + $0x1648] ss:$16 sps:$4 sm:$0xff]   ;;  %v11146_v38 = vld [vmem:[%s15288_s1 + $0x1664] ss:$16 sps:$4 sm:$0xff]  }
 0x294   :  { %7096 = vmatprep.subr.bf16.mxu0 %v11062_v39  ;;  %7944 = vmatprep.subr.bf16.mxu1 %v11065_v40  ;;  %v11149_v39 = vld [vmem:[%s15288_s1 + $0x166c] ss:$16 sps:$4 sm:$0xff]   ;;  %v8744_v40 = vcombine.high %v14016_v36, %v14021_v33 }
 0x297   :  { %7097 = vmatpush1.bf16.msra.mxu0 %v11060_v42  ;;  %7945 = vmatpush1.bf16.msra.mxu1 %v11063_v44  ;;  %v11144_v42 = vld [vmem:[%s15288_s1 + $0x1660] ss:$16 sps:$4 sm:$0xff]   ;;  %v11147_v44 = vld [vmem:[%s15288_s1 + $0x1668] ss:$16 sps:$4 sm:$0xff]  }
 0x298   :  { %7098 = vmatprep.subr.bf16.mxu0 %v11068_v41  ;;  %7946 = vmatprep.subr.bf16.mxu1 %v11071_v43  ;;  %v11152_v41 = vld [vmem:[%s15288_s1 + $0x1684] ss:$16 sps:$4 sm:$0xff]   ;;  %v11155_v43 = vld [vmem:[%s15288_s1 + $0x168c] ss:$16 sps:$4 sm:$0xff]  }
 0x29b   :  { %7099 = vmatpush1.bf16.msra.mxu0 %v11066_v45  ;;  %7947 = vmatpush1.bf16.msra.mxu1 %v11069_v46  ;;  %v11150_v45 = vld [vmem:[%s15288_s1 + $0x1680] ss:$16 sps:$4 sm:$0xff]   ;;  %v11153_v46 = vld [vmem:[%s15288_s1 + $0x1688] ss:$16 sps:$4 sm:$0xff]  }
 0x29c   :  { %7100 = vmatprep.subr.bf16.mxu0 %v11074_v47  ;;  %7948 = vmatprep.subr.bf16.mxu1 %v11077_v48  ;;  %v11158_v47 = vld [vmem:[%s15288_s1 + $0x16a4] ss:$16 sps:$4 sm:$0xff]   ;;  %v11161_v48 = vld [vmem:[%s15288_s1 + $0x16ac] ss:$16 sps:$4 sm:$0xff]  }
 0x29f   :  { %7101 = vmatpush1.bf16.msra.mxu0 %v11072_v51  ;;  %7949 = vmatpush1.bf16.msra.mxu1 %v11075_v52  ;;  %v11156_v51 = vld [vmem:[%s15288_s1 + $0x16a0] ss:$16 sps:$4 sm:$0xff]   ;;  %v11159_v52 = vld [vmem:[%s15288_s1 + $0x16a8] ss:$16 sps:$4 sm:$0xff]  }
 0x2a0   :  { %7102 = vmatprep.subr.bf16.mxu0 %v11080_v49  ;;  %7950 = vmatprep.subr.bf16.mxu1 %v11083_v50  ;;  %v11164_v49 = vld [vmem:[%s15288_s1 + $0x16c4] ss:$16 sps:$4 sm:$0xff]   ;;  %v11167_v50 = vld [vmem:[%s15288_s1 + $0x16cc] ss:$16 sps:$4 sm:$0xff]  }
 0x2a3   :  { %7103 = vmatpush1.bf16.msra.mxu0 %v11078_v53  ;;  %7951 = vmatpush1.bf16.msra.mxu1 %v11081_v54  ;;  %v11162_v53 = vld [vmem:[%s15288_s1 + $0x16c0] ss:$16 sps:$4 sm:$0xff]   ;;  %v11165_v54 = vld [vmem:[%s15288_s1 + $0x16c8] ss:$16 sps:$4 sm:$0xff]  }
 0x2a4   :  { %7104 = vmatprep.subr.bf16.mxu0 %v11086_v55  ;;  %7952 = vmatprep.subr.bf16.mxu1 %v11089_v56  ;;  %v11170_v55 = vld [vmem:[%s15288_s1 + $0x16e4] ss:$16 sps:$4 sm:$0xff]   ;;  %v11173_v56 = vld [vmem:[%s15288_s1 + $0x16ec] ss:$16 sps:$4 sm:$0xff]  }
 0x2a7   :  { %7105 = vmatpush1.bf16.msra.mxu0 %v11084_v59  ;;  %7953 = vmatpush1.bf16.msra.mxu1 %v11087_v60  ;;  %v11168_v59 = vld [vmem:[%s15288_s1 + $0x16e0] ss:$16 sps:$4 sm:$0xff]   ;;  %v11171_v60 = vld [vmem:[%s15288_s1 + $0x16e8] ss:$16 sps:$4 sm:$0xff]  }
 0x2a8   :  { %7106 = vmatprep.subr.bf16.mxu0 %v11092_v57  ;;  %7954 = vmatprep.subr.bf16.mxu1 %v11095_v58  ;;  %v11176_v57 = vld [vmem:[%s15288_s1 + $0x1704] ss:$16 sps:$4 sm:$0xff]   ;;  %v11179_v58 = vld [vmem:[%s15288_s1 + $0x170c] ss:$16 sps:$4 sm:$0xff]  }
 0x2ab   :  { %7107 = vmatpush1.bf16.msra.mxu0 %v11090_v61  ;;  %7955 = vmatpush1.bf16.msra.mxu1 %v11093_v62  ;;  %v11174_v61 = vld [vmem:[%s15288_s1 + $0x1700] ss:$16 sps:$4 sm:$0xff]   ;;  %v11177_v62 = vld [vmem:[%s15288_s1 + $0x1708] ss:$16 sps:$4 sm:$0xff]  }
 0x2ac   :  { %7108 = vmatprep.subr.bf16.mxu0 %v11098_v63  ;;  %7956 = vmatprep.subr.bf16.mxu1 %v11101_v0  ;;  %v11182_v63 = vld [vmem:[%s15288_s1 + $0x1724] ss:$16 sps:$4 sm:$0xff]   ;;  %v11185_v0 = vld [vmem:[%s15288_s1 + $0x172c] ss:$16 sps:$4 sm:$0xff]  }
 0x2af   :  { %7109 = vmatpush1.bf16.msra.mxu0 %v11096_v3  ;;  %7957 = vmatpush1.bf16.msra.mxu1 %v11099_v4  ;;  %v11180_v3 = vld [vmem:[%s15288_s1 + $0x1720] ss:$16 sps:$4 sm:$0xff]   ;;  %v11183_v4 = vld [vmem:[%s15288_s1 + $0x1728] ss:$16 sps:$4 sm:$0xff]  }
 0x2b0   :  { %7110 = vmatprep.subr.bf16.mxu0 %v11104_v1  ;;  %7958 = vmatprep.subr.bf16.mxu1 %v11107_v2  ;;  %v11188_v1 = vld [vmem:[%s15288_s1 + $0x1744] ss:$16 sps:$4 sm:$0xff]   ;;  %v11191_v2 = vld [vmem:[%s15288_s1 + $0x174c] ss:$16 sps:$4 sm:$0xff]  }
 0x2b3   :  { %7111 = vmatpush1.bf16.msra.mxu0 %v11102_v5  ;;  %7959 = vmatpush1.bf16.msra.mxu1 %v11105_v6  ;;  %v11186_v5 = vld [vmem:[%s15288_s1 + $0x1740] ss:$16 sps:$4 sm:$0xff]   ;;  %v11189_v6 = vld [vmem:[%s15288_s1 + $0x1748] ss:$16 sps:$4 sm:$0xff]  }
 0x2b4   :  { %7112 = vmatprep.subr.bf16.mxu0 %v11110_v7  ;;  %7960 = vmatprep.subr.bf16.mxu1 %v11113_v8  ;;  %v11194_v7 = vld [vmem:[%s15288_s1 + $0x1764] ss:$16 sps:$4 sm:$0xff]   ;;  %v11197_v8 = vld [vmem:[%s15288_s1 + $0x176c] ss:$16 sps:$4 sm:$0xff]  }
 0x2b7   :  { %7113 = vmatpush1.bf16.msra.mxu0 %v11108_v11  ;;  %7961 = vmatpush1.bf16.msra.mxu1 %v11111_v12  ;;  %v11192_v11 = vld [vmem:[%s15288_s1 + $0x1760] ss:$16 sps:$4 sm:$0xff]   ;;  %v11195_v12 = vld [vmem:[%s15288_s1 + $0x1768] ss:$16 sps:$4 sm:$0xff]  }
 0x2b8   :  { %7114 = vmatprep.subr.bf16.mxu0 %v11116_v9  ;;  %7962 = vmatprep.subr.bf16.mxu1 %v11119_v10  ;;  %v11200_v9 = vld [vmem:[%s15288_s1 + $0x1784] ss:$16 sps:$4 sm:$0xff]   ;;  %v11203_v10 = vld [vmem:[%s15288_s1 + $0x178c] ss:$16 sps:$4 sm:$0xff]  }
 0x2bb   :  { %7115 = vmatpush1.bf16.msra.mxu0 %v11114_v13  ;;  %7963 = vmatpush1.bf16.msra.mxu1 %v11117_v14  ;;  %v11198_v13 = vld [vmem:[%s15288_s1 + $0x1780] ss:$16 sps:$4 sm:$0xff]   ;;  %v11201_v14 = vld [vmem:[%s15288_s1 + $0x1788] ss:$16 sps:$4 sm:$0xff]  }
 0x2bc   :  { %7116 = vmatprep.subr.bf16.mxu0 %v11122_v15  ;;  %7964 = vmatprep.subr.bf16.mxu1 %v11125_v16  ;;  %v11206_v15 = vld [vmem:[%s15288_s1 + $0x17a4] ss:$16 sps:$4 sm:$0xff]   ;;  %v11209_v16 = vld [vmem:[%s15288_s1 + $0x17ac] ss:$16 sps:$4 sm:$0xff]  }
 0x2bf   :  { %7117 = vmatpush1.bf16.msra.mxu0 %v11120_v19  ;;  %7965 = vmatpush1.bf16.msra.mxu1 %v11123_v17  ;;  %v11204_v19 = vld [vmem:[%s15288_s1 + $0x17a0] ss:$16 sps:$4 sm:$0xff]   ;;  %v11207_v17 = vld [vmem:[%s15288_s1 + $0x17a8] ss:$16 sps:$4 sm:$0xff]  }
 0x2c0   :  { %7139 = vmatprep.subr.bf16.mxu0 %v11128_v18  ;;  %7987 = vmatprep.subr.bf16.mxu1 %v11131_v20  ;;  %v11212_v18 = vld [vmem:[%s15288_s1 + $0x17c4] ss:$16 sps:$4 sm:$0xff]   ;;  %v11215_v20 = vld [vmem:[%s15288_s1 + $0x17cc] ss:$16 sps:$4 sm:$0xff]  }
 0x2c2   :  { %7119 = vmatmul.mubr.bf16.vlgmr.msra.gmra.mrb[0].mxu0 %v8741_v21  ;;  %7967 = vmatmul.mubr.bf16.vlgmr.msra.gmra.mrb[0].mxu1 %v8741_v21  ;;  %v11210_v21 = vld [vmem:[%s15288_s1 + $0x17c0] ss:$16 sps:$4 sm:$0xff]  }
 0x2c3   :  { %7140 = vmatpush1.bf16.msra.mxu0 %v11126_v24  ;;  %7988 = vmatpush1.bf16.msra.mxu1 %v11129_v26  ;;  %v11221_v24 = vld [vmem:[%s15288_s1 + $0x17ec] ss:$16 sps:$4 sm:$0xff]   ;;  %v11216_v26 = vld [vmem:[%s15288_s1 + $0x17e0] ss:$16 sps:$4 sm:$0xff]  }
 0x2c4   :  { %7141 = vmatprep.subr.bf16.mxu0 %v11134_v25  ;;  %7989 = vmatprep.subr.bf16.mxu1 %v11137_v27  ;;  %v11219_v25 = vld [vmem:[%s15288_s1 + $0x17e8] ss:$16 sps:$4 sm:$0xff]   ;;  %v11224_v27 = vld [vmem:[%s15288_s1 + $0x1804] ss:$16 sps:$4 sm:$0xff]  }
 0x2c5   :  { %7128 = vmatprep.mubr.bf16.mxu0 %v8774_v28  ;;  %7976 = vmatprep.mubr.bf16.mxu1 %v8774_v28  ;;  %v11227_v28 = vld [vmem:[%s15288_s1 + $0x180c] ss:$16 sps:$4 sm:$0xff]  }
 0x2c7   :  { %7142 = vmatpush1.bf16.msra.mxu0 %v11132_v29  ;;  %7990 = vmatpush1.bf16.msra.mxu1 %v11135_v30  ;;  %v8743_v29 = vcombine.low %v14016_v36, %v14021_v33  ;;  %v71_v30 = vld [vmem:[%s15289_s0 + $0x158] sm:$0xff]  ;;  %v11230_v36 = vld [vmem:[%s15288_s1 + $0x1824] ss:$16 sps:$4 sm:$0xff]  }
 0x2c8   :  { %7143 = vmatprep.subr.bf16.mxu0 %v11140_v31  ;;  %7991 = vmatprep.subr.bf16.mxu1 %v11143_v32  ;;  %v87_v31 = vld [vmem:[%s15289_s0 + $0x1d8] sm:$0xff]  ;;  %v11222_v32 = vld [vmem:[%s15288_s1 + $0x1800] ss:$16 sps:$4 sm:$0xff]  }
 0x2c9   :  { %v11233_v33 = vld [vmem:[%s15288_s1 + $0x182c] ss:$16 sps:$4 sm:$0xff]  }
 0x2ca   :  { %7129 = vmatmul.mubr.bf16.gmra.mrb[4].mxu0 %v8773_v34  ;;  %7977 = vmatmul.mubr.bf16.gmra.mrb[4].mxu1 %v8773_v34  ;;  %v11225_v34 = vld [vmem:[%s15288_s1 + $0x1808] ss:$16 sps:$4 sm:$0xff]  }
 0x2cb   :  { %7144 = vmatpush1.bf16.msra.mxu0 %v11138_v35  ;;  %7992 = vmatpush1.bf16.msra.mxu1 %v11141_v37  ;;  %v8776_v35 = vcombine.high %v71_v30, %v87_v31  ;;  %v11228_v37 = vld [vmem:[%s15288_s1 + $0x1820] ss:$16 sps:$4 sm:$0xff]  }
 0x2cc   :  { %7145 = vmatprep.subr.bf16.mxu0 %v11146_v38  ;;  %7993 = vmatprep.subr.bf16.mxu1 %v11149_v39  ;;  %v11231_v38 = vld [vmem:[%s15288_s1 + $0x1828] ss:$16 sps:$4 sm:$0xff]   ;;  %v11236_v39 = vld [vmem:[%s15288_s1 + $0x1844] ss:$16 sps:$4 sm:$0xff]  }
 0x2cd   :  { %7171 = vmatprep.mubr.bf16.mxu0 %v8744_v40  ;;  %8019 = vmatprep.mubr.bf16.mxu1 %v8744_v40  ;;  %v11239_v40 = vld [vmem:[%s15288_s1 + $0x184c] ss:$16 sps:$4 sm:$0xff]  }
 0x2cf   :  { %7146 = vmatpush1.bf16.msra.mxu0 %v11144_v42  ;;  %7994 = vmatpush1.bf16.msra.mxu1 %v11147_v44  ;;  %v8775_v42 = vcombine.low %v71_v30, %v87_v31  ;;  %v14228_v44 = vld [vmem:[%s15289_s0 + $0x60] sm:$0xff]  ;;  %v11309_v30 = vld [vmem:[%s15288_s1 + $0x19c8] ss:$16 sps:$4 sm:$0xff]  }
 0x2d0   :  { %7147 = vmatprep.subr.bf16.mxu0 %v11152_v41  ;;  %7995 = vmatprep.subr.bf16.mxu1 %v11155_v43  ;;  %v14233_v41 = vld [vmem:[%s15289_s0 + $0xe0] sm:$0xff] }
 0x2d1   :  { %v11234_v43 = vld [vmem:[%s15288_s1 + $0x1840] ss:$16 sps:$4 sm:$0xff]   ;;  %v11314_v31 = vld [vmem:[%s15288_s1 + $0x19e4] ss:$16 sps:$4 sm:$0xff]  }
 0x2d3   :  { %7148 = vmatpush1.bf16.msra.mxu0 %v11150_v45  ;;  %7996 = vmatpush1.bf16.msra.mxu1 %v11153_v46  ;;  %v11237_v45 = vld [vmem:[%s15288_s1 + $0x1848] ss:$16 sps:$4 sm:$0xff]   ;;  %v11242_v46 = vld [vmem:[%s15288_s1 + $0x1864] ss:$16 sps:$4 sm:$0xff]  }
 0x2d4   :  { %7149 = vmatprep.subr.bf16.mxu0 %v11158_v47  ;;  %7997 = vmatprep.subr.bf16.mxu1 %v11161_v48  ;;  %v11245_v47 = vld [vmem:[%s15288_s1 + $0x186c] ss:$16 sps:$4 sm:$0xff]   ;;  %v8746_v48 = vcombine.high %v14228_v44, %v14233_v41 }
 0x2d7   :  { %7150 = vmatpush1.bf16.msra.mxu0 %v11156_v51  ;;  %7998 = vmatpush1.bf16.msra.mxu1 %v11159_v52  ;;  %v11240_v51 = vld [vmem:[%s15288_s1 + $0x1860] ss:$16 sps:$4 sm:$0xff]   ;;  %v11243_v52 = vld [vmem:[%s15288_s1 + $0x1868] ss:$16 sps:$4 sm:$0xff]  }
 0x2d8   :  { %7151 = vmatprep.subr.bf16.mxu0 %v11164_v49  ;;  %7999 = vmatprep.subr.bf16.mxu1 %v11167_v50  ;;  %v11248_v49 = vld [vmem:[%s15288_s1 + $0x1884] ss:$16 sps:$4 sm:$0xff]   ;;  %v11251_v50 = vld [vmem:[%s15288_s1 + $0x188c] ss:$16 sps:$4 sm:$0xff]  }
 0x2db   :  { %7152 = vmatpush1.bf16.msra.mxu0 %v11162_v53  ;;  %8000 = vmatpush1.bf16.msra.mxu1 %v11165_v54  ;;  %v11246_v53 = vld [vmem:[%s15288_s1 + $0x1880] ss:$16 sps:$4 sm:$0xff]   ;;  %v11249_v54 = vld [vmem:[%s15288_s1 + $0x1888] ss:$16 sps:$4 sm:$0xff]  }
 0x2dc   :  { %7153 = vmatprep.subr.bf16.mxu0 %v11170_v55  ;;  %8001 = vmatprep.subr.bf16.mxu1 %v11173_v56  ;;  %v11254_v55 = vld [vmem:[%s15288_s1 + $0x18a4] ss:$16 sps:$4 sm:$0xff]   ;;  %v11257_v56 = vld [vmem:[%s15288_s1 + $0x18ac] ss:$16 sps:$4 sm:$0xff]  }
 0x2df   :  { %7154 = vmatpush1.bf16.msra.mxu0 %v11168_v59  ;;  %8002 = vmatpush1.bf16.msra.mxu1 %v11171_v60  ;;  %v11252_v59 = vld [vmem:[%s15288_s1 + $0x18a0] ss:$16 sps:$4 sm:$0xff]   ;;  %v11255_v60 = vld [vmem:[%s15288_s1 + $0x18a8] ss:$16 sps:$4 sm:$0xff]  }
 0x2e0   :  { %7155 = vmatprep.subr.bf16.mxu0 %v11176_v57  ;;  %8003 = vmatprep.subr.bf16.mxu1 %v11179_v58  ;;  %v11260_v57 = vld [vmem:[%s15288_s1 + $0x18c4] ss:$16 sps:$4 sm:$0xff]   ;;  %v11263_v58 = vld [vmem:[%s15288_s1 + $0x18cc] ss:$16 sps:$4 sm:$0xff]  }
 0x2e3   :  { %7156 = vmatpush1.bf16.msra.mxu0 %v11174_v61  ;;  %8004 = vmatpush1.bf16.msra.mxu1 %v11177_v62  ;;  %v11258_v61 = vld [vmem:[%s15288_s1 + $0x18c0] ss:$16 sps:$4 sm:$0xff]   ;;  %v11261_v62 = vld [vmem:[%s15288_s1 + $0x18c8] ss:$16 sps:$4 sm:$0xff]  }
 0x2e4   :  { %7157 = vmatprep.subr.bf16.mxu0 %v11182_v63  ;;  %8005 = vmatprep.subr.bf16.mxu1 %v11185_v0  ;;  %v11266_v63 = vld [vmem:[%s15288_s1 + $0x18e4] ss:$16 sps:$4 sm:$0xff]   ;;  %v11269_v0 = vld [vmem:[%s15288_s1 + $0x18ec] ss:$16 sps:$4 sm:$0xff]  }
 0x2e7   :  { %7158 = vmatpush1.bf16.msra.mxu0 %v11180_v3  ;;  %8006 = vmatpush1.bf16.msra.mxu1 %v11183_v4  ;;  %v11264_v3 = vld [vmem:[%s15288_s1 + $0x18e0] ss:$16 sps:$4 sm:$0xff]   ;;  %v11267_v4 = vld [vmem:[%s15288_s1 + $0x18e8] ss:$16 sps:$4 sm:$0xff]  }
 0x2e8   :  { %7159 = vmatprep.subr.bf16.mxu0 %v11188_v1  ;;  %8007 = vmatprep.subr.bf16.mxu1 %v11191_v2  ;;  %v11272_v1 = vld [vmem:[%s15288_s1 + $0x1904] ss:$16 sps:$4 sm:$0xff]   ;;  %v11275_v2 = vld [vmem:[%s15288_s1 + $0x190c] ss:$16 sps:$4 sm:$0xff]  }
 0x2eb   :  { %7160 = vmatpush1.bf16.msra.mxu0 %v11186_v5  ;;  %8008 = vmatpush1.bf16.msra.mxu1 %v11189_v6  ;;  %v11270_v5 = vld [vmem:[%s15288_s1 + $0x1900] ss:$16 sps:$4 sm:$0xff]   ;;  %v11273_v6 = vld [vmem:[%s15288_s1 + $0x1908] ss:$16 sps:$4 sm:$0xff]  }
 0x2ec   :  { %7161 = vmatprep.subr.bf16.mxu0 %v11194_v7  ;;  %8009 = vmatprep.subr.bf16.mxu1 %v11197_v8  ;;  %v11278_v7 = vld [vmem:[%s15288_s1 + $0x1924] ss:$16 sps:$4 sm:$0xff]   ;;  %v11281_v8 = vld [vmem:[%s15288_s1 + $0x192c] ss:$16 sps:$4 sm:$0xff]  }
 0x2ef   :  { %7162 = vmatpush1.bf16.msra.mxu0 %v11192_v11  ;;  %8010 = vmatpush1.bf16.msra.mxu1 %v11195_v12  ;;  %v11276_v11 = vld [vmem:[%s15288_s1 + $0x1920] ss:$16 sps:$4 sm:$0xff]   ;;  %v11279_v12 = vld [vmem:[%s15288_s1 + $0x1928] ss:$16 sps:$4 sm:$0xff]  }
 0x2f0   :  { %7163 = vmatprep.subr.bf16.mxu0 %v11200_v9  ;;  %8011 = vmatprep.subr.bf16.mxu1 %v11203_v10  ;;  %v11284_v9 = vld [vmem:[%s15288_s1 + $0x1944] ss:$16 sps:$4 sm:$0xff]   ;;  %v11287_v10 = vld [vmem:[%s15288_s1 + $0x194c] ss:$16 sps:$4 sm:$0xff]  }
 0x2f3   :  { %7164 = vmatpush1.bf16.msra.mxu0 %v11198_v13  ;;  %8012 = vmatpush1.bf16.msra.mxu1 %v11201_v14  ;;  %v11282_v13 = vld [vmem:[%s15288_s1 + $0x1940] ss:$16 sps:$4 sm:$0xff]   ;;  %v11285_v14 = vld [vmem:[%s15288_s1 + $0x1948] ss:$16 sps:$4 sm:$0xff]  }
 0x2f4   :  { %7165 = vmatprep.subr.bf16.mxu0 %v11206_v15  ;;  %8013 = vmatprep.subr.bf16.mxu1 %v11209_v16  ;;  %v11290_v15 = vld [vmem:[%s15288_s1 + $0x1964] ss:$16 sps:$4 sm:$0xff]   ;;  %v11293_v16 = vld [vmem:[%s15288_s1 + $0x196c] ss:$16 sps:$4 sm:$0xff]  }
 0x2f7   :  { %7166 = vmatpush1.bf16.msra.mxu0 %v11204_v19  ;;  %8014 = vmatpush1.bf16.msra.mxu1 %v11207_v17  ;;  %v11288_v19 = vld [vmem:[%s15288_s1 + $0x1960] ss:$16 sps:$4 sm:$0xff]   ;;  %v11291_v17 = vld [vmem:[%s15288_s1 + $0x1968] ss:$16 sps:$4 sm:$0xff]  }
 0x2f8   :  { %7167 = vmatprep.subr.bf16.mxu0 %v11212_v18  ;;  %8015 = vmatprep.subr.bf16.mxu1 %v11215_v20  ;;  %v11296_v18 = vld [vmem:[%s15288_s1 + $0x1984] ss:$16 sps:$4 sm:$0xff]   ;;  %v11299_v20 = vld [vmem:[%s15288_s1 + $0x198c] ss:$16 sps:$4 sm:$0xff]  }
 0x2fb   :  { %7168 = vmatpush1.bf16.msra.mxu0 %v11210_v21  ;;  %8016 = vmatpush1.bf16.msra.mxu1 %v11213_v22  ;;  %v11294_v21 = vld [vmem:[%s15288_s1 + $0x1980] ss:$16 sps:$4 sm:$0xff]   ;;  %v11297_v22 = vld [vmem:[%s15288_s1 + $0x1988] ss:$16 sps:$4 sm:$0xff]  }
 0x2fc   :  { %7169 = vmatprep.subr.bf16.mxu0 %v11218_v23  ;;  %8017 = vmatprep.subr.bf16.mxu1 %v11221_v24  ;;  %v11302_v23 = vld [vmem:[%s15288_s1 + $0x19a4] ss:$16 sps:$4 sm:$0xff]   ;;  %v11305_v24 = vld [vmem:[%s15288_s1 + $0x19ac] ss:$16 sps:$4 sm:$0xff]  }
 0x2ff   :  { %7170 = vmatpush1.bf16.msra.mxu0 %v11216_v26  ;;  %8018 = vmatpush1.bf16.msra.mxu1 %v11219_v25  ;;  %v11300_v26 = vld [vmem:[%s15288_s1 + $0x19a0] ss:$16 sps:$4 sm:$0xff]   ;;  %v11303_v25 = vld [vmem:[%s15288_s1 + $0x19a8] ss:$16 sps:$4 sm:$0xff]  }
 0x300   :  { %7192 = vmatprep.subr.bf16.mxu0 %v11224_v27  ;;  %8040 = vmatprep.subr.bf16.mxu1 %v11227_v28  ;;  %v11308_v27 = vld [vmem:[%s15288_s1 + $0x19c4] ss:$16 sps:$4 sm:$0xff]   ;;  %v11311_v28 = vld [vmem:[%s15288_s1 + $0x19cc] ss:$16 sps:$4 sm:$0xff]  }
 0x302   :  { %7172 = vmatmul.mubr.bf16.vlgmr.msra.gmra.mrb[0].mxu0 %v8743_v29  ;;  %8020 = vmatmul.mubr.bf16.vlgmr.msra.gmra.mrb[0].mxu1 %v8743_v29  ;;  %v11306_v29 = vld [vmem:[%s15288_s1 + $0x19c0] ss:$16 sps:$4 sm:$0xff]  }
 0x303   :  { %7193 = vmatpush1.bf16.msra.mxu0 %v11222_v32  ;;  %8041 = vmatpush1.bf16.msra.mxu1 %v11225_v34  ;;  %v11317_v32 = vld [vmem:[%s15288_s1 + $0x19ec] ss:$16 sps:$4 sm:$0xff]   ;;  %v11312_v34 = vld [vmem:[%s15288_s1 + $0x19e0] ss:$16 sps:$4 sm:$0xff]  }
 0x304   :  { %7194 = vmatprep.subr.bf16.mxu0 %v11230_v36  ;;  %8042 = vmatprep.subr.bf16.mxu1 %v11233_v33  ;;  %v11315_v36 = vld [vmem:[%s15288_s1 + $0x19e8] ss:$16 sps:$4 sm:$0xff]   ;;  %v11320_v33 = vld [vmem:[%s15288_s1 + $0x1a04] ss:$16 sps:$4 sm:$0xff]  }
 0x305   :  { %7181 = vmatprep.mubr.bf16.mxu0 %v8776_v35  ;;  %8029 = vmatprep.mubr.bf16.mxu1 %v8776_v35  ;;  %v11323_v35 = vld [vmem:[%s15288_s1 + $0x1a0c] ss:$16 sps:$4 sm:$0xff]  }
 0x307   :  { %7195 = vmatpush1.bf16.msra.mxu0 %v11228_v37  ;;  %8043 = vmatpush1.bf16.msra.mxu1 %v11231_v38  ;;  %v8745_v37 = vcombine.low %v14228_v44, %v14233_v41  ;;  %v72_v38 = vld [vmem:[%s15289_s0 + $0x160] sm:$0xff]  ;;  %v11329_v41 = vld [vmem:[%s15288_s1 + $0x1a2c] ss:$16 sps:$4 sm:$0xff]  }
 0x308   :  { %7196 = vmatprep.subr.bf16.mxu0 %v11236_v39  ;;  %8044 = vmatprep.subr.bf16.mxu1 %v11239_v40  ;;  %v88_v39 = vld [vmem:[%s15289_s0 + $0x1e0] sm:$0xff] }
 0x309   :  { %v11318_v40 = vld [vmem:[%s15288_s1 + $0x1a00] ss:$16 sps:$4 sm:$0xff]   ;;  %v11326_v44 = vld [vmem:[%s15288_s1 + $0x1a24] ss:$16 sps:$4 sm:$0xff]  }
 0x30a   :  { %7182 = vmatmul.mubr.bf16.gmra.mrb[4].mxu0 %v8775_v42  ;;  %8030 = vmatmul.mubr.bf16.gmra.mrb[4].mxu1 %v8775_v42  ;;  %v11321_v42 = vld [vmem:[%s15288_s1 + $0x1a08] ss:$16 sps:$4 sm:$0xff]  }
 0x30b   :  { %7197 = vmatpush1.bf16.msra.mxu0 %v11234_v43  ;;  %8045 = vmatpush1.bf16.msra.mxu1 %v11237_v45  ;;  %v8778_v43 = vcombine.high %v72_v38, %v88_v39  ;;  %v11324_v45 = vld [vmem:[%s15288_s1 + $0x1a20] ss:$16 sps:$4 sm:$0xff]  }
 0x30c   :  { %7198 = vmatprep.subr.bf16.mxu0 %v11242_v46  ;;  %8046 = vmatprep.subr.bf16.mxu1 %v11245_v47  ;;  %v11327_v46 = vld [vmem:[%s15288_s1 + $0x1a28] ss:$16 sps:$4 sm:$0xff]   ;;  %v11332_v47 = vld [vmem:[%s15288_s1 + $0x1a44] ss:$16 sps:$4 sm:$0xff]  }
 0x30d   :  { %7224 = vmatprep.mubr.bf16.mxu0 %v8746_v48  ;;  %8072 = vmatprep.mubr.bf16.mxu1 %v8746_v48  ;;  %v11335_v48 = vld [vmem:[%s15288_s1 + $0x1a4c] ss:$16 sps:$4 sm:$0xff]  }
 0x30f   :  { %7199 = vmatpush1.bf16.msra.mxu0 %v11240_v51  ;;  %8047 = vmatpush1.bf16.msra.mxu1 %v11243_v52  ;;  %v8777_v51 = vcombine.low %v72_v38, %v88_v39  ;;  %v14440_v52 = vld [vmem:[%s15289_s0 + $0x68] sm:$0xff]  ;;  %v11410_v39 = vld [vmem:[%s15288_s1 + $0x1be4] ss:$16 sps:$4 sm:$0xff]  }
 0x310   :  { %7200 = vmatprep.subr.bf16.mxu0 %v11248_v49  ;;  %8048 = vmatprep.subr.bf16.mxu1 %v11251_v50  ;;  %v14445_v49 = vld [vmem:[%s15289_s0 + $0xe8] sm:$0xff]  ;;  %v11330_v50 = vld [vmem:[%s15288_s1 + $0x1a40] ss:$16 sps:$4 sm:$0xff]  }
 0x311   :  { %v11405_v38 = vld [vmem:[%s15288_s1 + $0x1bc8] ss:$16 sps:$4 sm:$0xff]  }
 0x313   :  { %7201 = vmatpush1.bf16.msra.mxu0 %v11246_v53  ;;  %8049 = vmatpush1.bf16.msra.mxu1 %v11249_v54  ;;  %v11333_v53 = vld [vmem:[%s15288_s1 + $0x1a48] ss:$16 sps:$4 sm:$0xff]   ;;  %v11338_v54 = vld [vmem:[%s15288_s1 + $0x1a64] ss:$16 sps:$4 sm:$0xff]  }
 0x314   :  { %7202 = vmatprep.subr.bf16.mxu0 %v11254_v55  ;;  %8050 = vmatprep.subr.bf16.mxu1 %v11257_v56  ;;  %v11341_v55 = vld [vmem:[%s15288_s1 + $0x1a6c] ss:$16 sps:$4 sm:$0xff]   ;;  %v8748_v56 = vcombine.high %v14440_v52, %v14445_v49 }
 0x317   :  { %7203 = vmatpush1.bf16.msra.mxu0 %v11252_v59  ;;  %8051 = vmatpush1.bf16.msra.mxu1 %v11255_v60  ;;  %v11336_v59 = vld [vmem:[%s15288_s1 + $0x1a60] ss:$16 sps:$4 sm:$0xff]   ;;  %v11339_v60 = vld [vmem:[%s15288_s1 + $0x1a68] ss:$16 sps:$4 sm:$0xff]  }
 0x318   :  { %7204 = vmatprep.subr.bf16.mxu0 %v11260_v57  ;;  %8052 = vmatprep.subr.bf16.mxu1 %v11263_v58  ;;  %v11344_v57 = vld [vmem:[%s15288_s1 + $0x1a84] ss:$16 sps:$4 sm:$0xff]   ;;  %v11347_v58 = vld [vmem:[%s15288_s1 + $0x1a8c] ss:$16 sps:$4 sm:$0xff]  }
 0x31b   :  { %7205 = vmatpush1.bf16.msra.mxu0 %v11258_v61  ;;  %8053 = vmatpush1.bf16.msra.mxu1 %v11261_v62  ;;  %v11342_v61 = vld [vmem:[%s15288_s1 + $0x1a80] ss:$16 sps:$4 sm:$0xff]   ;;  %v11345_v62 = vld [vmem:[%s15288_s1 + $0x1a88] ss:$16 sps:$4 sm:$0xff]  }
 0x31c   :  { %7206 = vmatprep.subr.bf16.mxu0 %v11266_v63  ;;  %8054 = vmatprep.subr.bf16.mxu1 %v11269_v0  ;;  %v11350_v63 = vld [vmem:[%s15288_s1 + $0x1aa4] ss:$16 sps:$4 sm:$0xff]   ;;  %v11353_v0 = vld [vmem:[%s15288_s1 + $0x1aac] ss:$16 sps:$4 sm:$0xff]  }
 0x31f   :  { %7207 = vmatpush1.bf16.msra.mxu0 %v11264_v3  ;;  %8055 = vmatpush1.bf16.msra.mxu1 %v11267_v4  ;;  %v11348_v3 = vld [vmem:[%s15288_s1 + $0x1aa0] ss:$16 sps:$4 sm:$0xff]   ;;  %v11351_v4 = vld [vmem:[%s15288_s1 + $0x1aa8] ss:$16 sps:$4 sm:$0xff]  }
 0x320   :  { %7208 = vmatprep.subr.bf16.mxu0 %v11272_v1  ;;  %8056 = vmatprep.subr.bf16.mxu1 %v11275_v2  ;;  %v11356_v1 = vld [vmem:[%s15288_s1 + $0x1ac4] ss:$16 sps:$4 sm:$0xff]   ;;  %v11359_v2 = vld [vmem:[%s15288_s1 + $0x1acc] ss:$16 sps:$4 sm:$0xff]  }
 0x323   :  { %7209 = vmatpush1.bf16.msra.mxu0 %v11270_v5  ;;  %8057 = vmatpush1.bf16.msra.mxu1 %v11273_v6  ;;  %v11354_v5 = vld [vmem:[%s15288_s1 + $0x1ac0] ss:$16 sps:$4 sm:$0xff]   ;;  %v11357_v6 = vld [vmem:[%s15288_s1 + $0x1ac8] ss:$16 sps:$4 sm:$0xff]  }
 0x324   :  { %7210 = vmatprep.subr.bf16.mxu0 %v11278_v7  ;;  %8058 = vmatprep.subr.bf16.mxu1 %v11281_v8  ;;  %v11362_v7 = vld [vmem:[%s15288_s1 + $0x1ae4] ss:$16 sps:$4 sm:$0xff]   ;;  %v11365_v8 = vld [vmem:[%s15288_s1 + $0x1aec] ss:$16 sps:$4 sm:$0xff]  }
 0x327   :  { %7211 = vmatpush1.bf16.msra.mxu0 %v11276_v11  ;;  %8059 = vmatpush1.bf16.msra.mxu1 %v11279_v12  ;;  %v11360_v11 = vld [vmem:[%s15288_s1 + $0x1ae0] ss:$16 sps:$4 sm:$0xff]   ;;  %v11363_v12 = vld [vmem:[%s15288_s1 + $0x1ae8] ss:$16 sps:$4 sm:$0xff]  }
 0x328   :  { %7212 = vmatprep.subr.bf16.mxu0 %v11284_v9  ;;  %8060 = vmatprep.subr.bf16.mxu1 %v11287_v10  ;;  %v11368_v9 = vld [vmem:[%s15288_s1 + $0x1b04] ss:$16 sps:$4 sm:$0xff]   ;;  %v11371_v10 = vld [vmem:[%s15288_s1 + $0x1b0c] ss:$16 sps:$4 sm:$0xff]  }
 0x32b   :  { %7213 = vmatpush1.bf16.msra.mxu0 %v11282_v13  ;;  %8061 = vmatpush1.bf16.msra.mxu1 %v11285_v14  ;;  %v11366_v13 = vld [vmem:[%s15288_s1 + $0x1b00] ss:$16 sps:$4 sm:$0xff]   ;;  %v11369_v14 = vld [vmem:[%s15288_s1 + $0x1b08] ss:$16 sps:$4 sm:$0xff]  }
 0x32c   :  { %7214 = vmatprep.subr.bf16.mxu0 %v11290_v15  ;;  %8062 = vmatprep.subr.bf16.mxu1 %v11293_v16  ;;  %v11374_v15 = vld [vmem:[%s15288_s1 + $0x1b24] ss:$16 sps:$4 sm:$0xff]   ;;  %v11377_v16 = vld [vmem:[%s15288_s1 + $0x1b2c] ss:$16 sps:$4 sm:$0xff]  }
 0x32f   :  { %7215 = vmatpush1.bf16.msra.mxu0 %v11288_v19  ;;  %8063 = vmatpush1.bf16.msra.mxu1 %v11291_v17  ;;  %v11372_v19 = vld [vmem:[%s15288_s1 + $0x1b20] ss:$16 sps:$4 sm:$0xff]   ;;  %v11375_v17 = vld [vmem:[%s15288_s1 + $0x1b28] ss:$16 sps:$4 sm:$0xff]  }
 0x330   :  { %7216 = vmatprep.subr.bf16.mxu0 %v11296_v18  ;;  %8064 = vmatprep.subr.bf16.mxu1 %v11299_v20  ;;  %v11380_v18 = vld [vmem:[%s15288_s1 + $0x1b44] ss:$16 sps:$4 sm:$0xff]   ;;  %v11383_v20 = vld [vmem:[%s15288_s1 + $0x1b4c] ss:$16 sps:$4 sm:$0xff]  }
 0x333   :  { %7217 = vmatpush1.bf16.msra.mxu0 %v11294_v21  ;;  %8065 = vmatpush1.bf16.msra.mxu1 %v11297_v22  ;;  %v11378_v21 = vld [vmem:[%s15288_s1 + $0x1b40] ss:$16 sps:$4 sm:$0xff]   ;;  %v11381_v22 = vld [vmem:[%s15288_s1 + $0x1b48] ss:$16 sps:$4 sm:$0xff]  }
 0x334   :  { %7218 = vmatprep.subr.bf16.mxu0 %v11302_v23  ;;  %8066 = vmatprep.subr.bf16.mxu1 %v11305_v24  ;;  %v11386_v23 = vld [vmem:[%s15288_s1 + $0x1b64] ss:$16 sps:$4 sm:$0xff]   ;;  %v11389_v24 = vld [vmem:[%s15288_s1 + $0x1b6c] ss:$16 sps:$4 sm:$0xff]  }
 0x337   :  { %7219 = vmatpush1.bf16.msra.mxu0 %v11300_v26  ;;  %8067 = vmatpush1.bf16.msra.mxu1 %v11303_v25  ;;  %v11384_v26 = vld [vmem:[%s15288_s1 + $0x1b60] ss:$16 sps:$4 sm:$0xff]   ;;  %v11387_v25 = vld [vmem:[%s15288_s1 + $0x1b68] ss:$16 sps:$4 sm:$0xff]  }
 0x338   :  { %7220 = vmatprep.subr.bf16.mxu0 %v11308_v27  ;;  %8068 = vmatprep.subr.bf16.mxu1 %v11311_v28  ;;  %v11392_v27 = vld [vmem:[%s15288_s1 + $0x1b84] ss:$16 sps:$4 sm:$0xff]   ;;  %v11395_v28 = vld [vmem:[%s15288_s1 + $0x1b8c] ss:$16 sps:$4 sm:$0xff]  }
 0x33b   :  { %7221 = vmatpush1.bf16.msra.mxu0 %v11306_v29  ;;  %8069 = vmatpush1.bf16.msra.mxu1 %v11309_v30  ;;  %v11390_v29 = vld [vmem:[%s15288_s1 + $0x1b80] ss:$16 sps:$4 sm:$0xff]   ;;  %v11393_v30 = vld [vmem:[%s15288_s1 + $0x1b88] ss:$16 sps:$4 sm:$0xff]  }
 0x33c   :  { %7222 = vmatprep.subr.bf16.mxu0 %v11314_v31  ;;  %8070 = vmatprep.subr.bf16.mxu1 %v11317_v32  ;;  %v11398_v31 = vld [vmem:[%s15288_s1 + $0x1ba4] ss:$16 sps:$4 sm:$0xff]   ;;  %v11401_v32 = vld [vmem:[%s15288_s1 + $0x1bac] ss:$16 sps:$4 sm:$0xff]  }
 0x33f   :  { %7223 = vmatpush1.bf16.msra.mxu0 %v11312_v34  ;;  %8071 = vmatpush1.bf16.msra.mxu1 %v11315_v36  ;;  %v11396_v34 = vld [vmem:[%s15288_s1 + $0x1ba0] ss:$16 sps:$4 sm:$0xff]   ;;  %v11399_v36 = vld [vmem:[%s15288_s1 + $0x1ba8] ss:$16 sps:$4 sm:$0xff]  }
 0x340   :  { %7245 = vmatprep.subr.bf16.mxu0 %v11320_v33  ;;  %8093 = vmatprep.subr.bf16.mxu1 %v11323_v35  ;;  %v11404_v33 = vld [vmem:[%s15288_s1 + $0x1bc4] ss:$16 sps:$4 sm:$0xff]   ;;  %v11407_v35 = vld [vmem:[%s15288_s1 + $0x1bcc] ss:$16 sps:$4 sm:$0xff]  }
 0x342   :  { %7225 = vmatmul.mubr.bf16.vlgmr.msra.gmra.mrb[0].mxu0 %v8745_v37  ;;  %8073 = vmatmul.mubr.bf16.vlgmr.msra.gmra.mrb[0].mxu1 %v8745_v37  ;;  %v11402_v37 = vld [vmem:[%s15288_s1 + $0x1bc0] ss:$16 sps:$4 sm:$0xff]  }
 0x343   :  { %7246 = vmatpush1.bf16.msra.mxu0 %v11318_v40  ;;  %8094 = vmatpush1.bf16.msra.mxu1 %v11321_v42  ;;  %v11413_v40 = vld [vmem:[%s15288_s1 + $0x1bec] ss:$16 sps:$4 sm:$0xff]   ;;  %v11408_v42 = vld [vmem:[%s15288_s1 + $0x1be0] ss:$16 sps:$4 sm:$0xff]  }
 0x344   :  { %7247 = vmatprep.subr.bf16.mxu0 %v11326_v44  ;;  %8095 = vmatprep.subr.bf16.mxu1 %v11329_v41  ;;  %v11411_v44 = vld [vmem:[%s15288_s1 + $0x1be8] ss:$16 sps:$4 sm:$0xff]   ;;  %v11416_v41 = vld [vmem:[%s15288_s1 + $0x1c04] ss:$16 sps:$4 sm:$0xff]  }
 0x345   :  { %7234 = vmatprep.mubr.bf16.mxu0 %v8778_v43  ;;  %8082 = vmatprep.mubr.bf16.mxu1 %v8778_v43  ;;  %v11419_v43 = vld [vmem:[%s15288_s1 + $0x1c0c] ss:$16 sps:$4 sm:$0xff]  }
 0x347   :  { %7248 = vmatpush1.bf16.msra.mxu0 %v11324_v45  ;;  %8096 = vmatpush1.bf16.msra.mxu1 %v11327_v46  ;;  %v8747_v45 = vcombine.low %v14440_v52, %v14445_v49  ;;  %v73_v46 = vld [vmem:[%s15289_s0 + $0x168] sm:$0xff]  ;;  %v11422_v52 = vld [vmem:[%s15288_s1 + $0x1c24] ss:$16 sps:$4 sm:$0xff]  }
 0x348   :  { %7249 = vmatprep.subr.bf16.mxu0 %v11332_v47  ;;  %8097 = vmatprep.subr.bf16.mxu1 %v11335_v48  ;;  %v89_v47 = vld [vmem:[%s15289_s0 + $0x1e8] sm:$0xff]  ;;  %v11414_v48 = vld [vmem:[%s15288_s1 + $0x1c00] ss:$16 sps:$4 sm:$0xff]  }
 0x349   :  { %v11425_v49 = vld [vmem:[%s15288_s1 + $0x1c2c] ss:$16 sps:$4 sm:$0xff]  }
 0x34a   :  { %7235 = vmatmul.mubr.bf16.gmra.mrb[4].mxu0 %v8777_v51  ;;  %8083 = vmatmul.mubr.bf16.gmra.mrb[4].mxu1 %v8777_v51  ;;  %v11417_v51 = vld [vmem:[%s15288_s1 + $0x1c08] ss:$16 sps:$4 sm:$0xff]  }
 0x34b   :  { %7250 = vmatpush1.bf16.msra.mxu0 %v11330_v50  ;;  %8098 = vmatpush1.bf16.msra.mxu1 %v11333_v53  ;;  %v8780_v50 = vcombine.high %v73_v46, %v89_v47  ;;  %v11420_v53 = vld [vmem:[%s15288_s1 + $0x1c20] ss:$16 sps:$4 sm:$0xff]  }
 0x34c   :  { %7251 = vmatprep.subr.bf16.mxu0 %v11338_v54  ;;  %8099 = vmatprep.subr.bf16.mxu1 %v11341_v55  ;;  %v11423_v54 = vld [vmem:[%s15288_s1 + $0x1c28] ss:$16 sps:$4 sm:$0xff]   ;;  %v11428_v55 = vld [vmem:[%s15288_s1 + $0x1c44] ss:$16 sps:$4 sm:$0xff]  }
 0x34d   :  { %7277 = vmatprep.mubr.bf16.mxu0 %v8748_v56  ;;  %8125 = vmatprep.mubr.bf16.mxu1 %v8748_v56  ;;  %v11431_v56 = vld [vmem:[%s15288_s1 + $0x1c4c] ss:$16 sps:$4 sm:$0xff]  }
 0x34f   :  { %7252 = vmatpush1.bf16.msra.mxu0 %v11336_v59  ;;  %8100 = vmatpush1.bf16.msra.mxu1 %v11339_v60  ;;  %v8779_v59 = vcombine.low %v73_v46, %v89_v47  ;;  %v14652_v60 = vld [vmem:[%s15289_s0 + $0x70] sm:$0xff]  ;;  %v11501_v46 = vld [vmem:[%s15288_s1 + $0x1dc8] ss:$16 sps:$4 sm:$0xff]  }
 0x350   :  { %7253 = vmatprep.subr.bf16.mxu0 %v11344_v57  ;;  %8101 = vmatprep.subr.bf16.mxu1 %v11347_v58  ;;  %v14657_v57 = vld [vmem:[%s15289_s0 + $0xf0] sm:$0xff] }
 0x351   :  { %v11426_v58 = vld [vmem:[%s15288_s1 + $0x1c40] ss:$16 sps:$4 sm:$0xff]   ;;  %v11506_v47 = vld [vmem:[%s15288_s1 + $0x1de4] ss:$16 sps:$4 sm:$0xff]  }
 0x353   :  { %7254 = vmatpush1.bf16.msra.mxu0 %v11342_v61  ;;  %8102 = vmatpush1.bf16.msra.mxu1 %v11345_v62  ;;  %v11429_v61 = vld [vmem:[%s15288_s1 + $0x1c48] ss:$16 sps:$4 sm:$0xff]   ;;  %v11434_v62 = vld [vmem:[%s15288_s1 + $0x1c64] ss:$16 sps:$4 sm:$0xff]  }
 0x354   :  { %7255 = vmatprep.subr.bf16.mxu0 %v11350_v63  ;;  %8103 = vmatprep.subr.bf16.mxu1 %v11353_v0  ;;  %v11437_v63 = vld [vmem:[%s15288_s1 + $0x1c6c] ss:$16 sps:$4 sm:$0xff]   ;;  %v8750_v0 = vcombine.high %v14652_v60, %v14657_v57 }
 0x357   :  { %7256 = vmatpush1.bf16.msra.mxu0 %v11348_v3  ;;  %8104 = vmatpush1.bf16.msra.mxu1 %v11351_v4  ;;  %v11432_v3 = vld [vmem:[%s15288_s1 + $0x1c60] ss:$16 sps:$4 sm:$0xff]   ;;  %v11435_v4 = vld [vmem:[%s15288_s1 + $0x1c68] ss:$16 sps:$4 sm:$0xff]  }
 0x358   :  { %7257 = vmatprep.subr.bf16.mxu0 %v11356_v1  ;;  %8105 = vmatprep.subr.bf16.mxu1 %v11359_v2  ;;  %v11440_v1 = vld [vmem:[%s15288_s1 + $0x1c84] ss:$16 sps:$4 sm:$0xff]   ;;  %v11443_v2 = vld [vmem:[%s15288_s1 + $0x1c8c] ss:$16 sps:$4 sm:$0xff]  }
 0x35b   :  { %7258 = vmatpush1.bf16.msra.mxu0 %v11354_v5  ;;  %8106 = vmatpush1.bf16.msra.mxu1 %v11357_v6  ;;  %v11438_v5 = vld [vmem:[%s15288_s1 + $0x1c80] ss:$16 sps:$4 sm:$0xff]   ;;  %v11441_v6 = vld [vmem:[%s15288_s1 + $0x1c88] ss:$16 sps:$4 sm:$0xff]  }
 0x35c   :  { %7259 = vmatprep.subr.bf16.mxu0 %v11362_v7  ;;  %8107 = vmatprep.subr.bf16.mxu1 %v11365_v8  ;;  %v11446_v7 = vld [vmem:[%s15288_s1 + $0x1ca4] ss:$16 sps:$4 sm:$0xff]   ;;  %v11449_v8 = vld [vmem:[%s15288_s1 + $0x1cac] ss:$16 sps:$4 sm:$0xff]  }
 0x35f   :  { %7260 = vmatpush1.bf16.msra.mxu0 %v11360_v11  ;;  %8108 = vmatpush1.bf16.msra.mxu1 %v11363_v12  ;;  %v11444_v11 = vld [vmem:[%s15288_s1 + $0x1ca0] ss:$16 sps:$4 sm:$0xff]   ;;  %v11447_v12 = vld [vmem:[%s15288_s1 + $0x1ca8] ss:$16 sps:$4 sm:$0xff]  }
 0x360   :  { %7261 = vmatprep.subr.bf16.mxu0 %v11368_v9  ;;  %8109 = vmatprep.subr.bf16.mxu1 %v11371_v10  ;;  %v11452_v9 = vld [vmem:[%s15288_s1 + $0x1cc4] ss:$16 sps:$4 sm:$0xff]   ;;  %v11455_v10 = vld [vmem:[%s15288_s1 + $0x1ccc] ss:$16 sps:$4 sm:$0xff]  }
 0x363   :  { %7262 = vmatpush1.bf16.msra.mxu0 %v11366_v13  ;;  %8110 = vmatpush1.bf16.msra.mxu1 %v11369_v14  ;;  %v11450_v13 = vld [vmem:[%s15288_s1 + $0x1cc0] ss:$16 sps:$4 sm:$0xff]   ;;  %v11453_v14 = vld [vmem:[%s15288_s1 + $0x1cc8] ss:$16 sps:$4 sm:$0xff]  }
 0x364   :  { %7263 = vmatprep.subr.bf16.mxu0 %v11374_v15  ;;  %8111 = vmatprep.subr.bf16.mxu1 %v11377_v16  ;;  %v11458_v15 = vld [vmem:[%s15288_s1 + $0x1ce4] ss:$16 sps:$4 sm:$0xff]   ;;  %v11461_v16 = vld [vmem:[%s15288_s1 + $0x1cec] ss:$16 sps:$4 sm:$0xff]  }
 0x367   :  { %7264 = vmatpush1.bf16.msra.mxu0 %v11372_v19  ;;  %8112 = vmatpush1.bf16.msra.mxu1 %v11375_v17  ;;  %v11456_v19 = vld [vmem:[%s15288_s1 + $0x1ce0] ss:$16 sps:$4 sm:$0xff]   ;;  %v11459_v17 = vld [vmem:[%s15288_s1 + $0x1ce8] ss:$16 sps:$4 sm:$0xff]  }
 0x368   :  { %7265 = vmatprep.subr.bf16.mxu0 %v11380_v18  ;;  %8113 = vmatprep.subr.bf16.mxu1 %v11383_v20  ;;  %v11464_v18 = vld [vmem:[%s15288_s1 + $0x1d04] ss:$16 sps:$4 sm:$0xff]   ;;  %v11467_v20 = vld [vmem:[%s15288_s1 + $0x1d0c] ss:$16 sps:$4 sm:$0xff]  }
 0x36b   :  { %7266 = vmatpush1.bf16.msra.mxu0 %v11378_v21  ;;  %8114 = vmatpush1.bf16.msra.mxu1 %v11381_v22  ;;  %v11462_v21 = vld [vmem:[%s15288_s1 + $0x1d00] ss:$16 sps:$4 sm:$0xff]   ;;  %v11465_v22 = vld [vmem:[%s15288_s1 + $0x1d08] ss:$16 sps:$4 sm:$0xff]  }
 0x36c   :  { %7267 = vmatprep.subr.bf16.mxu0 %v11386_v23  ;;  %8115 = vmatprep.subr.bf16.mxu1 %v11389_v24  ;;  %v11470_v23 = vld [vmem:[%s15288_s1 + $0x1d24] ss:$16 sps:$4 sm:$0xff]   ;;  %v11473_v24 = vld [vmem:[%s15288_s1 + $0x1d2c] ss:$16 sps:$4 sm:$0xff]  }
 0x36f   :  { %7268 = vmatpush1.bf16.msra.mxu0 %v11384_v26  ;;  %8116 = vmatpush1.bf16.msra.mxu1 %v11387_v25  ;;  %v11468_v26 = vld [vmem:[%s15288_s1 + $0x1d20] ss:$16 sps:$4 sm:$0xff]   ;;  %v11471_v25 = vld [vmem:[%s15288_s1 + $0x1d28] ss:$16 sps:$4 sm:$0xff]  }
 0x370   :  { %7269 = vmatprep.subr.bf16.mxu0 %v11392_v27  ;;  %8117 = vmatprep.subr.bf16.mxu1 %v11395_v28  ;;  %v11476_v27 = vld [vmem:[%s15288_s1 + $0x1d44] ss:$16 sps:$4 sm:$0xff]   ;;  %v11479_v28 = vld [vmem:[%s15288_s1 + $0x1d4c] ss:$16 sps:$4 sm:$0xff]  }
 0x373   :  { %7270 = vmatpush1.bf16.msra.mxu0 %v11390_v29  ;;  %8118 = vmatpush1.bf16.msra.mxu1 %v11393_v30  ;;  %v11474_v29 = vld [vmem:[%s15288_s1 + $0x1d40] ss:$16 sps:$4 sm:$0xff]   ;;  %v11477_v30 = vld [vmem:[%s15288_s1 + $0x1d48] ss:$16 sps:$4 sm:$0xff]  }
 0x374   :  { %7271 = vmatprep.subr.bf16.mxu0 %v11398_v31  ;;  %8119 = vmatprep.subr.bf16.mxu1 %v11401_v32  ;;  %v11482_v31 = vld [vmem:[%s15288_s1 + $0x1d64] ss:$16 sps:$4 sm:$0xff]   ;;  %v11485_v32 = vld [vmem:[%s15288_s1 + $0x1d6c] ss:$16 sps:$4 sm:$0xff]  }
 0x377   :  { %7272 = vmatpush1.bf16.msra.mxu0 %v11396_v34  ;;  %8120 = vmatpush1.bf16.msra.mxu1 %v11399_v36  ;;  %v11480_v34 = vld [vmem:[%s15288_s1 + $0x1d60] ss:$16 sps:$4 sm:$0xff]   ;;  %v11483_v36 = vld [vmem:[%s15288_s1 + $0x1d68] ss:$16 sps:$4 sm:$0xff]  }
 0x378   :  { %7273 = vmatprep.subr.bf16.mxu0 %v11404_v33  ;;  %8121 = vmatprep.subr.bf16.mxu1 %v11407_v35  ;;  %v11488_v33 = vld [vmem:[%s15288_s1 + $0x1d84] ss:$16 sps:$4 sm:$0xff]   ;;  %v11491_v35 = vld [vmem:[%s15288_s1 + $0x1d8c] ss:$16 sps:$4 sm:$0xff]  }
 0x37b   :  { %7274 = vmatpush1.bf16.msra.mxu0 %v11402_v37  ;;  %8122 = vmatpush1.bf16.msra.mxu1 %v11405_v38  ;;  %v11486_v37 = vld [vmem:[%s15288_s1 + $0x1d80] ss:$16 sps:$4 sm:$0xff]   ;;  %v11489_v38 = vld [vmem:[%s15288_s1 + $0x1d88] ss:$16 sps:$4 sm:$0xff]  }
 0x37c   :  { %7275 = vmatprep.subr.bf16.mxu0 %v11410_v39  ;;  %8123 = vmatprep.subr.bf16.mxu1 %v11413_v40  ;;  %v11494_v39 = vld [vmem:[%s15288_s1 + $0x1da4] ss:$16 sps:$4 sm:$0xff]   ;;  %v11497_v40 = vld [vmem:[%s15288_s1 + $0x1dac] ss:$16 sps:$4 sm:$0xff]  }
 0x37f   :  { %7276 = vmatpush1.bf16.msra.mxu0 %v11408_v42  ;;  %8124 = vmatpush1.bf16.msra.mxu1 %v11411_v44  ;;  %v11492_v42 = vld [vmem:[%s15288_s1 + $0x1da0] ss:$16 sps:$4 sm:$0xff]   ;;  %v11495_v44 = vld [vmem:[%s15288_s1 + $0x1da8] ss:$16 sps:$4 sm:$0xff]  }
 0x380   :  { %7298 = vmatprep.subr.bf16.mxu0 %v11416_v41  ;;  %8146 = vmatprep.subr.bf16.mxu1 %v11419_v43  ;;  %v11500_v41 = vld [vmem:[%s15288_s1 + $0x1dc4] ss:$16 sps:$4 sm:$0xff]   ;;  %v11503_v43 = vld [vmem:[%s15288_s1 + $0x1dcc] ss:$16 sps:$4 sm:$0xff]  }
 0x382   :  { %7278 = vmatmul.mubr.bf16.vlgmr.msra.gmra.mrb[0].mxu0 %v8747_v45  ;;  %8126 = vmatmul.mubr.bf16.vlgmr.msra.gmra.mrb[0].mxu1 %v8747_v45  ;;  %v11498_v45 = vld [vmem:[%s15288_s1 + $0x1dc0] ss:$16 sps:$4 sm:$0xff]  }
 0x383   :  { %7299 = vmatpush1.bf16.msra.mxu0 %v11414_v48  ;;  %8147 = vmatpush1.bf16.msra.mxu1 %v11417_v51  ;;  %v11509_v48 = vld [vmem:[%s15288_s1 + $0x1dec] ss:$16 sps:$4 sm:$0xff]   ;;  %v11504_v51 = vld [vmem:[%s15288_s1 + $0x1de0] ss:$16 sps:$4 sm:$0xff]  }
 0x384   :  { %7300 = vmatprep.subr.bf16.mxu0 %v11422_v52  ;;  %8148 = vmatprep.subr.bf16.mxu1 %v11425_v49  ;;  %v11507_v52 = vld [vmem:[%s15288_s1 + $0x1de8] ss:$16 sps:$4 sm:$0xff]   ;;  %v11512_v49 = vld [vmem:[%s15288_s1 + $0x1e04] ss:$16 sps:$4 sm:$0xff]  }
 0x385   :  { %7287 = vmatprep.mubr.bf16.mxu0 %v8780_v50  ;;  %8135 = vmatprep.mubr.bf16.mxu1 %v8780_v50  ;;  %v11515_v50 = vld [vmem:[%s15288_s1 + $0x1e0c] ss:$16 sps:$4 sm:$0xff]  }
 0x387   :  { %7301 = vmatpush1.bf16.msra.mxu0 %v11420_v53  ;;  %8149 = vmatpush1.bf16.msra.mxu1 %v11423_v54  ;;  %v8749_v53 = vcombine.low %v14652_v60, %v14657_v57  ;;  %v74_v54 = vld [vmem:[%s15289_s0 + $0x170] sm:$0xff]  ;;  %v11521_v57 = vld [vmem:[%s15288_s1 + $0x1e2c] ss:$16 sps:$4 sm:$0xff]  }
 0x388   :  { %7302 = vmatprep.subr.bf16.mxu0 %v11428_v55  ;;  %8150 = vmatprep.subr.bf16.mxu1 %v11431_v56  ;;  %v90_v55 = vld [vmem:[%s15289_s0 + $0x1f0] sm:$0xff] }
 0x389   :  { %v11510_v56 = vld [vmem:[%s15288_s1 + $0x1e00] ss:$16 sps:$4 sm:$0xff]   ;;  %v11518_v60 = vld [vmem:[%s15288_s1 + $0x1e24] ss:$16 sps:$4 sm:$0xff]  }
 0x38a   :  { %7288 = vmatmul.mubr.bf16.gmra.mrb[4].mxu0 %v8779_v59  ;;  %8136 = vmatmul.mubr.bf16.gmra.mrb[4].mxu1 %v8779_v59  ;;  %v11513_v59 = vld [vmem:[%s15288_s1 + $0x1e08] ss:$16 sps:$4 sm:$0xff]  }
 0x38b   :  { %7303 = vmatpush1.bf16.msra.mxu0 %v11426_v58  ;;  %8151 = vmatpush1.bf16.msra.mxu1 %v11429_v61  ;;  %v8782_v58 = vcombine.high %v74_v54, %v90_v55  ;;  %v11516_v61 = vld [vmem:[%s15288_s1 + $0x1e20] ss:$16 sps:$4 sm:$0xff]  }
 0x38c   :  { %7304 = vmatprep.subr.bf16.mxu0 %v11434_v62  ;;  %8152 = vmatprep.subr.bf16.mxu1 %v11437_v63  ;;  %v11519_v62 = vld [vmem:[%s15288_s1 + $0x1e28] ss:$16 sps:$4 sm:$0xff]   ;;  %v11524_v63 = vld [vmem:[%s15288_s1 + $0x1e44] ss:$16 sps:$4 sm:$0xff]  }
 0x38d   :  { %7330 = vmatprep.mubr.bf16.mxu0 %v8750_v0  ;;  %8178 = vmatprep.mubr.bf16.mxu1 %v8750_v0  ;;  %v11527_v0 = vld [vmem:[%s15288_s1 + $0x1e4c] ss:$16 sps:$4 sm:$0xff]  }
 0x38f   :  { %7305 = vmatpush1.bf16.msra.mxu0 %v11432_v3  ;;  %8153 = vmatpush1.bf16.msra.mxu1 %v11435_v4  ;;  %v8781_v3 = vcombine.low %v74_v54, %v90_v55  ;;  %v14864_v4 = vld [vmem:[%s15289_s0 + $0x78] sm:$0xff]  ;;  %v11602_v55 = vld [vmem:[%s15288_s1 + $0x1fe4] ss:$16 sps:$4 sm:$0xff]  }
 0x390   :  { %7306 = vmatprep.subr.bf16.mxu0 %v11440_v1  ;;  %8154 = vmatprep.subr.bf16.mxu1 %v11443_v2  ;;  %v14869_v1 = vld [vmem:[%s15289_s0 + $0xf8] sm:$0xff]  ;;  %v11522_v2 = vld [vmem:[%s15288_s1 + $0x1e40] ss:$16 sps:$4 sm:$0xff]  }
 0x391   :  { %v11597_v54 = vld [vmem:[%s15288_s1 + $0x1fc8] ss:$16 sps:$4 sm:$0xff]  }
 0x393   :  { %7307 = vmatpush1.bf16.msra.mxu0 %v11438_v5  ;;  %8155 = vmatpush1.bf16.msra.mxu1 %v11441_v6  ;;  %v11525_v5 = vld [vmem:[%s15288_s1 + $0x1e48] ss:$16 sps:$4 sm:$0xff]   ;;  %v11530_v6 = vld [vmem:[%s15288_s1 + $0x1e64] ss:$16 sps:$4 sm:$0xff]  }
 0x394   :  { %7308 = vmatprep.subr.bf16.mxu0 %v11446_v7  ;;  %8156 = vmatprep.subr.bf16.mxu1 %v11449_v8  ;;  %v11533_v7 = vld [vmem:[%s15288_s1 + $0x1e6c] ss:$16 sps:$4 sm:$0xff]   ;;  %v8752_v8 = vcombine.high %v14864_v4, %v14869_v1 }
 0x397   :  { %7309 = vmatpush1.bf16.msra.mxu0 %v11444_v11  ;;  %8157 = vmatpush1.bf16.msra.mxu1 %v11447_v12  ;;  %v11528_v11 = vld [vmem:[%s15288_s1 + $0x1e60] ss:$16 sps:$4 sm:$0xff]   ;;  %v11531_v12 = vld [vmem:[%s15288_s1 + $0x1e68] ss:$16 sps:$4 sm:$0xff]  }
 0x398   :  { %7310 = vmatprep.subr.bf16.mxu0 %v11452_v9  ;;  %8158 = vmatprep.subr.bf16.mxu1 %v11455_v10  ;;  %v11536_v9 = vld [vmem:[%s15288_s1 + $0x1e84] ss:$16 sps:$4 sm:$0xff]   ;;  %v11539_v10 = vld [vmem:[%s15288_s1 + $0x1e8c] ss:$16 sps:$4 sm:$0xff]  }
 0x39b   :  { %7311 = vmatpush1.bf16.msra.mxu0 %v11450_v13  ;;  %8159 = vmatpush1.bf16.msra.mxu1 %v11453_v14  ;;  %v11534_v13 = vld [vmem:[%s15288_s1 + $0x1e80] ss:$16 sps:$4 sm:$0xff]   ;;  %v11537_v14 = vld [vmem:[%s15288_s1 + $0x1e88] ss:$16 sps:$4 sm:$0xff]  }
 0x39c   :  { %7312 = vmatprep.subr.bf16.mxu0 %v11458_v15  ;;  %8160 = vmatprep.subr.bf16.mxu1 %v11461_v16  ;;  %v11542_v15 = vld [vmem:[%s15288_s1 + $0x1ea4] ss:$16 sps:$4 sm:$0xff]   ;;  %v11545_v16 = vld [vmem:[%s15288_s1 + $0x1eac] ss:$16 sps:$4 sm:$0xff]  }
 0x39f   :  { %7313 = vmatpush1.bf16.msra.mxu0 %v11456_v19  ;;  %8161 = vmatpush1.bf16.msra.mxu1 %v11459_v17  ;;  %v11540_v19 = vld [vmem:[%s15288_s1 + $0x1ea0] ss:$16 sps:$4 sm:$0xff]   ;;  %v11543_v17 = vld [vmem:[%s15288_s1 + $0x1ea8] ss:$16 sps:$4 sm:$0xff]  }
 0x3a0   :  { %7314 = vmatprep.subr.bf16.mxu0 %v11464_v18  ;;  %8162 = vmatprep.subr.bf16.mxu1 %v11467_v20  ;;  %v11548_v18 = vld [vmem:[%s15288_s1 + $0x1ec4] ss:$16 sps:$4 sm:$0xff]   ;;  %v11551_v20 = vld [vmem:[%s15288_s1 + $0x1ecc] ss:$16 sps:$4 sm:$0xff]  }
 0x3a3   :  { %7315 = vmatpush1.bf16.msra.mxu0 %v11462_v21  ;;  %8163 = vmatpush1.bf16.msra.mxu1 %v11465_v22  ;;  %v11546_v21 = vld [vmem:[%s15288_s1 + $0x1ec0] ss:$16 sps:$4 sm:$0xff]   ;;  %v11549_v22 = vld [vmem:[%s15288_s1 + $0x1ec8] ss:$16 sps:$4 sm:$0xff]  }
 0x3a4   :  { %7316 = vmatprep.subr.bf16.mxu0 %v11470_v23  ;;  %8164 = vmatprep.subr.bf16.mxu1 %v11473_v24  ;;  %v11554_v23 = vld [vmem:[%s15288_s1 + $0x1ee4] ss:$16 sps:$4 sm:$0xff]   ;;  %v11557_v24 = vld [vmem:[%s15288_s1 + $0x1eec] ss:$16 sps:$4 sm:$0xff]  }
 0x3a7   :  { %7317 = vmatpush1.bf16.msra.mxu0 %v11468_v26  ;;  %8165 = vmatpush1.bf16.msra.mxu1 %v11471_v25  ;;  %v11552_v26 = vld [vmem:[%s15288_s1 + $0x1ee0] ss:$16 sps:$4 sm:$0xff]   ;;  %v11555_v25 = vld [vmem:[%s15288_s1 + $0x1ee8] ss:$16 sps:$4 sm:$0xff]  }
 0x3a8   :  { %7318 = vmatprep.subr.bf16.mxu0 %v11476_v27  ;;  %8166 = vmatprep.subr.bf16.mxu1 %v11479_v28  ;;  %v11560_v27 = vld [vmem:[%s15288_s1 + $0x1f04] ss:$16 sps:$4 sm:$0xff]   ;;  %v11563_v28 = vld [vmem:[%s15288_s1 + $0x1f0c] ss:$16 sps:$4 sm:$0xff]  }
 0x3ab   :  { %7319 = vmatpush1.bf16.msra.mxu0 %v11474_v29  ;;  %8167 = vmatpush1.bf16.msra.mxu1 %v11477_v30  ;;  %v11558_v29 = vld [vmem:[%s15288_s1 + $0x1f00] ss:$16 sps:$4 sm:$0xff]   ;;  %v11561_v30 = vld [vmem:[%s15288_s1 + $0x1f08] ss:$16 sps:$4 sm:$0xff]  }
 0x3ac   :  { %7320 = vmatprep.subr.bf16.mxu0 %v11482_v31  ;;  %8168 = vmatprep.subr.bf16.mxu1 %v11485_v32  ;;  %v11566_v31 = vld [vmem:[%s15288_s1 + $0x1f24] ss:$16 sps:$4 sm:$0xff]   ;;  %v11569_v32 = vld [vmem:[%s15288_s1 + $0x1f2c] ss:$16 sps:$4 sm:$0xff]  }
 0x3af   :  { %7321 = vmatpush1.bf16.msra.mxu0 %v11480_v34  ;;  %8169 = vmatpush1.bf16.msra.mxu1 %v11483_v36  ;;  %v11564_v34 = vld [vmem:[%s15288_s1 + $0x1f20] ss:$16 sps:$4 sm:$0xff]   ;;  %v11567_v36 = vld [vmem:[%s15288_s1 + $0x1f28] ss:$16 sps:$4 sm:$0xff]  }
 0x3b0   :  { %7322 = vmatprep.subr.bf16.mxu0 %v11488_v33  ;;  %8170 = vmatprep.subr.bf16.mxu1 %v11491_v35  ;;  %v11572_v33 = vld [vmem:[%s15288_s1 + $0x1f44] ss:$16 sps:$4 sm:$0xff]   ;;  %v11575_v35 = vld [vmem:[%s15288_s1 + $0x1f4c] ss:$16 sps:$4 sm:$0xff]  }
 0x3b3   :  { %7323 = vmatpush1.bf16.msra.mxu0 %v11486_v37  ;;  %8171 = vmatpush1.bf16.msra.mxu1 %v11489_v38  ;;  %v11570_v37 = vld [vmem:[%s15288_s1 + $0x1f40] ss:$16 sps:$4 sm:$0xff]   ;;  %v11573_v38 = vld [vmem:[%s15288_s1 + $0x1f48] ss:$16 sps:$4 sm:$0xff]  }
 0x3b4   :  { %7324 = vmatprep.subr.bf16.mxu0 %v11494_v39  ;;  %8172 = vmatprep.subr.bf16.mxu1 %v11497_v40  ;;  %v11578_v39 = vld [vmem:[%s15288_s1 + $0x1f64] ss:$16 sps:$4 sm:$0xff]   ;;  %v11581_v40 = vld [vmem:[%s15288_s1 + $0x1f6c] ss:$16 sps:$4 sm:$0xff]  }
 0x3b7   :  { %7325 = vmatpush1.bf16.msra.mxu0 %v11492_v42  ;;  %8173 = vmatpush1.bf16.msra.mxu1 %v11495_v44  ;;  %v11576_v42 = vld [vmem:[%s15288_s1 + $0x1f60] ss:$16 sps:$4 sm:$0xff]   ;;  %v11579_v44 = vld [vmem:[%s15288_s1 + $0x1f68] ss:$16 sps:$4 sm:$0xff]  }
 0x3b8   :  { %7326 = vmatprep.subr.bf16.mxu0 %v11500_v41  ;;  %8174 = vmatprep.subr.bf16.mxu1 %v11503_v43  ;;  %v11584_v41 = vld [vmem:[%s15288_s1 + $0x1f84] ss:$16 sps:$4 sm:$0xff]   ;;  %v11587_v43 = vld [vmem:[%s15288_s1 + $0x1f8c] ss:$16 sps:$4 sm:$0xff]  }
 0x3bb   :  { %7327 = vmatpush1.bf16.msra.mxu0 %v11498_v45  ;;  %8175 = vmatpush1.bf16.msra.mxu1 %v11501_v46  ;;  %v11582_v45 = vld [vmem:[%s15288_s1 + $0x1f80] ss:$16 sps:$4 sm:$0xff]   ;;  %v11585_v46 = vld [vmem:[%s15288_s1 + $0x1f88] ss:$16 sps:$4 sm:$0xff]  }
 0x3bc   :  { %7328 = vmatprep.subr.bf16.mxu0 %v11506_v47  ;;  %8176 = vmatprep.subr.bf16.mxu1 %v11509_v48  ;;  %v11590_v47 = vld [vmem:[%s15288_s1 + $0x1fa4] ss:$16 sps:$4 sm:$0xff]   ;;  %v11593_v48 = vld [vmem:[%s15288_s1 + $0x1fac] ss:$16 sps:$4 sm:$0xff]  }
 0x3bf   :  { %7329 = vmatpush1.bf16.msra.mxu0 %v11504_v51  ;;  %8177 = vmatpush1.bf16.msra.mxu1 %v11507_v52  ;;  %v11588_v51 = vld [vmem:[%s15288_s1 + $0x1fa0] ss:$16 sps:$4 sm:$0xff]   ;;  %v11591_v52 = vld [vmem:[%s15288_s1 + $0x1fa8] ss:$16 sps:$4 sm:$0xff]  }
 0x3c0   :  { %7351 = vmatprep.subr.bf16.mxu0 %v11512_v49  ;;  %8199 = vmatprep.subr.bf16.mxu1 %v11515_v50  ;;  %v11596_v49 = vld [vmem:[%s15288_s1 + $0x1fc4] ss:$16 sps:$4 sm:$0xff]   ;;  %v11599_v50 = vld [vmem:[%s15288_s1 + $0x1fcc] ss:$16 sps:$4 sm:$0xff]  }
 0x3c2   :  { %7331 = vmatmul.mubr.bf16.vlgmr.msra.gmra.mrb[0].mxu0 %v8749_v53  ;;  %8179 = vmatmul.mubr.bf16.vlgmr.msra.gmra.mrb[0].mxu1 %v8749_v53  ;;  %v11594_v53 = vld [vmem:[%s15288_s1 + $0x1fc0] ss:$16 sps:$4 sm:$0xff]  }
 0x3c3   :  { %7352 = vmatpush1.bf16.msra.mxu0 %v11510_v56  ;;  %8200 = vmatpush1.bf16.msra.mxu1 %v11513_v59  ;;  %v11605_v56 = vld [vmem:[%s15288_s1 + $0x1fec] ss:$16 sps:$4 sm:$0xff]   ;;  %v11600_v59 = vld [vmem:[%s15288_s1 + $0x1fe0] ss:$16 sps:$4 sm:$0xff]  }
 0x3c4   :  { %7353 = vmatprep.subr.bf16.mxu0 %v11518_v60  ;;  %8201 = vmatprep.subr.bf16.mxu1 %v11521_v57  ;;  %v11603_v60 = vld [vmem:[%s15288_s1 + $0x1fe8] ss:$16 sps:$4 sm:$0xff]  }
 0x3c5   :  { %7340 = vmatprep.mubr.bf16.mxu0 %v8782_v58  ;;  %8188 = vmatprep.mubr.bf16.mxu1 %v8782_v58  ;;  %v75_v57 = vld [vmem:[%s15289_s0 + $0x178] sm:$0xff] }
 0x3c6   :  { %v91_v58 = vld [vmem:[%s15289_s0 + $0x1f8] sm:$0xff] }
 0x3c7   :  { %7354 = vmatpush1.bf16.msra.mxu0 %v11516_v61  ;;  %8202 = vmatpush1.bf16.msra.mxu1 %v11519_v62  ;;  %v8751_v61 = vcombine.low %v14864_v4, %v14869_v1  ;;  %v8784_v62 = vcombine.high %v75_v57, %v91_v58 }
 0x3c8   :  { %7355 = vmatprep.subr.bf16.mxu0 %v11524_v63  ;;  %8203 = vmatprep.subr.bf16.mxu1 %v11527_v0  ;;  %v8783_v63 = vcombine.low %v75_v57, %v91_v58  ;;  %v11618_v0 = vmov 0.0  }
 0x3ca   :  { %7341 = vmatmul.mubr.bf16.gmra.mrb[4].mxu0 %v8781_v3  ;;  %8189 = vmatmul.mubr.bf16.gmra.mrb[4].mxu1 %v8781_v3 }
 0x3cb   :  { %7356 = vmatpush1.bf16.msra.mxu0 %v11522_v2  ;;  %8204 = vmatpush1.bf16.msra.mxu1 %v11525_v5 }
 0x3cc   :  { %7357 = vmatprep.subr.bf16.mxu0 %v11530_v6  ;;  %8205 = vmatprep.subr.bf16.mxu1 %v11533_v7 }
 0x3cd   :  { %7383 = vmatprep.mubr.bf16.mxu0 %v8752_v8  ;;  %8231 = vmatprep.mubr.bf16.mxu1 %v8752_v8 }
 0x3cf   :  { %7358 = vmatpush1.bf16.msra.mxu0 %v11528_v11  ;;  %8206 = vmatpush1.bf16.msra.mxu1 %v11531_v12 }
 0x3d0   :  { %7359 = vmatprep.subr.bf16.mxu0 %v11536_v9  ;;  %8207 = vmatprep.subr.bf16.mxu1 %v11539_v10 }
 0x3d3   :  { %7360 = vmatpush1.bf16.msra.mxu0 %v11534_v13  ;;  %8208 = vmatpush1.bf16.msra.mxu1 %v11537_v14 }
 0x3d4   :  { %7361 = vmatprep.subr.bf16.mxu0 %v11542_v15  ;;  %8209 = vmatprep.subr.bf16.mxu1 %v11545_v16 }
 0x3d7   :  { %7362 = vmatpush1.bf16.msra.mxu0 %v11540_v19  ;;  %8210 = vmatpush1.bf16.msra.mxu1 %v11543_v17 }
 0x3d8   :  { %7363 = vmatprep.subr.bf16.mxu0 %v11548_v18  ;;  %8211 = vmatprep.subr.bf16.mxu1 %v11551_v20 }
 0x3db   :  { %7364 = vmatpush1.bf16.msra.mxu0 %v11546_v21  ;;  %8212 = vmatpush1.bf16.msra.mxu1 %v11549_v22 }
 0x3dc   :  { %7365 = vmatprep.subr.bf16.mxu0 %v11554_v23  ;;  %8213 = vmatprep.subr.bf16.mxu1 %v11557_v24 }
 0x3df   :  { %7366 = vmatpush1.bf16.msra.mxu0 %v11552_v26  ;;  %8214 = vmatpush1.bf16.msra.mxu1 %v11555_v25 }
 0x3e0   :  { %7367 = vmatprep.subr.bf16.mxu0 %v11560_v27  ;;  %8215 = vmatprep.subr.bf16.mxu1 %v11563_v28 }
 0x3e3   :  { %7368 = vmatpush1.bf16.msra.mxu0 %v11558_v29  ;;  %8216 = vmatpush1.bf16.msra.mxu1 %v11561_v30 }
 0x3e4   :  { %7369 = vmatprep.subr.bf16.mxu0 %v11566_v31  ;;  %8217 = vmatprep.subr.bf16.mxu1 %v11569_v32 }
 0x3e7   :  { %7370 = vmatpush1.bf16.msra.mxu0 %v11564_v34  ;;  %8218 = vmatpush1.bf16.msra.mxu1 %v11567_v36 }
 0x3e8   :  { %7371 = vmatprep.subr.bf16.mxu0 %v11572_v33  ;;  %8219 = vmatprep.subr.bf16.mxu1 %v11575_v35 }
 0x3eb   :  { %7372 = vmatpush1.bf16.msra.mxu0 %v11570_v37  ;;  %8220 = vmatpush1.bf16.msra.mxu1 %v11573_v38 }
 0x3ec   :  { %7373 = vmatprep.subr.bf16.mxu0 %v11578_v39  ;;  %8221 = vmatprep.subr.bf16.mxu1 %v11581_v40 }
 0x3ef   :  { %7374 = vmatpush1.bf16.msra.mxu0 %v11576_v42  ;;  %8222 = vmatpush1.bf16.msra.mxu1 %v11579_v44 }
 0x3f0   :  { %7375 = vmatprep.subr.bf16.mxu0 %v11584_v41  ;;  %8223 = vmatprep.subr.bf16.mxu1 %v11587_v43 }
 0x3f3   :  { %7376 = vmatpush1.bf16.msra.mxu0 %v11582_v45  ;;  %8224 = vmatpush1.bf16.msra.mxu1 %v11585_v46 }
 0x3f4   :  { %7377 = vmatprep.subr.bf16.mxu0 %v11590_v47  ;;  %8225 = vmatprep.subr.bf16.mxu1 %v11593_v48 }
 0x3f7   :  { %7378 = vmatpush1.bf16.msra.mxu0 %v11588_v51  ;;  %8226 = vmatpush1.bf16.msra.mxu1 %v11591_v52 }
 0x3f8   :  { %7379 = vmatprep.subr.bf16.mxu0 %v11596_v49  ;;  %8227 = vmatprep.subr.bf16.mxu1 %v11599_v50 }
 0x3fb   :  { %7380 = vmatpush1.bf16.msra.mxu0 %v11594_v53  ;;  %8228 = vmatpush1.bf16.msra.mxu1 %v11597_v54 }
 0x3fc   :  { %7381 = vmatprep.subr.bf16.mxu0 %v11602_v55  ;;  %8229 = vmatprep.subr.bf16.mxu1 %v11605_v56 }
 0x3ff   :  { %7382 = vmatpush1.bf16.msra.mxu0 %v11600_v59  ;;  %8230 = vmatpush1.bf16.msra.mxu1 %v11603_v60 }
 0x402   :  { %7384 = vmatmul.mubr.bf16.vlgmr.msra.gmra.mrb[0].mxu0 %v8751_v61  ;;  %8232 = vmatmul.mubr.bf16.vlgmr.msra.gmra.mrb[0].mxu1 %v8751_v61 }
 0x403   :  { %7393 = vmatprep.mubr.bf16.mxu0 %v8784_v62  ;;  %8241 = vmatprep.mubr.bf16.mxu1 %v8784_v62 }
 0x40a   :  { %7394 = vmatmul.mubr.bf16.gmra.mrb[4].mxu0 %v8783_v63  ;;  %8242 = vmatmul.mubr.bf16.gmra.mrb[4].mxu1 %v8783_v63 }
 0x40b   :  { %8613 = vmatprep.mubr.f32.mxu0 %v11618_v0  ;;  %8684 = vmatprep.mubr.f32.mxu1 %v11618_v0 }
 0x4d5   :  { %v7385_v3 = vpop.f32.mrb[0].mxu0  ;;  %v8233_v2 = vpop.f32.mrb[0].mxu1 }
 0x4d6   :  { %v15043_v5 = vpop.f32.mrb[1].mxu0  ;;  %v15045_v6 = vpop.f32.mrb[1].mxu1 }
 0x4d7   :  { %v7389_v4 = vpop.f32.mrb[2].mxu0  ;;  %v8237_v1 = vpop.f32.mrb[2].mxu1 }
 0x4d8   :  { %v8252_v7 = vadd.f32 %v7389_v4, %v7385_v3  ;;  %v8270_v8 = vadd.f32 %v8237_v1, %v8233_v2  ;;  %v15047_v11 = vpop.f32.mrb[3].mxu0  ;;  %v15049_v12 = vpop.f32.mrb[3].mxu1 }
 0x4d9   :  { %v8261_v9 = vadd.f32 %v15047_v11, %v15043_v5  ;;  %v8279_v10 = vadd.f32 %v15049_v12, %v15045_v6 }
 0x4dd   :  { %v7395_v13 = vpop.f32.mrb[4].mxu0  ;;  %v8243_v14 = vpop.f32.mrb[4].mxu1 }
 0x4de   :  { %v8253_v15 = vadd.f32 %v8252_v7, %v7395_v13  ;;  %v8271_v16 = vadd.f32 %v8270_v8, %v8243_v14  ;;  %v7397_v19 = vpop.f32.mrb[5].mxu0  ;;  %v15055_v17 = vpop.f32.mrb[5].mxu1 }
 0x4df   :  { %v8262_v18 = vadd.f32 %v8261_v9, %v7397_v19  ;;  %v8280_v20 = vadd.f32 %v8279_v10, %v15055_v17  ;;  %v7399_v21 = vpop.f32.mrb[6].mxu0  ;;  %v8247_v22 = vpop.f32.mrb[6].mxu1 }
 0x4e0   :  { %v8254_v23 = vadd.f32 %v8253_v15, %v7399_v21  ;;  %v8272_v24 = vadd.f32 %v8271_v16, %v8247_v22  ;;  %v7401_v26 = vpop.f32.mrb[7].mxu0  ;;  %v8249_v25 = vpop.f32.mrb[7].mxu1 }
 0x4e1   :  { %v8263_v27 = vadd.f32 %v8262_v18, %v7401_v26  ;;  %v8281_v28 = vadd.f32 %v8280_v20, %v8249_v25 }
 0x4e2   :  { %v8255_v29 = vrot.slane %v8254_v23, 4  ;;  %v8273_v30 = vrot.slane %v8272_v24, 4 }
 0x4e3   :  { %v8264_v31 = vrot.slane %v8263_v27, 4  ;;  %v8282_v32 = vrot.slane %v8281_v28, 4 }
 0x4e4   :  { %v8256_v34 = vadd.f32 %v8255_v29, %v8254_v23  ;;  %v8274_v36 = vadd.f32 %v8273_v30, %v8272_v24 }
 0x4e5   :  { %v8265_v33 = vadd.f32 %v8264_v31, %v8263_v27  ;;  %v8283_v35 = vadd.f32 %v8282_v32, %v8281_v28 }
 0x4e6   :  { %v8257_v37 = vrot.slane %v8256_v34, 2  ;;  %v8275_v38 = vrot.slane %v8274_v36, 2 }
 0x4e7   :  { %v8266_v39 = vrot.slane %v8265_v33, 2  ;;  %v8284_v40 = vrot.slane %v8283_v35, 2 }
 0x4e8   :  { %v8258_v42 = vadd.f32 %v8257_v37, %v8256_v34  ;;  %v8276_v44 = vadd.f32 %v8275_v38, %v8274_v36 }
 0x4e9   :  { %v8267_v41 = vadd.f32 %v8266_v39, %v8265_v33  ;;  %v8285_v43 = vadd.f32 %v8284_v40, %v8283_v35 }
 0x4ea   :  { %v8259_v45 = vrot.slane %v8258_v42, 1  ;;  %v8277_v46 = vrot.slane %v8276_v44, 1 }
 0x4eb   :  { %v8268_v47 = vrot.slane %v8267_v41, 1  ;;  %v8286_v48 = vrot.slane %v8285_v43, 1 }
 0x4ec   :  { %v8260_v51 = vadd.f32 %v8259_v45, %v8258_v42  ;;  %v8278_v52 = vadd.f32 %v8277_v46, %v8276_v44 }
 0x4ed   :  { %v8269_v49 = vadd.f32 %v8268_v47, %v8267_v41  ;;  %v8287_v50 = vadd.f32 %v8286_v48, %v8285_v43 }
 0x4ee   :  { %v8288_v53 = vmul.f32 0.03125, %v8260_v51  ;;  %v8290_v54 = vmul.f32 0.03125, %v8278_v52 }
 0x4ef   :  { %v8289_v55 = vmul.f32 0.03125, %v8269_v49  ;;  %v8291_v56 = vmul.f32 0.03125, %v8287_v50 }
 0x4f0   :  { %v15058_v59 = vsub.f32 %v7385_v3, %v8288_v53  ;;  %v15060_v60 = vsub.f32 %v7389_v4, %v8288_v53  ;;  %v15062_v57 = vsub.f32 %v7395_v13, %v8288_v53  ;;  %v15064_v58 = vsub.f32 %v7399_v21, %v8288_v53 }
 0x4f1   :  { %v15066_v61 = vsub.f32 %v8233_v2, %v8290_v54  ;;  %v15068_v62 = vsub.f32 %v8237_v1, %v8290_v54  ;;  %v15070_v63 = vsub.f32 %v8243_v14, %v8290_v54  ;;  %v15072_v0 = vsub.f32 %v8247_v22, %v8290_v54 }
 0x4f2   :  { %v8308_v7 = vmul.f32 %v15058_v59, %v15058_v59  ;;  %v8312_v3 = vmul.f32 %v15060_v60, %v15060_v60  ;;  %v8316_v4 = vmul.f32 %v15062_v57, %v15062_v57  ;;  %v8320_v8 = vmul.f32 %v15064_v58, %v15064_v58 }
 0x4f3   :  { %v8310_v2 = vmul.f32 %v15066_v61, %v15066_v61  ;;  %v8314_v1 = vmul.f32 %v15068_v62, %v15068_v62  ;;  %v8318_v9 = vmul.f32 %v15070_v63, %v15070_v63  ;;  %v15089_v13 = vsub.f32 %v15043_v5, %v8289_v55 }
 0x4f4   :  { %v8324_v10 = vadd.f32 %v8312_v3, %v8308_v7  ;;  %v15092_v14 = vsub.f32 %v15047_v11, %v8289_v55  ;;  %v15094_v15 = vsub.f32 %v7397_v19, %v8289_v55  ;;  %v15096_v18 = vsub.f32 %v7401_v26, %v8289_v55 }
 0x4f5   :  { %v8342_v16 = vadd.f32 %v8314_v1, %v8310_v2  ;;  %v15099_v20 = vsub.f32 %v15045_v6, %v8291_v56  ;;  %v15102_v21 = vsub.f32 %v15049_v12, %v8291_v56  ;;  %v8322_v23 = vmul.f32 %v15072_v0, %v15072_v0 }
 0x4f6   :  { %v8325_v22 = vadd.f32 %v8324_v10, %v8316_v4  ;;  %v8309_v5 = vmul.f32 %v15089_v13, %v15089_v13  ;;  %v8313_v11 = vmul.f32 %v15092_v14, %v15092_v14  ;;  %v8317_v24 = vmul.f32 %v15094_v15, %v15094_v15 }
 0x4f7   :  { %v8343_v19 = vadd.f32 %v8342_v16, %v8318_v9  ;;  %v15113_v6 = vsub.f32 %v15055_v17, %v8291_v56  ;;  %v15115_v26 = vsub.f32 %v8249_v25, %v8291_v56  ;;  %v8311_v28 = vmul.f32 %v15099_v20, %v15099_v20 }
 0x4f8   :  { %v8326_v12 = vadd.f32 %v8325_v22, %v8320_v8  ;;  %v8333_v27 = vadd.f32 %v8313_v11, %v8309_v5  ;;  %v8315_v29 = vmul.f32 %v15102_v21, %v15102_v21  ;;  %v8321_v31 = vmul.f32 %v15096_v18, %v15096_v18 }
 0x4f9   :  { %v8344_v30 = vadd.f32 %v8343_v19, %v8322_v23  ;;  %v8319_v17 = vmul.f32 %v15113_v6, %v15113_v6  ;;  %v8323_v37 = vmul.f32 %v15115_v26, %v15115_v26  ;;  %v8390_v4 = vlaneseq }
 0x4fa   :  { %v8327_v32 = vrot.slane %v8326_v12, 4  ;;  %v8334_v34 = vadd.f32 %v8333_v27, %v8317_v24  ;;  %v8351_v36 = vadd.f32 %v8315_v29, %v8311_v28  ;;  %v8388_v27 = vld [vmem:[%s15290_s2] sm:$0xf] }
 0x4fb   :  { %v8345_v25 = vrot.slane %v8344_v30, 4  ;;  %v8391_v23 = vshrl.u32 %v8390_v4, 7  ;;  %v8426_v29 = vld [vmem:[%s15291_s3] sm:$0xf] }
 0x4fc   :  { %v8328_v33 = vadd.f32 %v8327_v32, %v8326_v12  ;;  %v8335_v35 = vadd.f32 %v8334_v34, %v8321_v31  ;;  %v8352_v38 = vadd.f32 %v8351_v36, %v8319_v17 }
 0x4fd   :  { %v8346_v39 = vadd.f32 %v8345_v25, %v8344_v30  ;;  %v8392_v24 = vsub.s32 0, %v8391_v23  ;;  %v8400_v12 = vsub.s32 2, %v8391_v23  ;;  %v8396_v28 = vsub.s32 1, %v8391_v23 }
 0x4fe   :  { %v8329_v40 = vrot.slane %v8328_v33, 2  ;;  %v8336_v42 = vrot.slane %v8335_v35, 4  ;;  %v8353_v44 = vadd.f32 %v8352_v38, %v8323_v37  ;;  %v8404_v32 = vsub.s32 3, %v8391_v23 }
 0x4ff   :  { %v8347_v41 = vrot.slane %v8346_v39, 2  ;;  %v8393_v30 = vrot.slane %v8388_v27, %v8392_v24  ;;  %v8401_v31 = vrot.slane %v8388_v27, %v8400_v12  ;;  %v15133_v17 = vrot.slane %v8426_v29, %v8392_v24 }
 0x500   :  { %v8330_v43 = vadd.f32 %v8329_v40, %v8328_v33  ;;  %v8337_v45 = vadd.f32 %v8336_v42, %v8335_v35  ;;  %v8354_v46 = vrot.slane %v8353_v44, 4  ;;  %v15135_v36 = vrot.slane %v8426_v29, %v8400_v12 }
 0x501   :  { %v8348_v47 = vadd.f32 %v8347_v41, %v8346_v39  ;;  %v15137_v25 = vrot.slane %v8388_v27, %v8396_v28  ;;  %v15139_v33 = vrot.slane %v8426_v29, %v8396_v28 }
 0x502   :  { %v8331_v48 = vrot.slane %v8330_v43, 1  ;;  %v8338_v51 = vrot.slane %v8337_v45, 2  ;;  %v8355_v52 = vadd.f32 %v8354_v46, %v8353_v44  ;;  %v15149_v46 = vrot.slane %v8388_v27, %v8404_v32  ;;  %v8512_v27 = vld [vmem:[%s15292_s4] sm:$0xff] }
 0x503   :  { %v8349_v49 = vrot.slane %v8348_v47, 1 }
 0x504   :  { %v8332_v50 = vadd.f32 %v8331_v48, %v8330_v43  ;;  %v8339_v53 = vadd.f32 %v8338_v51, %v8337_v45  ;;  %v8356_v54 = vrot.slane %v8355_v52, 2 }
 0x505   :  { %v8350_v55 = vadd.f32 %v8349_v49, %v8348_v47 }
 0x506   :  { %v8360_v56 = vmul.f32 0.03125, %v8332_v50  ;;  %v8340_v7 = vrot.slane %v8339_v53, 1  ;;  %v8357_v3 = vadd.f32 %v8356_v54, %v8355_v52 }
 0x507   :  { %v8362_v8 = vmul.f32 0.03125, %v8350_v55 }
 0x508   :  { %v8364_v2 = vadd.f32 1e-05, %v8360_v56  ;;  %v8341_v1 = vadd.f32 %v8340_v7, %v8339_v53  ;;  %v8358_v9 = vrot.slane %v8357_v3, 1 }
 0x509   :  { %v8366_v10 = vadd.f32 1e-05, %v8362_v8 }
 0x50a   :  { %11606 = vrsqrt.f32 %v8364_v2  ;;  %v8361_v16 = vmul.f32 0.03125, %v8341_v1  ;;  %v8359_v22 = vadd.f32 %v8358_v9, %v8357_v3 }
 0x50b   :  { %11608 = vrsqrt.f32 %v8366_v10 }
 0x50c   :  { %v8365_v5 = vadd.f32 1e-05, %v8361_v16  ;;  %v8363_v11 = vmul.f32 0.03125, %v8359_v22 }
 0x50e   :  { %11610 = vrsqrt.f32 %v8365_v5  ;;  %v8367_v19 = vadd.f32 1e-05, %v8363_v11 }
 0x510   :  { %11612 = vrsqrt.f32 %v8367_v19  ;;  %v8517_v19 = vld [vmem:[%s15292_s4 + $0x28] sm:$0xff] }
 0x514   :  { %v11607_v34 = vpop.eup %11606 }
 0x515   :  { %v11609_v35 = vpop.eup %11608  ;;  %v8372_v37 = vmul.f32 %v11607_v34, %v15058_v59  ;;  %v8376_v38 = vmul.f32 %v11607_v34, %v15060_v60  ;;  %v8380_v39 = vmul.f32 %v11607_v34, %v15062_v57  ;;  %v8384_v40 = vmul.f32 %v11607_v34, %v15064_v58 }
 0x516   :  { %v8374_v42 = vmul.f32 %v11609_v35, %v15066_v61  ;;  %v8378_v44 = vmul.f32 %v11609_v35, %v15068_v62  ;;  %v8382_v41 = vmul.f32 %v11609_v35, %v15070_v63  ;;  %v8386_v43 = vmul.f32 %v11609_v35, %v15072_v0 }
 0x517   :  { %v8422_v45 = vmul.f32 %v8393_v30, %v8384_v40  ;;  %v8410_v47 = vmul.f32 %v8393_v30, %v8372_v37  ;;  %v8414_v48 = vmul.f32 %v8393_v30, %v8376_v38  ;;  %v15151_v51 = vmul.f32 %v8393_v30, %v8380_v39  ;;  %v8515_v40 = vld [vmem:[%s15292_s4 + $0x18] sm:$0xff] }
 0x518   :  { %v11611_v59 = vpop.eup %11610  ;;  %v15153_v60 = vmul.f32 %v8401_v31, %v8382_v41  ;;  %v8424_v57 = vmul.f32 %v8401_v31, %v8386_v43  ;;  %v15155_v58 = vrot.slane %v8426_v29, %v8404_v32  ;;  %v8416_v7 = vmul.f32 %v8401_v31, %v8378_v44 }
 0x519   :  { %v15158_v61 = vadd.f32 %v15133_v17, %v8422_v45  ;;  %v15161_v62 = vmul.f32 %v11611_v59, %v15094_v15  ;;  %v8385_v63 = vmul.f32 %v11611_v59, %v15096_v18  ;;  %v8373_v0 = vmul.f32 %v11611_v59, %v15089_v13 }
 0x51a   :  { %v11613_v52 = vpop.eup %11612  ;;  %v15166_v49 = vadd.f32 %v15135_v36, %v8424_v57  ;;  %v8377_v50 = vmul.f32 %v11611_v59, %v15092_v14  ;;  %v8448_v53 = vadd.f32 %v15133_v17, %v8410_v47  ;;  %v8452_v54 = vadd.f32 %v15133_v17, %v8414_v48  ;;  %v8514_v57 = vld [vmem:[%s15292_s4 + $0x10] sm:$0xff] }
 0x51b   :  { %v8423_v55 = vmul.f32 %v15137_v25, %v8385_v63  ;;  %v15173_v56 = vmul.f32 %v11613_v52, %v15113_v6  ;;  %v8412_v15 = vmul.f32 %v8401_v31, %v8374_v42  ;;  %v15176_v18 = vmul.f32 0.2, %v15158_v61  ;;  %v8516_v31 = vld [vmem:[%s15292_s4 + $0x20] sm:$0xff]  ;;  %v8519_v42 = vld [vmem:[%s15292_s4 + $0x38] sm:$0xff] }
 0x51c   :  { %v15179_v13 = vmul.f32 0.2, %v15166_v49  ;;  %v8387_v3 = vmul.f32 %v11613_v52, %v15115_v26  ;;  %v8411_v14 = vmul.f32 %v15137_v25, %v8373_v0  ;;  %v8415_v8 = vmul.f32 %v15137_v25, %v8377_v50 }
 0x51d   :  { %v15184_v4 = vadd.f32 %v15139_v33, %v8423_v55  ;;  %v8375_v6 = vmul.f32 %v11613_v52, %v15099_v20  ;;  %v8379_v2 = vmul.f32 %v11613_v52, %v15102_v21  ;;  %vm8464_vm0 = vcmp.gt.f32.partialorder %v8448_v53, 0.0  ;;  %v8513_v21 = vld [vmem:[%s15292_s4 + $0x8] sm:$0xff]  ;;  %v8518_v55 = vld [vmem:[%s15292_s4 + $0x30] sm:$0xff] }
 0x51e   :  { %v8425_v1 = vmul.f32 %v15149_v46, %v8387_v3  ;;  %v8449_v9 = vadd.f32 %v15139_v33, %v8411_v14  ;;  %vm8468_vm1 = vcmp.gt.f32.partialorder %v8452_v54, 0.0  ;;  %v8453_v10 = vadd.f32 %v15139_v33, %v8415_v8 }
 0x51f   :  { %v8413_v26 = vmul.f32 %v15149_v46, %v8375_v6  ;;  %v8417_v16 = vmul.f32 %v15149_v46, %v8379_v2  ;;  %v8480_v22 = vmul.f32 0.2, %v8448_v53  ;;  %v8484_v5 = vmul.f32 0.2, %v8452_v54 }
 0x520   :  { %v15195_v23 = vadd.f32 %v15155_v58, %v8425_v1  ;;  %vm8465_vm2 = vcmp.gt.f32.partialorder %v8449_v9, 0.0  ;;  %v8481_v20 = vmul.f32 0.2, %v8449_v9  ;;  %vm8476_vm3 = vcmp.gt.f32.partialorder %v15158_v61, 0.0 }
 0x521   :  { %vm8469_vm4 = vcmp.gt.f32.partialorder %v8453_v10, 0.0  ;;  %v8485_v11 = vmul.f32 0.2, %v8453_v10  ;;  %v8451_v24 = vadd.f32 %v15155_v58, %v8413_v26  ;;  %v8455_v12 = vadd.f32 %v15155_v58, %v8417_v16  ;;  %v8527_v16 = vld [vmem:[%s15292_s4 + $0x78] sm:$0xff] }
 0x522   :  { %v8497_v28 = vsel %vm8465_vm2, %v8449_v9, %v8481_v20  ;;  %v8496_v29 = vsel %vm8464_vm0, %v8448_v53, %v8480_v22  ;;  %v8500_v30 = vsel %vm8468_vm1, %v8452_v54, %v8484_v5  ;;  %v8450_v32 = vadd.f32 %v15135_v36, %v8412_v15  ;;  %v8523_v5 = vld [vmem:[%s15292_s4 + $0x58] sm:$0xff] }
 0x523   :  { %v8501_v34 = vsel %vm8469_vm4, %v8453_v10, %v8485_v11  ;;  %v8529_v35 = vmul.f32 %v8513_v21, %v8497_v28  ;;  %vm8467_vm5 = vcmp.gt.f32.partialorder %v8451_v24, 0.0  ;;  %vm8471_vm6 = vcmp.gt.f32.partialorder %v8455_v12, 0.0 }
 0x524   :  { %v8533_v37 = vmul.f32 %v8517_v19, %v8501_v34  ;;  %v8483_v38 = vmul.f32 0.2, %v8451_v24  ;;  %v8487_v39 = vmul.f32 0.2, %v8455_v12  ;;  %v8528_v44 = vmul.f32 %v8512_v27, %v8496_v29  ;;  %v8526_v27 = vld [vmem:[%s15292_s4 + $0x70] sm:$0xff] }
 0x525   :  { %vm8478_vm7 = vcmp.gt.f32.partialorder %v15166_v49, 0.0  ;;  %v8532_v41 = vmul.f32 %v8516_v31, %v8500_v30  ;;  %v8454_v43 = vadd.f32 %v15135_v36, %v8416_v7  ;;  %vm8466_vm8 = vcmp.gt.f32.partialorder %v8450_v32, 0.0 }
 0x526   :  { %v8482_v45 = vmul.f32 0.2, %v8450_v32  ;;  %v9813_v47 = vpack.c.bf16 %v8533_v37, %v8529_v35  ;;  %v8499_v48 = vsel %vm8467_vm5, %v8451_v24, %v8483_v38  ;;  %v8503_v59 = vsel %vm8471_vm6, %v8455_v12, %v8487_v39  ;;  %v8544_v38 = vld [vmem:[%s15293_s5] sm:$0x3] }
 0x527   :  { %v8419_v63 = vmul.f32 %v15137_v25, %v15161_v62  ;;  %v8531_v0 = vmul.f32 %v8515_v40, %v8499_v48  ;;  %v8535_v52 = vmul.f32 %v8519_v42, %v8503_v59  ;;  %v9815_v50 = vpack.c.bf16 %v8532_v41, %v8528_v44  ;;  %v8525_v62 = vld [vmem:[%s15292_s4 + $0x68] sm:$0xff] }
 0x528   :  { %vm8470_vm9 = vcmp.gt.f32.partialorder %v8454_v43, 0.0  ;;  %9814 = vmatprep.subr.bf16.mxu0 %v9813_v47  ;;  %v8486_v53 = vmul.f32 0.2, %v8454_v43  ;;  %v8498_v54 = vsel %vm8466_vm8, %v8450_v32, %v8482_v45  ;;  %vm8477_vm10 = vcmp.gt.f32.partialorder %v15184_v4, 0.0  ;;  %v8522_v32 = vld [vmem:[%s15292_s4 + $0x50] sm:$0xff] }
 0x529   :  { %v8457_v15 = vadd.f32 %v15139_v33, %v8419_v63  ;;  %v9821_v7 = vpack.c.bf16 %v8535_v52, %v8531_v0  ;;  %9816 = vmatpush1.bf16.msra.mxu0 %v9815_v50  ;;  %v8530_v3 = vmul.f32 %v8514_v57, %v8498_v54  ;;  %v8493_v25 = vmul.f32 0.2, %v15184_v4  ;;  %v8521_v33 = vld [vmem:[%s15292_s4 + $0x48] sm:$0xff] }
 0x52a   :  { %v8421_v14 = vmul.f32 %v15149_v46, %v15173_v56  ;;  %v8502_v8 = vsel %vm8470_vm9, %v8454_v43, %v8486_v53  ;;  %vm8479_vm12 = vcmp.gt.f32.partialorder %v15195_v23, 0.0  ;;  %v8495_v10 = vmul.f32 0.2, %v15195_v23  ;;  %v8524_v46 = vld [vmem:[%s15292_s4 + $0x60] sm:$0xff] }
 0x52b   :  { %vm8473_vm11 = vcmp.gt.f32.partialorder %v8457_v15, 0.0  ;;  %v8489_v6 = vmul.f32 0.2, %v8457_v15  ;;  %9822 = vmatprep.subr.bf16.mxu1 %v9821_v7  ;;  %v8534_v2 = vmul.f32 %v8518_v55, %v8502_v8  ;;  %v8509_v1 = vsel %vm8477_vm10, %v15184_v4, %v8493_v25 }
 0x52c   :  { %v8459_v9 = vadd.f32 %v15155_v58, %v8421_v14  ;;  %v8541_v26 = vmul.f32 %v8525_v62, %v8509_v1  ;;  %v8456_v22 = vadd.f32 %v15133_v17, %v15151_v51  ;;  %v8508_v58 = vsel %vm8476_vm3, %v15158_v61, %v15176_v18  ;;  %v8520_v17 = vld [vmem:[%s15292_s4 + $0x40] sm:$0xff] }
 0x52d   :  { %v8505_v56 = vsel %vm8473_vm11, %v8457_v15, %v8489_v6  ;;  %v9823_v4 = vpack.c.bf16 %v8534_v2, %v8530_v3  ;;  %v8511_v11 = vsel %vm8479_vm12, %v15195_v23, %v8495_v10  ;;  %v8540_v51 = vmul.f32 %v8524_v46, %v8508_v58 }
 0x52e   :  { %v8537_v20 = vmul.f32 %v8521_v33, %v8505_v56  ;;  %vm8475_vm13 = vcmp.gt.f32.partialorder %v8459_v9, 0.0  ;;  %v8491_v21 = vmul.f32 0.2, %v8459_v9  ;;  %vm8472_vm14 = vcmp.gt.f32.partialorder %v8456_v22, 0.0 }
 0x52f   :  { %v8488_v19 = vmul.f32 0.2, %v8456_v22  ;;  %9824 = vmatpush1.bf16.msra.mxu1 %v9823_v4  ;;  %v8543_v24 = vmul.f32 %v8527_v16, %v8511_v11  ;;  %v8458_v12 = vadd.f32 %v15135_v36, %v15153_v60  ;;  %v8510_v29 = vsel %vm8478_vm7, %v15166_v49, %v15179_v13 }
 0x530   :  { %v9817_v61 = vpack.c.bf16 %v8541_v26, %v8537_v20  ;;  %v8507_v18 = vsel %vm8475_vm13, %v8459_v9, %v8491_v21  ;;  %v8542_v60 = vmul.f32 %v8526_v27, %v8510_v29  ;;  %vm8545_vm0 = vcmask 261120  }
 0x531   :  { %v8539_v28 = vmul.f32 %v8523_v5, %v8507_v18  ;;  %v8504_v23 = vsel %vm8472_vm14, %v8456_v22, %v8488_v19  ;;  %vm8474_vm15 = vcmp.gt.f32.partialorder %v8458_v12, 0.0  ;;  %v8490_v31 = vmul.f32 0.2, %v8458_v12 }
 0x532   :  { %9818 = vmatprep.subr.bf16.mxu0 %v9817_v61  ;;  %v8536_v30 = vmul.f32 %v8520_v17, %v8504_v23  ;;  %v12_v13 = vstv %s15294_s6  ;;  %vm8691_vm1 = vcmask 1041408   ;;  %vm8715_vm2 = vcmask 1024  }
 0x533   :  { %v9825_v36 = vpack.c.bf16 %v8543_v24, %v8539_v28  ;;  %v8506_v35 = vsel %vm8474_vm15, %v8458_v12, %v8490_v31  ;;  %13 = vst [vmem:[#allocation2] sm:$0x1] %v12_v13 }
 0x534   :  { %v9819_v34 = vpack.c.bf16 %v8540_v51, %v8536_v30  ;;  %v8538_v37 = vmul.f32 %v8522_v32, %v8506_v35 }
 0x535   :  { %9826 = vmatprep.subr.bf16.mxu1 %v9825_v36 }
 0x536   :  { %9820 = vmatpush1.bf16.msra.mxu0 %v9819_v34  ;;  %v9827_v49 = vpack.c.bf16 %v8542_v60, %v8538_v37 }
 0x538   :  { %9828 = vmatpush1.bf16.msra.mxu1 %v9827_v49 }
 0x539   :  { %9809 = vmatmul.mubr.msk.f32.vlgmr.msra.gmra.mrb[8].mxu0 %vm8545_vm0, %v8544_v38 }
 0x53a   :  { %v9811_v63 = vld [vmem:[#allocation2] ss:$0 sm:$0xff] }
 0x53b   :  { %9810 = vmatmul.mubr.msk.f32.vlgmr.msra.gmra.mrb[8].mxu1 %vm8545_vm0, %v8544_v38 }
 0x60c   :  { %v8615_v39 = vpop.f32.mrb[8].mxu0 }
 0x60d   :  { %v8692_v40 = vsel %vm8691_vm1, %v8615_v39, 0.0  ;;  %v8617_v42 = vpop.f32.mrb[9].mxu0 }
 0x60e   :  { %v8693_v44 = vsel %vm8691_vm1, %v8617_v42, 0.0  ;;  %v8686_v43 = vpop.f32.mrb[8].mxu1 }
 0x60f   :  { %v8694_v41 = vadd.f32 %v8693_v44, %v8692_v40  ;;  %v8695_v45 = vsel %vm8691_vm1, %v8686_v43, 0.0  ;;  %v8688_v47 = vpop.f32.mrb[9].mxu1 }
 0x610   :  { %v8697_v59 = vsel %vm8691_vm1, %v8688_v47, 0.0 }
 0x611   :  { %v8696_v48 = vadd.f32 %v8695_v45, %v8694_v41 }
 0x613   :  { %v8698_v57 = vadd.f32 %v8697_v59, %v8696_v48 }
 0x615   :  { %8699 = vadd.xlane.f32.xlu0 %v8698_v57 }
 0x6a2   :  { %v8700_v0 = vpop.xlane.xlu0 %8699 }
 0x6a3   :  { %v8708_v52 = vadd.f32 %v9811_v63, %v8700_v0 }
 0x6a5   :  { %v9812_v50 = vmul.f32 -1.442695, %v8708_v52 }
 0x6a7   :  { %11614 = vpow2.f32 %v9812_v50 }
 0x6b1   :  { %v11615_v53 = vpop.eup %11614 }
 0x6b2   :  { %v8712_v54 = vadd.f32 1.0, %v11615_v53 }
 0x6b4   :  { %11616 = vrcp.f32 %v8712_v54 }
 0x6be   :  { %v11617_v55 = vpop.eup %11616 }
 0x6bf   :  { %8716 = vst.msk [vmem:[%s15295_s7] sm:$0x3] %vm8715_vm2, %v11617_v55 }

</bundles_post_ra>
